<compile_context>
chip_gen: v7x
topology: tpu7x:2x2x1
jax: 0.10.0
libtpu: 0.0.40
codegen_flags: <defaults>
</compile_context>

<pallas_src>
import functools

import jax
import jax.numpy as jnp
from jax import lax
from jax.experimental import pallas as pl
from jax.experimental.pallas import tpu as pltpu


def _round_up(x, m):
    return ((x + m - 1) // m) * m


def _nlp_lstm_kernel(tok_ref, emb_ref, wih_ref, whh_ref, b_ref, wout_ref, bout_ref,
                     out_ref, x_ref, xg_ref, gsem,
                     *, seq_len, chunk, n_chunks, bt, batch_stride):
    """LSTM over one batch tile, with in-kernel embedding gather.

    tok_ref  : (S*Bp,)          int32  SMEM  flattened time-major token ids (scalar prefetch)
    emb_ref  : (V, E)           f32    HBM   embedding table (manual DMA gather)
    wih_ref  : (E, 4H)          bf16   VMEM  input->gate weights, gate order (i, f, o, g)
    whh_ref  : (H, 4H)          bf16   VMEM  hidden->gate weights, same gate order
    b_ref    : (1, 4H)          f32    VMEM  b_ih + b_hh, same gate order
    wout_ref : (H, Cp)          bf16   VMEM  classifier weight (lane-padded)
    bout_ref : (1, Cp)          f32    VMEM  classifier bias (-1e30 in padded lanes)
    out_ref  : (BT, Cp)         f32    VMEM  log-softmax class predictions for this tile
    x_ref    : (S*BT, E)        f32    VMEM  scratch: gathered embeddings for this tile
    xg_ref   : (2, CHUNK, BT, 4H) f32  VMEM  scratch: double-buffered gate projections
    gsem     : DMA sems (2,)                 per-chunk gather completion
    """
    H = whh_ref.shape[0]
    tile = pl.program_id(0)
    col0 = tile * bt                      # first (padded) global batch row of this tile

    pending = {}                          # chunk id -> list of in-flight copy descriptors

    def issue_chunk(c):
        # Gather the `chunk * bt` embedding rows of S-chunk c straight from HBM.
        sem = gsem.at[c % 2]
        copies = []
        for tl in range(chunk):
            t = c * chunk + tl
            for b in range(bt):
                tok = tok_ref[t * batch_stride + col0 + b]       # SMEM scalar read
                cp = pltpu.make_async_copy(
                    emb_ref.at[pl.ds(tok, 1), :],                # (1, E) HBM row
                    x_ref.at[pl.ds(t * bt + b, 1), :],           # (1, E) VMEM row
                    sem,
                )
                cp.start()
                copies.append(cp)
        pending[c] = copies

    def wait_chunk(c):
        for cp in pending.pop(c):
            cp.wait()

    def project(c, slot):
        # (CHUNK*BT, E) @ (E, 4H) on the MXU -- off the serial h-chain.
        xc = x_ref[pl.ds(c * chunk * bt, chunk * bt), :].astype(jnp.bfloat16)
        proj = (jnp.dot(xc, wih_ref[...], preferred_element_type=jnp.float32)
                + b_ref[...])                                    # (CHUNK*BT, 4H) f32
        for tl in range(chunk):
            xg_ref[slot, tl] = proj[tl * bt:(tl + 1) * bt, :]

    def lstm_step(slot, tl, h, c_state):
        # Only the h @ W_hh matmul + gate math is on the serial critical path.
        gates = xg_ref[slot, tl] + jnp.dot(
            h.astype(jnp.bfloat16), whh_ref[...],                # RHS pulled from VMEM
            preferred_element_type=jnp.float32)                  # (BT, 4H) f32
        ifo = jax.nn.sigmoid(gates[:, 0:3 * H])                  # one EUP pass: i, f, o
        i_g = ifo[:, 0:H]
        f_g = ifo[:, H:2 * H]
        o_g = ifo[:, 2 * H:3 * H]
        g_g = jnp.tanh(gates[:, 3 * H:4 * H])                    # one EUP pass: g
        c_new = f_g * c_state + i_g * g_g
        h_new = o_g * jnp.tanh(c_new)
        return h_new, c_new

    # ---- software pipeline over S-chunks -----------------------------------
    issue_chunk(0)
    if n_chunks > 1:
        issue_chunk(1)
    wait_chunk(0)
    project(0, 0)

    h = jnp.zeros((bt, H), jnp.float32)
    c = jnp.zeros((bt, H), jnp.float32)

    for k in range(n_chunks):
        cur = k % 2
        if k + 1 < n_chunks:
            wait_chunk(k + 1)
            if k + 2 < n_chunks:
                issue_chunk(k + 2)                 # gather runs 2 chunks ahead
            project(k + 1, 1 - cur)                # MXU work, interleaves with recurrence
        for tl in range(chunk):                    # bounded unroll (CHUNK steps)
            h, c = lstm_step(cur, tl, h, c)

    # ---- classifier on the last hidden state + stable log_softmax ----------
    # NOTE: logits/bout must stay f32 -- the -1e30 padded-class bias would become -inf
    # (and shifted/lse could NaN) if this block were ever cast to bf16.
    logits = (jnp.dot(h.astype(jnp.bfloat16), wout_ref[...],
                      preferred_element_type=jnp.float32)
              + bout_ref[...])                                   # (BT, Cp) f32
    m = jnp.max(logits, axis=-1, keepdims=True)
    shifted = logits - m
    lse = jnp.log(jnp.sum(jnp.exp(shifted), axis=-1, keepdims=True))
    out_ref[...] = shifted - lse


def prepare_params(params):
    """One-time parameter prep: transposes, gate reorder (i,f,g,o)->(i,f,o,g), pads, casts."""
    H = params["w_hh"].shape[1]
    C, _ = params["w_out"].shape
    Cp = max(128, _round_up(C, 128))
    # torch LSTM gate order is (i, f, g, o); reorder columns to (i, f, o, g) so one
    # contiguous sigmoid covers [0:3H) in the kernel.
    perm = jnp.concatenate([jnp.arange(0, 2 * H),
                            jnp.arange(3 * H, 4 * H),
                            jnp.arange(2 * H, 3 * H)])
    wih_t = jnp.transpose(params["w_ih"])[:, perm].astype(jnp.bfloat16)      # (E, 4H)
    whh_t = jnp.transpose(params["w_hh"])[:, perm].astype(jnp.bfloat16)      # (H, 4H)
    b_all = (params["b_ih"] + params["b_hh"])[perm].reshape(1, 4 * H).astype(jnp.float32)
    wout_t = jnp.pad(jnp.transpose(params["w_out"]),
                     ((0, 0), (0, Cp - C))).astype(jnp.bfloat16)             # (H, Cp)
    bout = jnp.pad(params["b_out"].astype(jnp.float32), (0, Cp - C),
                   constant_values=-1e30).reshape(1, Cp)
    return {
        "emb": params["embedding"],        # stays f32 in HBM; rows gathered in-kernel
        "wih_t": wih_t, "whh_t": whh_t, "b_all": b_all,
        "wout_t": wout_t, "bout": bout,
        "hidden": int(H), "emb_dim": int(params["embedding"].shape[1]),
        "n_classes": int(C), "n_classes_pad": int(Cp),
    }


def nlp_lstm_forward(tokens, prep):
    """tokens: (B, S) int32. Returns (B, num_classes) log-probabilities."""
    B, S = tokens.shape
    H = prep["hidden"]
    E = prep["emb_dim"]
    Cp = prep["n_classes_pad"]

    BT = 8                                         # sublane-multiple batch tile
    n_tiles = (B + BT - 1) // BT
    Bp = n_tiles * BT
    chunk = 4 if S % 4 == 0 else (2 if S % 2 == 0 else 1)
    n_chunks = S // chunk

    # Pad batch with token id 0 (valid row), flatten time-major for SMEM prefetch.
    tok = jnp.pad(tokens.astype(jnp.int32), ((0, Bp - B), (0, 0)))   # (Bp, S)
    tok = jnp.transpose(tok).reshape(S * Bp)                          # (S*Bp,)

    grid_spec = pltpu.PrefetchScalarGridSpec(
        num_scalar_prefetch=1,
        grid=(n_tiles,),
        in_specs=[
            pl.BlockSpec(memory_space=pl.ANY),                        # embedding table (HBM)
            pl.BlockSpec((E, 4 * H), lambda i, tok: (0, 0)),          # wih_t
            pl.BlockSpec((H, 4 * H), lambda i, tok: (0, 0)),          # whh_t
            pl.BlockSpec((1, 4 * H), lambda i, tok: (0, 0)),          # b_all
            pl.BlockSpec((H, Cp), lambda i, tok: (0, 0)),             # wout_t
            pl.BlockSpec((1, Cp), lambda i, tok: (0, 0)),             # bout
        ],
        out_specs=pl.BlockSpec((BT, Cp), lambda i, tok: (i, 0)),
        scratch_shapes=[
            pltpu.VMEM((S * BT, E), jnp.float32),                     # gathered embeddings
            pltpu.VMEM((2, chunk, BT, 4 * H), jnp.float32),           # projections (2 slots)
            pltpu.SemaphoreType.DMA((2,)),                            # per-chunk gather sems
        ],
    )

    out_pad = pl.pallas_call(
        functools.partial(_nlp_lstm_kernel, seq_len=S, chunk=chunk,
                          n_chunks=n_chunks, bt=BT, batch_stride=Bp),
        out_shape=jax.ShapeDtypeStruct((Bp, Cp), jnp.float32),
        grid_spec=grid_spec,
        compiler_params=pltpu.CompilerParams(
            dimension_semantics=("parallel",),          # batch tiles across TCs (v7x)
            vmem_limit_bytes=32 * 1024 * 1024),         # explicit for v5e's 16 MiB default
    )(tok, prep["emb"], prep["wih_t"], prep["whh_t"], prep["b_all"],
      prep["wout_t"], prep["bout"])

    return out_pad[:B, :prep["n_classes"]]


def _reference_forward(tokens, params):
    """Pure-JAX f32 reference matching torch.nn.LSTM semantics (gate order i,f,g,o)."""
    emb = jnp.take(params["embedding"], tokens, axis=0)   # (B, S, E)
    H = params["w_hh"].shape[1]
    w_ih_t = params["w_ih"].T
    w_hh_t = params["w_hh"].T
    b = params["b_ih"] + params["b_hh"]

    def step(carry, x_t):
        h, c = carry
        gates = x_t @ w_ih_t + h @ w_hh_t + b
        i = jax.nn.sigmoid(gates[:, 0:H])
        f = jax.nn.sigmoid(gates[:, H:2 * H])
        g = jnp.tanh(gates[:, 2 * H:3 * H])
        o = jax.nn.sigmoid(gates[:, 3 * H:4 * H])
        c = f * c + i * g
        h = o * jnp.tanh(c)
        return (h, c), None

    B = tokens.shape[0]
    h0 = jnp.zeros((B, H), jnp.float32)
    c0 = jnp.zeros((B, H), jnp.float32)
    (h_last, _), _ = lax.scan(step, (h0, c0), jnp.transpose(emb, (1, 0, 2)))
    logits = h_last @ params["w_out"].T + params["b_out"]
    return jax.nn.log_softmax(logits, axis=1)


def init_params(key, vocab_size=1000, embedding_dim=128, hidden_dim=128,
                num_classes=2):
    ks = jax.random.split(key, 7)
    scale = 1.0 / jnp.sqrt(hidden_dim)
    return {
        "embedding": jax.random.normal(ks[0], (vocab_size, embedding_dim),
                                       jnp.float32),
        "w_ih": jax.random.uniform(ks[1], (4 * hidden_dim, embedding_dim),
                                   jnp.float32, -scale, scale),
        "w_hh": jax.random.uniform(ks[2], (4 * hidden_dim, hidden_dim),
                                   jnp.float32, -scale, scale),
        "b_ih": jax.random.uniform(ks[3], (4 * hidden_dim,), jnp.float32,
                                   -scale, scale),
        "b_hh": jax.random.uniform(ks[4], (4 * hidden_dim,), jnp.float32,
                                   -scale, scale),
        "w_out": jax.random.uniform(ks[5], (num_classes, hidden_dim),
                                    jnp.float32, -scale, scale),
        "b_out": jax.random.uniform(ks[6], (num_classes,), jnp.float32,
                                    -scale, scale),
    }


if __name__ == "__main__":
    key = jax.random.PRNGKey(0)
    pkey, tkey = jax.random.split(key)

    VOCAB, EMB, HID, NCLS = 1000, 128, 128, 2
    BATCH, SEQ = 2, 8

    params = init_params(pkey, VOCAB, EMB, HID, NCLS)
    tokens = jax.random.randint(tkey, (BATCH, SEQ), 0, VOCAB, dtype=jnp.int32)

    # TODO(synk): the torch forward's unused task-index argument `t` has no effect and is
    #             therefore not modeled.
    prep = prepare_params(params)
    out = jax.block_until_ready(nlp_lstm_forward(tokens, prep))
    ref = jax.block_until_ready(_reference_forward(tokens, params))

    assert out.shape == (BATCH, NCLS)
    # bf16 MXU operands (f32 accumulation / gate math) vs. pure-f32 reference.
    assert jnp.allclose(out, ref, rtol=2e-2, atol=2e-2), "mismatch vs reference"

    print("KERNEL_OK")
</pallas_src>

<mosaic_0001>
module attributes {stable_mosaic.version = 11 : i64} {
  func.func @_nlp_lstm_kernel(%arg0: i32, %arg1: memref<64xi32, #tpu.memory_space<smem>>, %arg2: memref<1000x128xf32, #tpu.memory_space<any>>, %arg3: memref<128x512xbf16, #tpu.memory_space<vmem>>, %arg4: memref<128x512xbf16, #tpu.memory_space<vmem>>, %arg5: memref<1x512xf32, #tpu.memory_space<vmem>>, %arg6: memref<128x128xbf16, #tpu.memory_space<vmem>>, %arg7: memref<1x128xf32, #tpu.memory_space<vmem>>, %arg8: memref<8x128xf32, #tpu.memory_space<vmem>>, %arg9: memref<64x128xf32, #tpu.memory_space<vmem>>, %arg10: memref<2x4x8x512xf32, #tpu.memory_space<vmem>>, %arg11: memref<2x!tpu.dma_semaphore, #tpu.memory_space<semaphore_mem>>) attributes {dimension_semantics = [#tpu.dimension_semantics<parallel>], iteration_bounds = array<i64: 1>, scalar_prefetch = 1 : i64, scratch_operands = 3 : i64, tpu.core_type = #tpu.core_type<tc>, window_params = [{}, {pipeline_mode = #tpu.pipeline_mode<synchronous>, transform_indices = @transform_1, window_bounds = array<i64: 128, 512>}, {pipeline_mode = #tpu.pipeline_mode<synchronous>, transform_indices = @transform_2, window_bounds = array<i64: 128, 512>}, {pipeline_mode = #tpu.pipeline_mode<synchronous>, transform_indices = @transform_3, window_bounds = array<i64: 1, 512>}, {pipeline_mode = #tpu.pipeline_mode<synchronous>, transform_indices = @transform_4, window_bounds = array<i64: 128, 128>}, {pipeline_mode = #tpu.pipeline_mode<synchronous>, transform_indices = @transform_5, window_bounds = array<i64: 1, 128>}, {transform_indices = @transform_6, window_bounds = array<i64: 8, 128>}]} {
    %c8_i32 = arith.constant 8 : i32
    %0 = arith.muli %arg0, %c8_i32 : i32
    %c0_i32 = arith.constant 0 : i32
    %1 = arith.addi %c0_i32, %0 : i32
    %c0_i32_0 = arith.constant 0 : i32
    %2 = arith.addi %1, %c0_i32_0 : i32
    %3 = arith.index_cast %2 : i32 to index
    %4 = memref.load %arg1[%3] : memref<64xi32, #tpu.memory_space<smem>>
    %c0_i32_1 = arith.constant 0 : i32
    %c0_i32_2 = arith.constant 0 : i32
    %5 = tpu.memref_slice %arg2[%4, %c0_i32_2] : memref<1000x128xf32, #tpu.memory_space<any>> -> memref<1x128xf32, #tpu.memory_space<any>>
    %c0_i32_3 = arith.constant 0 : i32
    %c0_i32_4 = arith.constant 0 : i32
    %6 = tpu.memref_slice %arg9[%c0_i32_3, %c0_i32_4] : memref<64x128xf32, #tpu.memory_space<vmem>> -> memref<1x128xf32, #tpu.memory_space<vmem>>
    %7 = tpu.memref_slice %arg11[%c0_i32_1] : memref<2x!tpu.dma_semaphore, #tpu.memory_space<semaphore_mem>> -> memref<1x!tpu.dma_semaphore, #tpu.memory_space<semaphore_mem>>
    %8 = tpu.memref_squeeze %7 : memref<1x!tpu.dma_semaphore, #tpu.memory_space<semaphore_mem>> -> memref<!tpu.dma_semaphore, #tpu.memory_space<semaphore_mem>>
    tpu.enqueue_dma source(%5 : memref<1x128xf32, #tpu.memory_space<any>>) target(%6 : memref<1x128xf32, #tpu.memory_space<vmem>>) target_semaphore(%8 : memref<!tpu.dma_semaphore, #tpu.memory_space<semaphore_mem>>)
    %c0_i32_5 = arith.constant 0 : i32
    %9 = arith.addi %c0_i32_5, %0 : i32
    %c1_i32 = arith.constant 1 : i32
    %10 = arith.addi %9, %c1_i32 : i32
    %11 = arith.index_cast %10 : i32 to index
    %12 = memref.load %arg1[%11] : memref<64xi32, #tpu.memory_space<smem>>
    %c0_i32_6 = arith.constant 0 : i32
    %c0_i32_7 = arith.constant 0 : i32
    %13 = tpu.memref_slice %arg2[%12, %c0_i32_7] : memref<1000x128xf32, #tpu.memory_space<any>> -> memref<1x128xf32, #tpu.memory_space<any>>
    %c1_i32_8 = arith.constant 1 : i32
    %c0_i32_9 = arith.constant 0 : i32
    %14 = tpu.memref_slice %arg9[%c1_i32_8, %c0_i32_9] : memref<64x128xf32, #tpu.memory_space<vmem>> -> memref<1x128xf32, #tpu.memory_space<vmem>>
    %15 = tpu.memref_slice %arg11[%c0_i32_6] : memref<2x!tpu.dma_semaphore, #tpu.memory_space<semaphore_mem>> -> memref<1x!tpu.dma_semaphore, #tpu.memory_space<semaphore_mem>>
    %16 = tpu.memref_squeeze %15 : memref<1x!tpu.dma_semaphore, #tpu.memory_space<semaphore_mem>> -> memref<!tpu.dma_semaphore, #tpu.memory_space<semaphore_mem>>
    tpu.enqueue_dma source(%13 : memref<1x128xf32, #tpu.memory_space<any>>) target(%14 : memref<1x128xf32, #tpu.memory_space<vmem>>) target_semaphore(%16 : memref<!tpu.dma_semaphore, #tpu.memory_space<semaphore_mem>>)
    %c0_i32_10 = arith.constant 0 : i32
    %17 = arith.addi %c0_i32_10, %0 : i32
    %c2_i32 = arith.constant 2 : i32
    %18 = arith.addi %17, %c2_i32 : i32
    %19 = arith.index_cast %18 : i32 to index
    %20 = memref.load %arg1[%19] : memref<64xi32, #tpu.memory_space<smem>>
    %c0_i32_11 = arith.constant 0 : i32
    %c0_i32_12 = arith.constant 0 : i32
    %21 = tpu.memref_slice %arg2[%20, %c0_i32_12] : memref<1000x128xf32, #tpu.memory_space<any>> -> memref<1x128xf32, #tpu.memory_space<any>>
    %c2_i32_13 = arith.constant 2 : i32
    %c0_i32_14 = arith.constant 0 : i32
    %22 = tpu.memref_slice %arg9[%c2_i32_13, %c0_i32_14] : memref<64x128xf32, #tpu.memory_space<vmem>> -> memref<1x128xf32, #tpu.memory_space<vmem>>
    %23 = tpu.memref_slice %arg11[%c0_i32_11] : memref<2x!tpu.dma_semaphore, #tpu.memory_space<semaphore_mem>> -> memref<1x!tpu.dma_semaphore, #tpu.memory_space<semaphore_mem>>
    %24 = tpu.memref_squeeze %23 : memref<1x!tpu.dma_semaphore, #tpu.memory_space<semaphore_mem>> -> memref<!tpu.dma_semaphore, #tpu.memory_space<semaphore_mem>>
    tpu.enqueue_dma source(%21 : memref<1x128xf32, #tpu.memory_space<any>>) target(%22 : memref<1x128xf32, #tpu.memory_space<vmem>>) target_semaphore(%24 : memref<!tpu.dma_semaphore, #tpu.memory_space<semaphore_mem>>)
    %c0_i32_15 = arith.constant 0 : i32
    %25 = arith.addi %c0_i32_15, %0 : i32
    %c3_i32 = arith.constant 3 : i32
    %26 = arith.addi %25, %c3_i32 : i32
    %27 = arith.index_cast %26 : i32 to index
    %28 = memref.load %arg1[%27] : memref<64xi32, #tpu.memory_space<smem>>
    %c0_i32_16 = arith.constant 0 : i32
    %c0_i32_17 = arith.constant 0 : i32
    %29 = tpu.memref_slice %arg2[%28, %c0_i32_17] : memref<1000x128xf32, #tpu.memory_space<any>> -> memref<1x128xf32, #tpu.memory_space<any>>
    %c3_i32_18 = arith.constant 3 : i32
    %c0_i32_19 = arith.constant 0 : i32
    %30 = tpu.memref_slice %arg9[%c3_i32_18, %c0_i32_19] : memref<64x128xf32, #tpu.memory_space<vmem>> -> memref<1x128xf32, #tpu.memory_space<vmem>>
    %31 = tpu.memref_slice %arg11[%c0_i32_16] : memref<2x!tpu.dma_semaphore, #tpu.memory_space<semaphore_mem>> -> memref<1x!tpu.dma_semaphore, #tpu.memory_space<semaphore_mem>>
    %32 = tpu.memref_squeeze %31 : memref<1x!tpu.dma_semaphore, #tpu.memory_space<semaphore_mem>> -> memref<!tpu.dma_semaphore, #tpu.memory_space<semaphore_mem>>
    tpu.enqueue_dma source(%29 : memref<1x128xf32, #tpu.memory_space<any>>) target(%30 : memref<1x128xf32, #tpu.memory_space<vmem>>) target_semaphore(%32 : memref<!tpu.dma_semaphore, #tpu.memory_space<semaphore_mem>>)
    %c0_i32_20 = arith.constant 0 : i32
    %33 = arith.addi %c0_i32_20, %0 : i32
    %c4_i32 = arith.constant 4 : i32
    %34 = arith.addi %33, %c4_i32 : i32
    %35 = arith.index_cast %34 : i32 to index
    %36 = memref.load %arg1[%35] : memref<64xi32, #tpu.memory_space<smem>>
    %c0_i32_21 = arith.constant 0 : i32
    %c0_i32_22 = arith.constant 0 : i32
    %37 = tpu.memref_slice %arg2[%36, %c0_i32_22] : memref<1000x128xf32, #tpu.memory_space<any>> -> memref<1x128xf32, #tpu.memory_space<any>>
    %c4_i32_23 = arith.constant 4 : i32
    %c0_i32_24 = arith.constant 0 : i32
    %38 = tpu.memref_slice %arg9[%c4_i32_23, %c0_i32_24] : memref<64x128xf32, #tpu.memory_space<vmem>> -> memref<1x128xf32, #tpu.memory_space<vmem>>
    %39 = tpu.memref_slice %arg11[%c0_i32_21] : memref<2x!tpu.dma_semaphore, #tpu.memory_space<semaphore_mem>> -> memref<1x!tpu.dma_semaphore, #tpu.memory_space<semaphore_mem>>
    %40 = tpu.memref_squeeze %39 : memref<1x!tpu.dma_semaphore, #tpu.memory_space<semaphore_mem>> -> memref<!tpu.dma_semaphore, #tpu.memory_space<semaphore_mem>>
    tpu.enqueue_dma source(%37 : memref<1x128xf32, #tpu.memory_space<any>>) target(%38 : memref<1x128xf32, #tpu.memory_space<vmem>>) target_semaphore(%40 : memref<!tpu.dma_semaphore, #tpu.memory_space<semaphore_mem>>)
    %c0_i32_25 = arith.constant 0 : i32
    %41 = arith.addi %c0_i32_25, %0 : i32
    %c5_i32 = arith.constant 5 : i32
    %42 = arith.addi %41, %c5_i32 : i32
    %43 = arith.index_cast %42 : i32 to index
    %44 = memref.load %arg1[%43] : memref<64xi32, #tpu.memory_space<smem>>
    %c0_i32_26 = arith.constant 0 : i32
    %c0_i32_27 = arith.constant 0 : i32
    %45 = tpu.memref_slice %arg2[%44, %c0_i32_27] : memref<1000x128xf32, #tpu.memory_space<any>> -> memref<1x128xf32, #tpu.memory_space<any>>
    %c5_i32_28 = arith.constant 5 : i32
    %c0_i32_29 = arith.constant 0 : i32
    %46 = tpu.memref_slice %arg9[%c5_i32_28, %c0_i32_29] : memref<64x128xf32, #tpu.memory_space<vmem>> -> memref<1x128xf32, #tpu.memory_space<vmem>>
    %47 = tpu.memref_slice %arg11[%c0_i32_26] : memref<2x!tpu.dma_semaphore, #tpu.memory_space<semaphore_mem>> -> memref<1x!tpu.dma_semaphore, #tpu.memory_space<semaphore_mem>>
    %48 = tpu.memref_squeeze %47 : memref<1x!tpu.dma_semaphore, #tpu.memory_space<semaphore_mem>> -> memref<!tpu.dma_semaphore, #tpu.memory_space<semaphore_mem>>
    tpu.enqueue_dma source(%45 : memref<1x128xf32, #tpu.memory_space<any>>) target(%46 : memref<1x128xf32, #tpu.memory_space<vmem>>) target_semaphore(%48 : memref<!tpu.dma_semaphore, #tpu.memory_space<semaphore_mem>>)
    %c0_i32_30 = arith.constant 0 : i32
    %49 = arith.addi %c0_i32_30, %0 : i32
    %c6_i32 = arith.constant 6 : i32
    %50 = arith.addi %49, %c6_i32 : i32
    %51 = arith.index_cast %50 : i32 to index
    %52 = memref.load %arg1[%51] : memref<64xi32, #tpu.memory_space<smem>>
    %c0_i32_31 = arith.constant 0 : i32
    %c0_i32_32 = arith.constant 0 : i32
    %53 = tpu.memref_slice %arg2[%52, %c0_i32_32] : memref<1000x128xf32, #tpu.memory_space<any>> -> memref<1x128xf32, #tpu.memory_space<any>>
    %c6_i32_33 = arith.constant 6 : i32
    %c0_i32_34 = arith.constant 0 : i32
    %54 = tpu.memref_slice %arg9[%c6_i32_33, %c0_i32_34] : memref<64x128xf32, #tpu.memory_space<vmem>> -> memref<1x128xf32, #tpu.memory_space<vmem>>
    %55 = tpu.memref_slice %arg11[%c0_i32_31] : memref<2x!tpu.dma_semaphore, #tpu.memory_space<semaphore_mem>> -> memref<1x!tpu.dma_semaphore, #tpu.memory_space<semaphore_mem>>
    %56 = tpu.memref_squeeze %55 : memref<1x!tpu.dma_semaphore, #tpu.memory_space<semaphore_mem>> -> memref<!tpu.dma_semaphore, #tpu.memory_space<semaphore_mem>>
    tpu.enqueue_dma source(%53 : memref<1x128xf32, #tpu.memory_space<any>>) target(%54 : memref<1x128xf32, #tpu.memory_space<vmem>>) target_semaphore(%56 : memref<!tpu.dma_semaphore, #tpu.memory_space<semaphore_mem>>)
    %c0_i32_35 = arith.constant 0 : i32
    %57 = arith.addi %c0_i32_35, %0 : i32
    %c7_i32 = arith.constant 7 : i32
    %58 = arith.addi %57, %c7_i32 : i32
    %59 = arith.index_cast %58 : i32 to index
    %60 = memref.load %arg1[%59] : memref<64xi32, #tpu.memory_space<smem>>
    %c0_i32_36 = arith.constant 0 : i32
    %c0_i32_37 = arith.constant 0 : i32
    %61 = tpu.memref_slice %arg2[%60, %c0_i32_37] : memref<1000x128xf32, #tpu.memory_space<any>> -> memref<1x128xf32, #tpu.memory_space<any>>
    %c7_i32_38 = arith.constant 7 : i32
    %c0_i32_39 = arith.constant 0 : i32
    %62 = tpu.memref_slice %arg9[%c7_i32_38, %c0_i32_39] : memref<64x128xf32, #tpu.memory_space<vmem>> -> memref<1x128xf32, #tpu.memory_space<vmem>>
    %63 = tpu.memref_slice %arg11[%c0_i32_36] : memref<2x!tpu.dma_semaphore, #tpu.memory_space<semaphore_mem>> -> memref<1x!tpu.dma_semaphore, #tpu.memory_space<semaphore_mem>>
    %64 = tpu.memref_squeeze %63 : memref<1x!tpu.dma_semaphore, #tpu.memory_space<semaphore_mem>> -> memref<!tpu.dma_semaphore, #tpu.memory_space<semaphore_mem>>
    tpu.enqueue_dma source(%61 : memref<1x128xf32, #tpu.memory_space<any>>) target(%62 : memref<1x128xf32, #tpu.memory_space<vmem>>) target_semaphore(%64 : memref<!tpu.dma_semaphore, #tpu.memory_space<semaphore_mem>>)
    %c8_i32_40 = arith.constant 8 : i32
    %65 = arith.addi %c8_i32_40, %0 : i32
    %c0_i32_41 = arith.constant 0 : i32
    %66 = arith.addi %65, %c0_i32_41 : i32
    %67 = arith.index_cast %66 : i32 to index
    %68 = memref.load %arg1[%67] : memref<64xi32, #tpu.memory_space<smem>>
    %c0_i32_42 = arith.constant 0 : i32
    %c0_i32_43 = arith.constant 0 : i32
    %69 = tpu.memref_slice %arg2[%68, %c0_i32_43] : memref<1000x128xf32, #tpu.memory_space<any>> -> memref<1x128xf32, #tpu.memory_space<any>>
    %c8_i32_44 = arith.constant 8 : i32
    %c0_i32_45 = arith.constant 0 : i32
    %70 = tpu.memref_slice %arg9[%c8_i32_44, %c0_i32_45] : memref<64x128xf32, #tpu.memory_space<vmem>> -> memref<1x128xf32, #tpu.memory_space<vmem>>
    %71 = tpu.memref_slice %arg11[%c0_i32_42] : memref<2x!tpu.dma_semaphore, #tpu.memory_space<semaphore_mem>> -> memref<1x!tpu.dma_semaphore, #tpu.memory_space<semaphore_mem>>
    %72 = tpu.memref_squeeze %71 : memref<1x!tpu.dma_semaphore, #tpu.memory_space<semaphore_mem>> -> memref<!tpu.dma_semaphore, #tpu.memory_space<semaphore_mem>>
    tpu.enqueue_dma source(%69 : memref<1x128xf32, #tpu.memory_space<any>>) target(%70 : memref<1x128xf32, #tpu.memory_space<vmem>>) target_semaphore(%72 : memref<!tpu.dma_semaphore, #tpu.memory_space<semaphore_mem>>)
    %c8_i32_46 = arith.constant 8 : i32
    %73 = arith.addi %c8_i32_46, %0 : i32
    %c1_i32_47 = arith.constant 1 : i32
    %74 = arith.addi %73, %c1_i32_47 : i32
    %75 = arith.index_cast %74 : i32 to index
    %76 = memref.load %arg1[%75] : memref<64xi32, #tpu.memory_space<smem>>
    %c0_i32_48 = arith.constant 0 : i32
    %c0_i32_49 = arith.constant 0 : i32
    %77 = tpu.memref_slice %arg2[%76, %c0_i32_49] : memref<1000x128xf32, #tpu.memory_space<any>> -> memref<1x128xf32, #tpu.memory_space<any>>
    %c9_i32 = arith.constant 9 : i32
    %c0_i32_50 = arith.constant 0 : i32
    %78 = tpu.memref_slice %arg9[%c9_i32, %c0_i32_50] : memref<64x128xf32, #tpu.memory_space<vmem>> -> memref<1x128xf32, #tpu.memory_space<vmem>>
    %79 = tpu.memref_slice %arg11[%c0_i32_48] : memref<2x!tpu.dma_semaphore, #tpu.memory_space<semaphore_mem>> -> memref<1x!tpu.dma_semaphore, #tpu.memory_space<semaphore_mem>>
    %80 = tpu.memref_squeeze %79 : memref<1x!tpu.dma_semaphore, #tpu.memory_space<semaphore_mem>> -> memref<!tpu.dma_semaphore, #tpu.memory_space<semaphore_mem>>
    tpu.enqueue_dma source(%77 : memref<1x128xf32, #tpu.memory_space<any>>) target(%78 : memref<1x128xf32, #tpu.memory_space<vmem>>) target_semaphore(%80 : memref<!tpu.dma_semaphore, #tpu.memory_space<semaphore_mem>>)
    %c8_i32_51 = arith.constant 8 : i32
    %81 = arith.addi %c8_i32_51, %0 : i32
    %c2_i32_52 = arith.constant 2 : i32
    %82 = arith.addi %81, %c2_i32_52 : i32
    %83 = arith.index_cast %82 : i32 to index
    %84 = memref.load %arg1[%83] : memref<64xi32, #tpu.memory_space<smem>>
    %c0_i32_53 = arith.constant 0 : i32
    %c0_i32_54 = arith.constant 0 : i32
    %85 = tpu.memref_slice %arg2[%84, %c0_i32_54] : memref<1000x128xf32, #tpu.memory_space<any>> -> memref<1x128xf32, #tpu.memory_space<any>>
    %c10_i32 = arith.constant 10 : i32
    %c0_i32_55 = arith.constant 0 : i32
    %86 = tpu.memref_slice %arg9[%c10_i32, %c0_i32_55] : memref<64x128xf32, #tpu.memory_space<vmem>> -> memref<1x128xf32, #tpu.memory_space<vmem>>
    %87 = tpu.memref_slice %arg11[%c0_i32_53] : memref<2x!tpu.dma_semaphore, #tpu.memory_space<semaphore_mem>> -> memref<1x!tpu.dma_semaphore, #tpu.memory_space<semaphore_mem>>
    %88 = tpu.memref_squeeze %87 : memref<1x!tpu.dma_semaphore, #tpu.memory_space<semaphore_mem>> -> memref<!tpu.dma_semaphore, #tpu.memory_space<semaphore_mem>>
    tpu.enqueue_dma source(%85 : memref<1x128xf32, #tpu.memory_space<any>>) target(%86 : memref<1x128xf32, #tpu.memory_space<vmem>>) target_semaphore(%88 : memref<!tpu.dma_semaphore, #tpu.memory_space<semaphore_mem>>)
    %c8_i32_56 = arith.constant 8 : i32
    %89 = arith.addi %c8_i32_56, %0 : i32
    %c3_i32_57 = arith.constant 3 : i32
    %90 = arith.addi %89, %c3_i32_57 : i32
    %91 = arith.index_cast %90 : i32 to index
    %92 = memref.load %arg1[%91] : memref<64xi32, #tpu.memory_space<smem>>
    %c0_i32_58 = arith.constant 0 : i32
    %c0_i32_59 = arith.constant 0 : i32
    %93 = tpu.memref_slice %arg2[%92, %c0_i32_59] : memref<1000x128xf32, #tpu.memory_space<any>> -> memref<1x128xf32, #tpu.memory_space<any>>
    %c11_i32 = arith.constant 11 : i32
    %c0_i32_60 = arith.constant 0 : i32
    %94 = tpu.memref_slice %arg9[%c11_i32, %c0_i32_60] : memref<64x128xf32, #tpu.memory_space<vmem>> -> memref<1x128xf32, #tpu.memory_space<vmem>>
    %95 = tpu.memref_slice %arg11[%c0_i32_58] : memref<2x!tpu.dma_semaphore, #tpu.memory_space<semaphore_mem>> -> memref<1x!tpu.dma_semaphore, #tpu.memory_space<semaphore_mem>>
    %96 = tpu.memref_squeeze %95 : memref<1x!tpu.dma_semaphore, #tpu.memory_space<semaphore_mem>> -> memref<!tpu.dma_semaphore, #tpu.memory_space<semaphore_mem>>
    tpu.enqueue_dma source(%93 : memref<1x128xf32, #tpu.memory_space<any>>) target(%94 : memref<1x128xf32, #tpu.memory_space<vmem>>) target_semaphore(%96 : memref<!tpu.dma_semaphore, #tpu.memory_space<semaphore_mem>>)
    %c8_i32_61 = arith.constant 8 : i32
    %97 = arith.addi %c8_i32_61, %0 : i32
    %c4_i32_62 = arith.constant 4 : i32
    %98 = arith.addi %97, %c4_i32_62 : i32
    %99 = arith.index_cast %98 : i32 to index
    %100 = memref.load %arg1[%99] : memref<64xi32, #tpu.memory_space<smem>>
    %c0_i32_63 = arith.constant 0 : i32
    %c0_i32_64 = arith.constant 0 : i32
    %101 = tpu.memref_slice %arg2[%100, %c0_i32_64] : memref<1000x128xf32, #tpu.memory_space<any>> -> memref<1x128xf32, #tpu.memory_space<any>>
    %c12_i32 = arith.constant 12 : i32
    %c0_i32_65 = arith.constant 0 : i32
    %102 = tpu.memref_slice %arg9[%c12_i32, %c0_i32_65] : memref<64x128xf32, #tpu.memory_space<vmem>> -> memref<1x128xf32, #tpu.memory_space<vmem>>
    %103 = tpu.memref_slice %arg11[%c0_i32_63] : memref<2x!tpu.dma_semaphore, #tpu.memory_space<semaphore_mem>> -> memref<1x!tpu.dma_semaphore, #tpu.memory_space<semaphore_mem>>
    %104 = tpu.memref_squeeze %103 : memref<1x!tpu.dma_semaphore, #tpu.memory_space<semaphore_mem>> -> memref<!tpu.dma_semaphore, #tpu.memory_space<semaphore_mem>>
    tpu.enqueue_dma source(%101 : memref<1x128xf32, #tpu.memory_space<any>>) target(%102 : memref<1x128xf32, #tpu.memory_space<vmem>>) target_semaphore(%104 : memref<!tpu.dma_semaphore, #tpu.memory_space<semaphore_mem>>)
    %c8_i32_66 = arith.constant 8 : i32
    %105 = arith.addi %c8_i32_66, %0 : i32
    %c5_i32_67 = arith.constant 5 : i32
    %106 = arith.addi %105, %c5_i32_67 : i32
    %107 = arith.index_cast %106 : i32 to index
    %108 = memref.load %arg1[%107] : memref<64xi32, #tpu.memory_space<smem>>
    %c0_i32_68 = arith.constant 0 : i32
    %c0_i32_69 = arith.constant 0 : i32
    %109 = tpu.memref_slice %arg2[%108, %c0_i32_69] : memref<1000x128xf32, #tpu.memory_space<any>> -> memref<1x128xf32, #tpu.memory_space<any>>
    %c13_i32 = arith.constant 13 : i32
    %c0_i32_70 = arith.constant 0 : i32
    %110 = tpu.memref_slice %arg9[%c13_i32, %c0_i32_70] : memref<64x128xf32, #tpu.memory_space<vmem>> -> memref<1x128xf32, #tpu.memory_space<vmem>>
    %111 = tpu.memref_slice %arg11[%c0_i32_68] : memref<2x!tpu.dma_semaphore, #tpu.memory_space<semaphore_mem>> -> memref<1x!tpu.dma_semaphore, #tpu.memory_space<semaphore_mem>>
    %112 = tpu.memref_squeeze %111 : memref<1x!tpu.dma_semaphore, #tpu.memory_space<semaphore_mem>> -> memref<!tpu.dma_semaphore, #tpu.memory_space<semaphore_mem>>
    tpu.enqueue_dma source(%109 : memref<1x128xf32, #tpu.memory_space<any>>) target(%110 : memref<1x128xf32, #tpu.memory_space<vmem>>) target_semaphore(%112 : memref<!tpu.dma_semaphore, #tpu.memory_space<semaphore_mem>>)
    %c8_i32_71 = arith.constant 8 : i32
    %113 = arith.addi %c8_i32_71, %0 : i32
    %c6_i32_72 = arith.constant 6 : i32
    %114 = arith.addi %113, %c6_i32_72 : i32
    %115 = arith.index_cast %114 : i32 to index
    %116 = memref.load %arg1[%115] : memref<64xi32, #tpu.memory_space<smem>>
    %c0_i32_73 = arith.constant 0 : i32
    %c0_i32_74 = arith.constant 0 : i32
    %117 = tpu.memref_slice %arg2[%116, %c0_i32_74] : memref<1000x128xf32, #tpu.memory_space<any>> -> memref<1x128xf32, #tpu.memory_space<any>>
    %c14_i32 = arith.constant 14 : i32
    %c0_i32_75 = arith.constant 0 : i32
    %118 = tpu.memref_slice %arg9[%c14_i32, %c0_i32_75] : memref<64x128xf32, #tpu.memory_space<vmem>> -> memref<1x128xf32, #tpu.memory_space<vmem>>
    %119 = tpu.memref_slice %arg11[%c0_i32_73] : memref<2x!tpu.dma_semaphore, #tpu.memory_space<semaphore_mem>> -> memref<1x!tpu.dma_semaphore, #tpu.memory_space<semaphore_mem>>
    %120 = tpu.memref_squeeze %119 : memref<1x!tpu.dma_semaphore, #tpu.memory_space<semaphore_mem>> -> memref<!tpu.dma_semaphore, #tpu.memory_space<semaphore_mem>>
    tpu.enqueue_dma source(%117 : memref<1x128xf32, #tpu.memory_space<any>>) target(%118 : memref<1x128xf32, #tpu.memory_space<vmem>>) target_semaphore(%120 : memref<!tpu.dma_semaphore, #tpu.memory_space<semaphore_mem>>)
    %c8_i32_76 = arith.constant 8 : i32
    %121 = arith.addi %c8_i32_76, %0 : i32
    %c7_i32_77 = arith.constant 7 : i32
    %122 = arith.addi %121, %c7_i32_77 : i32
    %123 = arith.index_cast %122 : i32 to index
    %124 = memref.load %arg1[%123] : memref<64xi32, #tpu.memory_space<smem>>
    %c0_i32_78 = arith.constant 0 : i32
    %c0_i32_79 = arith.constant 0 : i32
    %125 = tpu.memref_slice %arg2[%124, %c0_i32_79] : memref<1000x128xf32, #tpu.memory_space<any>> -> memref<1x128xf32, #tpu.memory_space<any>>
    %c15_i32 = arith.constant 15 : i32
    %c0_i32_80 = arith.constant 0 : i32
    %126 = tpu.memref_slice %arg9[%c15_i32, %c0_i32_80] : memref<64x128xf32, #tpu.memory_space<vmem>> -> memref<1x128xf32, #tpu.memory_space<vmem>>
    %127 = tpu.memref_slice %arg11[%c0_i32_78] : memref<2x!tpu.dma_semaphore, #tpu.memory_space<semaphore_mem>> -> memref<1x!tpu.dma_semaphore, #tpu.memory_space<semaphore_mem>>
    %128 = tpu.memref_squeeze %127 : memref<1x!tpu.dma_semaphore, #tpu.memory_space<semaphore_mem>> -> memref<!tpu.dma_semaphore, #tpu.memory_space<semaphore_mem>>
    tpu.enqueue_dma source(%125 : memref<1x128xf32, #tpu.memory_space<any>>) target(%126 : memref<1x128xf32, #tpu.memory_space<vmem>>) target_semaphore(%128 : memref<!tpu.dma_semaphore, #tpu.memory_space<semaphore_mem>>)
    %c16_i32 = arith.constant 16 : i32
    %129 = arith.addi %c16_i32, %0 : i32
    %c0_i32_81 = arith.constant 0 : i32
    %130 = arith.addi %129, %c0_i32_81 : i32
    %131 = arith.index_cast %130 : i32 to index
    %132 = memref.load %arg1[%131] : memref<64xi32, #tpu.memory_space<smem>>
    %c0_i32_82 = arith.constant 0 : i32
    %c0_i32_83 = arith.constant 0 : i32
    %133 = tpu.memref_slice %arg2[%132, %c0_i32_83] : memref<1000x128xf32, #tpu.memory_space<any>> -> memref<1x128xf32, #tpu.memory_space<any>>
    %c16_i32_84 = arith.constant 16 : i32
    %c0_i32_85 = arith.constant 0 : i32
    %134 = tpu.memref_slice %arg9[%c16_i32_84, %c0_i32_85] : memref<64x128xf32, #tpu.memory_space<vmem>> -> memref<1x128xf32, #tpu.memory_space<vmem>>
    %135 = tpu.memref_slice %arg11[%c0_i32_82] : memref<2x!tpu.dma_semaphore, #tpu.memory_space<semaphore_mem>> -> memref<1x!tpu.dma_semaphore, #tpu.memory_space<semaphore_mem>>
    %136 = tpu.memref_squeeze %135 : memref<1x!tpu.dma_semaphore, #tpu.memory_space<semaphore_mem>> -> memref<!tpu.dma_semaphore, #tpu.memory_space<semaphore_mem>>
    tpu.enqueue_dma source(%133 : memref<1x128xf32, #tpu.memory_space<any>>) target(%134 : memref<1x128xf32, #tpu.memory_space<vmem>>) target_semaphore(%136 : memref<!tpu.dma_semaphore, #tpu.memory_space<semaphore_mem>>)
    %c16_i32_86 = arith.constant 16 : i32
    %137 = arith.addi %c16_i32_86, %0 : i32
    %c1_i32_87 = arith.constant 1 : i32
    %138 = arith.addi %137, %c1_i32_87 : i32
    %139 = arith.index_cast %138 : i32 to index
    %140 = memref.load %arg1[%139] : memref<64xi32, #tpu.memory_space<smem>>
    %c0_i32_88 = arith.constant 0 : i32
    %c0_i32_89 = arith.constant 0 : i32
    %141 = tpu.memref_slice %arg2[%140, %c0_i32_89] : memref<1000x128xf32, #tpu.memory_space<any>> -> memref<1x128xf32, #tpu.memory_space<any>>
    %c17_i32 = arith.constant 17 : i32
    %c0_i32_90 = arith.constant 0 : i32
    %142 = tpu.memref_slice %arg9[%c17_i32, %c0_i32_90] : memref<64x128xf32, #tpu.memory_space<vmem>> -> memref<1x128xf32, #tpu.memory_space<vmem>>
    %143 = tpu.memref_slice %arg11[%c0_i32_88] : memref<2x!tpu.dma_semaphore, #tpu.memory_space<semaphore_mem>> -> memref<1x!tpu.dma_semaphore, #tpu.memory_space<semaphore_mem>>
    %144 = tpu.memref_squeeze %143 : memref<1x!tpu.dma_semaphore, #tpu.memory_space<semaphore_mem>> -> memref<!tpu.dma_semaphore, #tpu.memory_space<semaphore_mem>>
    tpu.enqueue_dma source(%141 : memref<1x128xf32, #tpu.memory_space<any>>) target(%142 : memref<1x128xf32, #tpu.memory_space<vmem>>) target_semaphore(%144 : memref<!tpu.dma_semaphore, #tpu.memory_space<semaphore_mem>>)
    %c16_i32_91 = arith.constant 16 : i32
    %145 = arith.addi %c16_i32_91, %0 : i32
    %c2_i32_92 = arith.constant 2 : i32
    %146 = arith.addi %145, %c2_i32_92 : i32
    %147 = arith.index_cast %146 : i32 to index
    %148 = memref.load %arg1[%147] : memref<64xi32, #tpu.memory_space<smem>>
    %c0_i32_93 = arith.constant 0 : i32
    %c0_i32_94 = arith.constant 0 : i32
    %149 = tpu.memref_slice %arg2[%148, %c0_i32_94] : memref<1000x128xf32, #tpu.memory_space<any>> -> memref<1x128xf32, #tpu.memory_space<any>>
    %c18_i32 = arith.constant 18 : i32
    %c0_i32_95 = arith.constant 0 : i32
    %150 = tpu.memref_slice %arg9[%c18_i32, %c0_i32_95] : memref<64x128xf32, #tpu.memory_space<vmem>> -> memref<1x128xf32, #tpu.memory_space<vmem>>
    %151 = tpu.memref_slice %arg11[%c0_i32_93] : memref<2x!tpu.dma_semaphore, #tpu.memory_space<semaphore_mem>> -> memref<1x!tpu.dma_semaphore, #tpu.memory_space<semaphore_mem>>
    %152 = tpu.memref_squeeze %151 : memref<1x!tpu.dma_semaphore, #tpu.memory_space<semaphore_mem>> -> memref<!tpu.dma_semaphore, #tpu.memory_space<semaphore_mem>>
    tpu.enqueue_dma source(%149 : memref<1x128xf32, #tpu.memory_space<any>>) target(%150 : memref<1x128xf32, #tpu.memory_space<vmem>>) target_semaphore(%152 : memref<!tpu.dma_semaphore, #tpu.memory_space<semaphore_mem>>)
    %c16_i32_96 = arith.constant 16 : i32
    %153 = arith.addi %c16_i32_96, %0 : i32
    %c3_i32_97 = arith.constant 3 : i32
    %154 = arith.addi %153, %c3_i32_97 : i32
    %155 = arith.index_cast %154 : i32 to index
    %156 = memref.load %arg1[%155] : memref<64xi32, #tpu.memory_space<smem>>
    %c0_i32_98 = arith.constant 0 : i32
    %c0_i32_99 = arith.constant 0 : i32
    %157 = tpu.memref_slice %arg2[%156, %c0_i32_99] : memref<1000x128xf32, #tpu.memory_space<any>> -> memref<1x128xf32, #tpu.memory_space<any>>
    %c19_i32 = arith.constant 19 : i32
    %c0_i32_100 = arith.constant 0 : i32
    %158 = tpu.memref_slice %arg9[%c19_i32, %c0_i32_100] : memref<64x128xf32, #tpu.memory_space<vmem>> -> memref<1x128xf32, #tpu.memory_space<vmem>>
    %159 = tpu.memref_slice %arg11[%c0_i32_98] : memref<2x!tpu.dma_semaphore, #tpu.memory_space<semaphore_mem>> -> memref<1x!tpu.dma_semaphore, #tpu.memory_space<semaphore_mem>>
    %160 = tpu.memref_squeeze %159 : memref<1x!tpu.dma_semaphore, #tpu.memory_space<semaphore_mem>> -> memref<!tpu.dma_semaphore, #tpu.memory_space<semaphore_mem>>
    tpu.enqueue_dma source(%157 : memref<1x128xf32, #tpu.memory_space<any>>) target(%158 : memref<1x128xf32, #tpu.memory_space<vmem>>) target_semaphore(%160 : memref<!tpu.dma_semaphore, #tpu.memory_space<semaphore_mem>>)
    %c16_i32_101 = arith.constant 16 : i32
    %161 = arith.addi %c16_i32_101, %0 : i32
    %c4_i32_102 = arith.constant 4 : i32
    %162 = arith.addi %161, %c4_i32_102 : i32
    %163 = arith.index_cast %162 : i32 to index
    %164 = memref.load %arg1[%163] : memref<64xi32, #tpu.memory_space<smem>>
    %c0_i32_103 = arith.constant 0 : i32
    %c0_i32_104 = arith.constant 0 : i32
    %165 = tpu.memref_slice %arg2[%164, %c0_i32_104] : memref<1000x128xf32, #tpu.memory_space<any>> -> memref<1x128xf32, #tpu.memory_space<any>>
    %c20_i32 = arith.constant 20 : i32
    %c0_i32_105 = arith.constant 0 : i32
    %166 = tpu.memref_slice %arg9[%c20_i32, %c0_i32_105] : memref<64x128xf32, #tpu.memory_space<vmem>> -> memref<1x128xf32, #tpu.memory_space<vmem>>
    %167 = tpu.memref_slice %arg11[%c0_i32_103] : memref<2x!tpu.dma_semaphore, #tpu.memory_space<semaphore_mem>> -> memref<1x!tpu.dma_semaphore, #tpu.memory_space<semaphore_mem>>
    %168 = tpu.memref_squeeze %167 : memref<1x!tpu.dma_semaphore, #tpu.memory_space<semaphore_mem>> -> memref<!tpu.dma_semaphore, #tpu.memory_space<semaphore_mem>>
    tpu.enqueue_dma source(%165 : memref<1x128xf32, #tpu.memory_space<any>>) target(%166 : memref<1x128xf32, #tpu.memory_space<vmem>>) target_semaphore(%168 : memref<!tpu.dma_semaphore, #tpu.memory_space<semaphore_mem>>)
    %c16_i32_106 = arith.constant 16 : i32
    %169 = arith.addi %c16_i32_106, %0 : i32
    %c5_i32_107 = arith.constant 5 : i32
    %170 = arith.addi %169, %c5_i32_107 : i32
    %171 = arith.index_cast %170 : i32 to index
    %172 = memref.load %arg1[%171] : memref<64xi32, #tpu.memory_space<smem>>
    %c0_i32_108 = arith.constant 0 : i32
    %c0_i32_109 = arith.constant 0 : i32
    %173 = tpu.memref_slice %arg2[%172, %c0_i32_109] : memref<1000x128xf32, #tpu.memory_space<any>> -> memref<1x128xf32, #tpu.memory_space<any>>
    %c21_i32 = arith.constant 21 : i32
    %c0_i32_110 = arith.constant 0 : i32
    %174 = tpu.memref_slice %arg9[%c21_i32, %c0_i32_110] : memref<64x128xf32, #tpu.memory_space<vmem>> -> memref<1x128xf32, #tpu.memory_space<vmem>>
    %175 = tpu.memref_slice %arg11[%c0_i32_108] : memref<2x!tpu.dma_semaphore, #tpu.memory_space<semaphore_mem>> -> memref<1x!tpu.dma_semaphore, #tpu.memory_space<semaphore_mem>>
    %176 = tpu.memref_squeeze %175 : memref<1x!tpu.dma_semaphore, #tpu.memory_space<semaphore_mem>> -> memref<!tpu.dma_semaphore, #tpu.memory_space<semaphore_mem>>
    tpu.enqueue_dma source(%173 : memref<1x128xf32, #tpu.memory_space<any>>) target(%174 : memref<1x128xf32, #tpu.memory_space<vmem>>) target_semaphore(%176 : memref<!tpu.dma_semaphore, #tpu.memory_space<semaphore_mem>>)
    %c16_i32_111 = arith.constant 16 : i32
    %177 = arith.addi %c16_i32_111, %0 : i32
    %c6_i32_112 = arith.constant 6 : i32
    %178 = arith.addi %177, %c6_i32_112 : i32
    %179 = arith.index_cast %178 : i32 to index
    %180 = memref.load %arg1[%179] : memref<64xi32, #tpu.memory_space<smem>>
    %c0_i32_113 = arith.constant 0 : i32
    %c0_i32_114 = arith.constant 0 : i32
    %181 = tpu.memref_slice %arg2[%180, %c0_i32_114] : memref<1000x128xf32, #tpu.memory_space<any>> -> memref<1x128xf32, #tpu.memory_space<any>>
    %c22_i32 = arith.constant 22 : i32
    %c0_i32_115 = arith.constant 0 : i32
    %182 = tpu.memref_slice %arg9[%c22_i32, %c0_i32_115] : memref<64x128xf32, #tpu.memory_space<vmem>> -> memref<1x128xf32, #tpu.memory_space<vmem>>
    %183 = tpu.memref_slice %arg11[%c0_i32_113] : memref<2x!tpu.dma_semaphore, #tpu.memory_space<semaphore_mem>> -> memref<1x!tpu.dma_semaphore, #tpu.memory_space<semaphore_mem>>
    %184 = tpu.memref_squeeze %183 : memref<1x!tpu.dma_semaphore, #tpu.memory_space<semaphore_mem>> -> memref<!tpu.dma_semaphore, #tpu.memory_space<semaphore_mem>>
    tpu.enqueue_dma source(%181 : memref<1x128xf32, #tpu.memory_space<any>>) target(%182 : memref<1x128xf32, #tpu.memory_space<vmem>>) target_semaphore(%184 : memref<!tpu.dma_semaphore, #tpu.memory_space<semaphore_mem>>)
    %c16_i32_116 = arith.constant 16 : i32
    %185 = arith.addi %c16_i32_116, %0 : i32
    %c7_i32_117 = arith.constant 7 : i32
    %186 = arith.addi %185, %c7_i32_117 : i32
    %187 = arith.index_cast %186 : i32 to index
    %188 = memref.load %arg1[%187] : memref<64xi32, #tpu.memory_space<smem>>
    %c0_i32_118 = arith.constant 0 : i32
    %c0_i32_119 = arith.constant 0 : i32
    %189 = tpu.memref_slice %arg2[%188, %c0_i32_119] : memref<1000x128xf32, #tpu.memory_space<any>> -> memref<1x128xf32, #tpu.memory_space<any>>
    %c23_i32 = arith.constant 23 : i32
    %c0_i32_120 = arith.constant 0 : i32
    %190 = tpu.memref_slice %arg9[%c23_i32, %c0_i32_120] : memref<64x128xf32, #tpu.memory_space<vmem>> -> memref<1x128xf32, #tpu.memory_space<vmem>>
    %191 = tpu.memref_slice %arg11[%c0_i32_118] : memref<2x!tpu.dma_semaphore, #tpu.memory_space<semaphore_mem>> -> memref<1x!tpu.dma_semaphore, #tpu.memory_space<semaphore_mem>>
    %192 = tpu.memref_squeeze %191 : memref<1x!tpu.dma_semaphore, #tpu.memory_space<semaphore_mem>> -> memref<!tpu.dma_semaphore, #tpu.memory_space<semaphore_mem>>
    tpu.enqueue_dma source(%189 : memref<1x128xf32, #tpu.memory_space<any>>) target(%190 : memref<1x128xf32, #tpu.memory_space<vmem>>) target_semaphore(%192 : memref<!tpu.dma_semaphore, #tpu.memory_space<semaphore_mem>>)
    %c24_i32 = arith.constant 24 : i32
    %193 = arith.addi %c24_i32, %0 : i32
    %c0_i32_121 = arith.constant 0 : i32
    %194 = arith.addi %193, %c0_i32_121 : i32
    %195 = arith.index_cast %194 : i32 to index
    %196 = memref.load %arg1[%195] : memref<64xi32, #tpu.memory_space<smem>>
    %c0_i32_122 = arith.constant 0 : i32
    %c0_i32_123 = arith.constant 0 : i32
    %197 = tpu.memref_slice %arg2[%196, %c0_i32_123] : memref<1000x128xf32, #tpu.memory_space<any>> -> memref<1x128xf32, #tpu.memory_space<any>>
    %c24_i32_124 = arith.constant 24 : i32
    %c0_i32_125 = arith.constant 0 : i32
    %198 = tpu.memref_slice %arg9[%c24_i32_124, %c0_i32_125] : memref<64x128xf32, #tpu.memory_space<vmem>> -> memref<1x128xf32, #tpu.memory_space<vmem>>
    %199 = tpu.memref_slice %arg11[%c0_i32_122] : memref<2x!tpu.dma_semaphore, #tpu.memory_space<semaphore_mem>> -> memref<1x!tpu.dma_semaphore, #tpu.memory_space<semaphore_mem>>
    %200 = tpu.memref_squeeze %199 : memref<1x!tpu.dma_semaphore, #tpu.memory_space<semaphore_mem>> -> memref<!tpu.dma_semaphore, #tpu.memory_space<semaphore_mem>>
    tpu.enqueue_dma source(%197 : memref<1x128xf32, #tpu.memory_space<any>>) target(%198 : memref<1x128xf32, #tpu.memory_space<vmem>>) target_semaphore(%200 : memref<!tpu.dma_semaphore, #tpu.memory_space<semaphore_mem>>)
    %c24_i32_126 = arith.constant 24 : i32
    %201 = arith.addi %c24_i32_126, %0 : i32
    %c1_i32_127 = arith.constant 1 : i32
    %202 = arith.addi %201, %c1_i32_127 : i32
    %203 = arith.index_cast %202 : i32 to index
    %204 = memref.load %arg1[%203] : memref<64xi32, #tpu.memory_space<smem>>
    %c0_i32_128 = arith.constant 0 : i32
    %c0_i32_129 = arith.constant 0 : i32
    %205 = tpu.memref_slice %arg2[%204, %c0_i32_129] : memref<1000x128xf32, #tpu.memory_space<any>> -> memref<1x128xf32, #tpu.memory_space<any>>
    %c25_i32 = arith.constant 25 : i32
    %c0_i32_130 = arith.constant 0 : i32
    %206 = tpu.memref_slice %arg9[%c25_i32, %c0_i32_130] : memref<64x128xf32, #tpu.memory_space<vmem>> -> memref<1x128xf32, #tpu.memory_space<vmem>>
    %207 = tpu.memref_slice %arg11[%c0_i32_128] : memref<2x!tpu.dma_semaphore, #tpu.memory_space<semaphore_mem>> -> memref<1x!tpu.dma_semaphore, #tpu.memory_space<semaphore_mem>>
    %208 = tpu.memref_squeeze %207 : memref<1x!tpu.dma_semaphore, #tpu.memory_space<semaphore_mem>> -> memref<!tpu.dma_semaphore, #tpu.memory_space<semaphore_mem>>
    tpu.enqueue_dma source(%205 : memref<1x128xf32, #tpu.memory_space<any>>) target(%206 : memref<1x128xf32, #tpu.memory_space<vmem>>) target_semaphore(%208 : memref<!tpu.dma_semaphore, #tpu.memory_space<semaphore_mem>>)
    %c24_i32_131 = arith.constant 24 : i32
    %209 = arith.addi %c24_i32_131, %0 : i32
    %c2_i32_132 = arith.constant 2 : i32
    %210 = arith.addi %209, %c2_i32_132 : i32
    %211 = arith.index_cast %210 : i32 to index
    %212 = memref.load %arg1[%211] : memref<64xi32, #tpu.memory_space<smem>>
    %c0_i32_133 = arith.constant 0 : i32
    %c0_i32_134 = arith.constant 0 : i32
    %213 = tpu.memref_slice %arg2[%212, %c0_i32_134] : memref<1000x128xf32, #tpu.memory_space<any>> -> memref<1x128xf32, #tpu.memory_space<any>>
    %c26_i32 = arith.constant 26 : i32
    %c0_i32_135 = arith.constant 0 : i32
    %214 = tpu.memref_slice %arg9[%c26_i32, %c0_i32_135] : memref<64x128xf32, #tpu.memory_space<vmem>> -> memref<1x128xf32, #tpu.memory_space<vmem>>
    %215 = tpu.memref_slice %arg11[%c0_i32_133] : memref<2x!tpu.dma_semaphore, #tpu.memory_space<semaphore_mem>> -> memref<1x!tpu.dma_semaphore, #tpu.memory_space<semaphore_mem>>
    %216 = tpu.memref_squeeze %215 : memref<1x!tpu.dma_semaphore, #tpu.memory_space<semaphore_mem>> -> memref<!tpu.dma_semaphore, #tpu.memory_space<semaphore_mem>>
    tpu.enqueue_dma source(%213 : memref<1x128xf32, #tpu.memory_space<any>>) target(%214 : memref<1x128xf32, #tpu.memory_space<vmem>>) target_semaphore(%216 : memref<!tpu.dma_semaphore, #tpu.memory_space<semaphore_mem>>)
    %c24_i32_136 = arith.constant 24 : i32
    %217 = arith.addi %c24_i32_136, %0 : i32
    %c3_i32_137 = arith.constant 3 : i32
    %218 = arith.addi %217, %c3_i32_137 : i32
    %219 = arith.index_cast %218 : i32 to index
    %220 = memref.load %arg1[%219] : memref<64xi32, #tpu.memory_space<smem>>
    %c0_i32_138 = arith.constant 0 : i32
    %c0_i32_139 = arith.constant 0 : i32
    %221 = tpu.memref_slice %arg2[%220, %c0_i32_139] : memref<1000x128xf32, #tpu.memory_space<any>> -> memref<1x128xf32, #tpu.memory_space<any>>
    %c27_i32 = arith.constant 27 : i32
    %c0_i32_140 = arith.constant 0 : i32
    %222 = tpu.memref_slice %arg9[%c27_i32, %c0_i32_140] : memref<64x128xf32, #tpu.memory_space<vmem>> -> memref<1x128xf32, #tpu.memory_space<vmem>>
    %223 = tpu.memref_slice %arg11[%c0_i32_138] : memref<2x!tpu.dma_semaphore, #tpu.memory_space<semaphore_mem>> -> memref<1x!tpu.dma_semaphore, #tpu.memory_space<semaphore_mem>>
    %224 = tpu.memref_squeeze %223 : memref<1x!tpu.dma_semaphore, #tpu.memory_space<semaphore_mem>> -> memref<!tpu.dma_semaphore, #tpu.memory_space<semaphore_mem>>
    tpu.enqueue_dma source(%221 : memref<1x128xf32, #tpu.memory_space<any>>) target(%222 : memref<1x128xf32, #tpu.memory_space<vmem>>) target_semaphore(%224 : memref<!tpu.dma_semaphore, #tpu.memory_space<semaphore_mem>>)
    %c24_i32_141 = arith.constant 24 : i32
    %225 = arith.addi %c24_i32_141, %0 : i32
    %c4_i32_142 = arith.constant 4 : i32
    %226 = arith.addi %225, %c4_i32_142 : i32
    %227 = arith.index_cast %226 : i32 to index
    %228 = memref.load %arg1[%227] : memref<64xi32, #tpu.memory_space<smem>>
    %c0_i32_143 = arith.constant 0 : i32
    %c0_i32_144 = arith.constant 0 : i32
    %229 = tpu.memref_slice %arg2[%228, %c0_i32_144] : memref<1000x128xf32, #tpu.memory_space<any>> -> memref<1x128xf32, #tpu.memory_space<any>>
    %c28_i32 = arith.constant 28 : i32
    %c0_i32_145 = arith.constant 0 : i32
    %230 = tpu.memref_slice %arg9[%c28_i32, %c0_i32_145] : memref<64x128xf32, #tpu.memory_space<vmem>> -> memref<1x128xf32, #tpu.memory_space<vmem>>
    %231 = tpu.memref_slice %arg11[%c0_i32_143] : memref<2x!tpu.dma_semaphore, #tpu.memory_space<semaphore_mem>> -> memref<1x!tpu.dma_semaphore, #tpu.memory_space<semaphore_mem>>
    %232 = tpu.memref_squeeze %231 : memref<1x!tpu.dma_semaphore, #tpu.memory_space<semaphore_mem>> -> memref<!tpu.dma_semaphore, #tpu.memory_space<semaphore_mem>>
    tpu.enqueue_dma source(%229 : memref<1x128xf32, #tpu.memory_space<any>>) target(%230 : memref<1x128xf32, #tpu.memory_space<vmem>>) target_semaphore(%232 : memref<!tpu.dma_semaphore, #tpu.memory_space<semaphore_mem>>)
    %c24_i32_146 = arith.constant 24 : i32
    %233 = arith.addi %c24_i32_146, %0 : i32
    %c5_i32_147 = arith.constant 5 : i32
    %234 = arith.addi %233, %c5_i32_147 : i32
    %235 = arith.index_cast %234 : i32 to index
    %236 = memref.load %arg1[%235] : memref<64xi32, #tpu.memory_space<smem>>
    %c0_i32_148 = arith.constant 0 : i32
    %c0_i32_149 = arith.constant 0 : i32
    %237 = tpu.memref_slice %arg2[%236, %c0_i32_149] : memref<1000x128xf32, #tpu.memory_space<any>> -> memref<1x128xf32, #tpu.memory_space<any>>
    %c29_i32 = arith.constant 29 : i32
    %c0_i32_150 = arith.constant 0 : i32
    %238 = tpu.memref_slice %arg9[%c29_i32, %c0_i32_150] : memref<64x128xf32, #tpu.memory_space<vmem>> -> memref<1x128xf32, #tpu.memory_space<vmem>>
    %239 = tpu.memref_slice %arg11[%c0_i32_148] : memref<2x!tpu.dma_semaphore, #tpu.memory_space<semaphore_mem>> -> memref<1x!tpu.dma_semaphore, #tpu.memory_space<semaphore_mem>>
    %240 = tpu.memref_squeeze %239 : memref<1x!tpu.dma_semaphore, #tpu.memory_space<semaphore_mem>> -> memref<!tpu.dma_semaphore, #tpu.memory_space<semaphore_mem>>
    tpu.enqueue_dma source(%237 : memref<1x128xf32, #tpu.memory_space<any>>) target(%238 : memref<1x128xf32, #tpu.memory_space<vmem>>) target_semaphore(%240 : memref<!tpu.dma_semaphore, #tpu.memory_space<semaphore_mem>>)
    %c24_i32_151 = arith.constant 24 : i32
    %241 = arith.addi %c24_i32_151, %0 : i32
    %c6_i32_152 = arith.constant 6 : i32
    %242 = arith.addi %241, %c6_i32_152 : i32
    %243 = arith.index_cast %242 : i32 to index
    %244 = memref.load %arg1[%243] : memref<64xi32, #tpu.memory_space<smem>>
    %c0_i32_153 = arith.constant 0 : i32
    %c0_i32_154 = arith.constant 0 : i32
    %245 = tpu.memref_slice %arg2[%244, %c0_i32_154] : memref<1000x128xf32, #tpu.memory_space<any>> -> memref<1x128xf32, #tpu.memory_space<any>>
    %c30_i32 = arith.constant 30 : i32
    %c0_i32_155 = arith.constant 0 : i32
    %246 = tpu.memref_slice %arg9[%c30_i32, %c0_i32_155] : memref<64x128xf32, #tpu.memory_space<vmem>> -> memref<1x128xf32, #tpu.memory_space<vmem>>
    %247 = tpu.memref_slice %arg11[%c0_i32_153] : memref<2x!tpu.dma_semaphore, #tpu.memory_space<semaphore_mem>> -> memref<1x!tpu.dma_semaphore, #tpu.memory_space<semaphore_mem>>
    %248 = tpu.memref_squeeze %247 : memref<1x!tpu.dma_semaphore, #tpu.memory_space<semaphore_mem>> -> memref<!tpu.dma_semaphore, #tpu.memory_space<semaphore_mem>>
    tpu.enqueue_dma source(%245 : memref<1x128xf32, #tpu.memory_space<any>>) target(%246 : memref<1x128xf32, #tpu.memory_space<vmem>>) target_semaphore(%248 : memref<!tpu.dma_semaphore, #tpu.memory_space<semaphore_mem>>)
    %c24_i32_156 = arith.constant 24 : i32
    %249 = arith.addi %c24_i32_156, %0 : i32
    %c7_i32_157 = arith.constant 7 : i32
    %250 = arith.addi %249, %c7_i32_157 : i32
    %251 = arith.index_cast %250 : i32 to index
    %252 = memref.load %arg1[%251] : memref<64xi32, #tpu.memory_space<smem>>
    %c0_i32_158 = arith.constant 0 : i32
    %c0_i32_159 = arith.constant 0 : i32
    %253 = tpu.memref_slice %arg2[%252, %c0_i32_159] : memref<1000x128xf32, #tpu.memory_space<any>> -> memref<1x128xf32, #tpu.memory_space<any>>
    %c31_i32 = arith.constant 31 : i32
    %c0_i32_160 = arith.constant 0 : i32
    %254 = tpu.memref_slice %arg9[%c31_i32, %c0_i32_160] : memref<64x128xf32, #tpu.memory_space<vmem>> -> memref<1x128xf32, #tpu.memory_space<vmem>>
    %255 = tpu.memref_slice %arg11[%c0_i32_158] : memref<2x!tpu.dma_semaphore, #tpu.memory_space<semaphore_mem>> -> memref<1x!tpu.dma_semaphore, #tpu.memory_space<semaphore_mem>>
    %256 = tpu.memref_squeeze %255 : memref<1x!tpu.dma_semaphore, #tpu.memory_space<semaphore_mem>> -> memref<!tpu.dma_semaphore, #tpu.memory_space<semaphore_mem>>
    tpu.enqueue_dma source(%253 : memref<1x128xf32, #tpu.memory_space<any>>) target(%254 : memref<1x128xf32, #tpu.memory_space<vmem>>) target_semaphore(%256 : memref<!tpu.dma_semaphore, #tpu.memory_space<semaphore_mem>>)
    %c32_i32 = arith.constant 32 : i32
    %257 = arith.addi %c32_i32, %0 : i32
    %c0_i32_161 = arith.constant 0 : i32
    %258 = arith.addi %257, %c0_i32_161 : i32
    %259 = arith.index_cast %258 : i32 to index
    %260 = memref.load %arg1[%259] : memref<64xi32, #tpu.memory_space<smem>>
    %c1_i32_162 = arith.constant 1 : i32
    %c0_i32_163 = arith.constant 0 : i32
    %261 = tpu.memref_slice %arg2[%260, %c0_i32_163] : memref<1000x128xf32, #tpu.memory_space<any>> -> memref<1x128xf32, #tpu.memory_space<any>>
    %c32_i32_164 = arith.constant 32 : i32
    %c0_i32_165 = arith.constant 0 : i32
    %262 = tpu.memref_slice %arg9[%c32_i32_164, %c0_i32_165] : memref<64x128xf32, #tpu.memory_space<vmem>> -> memref<1x128xf32, #tpu.memory_space<vmem>>
    %263 = tpu.memref_slice %arg11[%c1_i32_162] : memref<2x!tpu.dma_semaphore, #tpu.memory_space<semaphore_mem>> -> memref<1x!tpu.dma_semaphore, #tpu.memory_space<semaphore_mem>>
    %264 = tpu.memref_squeeze %263 : memref<1x!tpu.dma_semaphore, #tpu.memory_space<semaphore_mem>> -> memref<!tpu.dma_semaphore, #tpu.memory_space<semaphore_mem>>
    tpu.enqueue_dma source(%261 : memref<1x128xf32, #tpu.memory_space<any>>) target(%262 : memref<1x128xf32, #tpu.memory_space<vmem>>) target_semaphore(%264 : memref<!tpu.dma_semaphore, #tpu.memory_space<semaphore_mem>>)
    %c32_i32_166 = arith.constant 32 : i32
    %265 = arith.addi %c32_i32_166, %0 : i32
    %c1_i32_167 = arith.constant 1 : i32
    %266 = arith.addi %265, %c1_i32_167 : i32
    %267 = arith.index_cast %266 : i32 to index
    %268 = memref.load %arg1[%267] : memref<64xi32, #tpu.memory_space<smem>>
    %c1_i32_168 = arith.constant 1 : i32
    %c0_i32_169 = arith.constant 0 : i32
    %269 = tpu.memref_slice %arg2[%268, %c0_i32_169] : memref<1000x128xf32, #tpu.memory_space<any>> -> memref<1x128xf32, #tpu.memory_space<any>>
    %c33_i32 = arith.constant 33 : i32
    %c0_i32_170 = arith.constant 0 : i32
    %270 = tpu.memref_slice %arg9[%c33_i32, %c0_i32_170] : memref<64x128xf32, #tpu.memory_space<vmem>> -> memref<1x128xf32, #tpu.memory_space<vmem>>
    %271 = tpu.memref_slice %arg11[%c1_i32_168] : memref<2x!tpu.dma_semaphore, #tpu.memory_space<semaphore_mem>> -> memref<1x!tpu.dma_semaphore, #tpu.memory_space<semaphore_mem>>
    %272 = tpu.memref_squeeze %271 : memref<1x!tpu.dma_semaphore, #tpu.memory_space<semaphore_mem>> -> memref<!tpu.dma_semaphore, #tpu.memory_space<semaphore_mem>>
    tpu.enqueue_dma source(%269 : memref<1x128xf32, #tpu.memory_space<any>>) target(%270 : memref<1x128xf32, #tpu.memory_space<vmem>>) target_semaphore(%272 : memref<!tpu.dma_semaphore, #tpu.memory_space<semaphore_mem>>)
    %c32_i32_171 = arith.constant 32 : i32
    %273 = arith.addi %c32_i32_171, %0 : i32
    %c2_i32_172 = arith.constant 2 : i32
    %274 = arith.addi %273, %c2_i32_172 : i32
    %275 = arith.index_cast %274 : i32 to index
    %276 = memref.load %arg1[%275] : memref<64xi32, #tpu.memory_space<smem>>
    %c1_i32_173 = arith.constant 1 : i32
    %c0_i32_174 = arith.constant 0 : i32
    %277 = tpu.memref_slice %arg2[%276, %c0_i32_174] : memref<1000x128xf32, #tpu.memory_space<any>> -> memref<1x128xf32, #tpu.memory_space<any>>
    %c34_i32 = arith.constant 34 : i32
    %c0_i32_175 = arith.constant 0 : i32
    %278 = tpu.memref_slice %arg9[%c34_i32, %c0_i32_175] : memref<64x128xf32, #tpu.memory_space<vmem>> -> memref<1x128xf32, #tpu.memory_space<vmem>>
    %279 = tpu.memref_slice %arg11[%c1_i32_173] : memref<2x!tpu.dma_semaphore, #tpu.memory_space<semaphore_mem>> -> memref<1x!tpu.dma_semaphore, #tpu.memory_space<semaphore_mem>>
    %280 = tpu.memref_squeeze %279 : memref<1x!tpu.dma_semaphore, #tpu.memory_space<semaphore_mem>> -> memref<!tpu.dma_semaphore, #tpu.memory_space<semaphore_mem>>
    tpu.enqueue_dma source(%277 : memref<1x128xf32, #tpu.memory_space<any>>) target(%278 : memref<1x128xf32, #tpu.memory_space<vmem>>) target_semaphore(%280 : memref<!tpu.dma_semaphore, #tpu.memory_space<semaphore_mem>>)
    %c32_i32_176 = arith.constant 32 : i32
    %281 = arith.addi %c32_i32_176, %0 : i32
    %c3_i32_177 = arith.constant 3 : i32
    %282 = arith.addi %281, %c3_i32_177 : i32
    %283 = arith.index_cast %282 : i32 to index
    %284 = memref.load %arg1[%283] : memref<64xi32, #tpu.memory_space<smem>>
    %c1_i32_178 = arith.constant 1 : i32
    %c0_i32_179 = arith.constant 0 : i32
    %285 = tpu.memref_slice %arg2[%284, %c0_i32_179] : memref<1000x128xf32, #tpu.memory_space<any>> -> memref<1x128xf32, #tpu.memory_space<any>>
    %c35_i32 = arith.constant 35 : i32
    %c0_i32_180 = arith.constant 0 : i32
    %286 = tpu.memref_slice %arg9[%c35_i32, %c0_i32_180] : memref<64x128xf32, #tpu.memory_space<vmem>> -> memref<1x128xf32, #tpu.memory_space<vmem>>
    %287 = tpu.memref_slice %arg11[%c1_i32_178] : memref<2x!tpu.dma_semaphore, #tpu.memory_space<semaphore_mem>> -> memref<1x!tpu.dma_semaphore, #tpu.memory_space<semaphore_mem>>
    %288 = tpu.memref_squeeze %287 : memref<1x!tpu.dma_semaphore, #tpu.memory_space<semaphore_mem>> -> memref<!tpu.dma_semaphore, #tpu.memory_space<semaphore_mem>>
    tpu.enqueue_dma source(%285 : memref<1x128xf32, #tpu.memory_space<any>>) target(%286 : memref<1x128xf32, #tpu.memory_space<vmem>>) target_semaphore(%288 : memref<!tpu.dma_semaphore, #tpu.memory_space<semaphore_mem>>)
    %c32_i32_181 = arith.constant 32 : i32
    %289 = arith.addi %c32_i32_181, %0 : i32
    %c4_i32_182 = arith.constant 4 : i32
    %290 = arith.addi %289, %c4_i32_182 : i32
    %291 = arith.index_cast %290 : i32 to index
    %292 = memref.load %arg1[%291] : memref<64xi32, #tpu.memory_space<smem>>
    %c1_i32_183 = arith.constant 1 : i32
    %c0_i32_184 = arith.constant 0 : i32
    %293 = tpu.memref_slice %arg2[%292, %c0_i32_184] : memref<1000x128xf32, #tpu.memory_space<any>> -> memref<1x128xf32, #tpu.memory_space<any>>
    %c36_i32 = arith.constant 36 : i32
    %c0_i32_185 = arith.constant 0 : i32
    %294 = tpu.memref_slice %arg9[%c36_i32, %c0_i32_185] : memref<64x128xf32, #tpu.memory_space<vmem>> -> memref<1x128xf32, #tpu.memory_space<vmem>>
    %295 = tpu.memref_slice %arg11[%c1_i32_183] : memref<2x!tpu.dma_semaphore, #tpu.memory_space<semaphore_mem>> -> memref<1x!tpu.dma_semaphore, #tpu.memory_space<semaphore_mem>>
    %296 = tpu.memref_squeeze %295 : memref<1x!tpu.dma_semaphore, #tpu.memory_space<semaphore_mem>> -> memref<!tpu.dma_semaphore, #tpu.memory_space<semaphore_mem>>
    tpu.enqueue_dma source(%293 : memref<1x128xf32, #tpu.memory_space<any>>) target(%294 : memref<1x128xf32, #tpu.memory_space<vmem>>) target_semaphore(%296 : memref<!tpu.dma_semaphore, #tpu.memory_space<semaphore_mem>>)
    %c32_i32_186 = arith.constant 32 : i32
    %297 = arith.addi %c32_i32_186, %0 : i32
    %c5_i32_187 = arith.constant 5 : i32
    %298 = arith.addi %297, %c5_i32_187 : i32
    %299 = arith.index_cast %298 : i32 to index
    %300 = memref.load %arg1[%299] : memref<64xi32, #tpu.memory_space<smem>>
    %c1_i32_188 = arith.constant 1 : i32
    %c0_i32_189 = arith.constant 0 : i32
    %301 = tpu.memref_slice %arg2[%300, %c0_i32_189] : memref<1000x128xf32, #tpu.memory_space<any>> -> memref<1x128xf32, #tpu.memory_space<any>>
    %c37_i32 = arith.constant 37 : i32
    %c0_i32_190 = arith.constant 0 : i32
    %302 = tpu.memref_slice %arg9[%c37_i32, %c0_i32_190] : memref<64x128xf32, #tpu.memory_space<vmem>> -> memref<1x128xf32, #tpu.memory_space<vmem>>
    %303 = tpu.memref_slice %arg11[%c1_i32_188] : memref<2x!tpu.dma_semaphore, #tpu.memory_space<semaphore_mem>> -> memref<1x!tpu.dma_semaphore, #tpu.memory_space<semaphore_mem>>
    %304 = tpu.memref_squeeze %303 : memref<1x!tpu.dma_semaphore, #tpu.memory_space<semaphore_mem>> -> memref<!tpu.dma_semaphore, #tpu.memory_space<semaphore_mem>>
    tpu.enqueue_dma source(%301 : memref<1x128xf32, #tpu.memory_space<any>>) target(%302 : memref<1x128xf32, #tpu.memory_space<vmem>>) target_semaphore(%304 : memref<!tpu.dma_semaphore, #tpu.memory_space<semaphore_mem>>)
    %c32_i32_191 = arith.constant 32 : i32
    %305 = arith.addi %c32_i32_191, %0 : i32
    %c6_i32_192 = arith.constant 6 : i32
    %306 = arith.addi %305, %c6_i32_192 : i32
    %307 = arith.index_cast %306 : i32 to index
    %308 = memref.load %arg1[%307] : memref<64xi32, #tpu.memory_space<smem>>
    %c1_i32_193 = arith.constant 1 : i32
    %c0_i32_194 = arith.constant 0 : i32
    %309 = tpu.memref_slice %arg2[%308, %c0_i32_194] : memref<1000x128xf32, #tpu.memory_space<any>> -> memref<1x128xf32, #tpu.memory_space<any>>
    %c38_i32 = arith.constant 38 : i32
    %c0_i32_195 = arith.constant 0 : i32
    %310 = tpu.memref_slice %arg9[%c38_i32, %c0_i32_195] : memref<64x128xf32, #tpu.memory_space<vmem>> -> memref<1x128xf32, #tpu.memory_space<vmem>>
    %311 = tpu.memref_slice %arg11[%c1_i32_193] : memref<2x!tpu.dma_semaphore, #tpu.memory_space<semaphore_mem>> -> memref<1x!tpu.dma_semaphore, #tpu.memory_space<semaphore_mem>>
    %312 = tpu.memref_squeeze %311 : memref<1x!tpu.dma_semaphore, #tpu.memory_space<semaphore_mem>> -> memref<!tpu.dma_semaphore, #tpu.memory_space<semaphore_mem>>
    tpu.enqueue_dma source(%309 : memref<1x128xf32, #tpu.memory_space<any>>) target(%310 : memref<1x128xf32, #tpu.memory_space<vmem>>) target_semaphore(%312 : memref<!tpu.dma_semaphore, #tpu.memory_space<semaphore_mem>>)
    %c32_i32_196 = arith.constant 32 : i32
    %313 = arith.addi %c32_i32_196, %0 : i32
    %c7_i32_197 = arith.constant 7 : i32
    %314 = arith.addi %313, %c7_i32_197 : i32
    %315 = arith.index_cast %314 : i32 to index
    %316 = memref.load %arg1[%315] : memref<64xi32, #tpu.memory_space<smem>>
    %c1_i32_198 = arith.constant 1 : i32
    %c0_i32_199 = arith.constant 0 : i32
    %317 = tpu.memref_slice %arg2[%316, %c0_i32_199] : memref<1000x128xf32, #tpu.memory_space<any>> -> memref<1x128xf32, #tpu.memory_space<any>>
    %c39_i32 = arith.constant 39 : i32
    %c0_i32_200 = arith.constant 0 : i32
    %318 = tpu.memref_slice %arg9[%c39_i32, %c0_i32_200] : memref<64x128xf32, #tpu.memory_space<vmem>> -> memref<1x128xf32, #tpu.memory_space<vmem>>
    %319 = tpu.memref_slice %arg11[%c1_i32_198] : memref<2x!tpu.dma_semaphore, #tpu.memory_space<semaphore_mem>> -> memref<1x!tpu.dma_semaphore, #tpu.memory_space<semaphore_mem>>
    %320 = tpu.memref_squeeze %319 : memref<1x!tpu.dma_semaphore, #tpu.memory_space<semaphore_mem>> -> memref<!tpu.dma_semaphore, #tpu.memory_space<semaphore_mem>>
    tpu.enqueue_dma source(%317 : memref<1x128xf32, #tpu.memory_space<any>>) target(%318 : memref<1x128xf32, #tpu.memory_space<vmem>>) target_semaphore(%320 : memref<!tpu.dma_semaphore, #tpu.memory_space<semaphore_mem>>)
    %c40_i32 = arith.constant 40 : i32
    %321 = arith.addi %c40_i32, %0 : i32
    %c0_i32_201 = arith.constant 0 : i32
    %322 = arith.addi %321, %c0_i32_201 : i32
    %323 = arith.index_cast %322 : i32 to index
    %324 = memref.load %arg1[%323] : memref<64xi32, #tpu.memory_space<smem>>
    %c1_i32_202 = arith.constant 1 : i32
    %c0_i32_203 = arith.constant 0 : i32
    %325 = tpu.memref_slice %arg2[%324, %c0_i32_203] : memref<1000x128xf32, #tpu.memory_space<any>> -> memref<1x128xf32, #tpu.memory_space<any>>
    %c40_i32_204 = arith.constant 40 : i32
    %c0_i32_205 = arith.constant 0 : i32
    %326 = tpu.memref_slice %arg9[%c40_i32_204, %c0_i32_205] : memref<64x128xf32, #tpu.memory_space<vmem>> -> memref<1x128xf32, #tpu.memory_space<vmem>>
    %327 = tpu.memref_slice %arg11[%c1_i32_202] : memref<2x!tpu.dma_semaphore, #tpu.memory_space<semaphore_mem>> -> memref<1x!tpu.dma_semaphore, #tpu.memory_space<semaphore_mem>>
    %328 = tpu.memref_squeeze %327 : memref<1x!tpu.dma_semaphore, #tpu.memory_space<semaphore_mem>> -> memref<!tpu.dma_semaphore, #tpu.memory_space<semaphore_mem>>
    tpu.enqueue_dma source(%325 : memref<1x128xf32, #tpu.memory_space<any>>) target(%326 : memref<1x128xf32, #tpu.memory_space<vmem>>) target_semaphore(%328 : memref<!tpu.dma_semaphore, #tpu.memory_space<semaphore_mem>>)
    %c40_i32_206 = arith.constant 40 : i32
    %329 = arith.addi %c40_i32_206, %0 : i32
    %c1_i32_207 = arith.constant 1 : i32
    %330 = arith.addi %329, %c1_i32_207 : i32
    %331 = arith.index_cast %330 : i32 to index
    %332 = memref.load %arg1[%331] : memref<64xi32, #tpu.memory_space<smem>>
    %c1_i32_208 = arith.constant 1 : i32
    %c0_i32_209 = arith.constant 0 : i32
    %333 = tpu.memref_slice %arg2[%332, %c0_i32_209] : memref<1000x128xf32, #tpu.memory_space<any>> -> memref<1x128xf32, #tpu.memory_space<any>>
    %c41_i32 = arith.constant 41 : i32
    %c0_i32_210 = arith.constant 0 : i32
    %334 = tpu.memref_slice %arg9[%c41_i32, %c0_i32_210] : memref<64x128xf32, #tpu.memory_space<vmem>> -> memref<1x128xf32, #tpu.memory_space<vmem>>
    %335 = tpu.memref_slice %arg11[%c1_i32_208] : memref<2x!tpu.dma_semaphore, #tpu.memory_space<semaphore_mem>> -> memref<1x!tpu.dma_semaphore, #tpu.memory_space<semaphore_mem>>
    %336 = tpu.memref_squeeze %335 : memref<1x!tpu.dma_semaphore, #tpu.memory_space<semaphore_mem>> -> memref<!tpu.dma_semaphore, #tpu.memory_space<semaphore_mem>>
    tpu.enqueue_dma source(%333 : memref<1x128xf32, #tpu.memory_space<any>>) target(%334 : memref<1x128xf32, #tpu.memory_space<vmem>>) target_semaphore(%336 : memref<!tpu.dma_semaphore, #tpu.memory_space<semaphore_mem>>)
    %c40_i32_211 = arith.constant 40 : i32
    %337 = arith.addi %c40_i32_211, %0 : i32
    %c2_i32_212 = arith.constant 2 : i32
    %338 = arith.addi %337, %c2_i32_212 : i32
    %339 = arith.index_cast %338 : i32 to index
    %340 = memref.load %arg1[%339] : memref<64xi32, #tpu.memory_space<smem>>
    %c1_i32_213 = arith.constant 1 : i32
    %c0_i32_214 = arith.constant 0 : i32
    %341 = tpu.memref_slice %arg2[%340, %c0_i32_214] : memref<1000x128xf32, #tpu.memory_space<any>> -> memref<1x128xf32, #tpu.memory_space<any>>
    %c42_i32 = arith.constant 42 : i32
    %c0_i32_215 = arith.constant 0 : i32
    %342 = tpu.memref_slice %arg9[%c42_i32, %c0_i32_215] : memref<64x128xf32, #tpu.memory_space<vmem>> -> memref<1x128xf32, #tpu.memory_space<vmem>>
    %343 = tpu.memref_slice %arg11[%c1_i32_213] : memref<2x!tpu.dma_semaphore, #tpu.memory_space<semaphore_mem>> -> memref<1x!tpu.dma_semaphore, #tpu.memory_space<semaphore_mem>>
    %344 = tpu.memref_squeeze %343 : memref<1x!tpu.dma_semaphore, #tpu.memory_space<semaphore_mem>> -> memref<!tpu.dma_semaphore, #tpu.memory_space<semaphore_mem>>
    tpu.enqueue_dma source(%341 : memref<1x128xf32, #tpu.memory_space<any>>) target(%342 : memref<1x128xf32, #tpu.memory_space<vmem>>) target_semaphore(%344 : memref<!tpu.dma_semaphore, #tpu.memory_space<semaphore_mem>>)
    %c40_i32_216 = arith.constant 40 : i32
    %345 = arith.addi %c40_i32_216, %0 : i32
    %c3_i32_217 = arith.constant 3 : i32
    %346 = arith.addi %345, %c3_i32_217 : i32
    %347 = arith.index_cast %346 : i32 to index
    %348 = memref.load %arg1[%347] : memref<64xi32, #tpu.memory_space<smem>>
    %c1_i32_218 = arith.constant 1 : i32
    %c0_i32_219 = arith.constant 0 : i32
    %349 = tpu.memref_slice %arg2[%348, %c0_i32_219] : memref<1000x128xf32, #tpu.memory_space<any>> -> memref<1x128xf32, #tpu.memory_space<any>>
    %c43_i32 = arith.constant 43 : i32
    %c0_i32_220 = arith.constant 0 : i32
    %350 = tpu.memref_slice %arg9[%c43_i32, %c0_i32_220] : memref<64x128xf32, #tpu.memory_space<vmem>> -> memref<1x128xf32, #tpu.memory_space<vmem>>
    %351 = tpu.memref_slice %arg11[%c1_i32_218] : memref<2x!tpu.dma_semaphore, #tpu.memory_space<semaphore_mem>> -> memref<1x!tpu.dma_semaphore, #tpu.memory_space<semaphore_mem>>
    %352 = tpu.memref_squeeze %351 : memref<1x!tpu.dma_semaphore, #tpu.memory_space<semaphore_mem>> -> memref<!tpu.dma_semaphore, #tpu.memory_space<semaphore_mem>>
    tpu.enqueue_dma source(%349 : memref<1x128xf32, #tpu.memory_space<any>>) target(%350 : memref<1x128xf32, #tpu.memory_space<vmem>>) target_semaphore(%352 : memref<!tpu.dma_semaphore, #tpu.memory_space<semaphore_mem>>)
    %c40_i32_221 = arith.constant 40 : i32
    %353 = arith.addi %c40_i32_221, %0 : i32
    %c4_i32_222 = arith.constant 4 : i32
    %354 = arith.addi %353, %c4_i32_222 : i32
    %355 = arith.index_cast %354 : i32 to index
    %356 = memref.load %arg1[%355] : memref<64xi32, #tpu.memory_space<smem>>
    %c1_i32_223 = arith.constant 1 : i32
    %c0_i32_224 = arith.constant 0 : i32
    %357 = tpu.memref_slice %arg2[%356, %c0_i32_224] : memref<1000x128xf32, #tpu.memory_space<any>> -> memref<1x128xf32, #tpu.memory_space<any>>
    %c44_i32 = arith.constant 44 : i32
    %c0_i32_225 = arith.constant 0 : i32
    %358 = tpu.memref_slice %arg9[%c44_i32, %c0_i32_225] : memref<64x128xf32, #tpu.memory_space<vmem>> -> memref<1x128xf32, #tpu.memory_space<vmem>>
    %359 = tpu.memref_slice %arg11[%c1_i32_223] : memref<2x!tpu.dma_semaphore, #tpu.memory_space<semaphore_mem>> -> memref<1x!tpu.dma_semaphore, #tpu.memory_space<semaphore_mem>>
    %360 = tpu.memref_squeeze %359 : memref<1x!tpu.dma_semaphore, #tpu.memory_space<semaphore_mem>> -> memref<!tpu.dma_semaphore, #tpu.memory_space<semaphore_mem>>
    tpu.enqueue_dma source(%357 : memref<1x128xf32, #tpu.memory_space<any>>) target(%358 : memref<1x128xf32, #tpu.memory_space<vmem>>) target_semaphore(%360 : memref<!tpu.dma_semaphore, #tpu.memory_space<semaphore_mem>>)
    %c40_i32_226 = arith.constant 40 : i32
    %361 = arith.addi %c40_i32_226, %0 : i32
    %c5_i32_227 = arith.constant 5 : i32
    %362 = arith.addi %361, %c5_i32_227 : i32
    %363 = arith.index_cast %362 : i32 to index
    %364 = memref.load %arg1[%363] : memref<64xi32, #tpu.memory_space<smem>>
    %c1_i32_228 = arith.constant 1 : i32
    %c0_i32_229 = arith.constant 0 : i32
    %365 = tpu.memref_slice %arg2[%364, %c0_i32_229] : memref<1000x128xf32, #tpu.memory_space<any>> -> memref<1x128xf32, #tpu.memory_space<any>>
    %c45_i32 = arith.constant 45 : i32
    %c0_i32_230 = arith.constant 0 : i32
    %366 = tpu.memref_slice %arg9[%c45_i32, %c0_i32_230] : memref<64x128xf32, #tpu.memory_space<vmem>> -> memref<1x128xf32, #tpu.memory_space<vmem>>
    %367 = tpu.memref_slice %arg11[%c1_i32_228] : memref<2x!tpu.dma_semaphore, #tpu.memory_space<semaphore_mem>> -> memref<1x!tpu.dma_semaphore, #tpu.memory_space<semaphore_mem>>
    %368 = tpu.memref_squeeze %367 : memref<1x!tpu.dma_semaphore, #tpu.memory_space<semaphore_mem>> -> memref<!tpu.dma_semaphore, #tpu.memory_space<semaphore_mem>>
    tpu.enqueue_dma source(%365 : memref<1x128xf32, #tpu.memory_space<any>>) target(%366 : memref<1x128xf32, #tpu.memory_space<vmem>>) target_semaphore(%368 : memref<!tpu.dma_semaphore, #tpu.memory_space<semaphore_mem>>)
    %c40_i32_231 = arith.constant 40 : i32
    %369 = arith.addi %c40_i32_231, %0 : i32
    %c6_i32_232 = arith.constant 6 : i32
    %370 = arith.addi %369, %c6_i32_232 : i32
    %371 = arith.index_cast %370 : i32 to index
    %372 = memref.load %arg1[%371] : memref<64xi32, #tpu.memory_space<smem>>
    %c1_i32_233 = arith.constant 1 : i32
    %c0_i32_234 = arith.constant 0 : i32
    %373 = tpu.memref_slice %arg2[%372, %c0_i32_234] : memref<1000x128xf32, #tpu.memory_space<any>> -> memref<1x128xf32, #tpu.memory_space<any>>
    %c46_i32 = arith.constant 46 : i32
    %c0_i32_235 = arith.constant 0 : i32
    %374 = tpu.memref_slice %arg9[%c46_i32, %c0_i32_235] : memref<64x128xf32, #tpu.memory_space<vmem>> -> memref<1x128xf32, #tpu.memory_space<vmem>>
    %375 = tpu.memref_slice %arg11[%c1_i32_233] : memref<2x!tpu.dma_semaphore, #tpu.memory_space<semaphore_mem>> -> memref<1x!tpu.dma_semaphore, #tpu.memory_space<semaphore_mem>>
    %376 = tpu.memref_squeeze %375 : memref<1x!tpu.dma_semaphore, #tpu.memory_space<semaphore_mem>> -> memref<!tpu.dma_semaphore, #tpu.memory_space<semaphore_mem>>
    tpu.enqueue_dma source(%373 : memref<1x128xf32, #tpu.memory_space<any>>) target(%374 : memref<1x128xf32, #tpu.memory_space<vmem>>) target_semaphore(%376 : memref<!tpu.dma_semaphore, #tpu.memory_space<semaphore_mem>>)
    %c40_i32_236 = arith.constant 40 : i32
    %377 = arith.addi %c40_i32_236, %0 : i32
    %c7_i32_237 = arith.constant 7 : i32
    %378 = arith.addi %377, %c7_i32_237 : i32
    %379 = arith.index_cast %378 : i32 to index
    %380 = memref.load %arg1[%379] : memref<64xi32, #tpu.memory_space<smem>>
    %c1_i32_238 = arith.constant 1 : i32
    %c0_i32_239 = arith.constant 0 : i32
    %381 = tpu.memref_slice %arg2[%380, %c0_i32_239] : memref<1000x128xf32, #tpu.memory_space<any>> -> memref<1x128xf32, #tpu.memory_space<any>>
    %c47_i32 = arith.constant 47 : i32
    %c0_i32_240 = arith.constant 0 : i32
    %382 = tpu.memref_slice %arg9[%c47_i32, %c0_i32_240] : memref<64x128xf32, #tpu.memory_space<vmem>> -> memref<1x128xf32, #tpu.memory_space<vmem>>
    %383 = tpu.memref_slice %arg11[%c1_i32_238] : memref<2x!tpu.dma_semaphore, #tpu.memory_space<semaphore_mem>> -> memref<1x!tpu.dma_semaphore, #tpu.memory_space<semaphore_mem>>
    %384 = tpu.memref_squeeze %383 : memref<1x!tpu.dma_semaphore, #tpu.memory_space<semaphore_mem>> -> memref<!tpu.dma_semaphore, #tpu.memory_space<semaphore_mem>>
    tpu.enqueue_dma source(%381 : memref<1x128xf32, #tpu.memory_space<any>>) target(%382 : memref<1x128xf32, #tpu.memory_space<vmem>>) target_semaphore(%384 : memref<!tpu.dma_semaphore, #tpu.memory_space<semaphore_mem>>)
    %c48_i32 = arith.constant 48 : i32
    %385 = arith.addi %c48_i32, %0 : i32
    %c0_i32_241 = arith.constant 0 : i32
    %386 = arith.addi %385, %c0_i32_241 : i32
    %387 = arith.index_cast %386 : i32 to index
    %388 = memref.load %arg1[%387] : memref<64xi32, #tpu.memory_space<smem>>
    %c1_i32_242 = arith.constant 1 : i32
    %c0_i32_243 = arith.constant 0 : i32
    %389 = tpu.memref_slice %arg2[%388, %c0_i32_243] : memref<1000x128xf32, #tpu.memory_space<any>> -> memref<1x128xf32, #tpu.memory_space<any>>
    %c48_i32_244 = arith.constant 48 : i32
    %c0_i32_245 = arith.constant 0 : i32
    %390 = tpu.memref_slice %arg9[%c48_i32_244, %c0_i32_245] : memref<64x128xf32, #tpu.memory_space<vmem>> -> memref<1x128xf32, #tpu.memory_space<vmem>>
    %391 = tpu.memref_slice %arg11[%c1_i32_242] : memref<2x!tpu.dma_semaphore, #tpu.memory_space<semaphore_mem>> -> memref<1x!tpu.dma_semaphore, #tpu.memory_space<semaphore_mem>>
    %392 = tpu.memref_squeeze %391 : memref<1x!tpu.dma_semaphore, #tpu.memory_space<semaphore_mem>> -> memref<!tpu.dma_semaphore, #tpu.memory_space<semaphore_mem>>
    tpu.enqueue_dma source(%389 : memref<1x128xf32, #tpu.memory_space<any>>) target(%390 : memref<1x128xf32, #tpu.memory_space<vmem>>) target_semaphore(%392 : memref<!tpu.dma_semaphore, #tpu.memory_space<semaphore_mem>>)
    %c48_i32_246 = arith.constant 48 : i32
    %393 = arith.addi %c48_i32_246, %0 : i32
    %c1_i32_247 = arith.constant 1 : i32
    %394 = arith.addi %393, %c1_i32_247 : i32
    %395 = arith.index_cast %394 : i32 to index
    %396 = memref.load %arg1[%395] : memref<64xi32, #tpu.memory_space<smem>>
    %c1_i32_248 = arith.constant 1 : i32
    %c0_i32_249 = arith.constant 0 : i32
    %397 = tpu.memref_slice %arg2[%396, %c0_i32_249] : memref<1000x128xf32, #tpu.memory_space<any>> -> memref<1x128xf32, #tpu.memory_space<any>>
    %c49_i32 = arith.constant 49 : i32
    %c0_i32_250 = arith.constant 0 : i32
    %398 = tpu.memref_slice %arg9[%c49_i32, %c0_i32_250] : memref<64x128xf32, #tpu.memory_space<vmem>> -> memref<1x128xf32, #tpu.memory_space<vmem>>
    %399 = tpu.memref_slice %arg11[%c1_i32_248] : memref<2x!tpu.dma_semaphore, #tpu.memory_space<semaphore_mem>> -> memref<1x!tpu.dma_semaphore, #tpu.memory_space<semaphore_mem>>
    %400 = tpu.memref_squeeze %399 : memref<1x!tpu.dma_semaphore, #tpu.memory_space<semaphore_mem>> -> memref<!tpu.dma_semaphore, #tpu.memory_space<semaphore_mem>>
    tpu.enqueue_dma source(%397 : memref<1x128xf32, #tpu.memory_space<any>>) target(%398 : memref<1x128xf32, #tpu.memory_space<vmem>>) target_semaphore(%400 : memref<!tpu.dma_semaphore, #tpu.memory_space<semaphore_mem>>)
    %c48_i32_251 = arith.constant 48 : i32
    %401 = arith.addi %c48_i32_251, %0 : i32
    %c2_i32_252 = arith.constant 2 : i32
    %402 = arith.addi %401, %c2_i32_252 : i32
    %403 = arith.index_cast %402 : i32 to index
    %404 = memref.load %arg1[%403] : memref<64xi32, #tpu.memory_space<smem>>
    %c1_i32_253 = arith.constant 1 : i32
    %c0_i32_254 = arith.constant 0 : i32
    %405 = tpu.memref_slice %arg2[%404, %c0_i32_254] : memref<1000x128xf32, #tpu.memory_space<any>> -> memref<1x128xf32, #tpu.memory_space<any>>
    %c50_i32 = arith.constant 50 : i32
    %c0_i32_255 = arith.constant 0 : i32
    %406 = tpu.memref_slice %arg9[%c50_i32, %c0_i32_255] : memref<64x128xf32, #tpu.memory_space<vmem>> -> memref<1x128xf32, #tpu.memory_space<vmem>>
    %407 = tpu.memref_slice %arg11[%c1_i32_253] : memref<2x!tpu.dma_semaphore, #tpu.memory_space<semaphore_mem>> -> memref<1x!tpu.dma_semaphore, #tpu.memory_space<semaphore_mem>>
    %408 = tpu.memref_squeeze %407 : memref<1x!tpu.dma_semaphore, #tpu.memory_space<semaphore_mem>> -> memref<!tpu.dma_semaphore, #tpu.memory_space<semaphore_mem>>
    tpu.enqueue_dma source(%405 : memref<1x128xf32, #tpu.memory_space<any>>) target(%406 : memref<1x128xf32, #tpu.memory_space<vmem>>) target_semaphore(%408 : memref<!tpu.dma_semaphore, #tpu.memory_space<semaphore_mem>>)
    %c48_i32_256 = arith.constant 48 : i32
    %409 = arith.addi %c48_i32_256, %0 : i32
    %c3_i32_257 = arith.constant 3 : i32
    %410 = arith.addi %409, %c3_i32_257 : i32
    %411 = arith.index_cast %410 : i32 to index
    %412 = memref.load %arg1[%411] : memref<64xi32, #tpu.memory_space<smem>>
    %c1_i32_258 = arith.constant 1 : i32
    %c0_i32_259 = arith.constant 0 : i32
    %413 = tpu.memref_slice %arg2[%412, %c0_i32_259] : memref<1000x128xf32, #tpu.memory_space<any>> -> memref<1x128xf32, #tpu.memory_space<any>>
    %c51_i32 = arith.constant 51 : i32
    %c0_i32_260 = arith.constant 0 : i32
    %414 = tpu.memref_slice %arg9[%c51_i32, %c0_i32_260] : memref<64x128xf32, #tpu.memory_space<vmem>> -> memref<1x128xf32, #tpu.memory_space<vmem>>
    %415 = tpu.memref_slice %arg11[%c1_i32_258] : memref<2x!tpu.dma_semaphore, #tpu.memory_space<semaphore_mem>> -> memref<1x!tpu.dma_semaphore, #tpu.memory_space<semaphore_mem>>
    %416 = tpu.memref_squeeze %415 : memref<1x!tpu.dma_semaphore, #tpu.memory_space<semaphore_mem>> -> memref<!tpu.dma_semaphore, #tpu.memory_space<semaphore_mem>>
    tpu.enqueue_dma source(%413 : memref<1x128xf32, #tpu.memory_space<any>>) target(%414 : memref<1x128xf32, #tpu.memory_space<vmem>>) target_semaphore(%416 : memref<!tpu.dma_semaphore, #tpu.memory_space<semaphore_mem>>)
    %c48_i32_261 = arith.constant 48 : i32
    %417 = arith.addi %c48_i32_261, %0 : i32
    %c4_i32_262 = arith.constant 4 : i32
    %418 = arith.addi %417, %c4_i32_262 : i32
    %419 = arith.index_cast %418 : i32 to index
    %420 = memref.load %arg1[%419] : memref<64xi32, #tpu.memory_space<smem>>
    %c1_i32_263 = arith.constant 1 : i32
    %c0_i32_264 = arith.constant 0 : i32
    %421 = tpu.memref_slice %arg2[%420, %c0_i32_264] : memref<1000x128xf32, #tpu.memory_space<any>> -> memref<1x128xf32, #tpu.memory_space<any>>
    %c52_i32 = arith.constant 52 : i32
    %c0_i32_265 = arith.constant 0 : i32
    %422 = tpu.memref_slice %arg9[%c52_i32, %c0_i32_265] : memref<64x128xf32, #tpu.memory_space<vmem>> -> memref<1x128xf32, #tpu.memory_space<vmem>>
    %423 = tpu.memref_slice %arg11[%c1_i32_263] : memref<2x!tpu.dma_semaphore, #tpu.memory_space<semaphore_mem>> -> memref<1x!tpu.dma_semaphore, #tpu.memory_space<semaphore_mem>>
    %424 = tpu.memref_squeeze %423 : memref<1x!tpu.dma_semaphore, #tpu.memory_space<semaphore_mem>> -> memref<!tpu.dma_semaphore, #tpu.memory_space<semaphore_mem>>
    tpu.enqueue_dma source(%421 : memref<1x128xf32, #tpu.memory_space<any>>) target(%422 : memref<1x128xf32, #tpu.memory_space<vmem>>) target_semaphore(%424 : memref<!tpu.dma_semaphore, #tpu.memory_space<semaphore_mem>>)
    %c48_i32_266 = arith.constant 48 : i32
    %425 = arith.addi %c48_i32_266, %0 : i32
    %c5_i32_267 = arith.constant 5 : i32
    %426 = arith.addi %425, %c5_i32_267 : i32
    %427 = arith.index_cast %426 : i32 to index
    %428 = memref.load %arg1[%427] : memref<64xi32, #tpu.memory_space<smem>>
    %c1_i32_268 = arith.constant 1 : i32
    %c0_i32_269 = arith.constant 0 : i32
    %429 = tpu.memref_slice %arg2[%428, %c0_i32_269] : memref<1000x128xf32, #tpu.memory_space<any>> -> memref<1x128xf32, #tpu.memory_space<any>>
    %c53_i32 = arith.constant 53 : i32
    %c0_i32_270 = arith.constant 0 : i32
    %430 = tpu.memref_slice %arg9[%c53_i32, %c0_i32_270] : memref<64x128xf32, #tpu.memory_space<vmem>> -> memref<1x128xf32, #tpu.memory_space<vmem>>
    %431 = tpu.memref_slice %arg11[%c1_i32_268] : memref<2x!tpu.dma_semaphore, #tpu.memory_space<semaphore_mem>> -> memref<1x!tpu.dma_semaphore, #tpu.memory_space<semaphore_mem>>
    %432 = tpu.memref_squeeze %431 : memref<1x!tpu.dma_semaphore, #tpu.memory_space<semaphore_mem>> -> memref<!tpu.dma_semaphore, #tpu.memory_space<semaphore_mem>>
    tpu.enqueue_dma source(%429 : memref<1x128xf32, #tpu.memory_space<any>>) target(%430 : memref<1x128xf32, #tpu.memory_space<vmem>>) target_semaphore(%432 : memref<!tpu.dma_semaphore, #tpu.memory_space<semaphore_mem>>)
    %c48_i32_271 = arith.constant 48 : i32
    %433 = arith.addi %c48_i32_271, %0 : i32
    %c6_i32_272 = arith.constant 6 : i32
    %434 = arith.addi %433, %c6_i32_272 : i32
    %435 = arith.index_cast %434 : i32 to index
    %436 = memref.load %arg1[%435] : memref<64xi32, #tpu.memory_space<smem>>
    %c1_i32_273 = arith.constant 1 : i32
    %c0_i32_274 = arith.constant 0 : i32
    %437 = tpu.memref_slice %arg2[%436, %c0_i32_274] : memref<1000x128xf32, #tpu.memory_space<any>> -> memref<1x128xf32, #tpu.memory_space<any>>
    %c54_i32 = arith.constant 54 : i32
    %c0_i32_275 = arith.constant 0 : i32
    %438 = tpu.memref_slice %arg9[%c54_i32, %c0_i32_275] : memref<64x128xf32, #tpu.memory_space<vmem>> -> memref<1x128xf32, #tpu.memory_space<vmem>>
    %439 = tpu.memref_slice %arg11[%c1_i32_273] : memref<2x!tpu.dma_semaphore, #tpu.memory_space<semaphore_mem>> -> memref<1x!tpu.dma_semaphore, #tpu.memory_space<semaphore_mem>>
    %440 = tpu.memref_squeeze %439 : memref<1x!tpu.dma_semaphore, #tpu.memory_space<semaphore_mem>> -> memref<!tpu.dma_semaphore, #tpu.memory_space<semaphore_mem>>
    tpu.enqueue_dma source(%437 : memref<1x128xf32, #tpu.memory_space<any>>) target(%438 : memref<1x128xf32, #tpu.memory_space<vmem>>) target_semaphore(%440 : memref<!tpu.dma_semaphore, #tpu.memory_space<semaphore_mem>>)
    %c48_i32_276 = arith.constant 48 : i32
    %441 = arith.addi %c48_i32_276, %0 : i32
    %c7_i32_277 = arith.constant 7 : i32
    %442 = arith.addi %441, %c7_i32_277 : i32
    %443 = arith.index_cast %442 : i32 to index
    %444 = memref.load %arg1[%443] : memref<64xi32, #tpu.memory_space<smem>>
    %c1_i32_278 = arith.constant 1 : i32
    %c0_i32_279 = arith.constant 0 : i32
    %445 = tpu.memref_slice %arg2[%444, %c0_i32_279] : memref<1000x128xf32, #tpu.memory_space<any>> -> memref<1x128xf32, #tpu.memory_space<any>>
    %c55_i32 = arith.constant 55 : i32
    %c0_i32_280 = arith.constant 0 : i32
    %446 = tpu.memref_slice %arg9[%c55_i32, %c0_i32_280] : memref<64x128xf32, #tpu.memory_space<vmem>> -> memref<1x128xf32, #tpu.memory_space<vmem>>
    %447 = tpu.memref_slice %arg11[%c1_i32_278] : memref<2x!tpu.dma_semaphore, #tpu.memory_space<semaphore_mem>> -> memref<1x!tpu.dma_semaphore, #tpu.memory_space<semaphore_mem>>
    %448 = tpu.memref_squeeze %447 : memref<1x!tpu.dma_semaphore, #tpu.memory_space<semaphore_mem>> -> memref<!tpu.dma_semaphore, #tpu.memory_space<semaphore_mem>>
    tpu.enqueue_dma source(%445 : memref<1x128xf32, #tpu.memory_space<any>>) target(%446 : memref<1x128xf32, #tpu.memory_space<vmem>>) target_semaphore(%448 : memref<!tpu.dma_semaphore, #tpu.memory_space<semaphore_mem>>)
    %c56_i32 = arith.constant 56 : i32
    %449 = arith.addi %c56_i32, %0 : i32
    %c0_i32_281 = arith.constant 0 : i32
    %450 = arith.addi %449, %c0_i32_281 : i32
    %451 = arith.index_cast %450 : i32 to index
    %452 = memref.load %arg1[%451] : memref<64xi32, #tpu.memory_space<smem>>
    %c1_i32_282 = arith.constant 1 : i32
    %c0_i32_283 = arith.constant 0 : i32
    %453 = tpu.memref_slice %arg2[%452, %c0_i32_283] : memref<1000x128xf32, #tpu.memory_space<any>> -> memref<1x128xf32, #tpu.memory_space<any>>
    %c56_i32_284 = arith.constant 56 : i32
    %c0_i32_285 = arith.constant 0 : i32
    %454 = tpu.memref_slice %arg9[%c56_i32_284, %c0_i32_285] : memref<64x128xf32, #tpu.memory_space<vmem>> -> memref<1x128xf32, #tpu.memory_space<vmem>>
    %455 = tpu.memref_slice %arg11[%c1_i32_282] : memref<2x!tpu.dma_semaphore, #tpu.memory_space<semaphore_mem>> -> memref<1x!tpu.dma_semaphore, #tpu.memory_space<semaphore_mem>>
    %456 = tpu.memref_squeeze %455 : memref<1x!tpu.dma_semaphore, #tpu.memory_space<semaphore_mem>> -> memref<!tpu.dma_semaphore, #tpu.memory_space<semaphore_mem>>
    tpu.enqueue_dma source(%453 : memref<1x128xf32, #tpu.memory_space<any>>) target(%454 : memref<1x128xf32, #tpu.memory_space<vmem>>) target_semaphore(%456 : memref<!tpu.dma_semaphore, #tpu.memory_space<semaphore_mem>>)
    %c56_i32_286 = arith.constant 56 : i32
    %457 = arith.addi %c56_i32_286, %0 : i32
    %c1_i32_287 = arith.constant 1 : i32
    %458 = arith.addi %457, %c1_i32_287 : i32
    %459 = arith.index_cast %458 : i32 to index
    %460 = memref.load %arg1[%459] : memref<64xi32, #tpu.memory_space<smem>>
    %c1_i32_288 = arith.constant 1 : i32
    %c0_i32_289 = arith.constant 0 : i32
    %461 = tpu.memref_slice %arg2[%460, %c0_i32_289] : memref<1000x128xf32, #tpu.memory_space<any>> -> memref<1x128xf32, #tpu.memory_space<any>>
    %c57_i32 = arith.constant 57 : i32
    %c0_i32_290 = arith.constant 0 : i32
    %462 = tpu.memref_slice %arg9[%c57_i32, %c0_i32_290] : memref<64x128xf32, #tpu.memory_space<vmem>> -> memref<1x128xf32, #tpu.memory_space<vmem>>
    %463 = tpu.memref_slice %arg11[%c1_i32_288] : memref<2x!tpu.dma_semaphore, #tpu.memory_space<semaphore_mem>> -> memref<1x!tpu.dma_semaphore, #tpu.memory_space<semaphore_mem>>
    %464 = tpu.memref_squeeze %463 : memref<1x!tpu.dma_semaphore, #tpu.memory_space<semaphore_mem>> -> memref<!tpu.dma_semaphore, #tpu.memory_space<semaphore_mem>>
    tpu.enqueue_dma source(%461 : memref<1x128xf32, #tpu.memory_space<any>>) target(%462 : memref<1x128xf32, #tpu.memory_space<vmem>>) target_semaphore(%464 : memref<!tpu.dma_semaphore, #tpu.memory_space<semaphore_mem>>)
    %c56_i32_291 = arith.constant 56 : i32
    %465 = arith.addi %c56_i32_291, %0 : i32
    %c2_i32_292 = arith.constant 2 : i32
    %466 = arith.addi %465, %c2_i32_292 : i32
    %467 = arith.index_cast %466 : i32 to index
    %468 = memref.load %arg1[%467] : memref<64xi32, #tpu.memory_space<smem>>
    %c1_i32_293 = arith.constant 1 : i32
    %c0_i32_294 = arith.constant 0 : i32
    %469 = tpu.memref_slice %arg2[%468, %c0_i32_294] : memref<1000x128xf32, #tpu.memory_space<any>> -> memref<1x128xf32, #tpu.memory_space<any>>
    %c58_i32 = arith.constant 58 : i32
    %c0_i32_295 = arith.constant 0 : i32
    %470 = tpu.memref_slice %arg9[%c58_i32, %c0_i32_295] : memref<64x128xf32, #tpu.memory_space<vmem>> -> memref<1x128xf32, #tpu.memory_space<vmem>>
    %471 = tpu.memref_slice %arg11[%c1_i32_293] : memref<2x!tpu.dma_semaphore, #tpu.memory_space<semaphore_mem>> -> memref<1x!tpu.dma_semaphore, #tpu.memory_space<semaphore_mem>>
    %472 = tpu.memref_squeeze %471 : memref<1x!tpu.dma_semaphore, #tpu.memory_space<semaphore_mem>> -> memref<!tpu.dma_semaphore, #tpu.memory_space<semaphore_mem>>
    tpu.enqueue_dma source(%469 : memref<1x128xf32, #tpu.memory_space<any>>) target(%470 : memref<1x128xf32, #tpu.memory_space<vmem>>) target_semaphore(%472 : memref<!tpu.dma_semaphore, #tpu.memory_space<semaphore_mem>>)
    %c56_i32_296 = arith.constant 56 : i32
    %473 = arith.addi %c56_i32_296, %0 : i32
    %c3_i32_297 = arith.constant 3 : i32
    %474 = arith.addi %473, %c3_i32_297 : i32
    %475 = arith.index_cast %474 : i32 to index
    %476 = memref.load %arg1[%475] : memref<64xi32, #tpu.memory_space<smem>>
    %c1_i32_298 = arith.constant 1 : i32
    %c0_i32_299 = arith.constant 0 : i32
    %477 = tpu.memref_slice %arg2[%476, %c0_i32_299] : memref<1000x128xf32, #tpu.memory_space<any>> -> memref<1x128xf32, #tpu.memory_space<any>>
    %c59_i32 = arith.constant 59 : i32
    %c0_i32_300 = arith.constant 0 : i32
    %478 = tpu.memref_slice %arg9[%c59_i32, %c0_i32_300] : memref<64x128xf32, #tpu.memory_space<vmem>> -> memref<1x128xf32, #tpu.memory_space<vmem>>
    %479 = tpu.memref_slice %arg11[%c1_i32_298] : memref<2x!tpu.dma_semaphore, #tpu.memory_space<semaphore_mem>> -> memref<1x!tpu.dma_semaphore, #tpu.memory_space<semaphore_mem>>
    %480 = tpu.memref_squeeze %479 : memref<1x!tpu.dma_semaphore, #tpu.memory_space<semaphore_mem>> -> memref<!tpu.dma_semaphore, #tpu.memory_space<semaphore_mem>>
    tpu.enqueue_dma source(%477 : memref<1x128xf32, #tpu.memory_space<any>>) target(%478 : memref<1x128xf32, #tpu.memory_space<vmem>>) target_semaphore(%480 : memref<!tpu.dma_semaphore, #tpu.memory_space<semaphore_mem>>)
    %c56_i32_301 = arith.constant 56 : i32
    %481 = arith.addi %c56_i32_301, %0 : i32
    %c4_i32_302 = arith.constant 4 : i32
    %482 = arith.addi %481, %c4_i32_302 : i32
    %483 = arith.index_cast %482 : i32 to index
    %484 = memref.load %arg1[%483] : memref<64xi32, #tpu.memory_space<smem>>
    %c1_i32_303 = arith.constant 1 : i32
    %c0_i32_304 = arith.constant 0 : i32
    %485 = tpu.memref_slice %arg2[%484, %c0_i32_304] : memref<1000x128xf32, #tpu.memory_space<any>> -> memref<1x128xf32, #tpu.memory_space<any>>
    %c60_i32 = arith.constant 60 : i32
    %c0_i32_305 = arith.constant 0 : i32
    %486 = tpu.memref_slice %arg9[%c60_i32, %c0_i32_305] : memref<64x128xf32, #tpu.memory_space<vmem>> -> memref<1x128xf32, #tpu.memory_space<vmem>>
    %487 = tpu.memref_slice %arg11[%c1_i32_303] : memref<2x!tpu.dma_semaphore, #tpu.memory_space<semaphore_mem>> -> memref<1x!tpu.dma_semaphore, #tpu.memory_space<semaphore_mem>>
    %488 = tpu.memref_squeeze %487 : memref<1x!tpu.dma_semaphore, #tpu.memory_space<semaphore_mem>> -> memref<!tpu.dma_semaphore, #tpu.memory_space<semaphore_mem>>
    tpu.enqueue_dma source(%485 : memref<1x128xf32, #tpu.memory_space<any>>) target(%486 : memref<1x128xf32, #tpu.memory_space<vmem>>) target_semaphore(%488 : memref<!tpu.dma_semaphore, #tpu.memory_space<semaphore_mem>>)
    %c56_i32_306 = arith.constant 56 : i32
    %489 = arith.addi %c56_i32_306, %0 : i32
    %c5_i32_307 = arith.constant 5 : i32
    %490 = arith.addi %489, %c5_i32_307 : i32
    %491 = arith.index_cast %490 : i32 to index
    %492 = memref.load %arg1[%491] : memref<64xi32, #tpu.memory_space<smem>>
    %c1_i32_308 = arith.constant 1 : i32
    %c0_i32_309 = arith.constant 0 : i32
    %493 = tpu.memref_slice %arg2[%492, %c0_i32_309] : memref<1000x128xf32, #tpu.memory_space<any>> -> memref<1x128xf32, #tpu.memory_space<any>>
    %c61_i32 = arith.constant 61 : i32
    %c0_i32_310 = arith.constant 0 : i32
    %494 = tpu.memref_slice %arg9[%c61_i32, %c0_i32_310] : memref<64x128xf32, #tpu.memory_space<vmem>> -> memref<1x128xf32, #tpu.memory_space<vmem>>
    %495 = tpu.memref_slice %arg11[%c1_i32_308] : memref<2x!tpu.dma_semaphore, #tpu.memory_space<semaphore_mem>> -> memref<1x!tpu.dma_semaphore, #tpu.memory_space<semaphore_mem>>
    %496 = tpu.memref_squeeze %495 : memref<1x!tpu.dma_semaphore, #tpu.memory_space<semaphore_mem>> -> memref<!tpu.dma_semaphore, #tpu.memory_space<semaphore_mem>>
    tpu.enqueue_dma source(%493 : memref<1x128xf32, #tpu.memory_space<any>>) target(%494 : memref<1x128xf32, #tpu.memory_space<vmem>>) target_semaphore(%496 : memref<!tpu.dma_semaphore, #tpu.memory_space<semaphore_mem>>)
    %c56_i32_311 = arith.constant 56 : i32
    %497 = arith.addi %c56_i32_311, %0 : i32
    %c6_i32_312 = arith.constant 6 : i32
    %498 = arith.addi %497, %c6_i32_312 : i32
    %499 = arith.index_cast %498 : i32 to index
    %500 = memref.load %arg1[%499] : memref<64xi32, #tpu.memory_space<smem>>
    %c1_i32_313 = arith.constant 1 : i32
    %c0_i32_314 = arith.constant 0 : i32
    %501 = tpu.memref_slice %arg2[%500, %c0_i32_314] : memref<1000x128xf32, #tpu.memory_space<any>> -> memref<1x128xf32, #tpu.memory_space<any>>
    %c62_i32 = arith.constant 62 : i32
    %c0_i32_315 = arith.constant 0 : i32
    %502 = tpu.memref_slice %arg9[%c62_i32, %c0_i32_315] : memref<64x128xf32, #tpu.memory_space<vmem>> -> memref<1x128xf32, #tpu.memory_space<vmem>>
    %503 = tpu.memref_slice %arg11[%c1_i32_313] : memref<2x!tpu.dma_semaphore, #tpu.memory_space<semaphore_mem>> -> memref<1x!tpu.dma_semaphore, #tpu.memory_space<semaphore_mem>>
    %504 = tpu.memref_squeeze %503 : memref<1x!tpu.dma_semaphore, #tpu.memory_space<semaphore_mem>> -> memref<!tpu.dma_semaphore, #tpu.memory_space<semaphore_mem>>
    tpu.enqueue_dma source(%501 : memref<1x128xf32, #tpu.memory_space<any>>) target(%502 : memref<1x128xf32, #tpu.memory_space<vmem>>) target_semaphore(%504 : memref<!tpu.dma_semaphore, #tpu.memory_space<semaphore_mem>>)
    %c56_i32_316 = arith.constant 56 : i32
    %505 = arith.addi %c56_i32_316, %0 : i32
    %c7_i32_317 = arith.constant 7 : i32
    %506 = arith.addi %505, %c7_i32_317 : i32
    %507 = arith.index_cast %506 : i32 to index
    %508 = memref.load %arg1[%507] : memref<64xi32, #tpu.memory_space<smem>>
    %c1_i32_318 = arith.constant 1 : i32
    %c0_i32_319 = arith.constant 0 : i32
    %509 = tpu.memref_slice %arg2[%508, %c0_i32_319] : memref<1000x128xf32, #tpu.memory_space<any>> -> memref<1x128xf32, #tpu.memory_space<any>>
    %c63_i32 = arith.constant 63 : i32
    %c0_i32_320 = arith.constant 0 : i32
    %510 = tpu.memref_slice %arg9[%c63_i32, %c0_i32_320] : memref<64x128xf32, #tpu.memory_space<vmem>> -> memref<1x128xf32, #tpu.memory_space<vmem>>
    %511 = tpu.memref_slice %arg11[%c1_i32_318] : memref<2x!tpu.dma_semaphore, #tpu.memory_space<semaphore_mem>> -> memref<1x!tpu.dma_semaphore, #tpu.memory_space<semaphore_mem>>
    %512 = tpu.memref_squeeze %511 : memref<1x!tpu.dma_semaphore, #tpu.memory_space<semaphore_mem>> -> memref<!tpu.dma_semaphore, #tpu.memory_space<semaphore_mem>>
    tpu.enqueue_dma source(%509 : memref<1x128xf32, #tpu.memory_space<any>>) target(%510 : memref<1x128xf32, #tpu.memory_space<vmem>>) target_semaphore(%512 : memref<!tpu.dma_semaphore, #tpu.memory_space<semaphore_mem>>)
    %c0_i32_321 = arith.constant 0 : i32
    %c0_i32_322 = arith.constant 0 : i32
    %513 = tpu.memref_slice %arg2[%4, %c0_i32_322] : memref<1000x128xf32, #tpu.memory_space<any>> -> memref<1x128xf32, #tpu.memory_space<any>>
    %c0_i32_323 = arith.constant 0 : i32
    %c0_i32_324 = arith.constant 0 : i32
    %514 = tpu.memref_slice %arg9[%c0_i32_323, %c0_i32_324] : memref<64x128xf32, #tpu.memory_space<vmem>> -> memref<1x128xf32, #tpu.memory_space<vmem>>
    %515 = tpu.memref_slice %arg11[%c0_i32_321] : memref<2x!tpu.dma_semaphore, #tpu.memory_space<semaphore_mem>> -> memref<1x!tpu.dma_semaphore, #tpu.memory_space<semaphore_mem>>
    %516 = tpu.memref_squeeze %515 : memref<1x!tpu.dma_semaphore, #tpu.memory_space<semaphore_mem>> -> memref<!tpu.dma_semaphore, #tpu.memory_space<semaphore_mem>>
    tpu.wait_dma2 semaphore(%516 : memref<!tpu.dma_semaphore, #tpu.memory_space<semaphore_mem>>) src(%513 : memref<1x128xf32, #tpu.memory_space<any>>) dst(%514 : memref<1x128xf32, #tpu.memory_space<vmem>>)
    %c0_i32_325 = arith.constant 0 : i32
    %c0_i32_326 = arith.constant 0 : i32
    %517 = tpu.memref_slice %arg2[%12, %c0_i32_326] : memref<1000x128xf32, #tpu.memory_space<any>> -> memref<1x128xf32, #tpu.memory_space<any>>
    %c1_i32_327 = arith.constant 1 : i32
    %c0_i32_328 = arith.constant 0 : i32
    %518 = tpu.memref_slice %arg9[%c1_i32_327, %c0_i32_328] : memref<64x128xf32, #tpu.memory_space<vmem>> -> memref<1x128xf32, #tpu.memory_space<vmem>>
    %519 = tpu.memref_slice %arg11[%c0_i32_325] : memref<2x!tpu.dma_semaphore, #tpu.memory_space<semaphore_mem>> -> memref<1x!tpu.dma_semaphore, #tpu.memory_space<semaphore_mem>>
    %520 = tpu.memref_squeeze %519 : memref<1x!tpu.dma_semaphore, #tpu.memory_space<semaphore_mem>> -> memref<!tpu.dma_semaphore, #tpu.memory_space<semaphore_mem>>
    tpu.wait_dma2 semaphore(%520 : memref<!tpu.dma_semaphore, #tpu.memory_space<semaphore_mem>>) src(%517 : memref<1x128xf32, #tpu.memory_space<any>>) dst(%518 : memref<1x128xf32, #tpu.memory_space<vmem>>)
    %c0_i32_329 = arith.constant 0 : i32
    %c0_i32_330 = arith.constant 0 : i32
    %521 = tpu.memref_slice %arg2[%20, %c0_i32_330] : memref<1000x128xf32, #tpu.memory_space<any>> -> memref<1x128xf32, #tpu.memory_space<any>>
    %c2_i32_331 = arith.constant 2 : i32
    %c0_i32_332 = arith.constant 0 : i32
    %522 = tpu.memref_slice %arg9[%c2_i32_331, %c0_i32_332] : memref<64x128xf32, #tpu.memory_space<vmem>> -> memref<1x128xf32, #tpu.memory_space<vmem>>
    %523 = tpu.memref_slice %arg11[%c0_i32_329] : memref<2x!tpu.dma_semaphore, #tpu.memory_space<semaphore_mem>> -> memref<1x!tpu.dma_semaphore, #tpu.memory_space<semaphore_mem>>
    %524 = tpu.memref_squeeze %523 : memref<1x!tpu.dma_semaphore, #tpu.memory_space<semaphore_mem>> -> memref<!tpu.dma_semaphore, #tpu.memory_space<semaphore_mem>>
    tpu.wait_dma2 semaphore(%524 : memref<!tpu.dma_semaphore, #tpu.memory_space<semaphore_mem>>) src(%521 : memref<1x128xf32, #tpu.memory_space<any>>) dst(%522 : memref<1x128xf32, #tpu.memory_space<vmem>>)
    %c0_i32_333 = arith.constant 0 : i32
    %c0_i32_334 = arith.constant 0 : i32
    %525 = tpu.memref_slice %arg2[%28, %c0_i32_334] : memref<1000x128xf32, #tpu.memory_space<any>> -> memref<1x128xf32, #tpu.memory_space<any>>
    %c3_i32_335 = arith.constant 3 : i32
    %c0_i32_336 = arith.constant 0 : i32
    %526 = tpu.memref_slice %arg9[%c3_i32_335, %c0_i32_336] : memref<64x128xf32, #tpu.memory_space<vmem>> -> memref<1x128xf32, #tpu.memory_space<vmem>>
    %527 = tpu.memref_slice %arg11[%c0_i32_333] : memref<2x!tpu.dma_semaphore, #tpu.memory_space<semaphore_mem>> -> memref<1x!tpu.dma_semaphore, #tpu.memory_space<semaphore_mem>>
    %528 = tpu.memref_squeeze %527 : memref<1x!tpu.dma_semaphore, #tpu.memory_space<semaphore_mem>> -> memref<!tpu.dma_semaphore, #tpu.memory_space<semaphore_mem>>
    tpu.wait_dma2 semaphore(%528 : memref<!tpu.dma_semaphore, #tpu.memory_space<semaphore_mem>>) src(%525 : memref<1x128xf32, #tpu.memory_space<any>>) dst(%526 : memref<1x128xf32, #tpu.memory_space<vmem>>)
    %c0_i32_337 = arith.constant 0 : i32
    %c0_i32_338 = arith.constant 0 : i32
    %529 = tpu.memref_slice %arg2[%36, %c0_i32_338] : memref<1000x128xf32, #tpu.memory_space<any>> -> memref<1x128xf32, #tpu.memory_space<any>>
    %c4_i32_339 = arith.constant 4 : i32
    %c0_i32_340 = arith.constant 0 : i32
    %530 = tpu.memref_slice %arg9[%c4_i32_339, %c0_i32_340] : memref<64x128xf32, #tpu.memory_space<vmem>> -> memref<1x128xf32, #tpu.memory_space<vmem>>
    %531 = tpu.memref_slice %arg11[%c0_i32_337] : memref<2x!tpu.dma_semaphore, #tpu.memory_space<semaphore_mem>> -> memref<1x!tpu.dma_semaphore, #tpu.memory_space<semaphore_mem>>
    %532 = tpu.memref_squeeze %531 : memref<1x!tpu.dma_semaphore, #tpu.memory_space<semaphore_mem>> -> memref<!tpu.dma_semaphore, #tpu.memory_space<semaphore_mem>>
    tpu.wait_dma2 semaphore(%532 : memref<!tpu.dma_semaphore, #tpu.memory_space<semaphore_mem>>) src(%529 : memref<1x128xf32, #tpu.memory_space<any>>) dst(%530 : memref<1x128xf32, #tpu.memory_space<vmem>>)
    %c0_i32_341 = arith.constant 0 : i32
    %c0_i32_342 = arith.constant 0 : i32
    %533 = tpu.memref_slice %arg2[%44, %c0_i32_342] : memref<1000x128xf32, #tpu.memory_space<any>> -> memref<1x128xf32, #tpu.memory_space<any>>
    %c5_i32_343 = arith.constant 5 : i32
    %c0_i32_344 = arith.constant 0 : i32
    %534 = tpu.memref_slice %arg9[%c5_i32_343, %c0_i32_344] : memref<64x128xf32, #tpu.memory_space<vmem>> -> memref<1x128xf32, #tpu.memory_space<vmem>>
    %535 = tpu.memref_slice %arg11[%c0_i32_341] : memref<2x!tpu.dma_semaphore, #tpu.memory_space<semaphore_mem>> -> memref<1x!tpu.dma_semaphore, #tpu.memory_space<semaphore_mem>>
    %536 = tpu.memref_squeeze %535 : memref<1x!tpu.dma_semaphore, #tpu.memory_space<semaphore_mem>> -> memref<!tpu.dma_semaphore, #tpu.memory_space<semaphore_mem>>
    tpu.wait_dma2 semaphore(%536 : memref<!tpu.dma_semaphore, #tpu.memory_space<semaphore_mem>>) src(%533 : memref<1x128xf32, #tpu.memory_space<any>>) dst(%534 : memref<1x128xf32, #tpu.memory_space<vmem>>)
    %c0_i32_345 = arith.constant 0 : i32
    %c0_i32_346 = arith.constant 0 : i32
    %537 = tpu.memref_slice %arg2[%52, %c0_i32_346] : memref<1000x128xf32, #tpu.memory_space<any>> -> memref<1x128xf32, #tpu.memory_space<any>>
    %c6_i32_347 = arith.constant 6 : i32
    %c0_i32_348 = arith.constant 0 : i32
    %538 = tpu.memref_slice %arg9[%c6_i32_347, %c0_i32_348] : memref<64x128xf32, #tpu.memory_space<vmem>> -> memref<1x128xf32, #tpu.memory_space<vmem>>
    %539 = tpu.memref_slice %arg11[%c0_i32_345] : memref<2x!tpu.dma_semaphore, #tpu.memory_space<semaphore_mem>> -> memref<1x!tpu.dma_semaphore, #tpu.memory_space<semaphore_mem>>
    %540 = tpu.memref_squeeze %539 : memref<1x!tpu.dma_semaphore, #tpu.memory_space<semaphore_mem>> -> memref<!tpu.dma_semaphore, #tpu.memory_space<semaphore_mem>>
    tpu.wait_dma2 semaphore(%540 : memref<!tpu.dma_semaphore, #tpu.memory_space<semaphore_mem>>) src(%537 : memref<1x128xf32, #tpu.memory_space<any>>) dst(%538 : memref<1x128xf32, #tpu.memory_space<vmem>>)
    %c0_i32_349 = arith.constant 0 : i32
    %c0_i32_350 = arith.constant 0 : i32
    %541 = tpu.memref_slice %arg2[%60, %c0_i32_350] : memref<1000x128xf32, #tpu.memory_space<any>> -> memref<1x128xf32, #tpu.memory_space<any>>
    %c7_i32_351 = arith.constant 7 : i32
    %c0_i32_352 = arith.constant 0 : i32
    %542 = tpu.memref_slice %arg9[%c7_i32_351, %c0_i32_352] : memref<64x128xf32, #tpu.memory_space<vmem>> -> memref<1x128xf32, #tpu.memory_space<vmem>>
    %543 = tpu.memref_slice %arg11[%c0_i32_349] : memref<2x!tpu.dma_semaphore, #tpu.memory_space<semaphore_mem>> -> memref<1x!tpu.dma_semaphore, #tpu.memory_space<semaphore_mem>>
    %544 = tpu.memref_squeeze %543 : memref<1x!tpu.dma_semaphore, #tpu.memory_space<semaphore_mem>> -> memref<!tpu.dma_semaphore, #tpu.memory_space<semaphore_mem>>
    tpu.wait_dma2 semaphore(%544 : memref<!tpu.dma_semaphore, #tpu.memory_space<semaphore_mem>>) src(%541 : memref<1x128xf32, #tpu.memory_space<any>>) dst(%542 : memref<1x128xf32, #tpu.memory_space<vmem>>)
    %c0_i32_353 = arith.constant 0 : i32
    %c0_i32_354 = arith.constant 0 : i32
    %545 = tpu.memref_slice %arg2[%68, %c0_i32_354] : memref<1000x128xf32, #tpu.memory_space<any>> -> memref<1x128xf32, #tpu.memory_space<any>>
    %c8_i32_355 = arith.constant 8 : i32
    %c0_i32_356 = arith.constant 0 : i32
    %546 = tpu.memref_slice %arg9[%c8_i32_355, %c0_i32_356] : memref<64x128xf32, #tpu.memory_space<vmem>> -> memref<1x128xf32, #tpu.memory_space<vmem>>
    %547 = tpu.memref_slice %arg11[%c0_i32_353] : memref<2x!tpu.dma_semaphore, #tpu.memory_space<semaphore_mem>> -> memref<1x!tpu.dma_semaphore, #tpu.memory_space<semaphore_mem>>
    %548 = tpu.memref_squeeze %547 : memref<1x!tpu.dma_semaphore, #tpu.memory_space<semaphore_mem>> -> memref<!tpu.dma_semaphore, #tpu.memory_space<semaphore_mem>>
    tpu.wait_dma2 semaphore(%548 : memref<!tpu.dma_semaphore, #tpu.memory_space<semaphore_mem>>) src(%545 : memref<1x128xf32, #tpu.memory_space<any>>) dst(%546 : memref<1x128xf32, #tpu.memory_space<vmem>>)
    %c0_i32_357 = arith.constant 0 : i32
    %c0_i32_358 = arith.constant 0 : i32
    %549 = tpu.memref_slice %arg2[%76, %c0_i32_358] : memref<1000x128xf32, #tpu.memory_space<any>> -> memref<1x128xf32, #tpu.memory_space<any>>
    %c9_i32_359 = arith.constant 9 : i32
    %c0_i32_360 = arith.constant 0 : i32
    %550 = tpu.memref_slice %arg9[%c9_i32_359, %c0_i32_360] : memref<64x128xf32, #tpu.memory_space<vmem>> -> memref<1x128xf32, #tpu.memory_space<vmem>>
    %551 = tpu.memref_slice %arg11[%c0_i32_357] : memref<2x!tpu.dma_semaphore, #tpu.memory_space<semaphore_mem>> -> memref<1x!tpu.dma_semaphore, #tpu.memory_space<semaphore_mem>>
    %552 = tpu.memref_squeeze %551 : memref<1x!tpu.dma_semaphore, #tpu.memory_space<semaphore_mem>> -> memref<!tpu.dma_semaphore, #tpu.memory_space<semaphore_mem>>
    tpu.wait_dma2 semaphore(%552 : memref<!tpu.dma_semaphore, #tpu.memory_space<semaphore_mem>>) src(%549 : memref<1x128xf32, #tpu.memory_space<any>>) dst(%550 : memref<1x128xf32, #tpu.memory_space<vmem>>)
    %c0_i32_361 = arith.constant 0 : i32
    %c0_i32_362 = arith.constant 0 : i32
    %553 = tpu.memref_slice %arg2[%84, %c0_i32_362] : memref<1000x128xf32, #tpu.memory_space<any>> -> memref<1x128xf32, #tpu.memory_space<any>>
    %c10_i32_363 = arith.constant 10 : i32
    %c0_i32_364 = arith.constant 0 : i32
    %554 = tpu.memref_slice %arg9[%c10_i32_363, %c0_i32_364] : memref<64x128xf32, #tpu.memory_space<vmem>> -> memref<1x128xf32, #tpu.memory_space<vmem>>
    %555 = tpu.memref_slice %arg11[%c0_i32_361] : memref<2x!tpu.dma_semaphore, #tpu.memory_space<semaphore_mem>> -> memref<1x!tpu.dma_semaphore, #tpu.memory_space<semaphore_mem>>
    %556 = tpu.memref_squeeze %555 : memref<1x!tpu.dma_semaphore, #tpu.memory_space<semaphore_mem>> -> memref<!tpu.dma_semaphore, #tpu.memory_space<semaphore_mem>>
    tpu.wait_dma2 semaphore(%556 : memref<!tpu.dma_semaphore, #tpu.memory_space<semaphore_mem>>) src(%553 : memref<1x128xf32, #tpu.memory_space<any>>) dst(%554 : memref<1x128xf32, #tpu.memory_space<vmem>>)
    %c0_i32_365 = arith.constant 0 : i32
    %c0_i32_366 = arith.constant 0 : i32
    %557 = tpu.memref_slice %arg2[%92, %c0_i32_366] : memref<1000x128xf32, #tpu.memory_space<any>> -> memref<1x128xf32, #tpu.memory_space<any>>
    %c11_i32_367 = arith.constant 11 : i32
    %c0_i32_368 = arith.constant 0 : i32
    %558 = tpu.memref_slice %arg9[%c11_i32_367, %c0_i32_368] : memref<64x128xf32, #tpu.memory_space<vmem>> -> memref<1x128xf32, #tpu.memory_space<vmem>>
    %559 = tpu.memref_slice %arg11[%c0_i32_365] : memref<2x!tpu.dma_semaphore, #tpu.memory_space<semaphore_mem>> -> memref<1x!tpu.dma_semaphore, #tpu.memory_space<semaphore_mem>>
    %560 = tpu.memref_squeeze %559 : memref<1x!tpu.dma_semaphore, #tpu.memory_space<semaphore_mem>> -> memref<!tpu.dma_semaphore, #tpu.memory_space<semaphore_mem>>
    tpu.wait_dma2 semaphore(%560 : memref<!tpu.dma_semaphore, #tpu.memory_space<semaphore_mem>>) src(%557 : memref<1x128xf32, #tpu.memory_space<any>>) dst(%558 : memref<1x128xf32, #tpu.memory_space<vmem>>)
    %c0_i32_369 = arith.constant 0 : i32
    %c0_i32_370 = arith.constant 0 : i32
    %561 = tpu.memref_slice %arg2[%100, %c0_i32_370] : memref<1000x128xf32, #tpu.memory_space<any>> -> memref<1x128xf32, #tpu.memory_space<any>>
    %c12_i32_371 = arith.constant 12 : i32
    %c0_i32_372 = arith.constant 0 : i32
    %562 = tpu.memref_slice %arg9[%c12_i32_371, %c0_i32_372] : memref<64x128xf32, #tpu.memory_space<vmem>> -> memref<1x128xf32, #tpu.memory_space<vmem>>
    %563 = tpu.memref_slice %arg11[%c0_i32_369] : memref<2x!tpu.dma_semaphore, #tpu.memory_space<semaphore_mem>> -> memref<1x!tpu.dma_semaphore, #tpu.memory_space<semaphore_mem>>
    %564 = tpu.memref_squeeze %563 : memref<1x!tpu.dma_semaphore, #tpu.memory_space<semaphore_mem>> -> memref<!tpu.dma_semaphore, #tpu.memory_space<semaphore_mem>>
    tpu.wait_dma2 semaphore(%564 : memref<!tpu.dma_semaphore, #tpu.memory_space<semaphore_mem>>) src(%561 : memref<1x128xf32, #tpu.memory_space<any>>) dst(%562 : memref<1x128xf32, #tpu.memory_space<vmem>>)
    %c0_i32_373 = arith.constant 0 : i32
    %c0_i32_374 = arith.constant 0 : i32
    %565 = tpu.memref_slice %arg2[%108, %c0_i32_374] : memref<1000x128xf32, #tpu.memory_space<any>> -> memref<1x128xf32, #tpu.memory_space<any>>
    %c13_i32_375 = arith.constant 13 : i32
    %c0_i32_376 = arith.constant 0 : i32
    %566 = tpu.memref_slice %arg9[%c13_i32_375, %c0_i32_376] : memref<64x128xf32, #tpu.memory_space<vmem>> -> memref<1x128xf32, #tpu.memory_space<vmem>>
    %567 = tpu.memref_slice %arg11[%c0_i32_373] : memref<2x!tpu.dma_semaphore, #tpu.memory_space<semaphore_mem>> -> memref<1x!tpu.dma_semaphore, #tpu.memory_space<semaphore_mem>>
    %568 = tpu.memref_squeeze %567 : memref<1x!tpu.dma_semaphore, #tpu.memory_space<semaphore_mem>> -> memref<!tpu.dma_semaphore, #tpu.memory_space<semaphore_mem>>
    tpu.wait_dma2 semaphore(%568 : memref<!tpu.dma_semaphore, #tpu.memory_space<semaphore_mem>>) src(%565 : memref<1x128xf32, #tpu.memory_space<any>>) dst(%566 : memref<1x128xf32, #tpu.memory_space<vmem>>)
    %c0_i32_377 = arith.constant 0 : i32
    %c0_i32_378 = arith.constant 0 : i32
    %569 = tpu.memref_slice %arg2[%116, %c0_i32_378] : memref<1000x128xf32, #tpu.memory_space<any>> -> memref<1x128xf32, #tpu.memory_space<any>>
    %c14_i32_379 = arith.constant 14 : i32
    %c0_i32_380 = arith.constant 0 : i32
    %570 = tpu.memref_slice %arg9[%c14_i32_379, %c0_i32_380] : memref<64x128xf32, #tpu.memory_space<vmem>> -> memref<1x128xf32, #tpu.memory_space<vmem>>
    %571 = tpu.memref_slice %arg11[%c0_i32_377] : memref<2x!tpu.dma_semaphore, #tpu.memory_space<semaphore_mem>> -> memref<1x!tpu.dma_semaphore, #tpu.memory_space<semaphore_mem>>
    %572 = tpu.memref_squeeze %571 : memref<1x!tpu.dma_semaphore, #tpu.memory_space<semaphore_mem>> -> memref<!tpu.dma_semaphore, #tpu.memory_space<semaphore_mem>>
    tpu.wait_dma2 semaphore(%572 : memref<!tpu.dma_semaphore, #tpu.memory_space<semaphore_mem>>) src(%569 : memref<1x128xf32, #tpu.memory_space<any>>) dst(%570 : memref<1x128xf32, #tpu.memory_space<vmem>>)
    %c0_i32_381 = arith.constant 0 : i32
    %c0_i32_382 = arith.constant 0 : i32
    %573 = tpu.memref_slice %arg2[%124, %c0_i32_382] : memref<1000x128xf32, #tpu.memory_space<any>> -> memref<1x128xf32, #tpu.memory_space<any>>
    %c15_i32_383 = arith.constant 15 : i32
    %c0_i32_384 = arith.constant 0 : i32
    %574 = tpu.memref_slice %arg9[%c15_i32_383, %c0_i32_384] : memref<64x128xf32, #tpu.memory_space<vmem>> -> memref<1x128xf32, #tpu.memory_space<vmem>>
    %575 = tpu.memref_slice %arg11[%c0_i32_381] : memref<2x!tpu.dma_semaphore, #tpu.memory_space<semaphore_mem>> -> memref<1x!tpu.dma_semaphore, #tpu.memory_space<semaphore_mem>>
    %576 = tpu.memref_squeeze %575 : memref<1x!tpu.dma_semaphore, #tpu.memory_space<semaphore_mem>> -> memref<!tpu.dma_semaphore, #tpu.memory_space<semaphore_mem>>
    tpu.wait_dma2 semaphore(%576 : memref<!tpu.dma_semaphore, #tpu.memory_space<semaphore_mem>>) src(%573 : memref<1x128xf32, #tpu.memory_space<any>>) dst(%574 : memref<1x128xf32, #tpu.memory_space<vmem>>)
    %c0_i32_385 = arith.constant 0 : i32
    %c0_i32_386 = arith.constant 0 : i32
    %577 = tpu.memref_slice %arg2[%132, %c0_i32_386] : memref<1000x128xf32, #tpu.memory_space<any>> -> memref<1x128xf32, #tpu.memory_space<any>>
    %c16_i32_387 = arith.constant 16 : i32
    %c0_i32_388 = arith.constant 0 : i32
    %578 = tpu.memref_slice %arg9[%c16_i32_387, %c0_i32_388] : memref<64x128xf32, #tpu.memory_space<vmem>> -> memref<1x128xf32, #tpu.memory_space<vmem>>
    %579 = tpu.memref_slice %arg11[%c0_i32_385] : memref<2x!tpu.dma_semaphore, #tpu.memory_space<semaphore_mem>> -> memref<1x!tpu.dma_semaphore, #tpu.memory_space<semaphore_mem>>
    %580 = tpu.memref_squeeze %579 : memref<1x!tpu.dma_semaphore, #tpu.memory_space<semaphore_mem>> -> memref<!tpu.dma_semaphore, #tpu.memory_space<semaphore_mem>>
    tpu.wait_dma2 semaphore(%580 : memref<!tpu.dma_semaphore, #tpu.memory_space<semaphore_mem>>) src(%577 : memref<1x128xf32, #tpu.memory_space<any>>) dst(%578 : memref<1x128xf32, #tpu.memory_space<vmem>>)
    %c0_i32_389 = arith.constant 0 : i32
    %c0_i32_390 = arith.constant 0 : i32
    %581 = tpu.memref_slice %arg2[%140, %c0_i32_390] : memref<1000x128xf32, #tpu.memory_space<any>> -> memref<1x128xf32, #tpu.memory_space<any>>
    %c17_i32_391 = arith.constant 17 : i32
    %c0_i32_392 = arith.constant 0 : i32
    %582 = tpu.memref_slice %arg9[%c17_i32_391, %c0_i32_392] : memref<64x128xf32, #tpu.memory_space<vmem>> -> memref<1x128xf32, #tpu.memory_space<vmem>>
    %583 = tpu.memref_slice %arg11[%c0_i32_389] : memref<2x!tpu.dma_semaphore, #tpu.memory_space<semaphore_mem>> -> memref<1x!tpu.dma_semaphore, #tpu.memory_space<semaphore_mem>>
    %584 = tpu.memref_squeeze %583 : memref<1x!tpu.dma_semaphore, #tpu.memory_space<semaphore_mem>> -> memref<!tpu.dma_semaphore, #tpu.memory_space<semaphore_mem>>
    tpu.wait_dma2 semaphore(%584 : memref<!tpu.dma_semaphore, #tpu.memory_space<semaphore_mem>>) src(%581 : memref<1x128xf32, #tpu.memory_space<any>>) dst(%582 : memref<1x128xf32, #tpu.memory_space<vmem>>)
    %c0_i32_393 = arith.constant 0 : i32
    %c0_i32_394 = arith.constant 0 : i32
    %585 = tpu.memref_slice %arg2[%148, %c0_i32_394] : memref<1000x128xf32, #tpu.memory_space<any>> -> memref<1x128xf32, #tpu.memory_space<any>>
    %c18_i32_395 = arith.constant 18 : i32
    %c0_i32_396 = arith.constant 0 : i32
    %586 = tpu.memref_slice %arg9[%c18_i32_395, %c0_i32_396] : memref<64x128xf32, #tpu.memory_space<vmem>> -> memref<1x128xf32, #tpu.memory_space<vmem>>
    %587 = tpu.memref_slice %arg11[%c0_i32_393] : memref<2x!tpu.dma_semaphore, #tpu.memory_space<semaphore_mem>> -> memref<1x!tpu.dma_semaphore, #tpu.memory_space<semaphore_mem>>
    %588 = tpu.memref_squeeze %587 : memref<1x!tpu.dma_semaphore, #tpu.memory_space<semaphore_mem>> -> memref<!tpu.dma_semaphore, #tpu.memory_space<semaphore_mem>>
    tpu.wait_dma2 semaphore(%588 : memref<!tpu.dma_semaphore, #tpu.memory_space<semaphore_mem>>) src(%585 : memref<1x128xf32, #tpu.memory_space<any>>) dst(%586 : memref<1x128xf32, #tpu.memory_space<vmem>>)
    %c0_i32_397 = arith.constant 0 : i32
    %c0_i32_398 = arith.constant 0 : i32
    %589 = tpu.memref_slice %arg2[%156, %c0_i32_398] : memref<1000x128xf32, #tpu.memory_space<any>> -> memref<1x128xf32, #tpu.memory_space<any>>
    %c19_i32_399 = arith.constant 19 : i32
    %c0_i32_400 = arith.constant 0 : i32
    %590 = tpu.memref_slice %arg9[%c19_i32_399, %c0_i32_400] : memref<64x128xf32, #tpu.memory_space<vmem>> -> memref<1x128xf32, #tpu.memory_space<vmem>>
    %591 = tpu.memref_slice %arg11[%c0_i32_397] : memref<2x!tpu.dma_semaphore, #tpu.memory_space<semaphore_mem>> -> memref<1x!tpu.dma_semaphore, #tpu.memory_space<semaphore_mem>>
    %592 = tpu.memref_squeeze %591 : memref<1x!tpu.dma_semaphore, #tpu.memory_space<semaphore_mem>> -> memref<!tpu.dma_semaphore, #tpu.memory_space<semaphore_mem>>
    tpu.wait_dma2 semaphore(%592 : memref<!tpu.dma_semaphore, #tpu.memory_space<semaphore_mem>>) src(%589 : memref<1x128xf32, #tpu.memory_space<any>>) dst(%590 : memref<1x128xf32, #tpu.memory_space<vmem>>)
    %c0_i32_401 = arith.constant 0 : i32
    %c0_i32_402 = arith.constant 0 : i32
    %593 = tpu.memref_slice %arg2[%164, %c0_i32_402] : memref<1000x128xf32, #tpu.memory_space<any>> -> memref<1x128xf32, #tpu.memory_space<any>>
    %c20_i32_403 = arith.constant 20 : i32
    %c0_i32_404 = arith.constant 0 : i32
    %594 = tpu.memref_slice %arg9[%c20_i32_403, %c0_i32_404] : memref<64x128xf32, #tpu.memory_space<vmem>> -> memref<1x128xf32, #tpu.memory_space<vmem>>
    %595 = tpu.memref_slice %arg11[%c0_i32_401] : memref<2x!tpu.dma_semaphore, #tpu.memory_space<semaphore_mem>> -> memref<1x!tpu.dma_semaphore, #tpu.memory_space<semaphore_mem>>
    %596 = tpu.memref_squeeze %595 : memref<1x!tpu.dma_semaphore, #tpu.memory_space<semaphore_mem>> -> memref<!tpu.dma_semaphore, #tpu.memory_space<semaphore_mem>>
    tpu.wait_dma2 semaphore(%596 : memref<!tpu.dma_semaphore, #tpu.memory_space<semaphore_mem>>) src(%593 : memref<1x128xf32, #tpu.memory_space<any>>) dst(%594 : memref<1x128xf32, #tpu.memory_space<vmem>>)
    %c0_i32_405 = arith.constant 0 : i32
    %c0_i32_406 = arith.constant 0 : i32
    %597 = tpu.memref_slice %arg2[%172, %c0_i32_406] : memref<1000x128xf32, #tpu.memory_space<any>> -> memref<1x128xf32, #tpu.memory_space<any>>
    %c21_i32_407 = arith.constant 21 : i32
    %c0_i32_408 = arith.constant 0 : i32
    %598 = tpu.memref_slice %arg9[%c21_i32_407, %c0_i32_408] : memref<64x128xf32, #tpu.memory_space<vmem>> -> memref<1x128xf32, #tpu.memory_space<vmem>>
    %599 = tpu.memref_slice %arg11[%c0_i32_405] : memref<2x!tpu.dma_semaphore, #tpu.memory_space<semaphore_mem>> -> memref<1x!tpu.dma_semaphore, #tpu.memory_space<semaphore_mem>>
    %600 = tpu.memref_squeeze %599 : memref<1x!tpu.dma_semaphore, #tpu.memory_space<semaphore_mem>> -> memref<!tpu.dma_semaphore, #tpu.memory_space<semaphore_mem>>
    tpu.wait_dma2 semaphore(%600 : memref<!tpu.dma_semaphore, #tpu.memory_space<semaphore_mem>>) src(%597 : memref<1x128xf32, #tpu.memory_space<any>>) dst(%598 : memref<1x128xf32, #tpu.memory_space<vmem>>)
    %c0_i32_409 = arith.constant 0 : i32
    %c0_i32_410 = arith.constant 0 : i32
    %601 = tpu.memref_slice %arg2[%180, %c0_i32_410] : memref<1000x128xf32, #tpu.memory_space<any>> -> memref<1x128xf32, #tpu.memory_space<any>>
    %c22_i32_411 = arith.constant 22 : i32
    %c0_i32_412 = arith.constant 0 : i32
    %602 = tpu.memref_slice %arg9[%c22_i32_411, %c0_i32_412] : memref<64x128xf32, #tpu.memory_space<vmem>> -> memref<1x128xf32, #tpu.memory_space<vmem>>
    %603 = tpu.memref_slice %arg11[%c0_i32_409] : memref<2x!tpu.dma_semaphore, #tpu.memory_space<semaphore_mem>> -> memref<1x!tpu.dma_semaphore, #tpu.memory_space<semaphore_mem>>
    %604 = tpu.memref_squeeze %603 : memref<1x!tpu.dma_semaphore, #tpu.memory_space<semaphore_mem>> -> memref<!tpu.dma_semaphore, #tpu.memory_space<semaphore_mem>>
    tpu.wait_dma2 semaphore(%604 : memref<!tpu.dma_semaphore, #tpu.memory_space<semaphore_mem>>) src(%601 : memref<1x128xf32, #tpu.memory_space<any>>) dst(%602 : memref<1x128xf32, #tpu.memory_space<vmem>>)
    %c0_i32_413 = arith.constant 0 : i32
    %c0_i32_414 = arith.constant 0 : i32
    %605 = tpu.memref_slice %arg2[%188, %c0_i32_414] : memref<1000x128xf32, #tpu.memory_space<any>> -> memref<1x128xf32, #tpu.memory_space<any>>
    %c23_i32_415 = arith.constant 23 : i32
    %c0_i32_416 = arith.constant 0 : i32
    %606 = tpu.memref_slice %arg9[%c23_i32_415, %c0_i32_416] : memref<64x128xf32, #tpu.memory_space<vmem>> -> memref<1x128xf32, #tpu.memory_space<vmem>>
    %607 = tpu.memref_slice %arg11[%c0_i32_413] : memref<2x!tpu.dma_semaphore, #tpu.memory_space<semaphore_mem>> -> memref<1x!tpu.dma_semaphore, #tpu.memory_space<semaphore_mem>>
    %608 = tpu.memref_squeeze %607 : memref<1x!tpu.dma_semaphore, #tpu.memory_space<semaphore_mem>> -> memref<!tpu.dma_semaphore, #tpu.memory_space<semaphore_mem>>
    tpu.wait_dma2 semaphore(%608 : memref<!tpu.dma_semaphore, #tpu.memory_space<semaphore_mem>>) src(%605 : memref<1x128xf32, #tpu.memory_space<any>>) dst(%606 : memref<1x128xf32, #tpu.memory_space<vmem>>)
    %c0_i32_417 = arith.constant 0 : i32
    %c0_i32_418 = arith.constant 0 : i32
    %609 = tpu.memref_slice %arg2[%196, %c0_i32_418] : memref<1000x128xf32, #tpu.memory_space<any>> -> memref<1x128xf32, #tpu.memory_space<any>>
    %c24_i32_419 = arith.constant 24 : i32
    %c0_i32_420 = arith.constant 0 : i32
    %610 = tpu.memref_slice %arg9[%c24_i32_419, %c0_i32_420] : memref<64x128xf32, #tpu.memory_space<vmem>> -> memref<1x128xf32, #tpu.memory_space<vmem>>
    %611 = tpu.memref_slice %arg11[%c0_i32_417] : memref<2x!tpu.dma_semaphore, #tpu.memory_space<semaphore_mem>> -> memref<1x!tpu.dma_semaphore, #tpu.memory_space<semaphore_mem>>
    %612 = tpu.memref_squeeze %611 : memref<1x!tpu.dma_semaphore, #tpu.memory_space<semaphore_mem>> -> memref<!tpu.dma_semaphore, #tpu.memory_space<semaphore_mem>>
    tpu.wait_dma2 semaphore(%612 : memref<!tpu.dma_semaphore, #tpu.memory_space<semaphore_mem>>) src(%609 : memref<1x128xf32, #tpu.memory_space<any>>) dst(%610 : memref<1x128xf32, #tpu.memory_space<vmem>>)
    %c0_i32_421 = arith.constant 0 : i32
    %c0_i32_422 = arith.constant 0 : i32
    %613 = tpu.memref_slice %arg2[%204, %c0_i32_422] : memref<1000x128xf32, #tpu.memory_space<any>> -> memref<1x128xf32, #tpu.memory_space<any>>
    %c25_i32_423 = arith.constant 25 : i32
    %c0_i32_424 = arith.constant 0 : i32
    %614 = tpu.memref_slice %arg9[%c25_i32_423, %c0_i32_424] : memref<64x128xf32, #tpu.memory_space<vmem>> -> memref<1x128xf32, #tpu.memory_space<vmem>>
    %615 = tpu.memref_slice %arg11[%c0_i32_421] : memref<2x!tpu.dma_semaphore, #tpu.memory_space<semaphore_mem>> -> memref<1x!tpu.dma_semaphore, #tpu.memory_space<semaphore_mem>>
    %616 = tpu.memref_squeeze %615 : memref<1x!tpu.dma_semaphore, #tpu.memory_space<semaphore_mem>> -> memref<!tpu.dma_semaphore, #tpu.memory_space<semaphore_mem>>
    tpu.wait_dma2 semaphore(%616 : memref<!tpu.dma_semaphore, #tpu.memory_space<semaphore_mem>>) src(%613 : memref<1x128xf32, #tpu.memory_space<any>>) dst(%614 : memref<1x128xf32, #tpu.memory_space<vmem>>)
    %c0_i32_425 = arith.constant 0 : i32
    %c0_i32_426 = arith.constant 0 : i32
    %617 = tpu.memref_slice %arg2[%212, %c0_i32_426] : memref<1000x128xf32, #tpu.memory_space<any>> -> memref<1x128xf32, #tpu.memory_space<any>>
    %c26_i32_427 = arith.constant 26 : i32
    %c0_i32_428 = arith.constant 0 : i32
    %618 = tpu.memref_slice %arg9[%c26_i32_427, %c0_i32_428] : memref<64x128xf32, #tpu.memory_space<vmem>> -> memref<1x128xf32, #tpu.memory_space<vmem>>
    %619 = tpu.memref_slice %arg11[%c0_i32_425] : memref<2x!tpu.dma_semaphore, #tpu.memory_space<semaphore_mem>> -> memref<1x!tpu.dma_semaphore, #tpu.memory_space<semaphore_mem>>
    %620 = tpu.memref_squeeze %619 : memref<1x!tpu.dma_semaphore, #tpu.memory_space<semaphore_mem>> -> memref<!tpu.dma_semaphore, #tpu.memory_space<semaphore_mem>>
    tpu.wait_dma2 semaphore(%620 : memref<!tpu.dma_semaphore, #tpu.memory_space<semaphore_mem>>) src(%617 : memref<1x128xf32, #tpu.memory_space<any>>) dst(%618 : memref<1x128xf32, #tpu.memory_space<vmem>>)
    %c0_i32_429 = arith.constant 0 : i32
    %c0_i32_430 = arith.constant 0 : i32
    %621 = tpu.memref_slice %arg2[%220, %c0_i32_430] : memref<1000x128xf32, #tpu.memory_space<any>> -> memref<1x128xf32, #tpu.memory_space<any>>
    %c27_i32_431 = arith.constant 27 : i32
    %c0_i32_432 = arith.constant 0 : i32
    %622 = tpu.memref_slice %arg9[%c27_i32_431, %c0_i32_432] : memref<64x128xf32, #tpu.memory_space<vmem>> -> memref<1x128xf32, #tpu.memory_space<vmem>>
    %623 = tpu.memref_slice %arg11[%c0_i32_429] : memref<2x!tpu.dma_semaphore, #tpu.memory_space<semaphore_mem>> -> memref<1x!tpu.dma_semaphore, #tpu.memory_space<semaphore_mem>>
    %624 = tpu.memref_squeeze %623 : memref<1x!tpu.dma_semaphore, #tpu.memory_space<semaphore_mem>> -> memref<!tpu.dma_semaphore, #tpu.memory_space<semaphore_mem>>
    tpu.wait_dma2 semaphore(%624 : memref<!tpu.dma_semaphore, #tpu.memory_space<semaphore_mem>>) src(%621 : memref<1x128xf32, #tpu.memory_space<any>>) dst(%622 : memref<1x128xf32, #tpu.memory_space<vmem>>)
    %c0_i32_433 = arith.constant 0 : i32
    %c0_i32_434 = arith.constant 0 : i32
    %625 = tpu.memref_slice %arg2[%228, %c0_i32_434] : memref<1000x128xf32, #tpu.memory_space<any>> -> memref<1x128xf32, #tpu.memory_space<any>>
    %c28_i32_435 = arith.constant 28 : i32
    %c0_i32_436 = arith.constant 0 : i32
    %626 = tpu.memref_slice %arg9[%c28_i32_435, %c0_i32_436] : memref<64x128xf32, #tpu.memory_space<vmem>> -> memref<1x128xf32, #tpu.memory_space<vmem>>
    %627 = tpu.memref_slice %arg11[%c0_i32_433] : memref<2x!tpu.dma_semaphore, #tpu.memory_space<semaphore_mem>> -> memref<1x!tpu.dma_semaphore, #tpu.memory_space<semaphore_mem>>
    %628 = tpu.memref_squeeze %627 : memref<1x!tpu.dma_semaphore, #tpu.memory_space<semaphore_mem>> -> memref<!tpu.dma_semaphore, #tpu.memory_space<semaphore_mem>>
    tpu.wait_dma2 semaphore(%628 : memref<!tpu.dma_semaphore, #tpu.memory_space<semaphore_mem>>) src(%625 : memref<1x128xf32, #tpu.memory_space<any>>) dst(%626 : memref<1x128xf32, #tpu.memory_space<vmem>>)
    %c0_i32_437 = arith.constant 0 : i32
    %c0_i32_438 = arith.constant 0 : i32
    %629 = tpu.memref_slice %arg2[%236, %c0_i32_438] : memref<1000x128xf32, #tpu.memory_space<any>> -> memref<1x128xf32, #tpu.memory_space<any>>
    %c29_i32_439 = arith.constant 29 : i32
    %c0_i32_440 = arith.constant 0 : i32
    %630 = tpu.memref_slice %arg9[%c29_i32_439, %c0_i32_440] : memref<64x128xf32, #tpu.memory_space<vmem>> -> memref<1x128xf32, #tpu.memory_space<vmem>>
    %631 = tpu.memref_slice %arg11[%c0_i32_437] : memref<2x!tpu.dma_semaphore, #tpu.memory_space<semaphore_mem>> -> memref<1x!tpu.dma_semaphore, #tpu.memory_space<semaphore_mem>>
    %632 = tpu.memref_squeeze %631 : memref<1x!tpu.dma_semaphore, #tpu.memory_space<semaphore_mem>> -> memref<!tpu.dma_semaphore, #tpu.memory_space<semaphore_mem>>
    tpu.wait_dma2 semaphore(%632 : memref<!tpu.dma_semaphore, #tpu.memory_space<semaphore_mem>>) src(%629 : memref<1x128xf32, #tpu.memory_space<any>>) dst(%630 : memref<1x128xf32, #tpu.memory_space<vmem>>)
    %c0_i32_441 = arith.constant 0 : i32
    %c0_i32_442 = arith.constant 0 : i32
    %633 = tpu.memref_slice %arg2[%244, %c0_i32_442] : memref<1000x128xf32, #tpu.memory_space<any>> -> memref<1x128xf32, #tpu.memory_space<any>>
    %c30_i32_443 = arith.constant 30 : i32
    %c0_i32_444 = arith.constant 0 : i32
    %634 = tpu.memref_slice %arg9[%c30_i32_443, %c0_i32_444] : memref<64x128xf32, #tpu.memory_space<vmem>> -> memref<1x128xf32, #tpu.memory_space<vmem>>
    %635 = tpu.memref_slice %arg11[%c0_i32_441] : memref<2x!tpu.dma_semaphore, #tpu.memory_space<semaphore_mem>> -> memref<1x!tpu.dma_semaphore, #tpu.memory_space<semaphore_mem>>
    %636 = tpu.memref_squeeze %635 : memref<1x!tpu.dma_semaphore, #tpu.memory_space<semaphore_mem>> -> memref<!tpu.dma_semaphore, #tpu.memory_space<semaphore_mem>>
    tpu.wait_dma2 semaphore(%636 : memref<!tpu.dma_semaphore, #tpu.memory_space<semaphore_mem>>) src(%633 : memref<1x128xf32, #tpu.memory_space<any>>) dst(%634 : memref<1x128xf32, #tpu.memory_space<vmem>>)
    %c0_i32_445 = arith.constant 0 : i32
    %c0_i32_446 = arith.constant 0 : i32
    %637 = tpu.memref_slice %arg2[%252, %c0_i32_446] : memref<1000x128xf32, #tpu.memory_space<any>> -> memref<1x128xf32, #tpu.memory_space<any>>
    %c31_i32_447 = arith.constant 31 : i32
    %c0_i32_448 = arith.constant 0 : i32
    %638 = tpu.memref_slice %arg9[%c31_i32_447, %c0_i32_448] : memref<64x128xf32, #tpu.memory_space<vmem>> -> memref<1x128xf32, #tpu.memory_space<vmem>>
    %639 = tpu.memref_slice %arg11[%c0_i32_445] : memref<2x!tpu.dma_semaphore, #tpu.memory_space<semaphore_mem>> -> memref<1x!tpu.dma_semaphore, #tpu.memory_space<semaphore_mem>>
    %640 = tpu.memref_squeeze %639 : memref<1x!tpu.dma_semaphore, #tpu.memory_space<semaphore_mem>> -> memref<!tpu.dma_semaphore, #tpu.memory_space<semaphore_mem>>
    tpu.wait_dma2 semaphore(%640 : memref<!tpu.dma_semaphore, #tpu.memory_space<semaphore_mem>>) src(%637 : memref<1x128xf32, #tpu.memory_space<any>>) dst(%638 : memref<1x128xf32, #tpu.memory_space<vmem>>)
    %c0 = arith.constant 0 : index
    %c0_449 = arith.constant 0 : index
    %641 = vector.load %arg9[%c0, %c0_449] : memref<64x128xf32, #tpu.memory_space<vmem>>, vector<32x128xf32>
    %642 = arith.truncf %641 : vector<32x128xf32> to vector<32x128xbf16>
    %c0_450 = arith.constant 0 : index
    %c0_451 = arith.constant 0 : index
    %643 = vector.load %arg3[%c0_450, %c0_451] : memref<128x512xbf16, #tpu.memory_space<vmem>>, vector<128x512xbf16>
    %cst = arith.constant dense<0.000000e+00> : vector<32x512xf32>
    %644 = tpu.matmul %642, %643, %cst {dimension_numbers = #tpu.dot_dimension_numbers<[1], [0], [0], [1], [0, 0, 1, 1], [], []>} : vector<32x128xbf16>, vector<128x512xbf16>, vector<32x512xf32> -> vector<32x512xf32>
    %c0_452 = arith.constant 0 : index
    %c0_453 = arith.constant 0 : index
    %645 = vector.load %arg5[%c0_452, %c0_453] : memref<1x512xf32, #tpu.memory_space<vmem>>, vector<1x512xf32>
    %646 = vector.broadcast %645 : vector<1x512xf32> to vector<32x512xf32>
    %647 = arith.addf %644, %646 : vector<32x512xf32>
    %648 = vector.extract_strided_slice %647 {offsets = [0, 0], sizes = [8, 512], strides = [1, 1]} : vector<32x512xf32> to vector<8x512xf32>
    %c0_454 = arith.constant 0 : index
    %c0_455 = arith.constant 0 : index
    %c0_456 = arith.constant 0 : index
    %c0_457 = arith.constant 0 : index
    %649 = vector.load %arg10[%c0_454, %c0_455, %c0_456, %c0_457] : memref<2x4x8x512xf32, #tpu.memory_space<vmem>>, vector<1x1x8x512xf32>
    %650 = vector.shape_cast %649 : vector<1x1x8x512xf32> to vector<8x512xf32>
    %651 = vector.shape_cast %648 : vector<8x512xf32> to vector<1x1x8x512xf32>
    tpu.vector_store %arg10[%c0_454, %c0_455, %c0_456, %c0_457], %651 {strides = array<i32>} : memref<2x4x8x512xf32, #tpu.memory_space<vmem>>, vector<1x1x8x512xf32>,
    %652 = vector.extract_strided_slice %647 {offsets = [8, 0], sizes = [8, 512], strides = [1, 1]} : vector<32x512xf32> to vector<8x512xf32>
    %c0_458 = arith.constant 0 : index
    %c1 = arith.constant 1 : index
    %c0_459 = arith.constant 0 : index
    %c0_460 = arith.constant 0 : index
    %653 = vector.load %arg10[%c0_458, %c1, %c0_459, %c0_460] : memref<2x4x8x512xf32, #tpu.memory_space<vmem>>, vector<1x1x8x512xf32>
    %654 = vector.shape_cast %653 : vector<1x1x8x512xf32> to vector<8x512xf32>
    %655 = vector.shape_cast %652 : vector<8x512xf32> to vector<1x1x8x512xf32>
    tpu.vector_store %arg10[%c0_458, %c1, %c0_459, %c0_460], %655 {strides = array<i32>} : memref<2x4x8x512xf32, #tpu.memory_space<vmem>>, vector<1x1x8x512xf32>,
    %656 = vector.extract_strided_slice %647 {offsets = [16, 0], sizes = [8, 512], strides = [1, 1]} : vector<32x512xf32> to vector<8x512xf32>
    %c0_461 = arith.constant 0 : index
    %c2 = arith.constant 2 : index
    %c0_462 = arith.constant 0 : index
    %c0_463 = arith.constant 0 : index
    %657 = vector.load %arg10[%c0_461, %c2, %c0_462, %c0_463] : memref<2x4x8x512xf32, #tpu.memory_space<vmem>>, vector<1x1x8x512xf32>
    %658 = vector.shape_cast %657 : vector<1x1x8x512xf32> to vector<8x512xf32>
    %659 = vector.shape_cast %656 : vector<8x512xf32> to vector<1x1x8x512xf32>
    tpu.vector_store %arg10[%c0_461, %c2, %c0_462, %c0_463], %659 {strides = array<i32>} : memref<2x4x8x512xf32, #tpu.memory_space<vmem>>, vector<1x1x8x512xf32>,
    %660 = vector.extract_strided_slice %647 {offsets = [24, 0], sizes = [8, 512], strides = [1, 1]} : vector<32x512xf32> to vector<8x512xf32>
    %c0_464 = arith.constant 0 : index
    %c3 = arith.constant 3 : index
    %c0_465 = arith.constant 0 : index
    %c0_466 = arith.constant 0 : index
    %661 = vector.load %arg10[%c0_464, %c3, %c0_465, %c0_466] : memref<2x4x8x512xf32, #tpu.memory_space<vmem>>, vector<1x1x8x512xf32>
    %662 = vector.shape_cast %661 : vector<1x1x8x512xf32> to vector<8x512xf32>
    %663 = vector.shape_cast %660 : vector<8x512xf32> to vector<1x1x8x512xf32>
    tpu.vector_store %arg10[%c0_464, %c3, %c0_465, %c0_466], %663 {strides = array<i32>} : memref<2x4x8x512xf32, #tpu.memory_space<vmem>>, vector<1x1x8x512xf32>,
    %cst_467 = arith.constant 0.000000e+00 : f32
    %664 = vector.broadcast %cst_467 : f32 to vector<8x128xf32>
    %cst_468 = arith.constant 0.000000e+00 : f32
    %665 = vector.broadcast %cst_468 : f32 to vector<8x128xf32>
    %c1_i32_469 = arith.constant 1 : i32
    %c0_i32_470 = arith.constant 0 : i32
    %666 = tpu.memref_slice %arg2[%260, %c0_i32_470] : memref<1000x128xf32, #tpu.memory_space<any>> -> memref<1x128xf32, #tpu.memory_space<any>>
    %c32_i32_471 = arith.constant 32 : i32
    %c0_i32_472 = arith.constant 0 : i32
    %667 = tpu.memref_slice %arg9[%c32_i32_471, %c0_i32_472] : memref<64x128xf32, #tpu.memory_space<vmem>> -> memref<1x128xf32, #tpu.memory_space<vmem>>
    %668 = tpu.memref_slice %arg11[%c1_i32_469] : memref<2x!tpu.dma_semaphore, #tpu.memory_space<semaphore_mem>> -> memref<1x!tpu.dma_semaphore, #tpu.memory_space<semaphore_mem>>
    %669 = tpu.memref_squeeze %668 : memref<1x!tpu.dma_semaphore, #tpu.memory_space<semaphore_mem>> -> memref<!tpu.dma_semaphore, #tpu.memory_space<semaphore_mem>>
    tpu.wait_dma2 semaphore(%669 : memref<!tpu.dma_semaphore, #tpu.memory_space<semaphore_mem>>) src(%666 : memref<1x128xf32, #tpu.memory_space<any>>) dst(%667 : memref<1x128xf32, #tpu.memory_space<vmem>>)
    %c1_i32_473 = arith.constant 1 : i32
    %c0_i32_474 = arith.constant 0 : i32
    %670 = tpu.memref_slice %arg2[%268, %c0_i32_474] : memref<1000x128xf32, #tpu.memory_space<any>> -> memref<1x128xf32, #tpu.memory_space<any>>
    %c33_i32_475 = arith.constant 33 : i32
    %c0_i32_476 = arith.constant 0 : i32
    %671 = tpu.memref_slice %arg9[%c33_i32_475, %c0_i32_476] : memref<64x128xf32, #tpu.memory_space<vmem>> -> memref<1x128xf32, #tpu.memory_space<vmem>>
    %672 = tpu.memref_slice %arg11[%c1_i32_473] : memref<2x!tpu.dma_semaphore, #tpu.memory_space<semaphore_mem>> -> memref<1x!tpu.dma_semaphore, #tpu.memory_space<semaphore_mem>>
    %673 = tpu.memref_squeeze %672 : memref<1x!tpu.dma_semaphore, #tpu.memory_space<semaphore_mem>> -> memref<!tpu.dma_semaphore, #tpu.memory_space<semaphore_mem>>
    tpu.wait_dma2 semaphore(%673 : memref<!tpu.dma_semaphore, #tpu.memory_space<semaphore_mem>>) src(%670 : memref<1x128xf32, #tpu.memory_space<any>>) dst(%671 : memref<1x128xf32, #tpu.memory_space<vmem>>)
    %c1_i32_477 = arith.constant 1 : i32
    %c0_i32_478 = arith.constant 0 : i32
    %674 = tpu.memref_slice %arg2[%276, %c0_i32_478] : memref<1000x128xf32, #tpu.memory_space<any>> -> memref<1x128xf32, #tpu.memory_space<any>>
    %c34_i32_479 = arith.constant 34 : i32
    %c0_i32_480 = arith.constant 0 : i32
    %675 = tpu.memref_slice %arg9[%c34_i32_479, %c0_i32_480] : memref<64x128xf32, #tpu.memory_space<vmem>> -> memref<1x128xf32, #tpu.memory_space<vmem>>
    %676 = tpu.memref_slice %arg11[%c1_i32_477] : memref<2x!tpu.dma_semaphore, #tpu.memory_space<semaphore_mem>> -> memref<1x!tpu.dma_semaphore, #tpu.memory_space<semaphore_mem>>
    %677 = tpu.memref_squeeze %676 : memref<1x!tpu.dma_semaphore, #tpu.memory_space<semaphore_mem>> -> memref<!tpu.dma_semaphore, #tpu.memory_space<semaphore_mem>>
    tpu.wait_dma2 semaphore(%677 : memref<!tpu.dma_semaphore, #tpu.memory_space<semaphore_mem>>) src(%674 : memref<1x128xf32, #tpu.memory_space<any>>) dst(%675 : memref<1x128xf32, #tpu.memory_space<vmem>>)
    %c1_i32_481 = arith.constant 1 : i32
    %c0_i32_482 = arith.constant 0 : i32
    %678 = tpu.memref_slice %arg2[%284, %c0_i32_482] : memref<1000x128xf32, #tpu.memory_space<any>> -> memref<1x128xf32, #tpu.memory_space<any>>
    %c35_i32_483 = arith.constant 35 : i32
    %c0_i32_484 = arith.constant 0 : i32
    %679 = tpu.memref_slice %arg9[%c35_i32_483, %c0_i32_484] : memref<64x128xf32, #tpu.memory_space<vmem>> -> memref<1x128xf32, #tpu.memory_space<vmem>>
    %680 = tpu.memref_slice %arg11[%c1_i32_481] : memref<2x!tpu.dma_semaphore, #tpu.memory_space<semaphore_mem>> -> memref<1x!tpu.dma_semaphore, #tpu.memory_space<semaphore_mem>>
    %681 = tpu.memref_squeeze %680 : memref<1x!tpu.dma_semaphore, #tpu.memory_space<semaphore_mem>> -> memref<!tpu.dma_semaphore, #tpu.memory_space<semaphore_mem>>
    tpu.wait_dma2 semaphore(%681 : memref<!tpu.dma_semaphore, #tpu.memory_space<semaphore_mem>>) src(%678 : memref<1x128xf32, #tpu.memory_space<any>>) dst(%679 : memref<1x128xf32, #tpu.memory_space<vmem>>)
    %c1_i32_485 = arith.constant 1 : i32
    %c0_i32_486 = arith.constant 0 : i32
    %682 = tpu.memref_slice %arg2[%292, %c0_i32_486] : memref<1000x128xf32, #tpu.memory_space<any>> -> memref<1x128xf32, #tpu.memory_space<any>>
    %c36_i32_487 = arith.constant 36 : i32
    %c0_i32_488 = arith.constant 0 : i32
    %683 = tpu.memref_slice %arg9[%c36_i32_487, %c0_i32_488] : memref<64x128xf32, #tpu.memory_space<vmem>> -> memref<1x128xf32, #tpu.memory_space<vmem>>
    %684 = tpu.memref_slice %arg11[%c1_i32_485] : memref<2x!tpu.dma_semaphore, #tpu.memory_space<semaphore_mem>> -> memref<1x!tpu.dma_semaphore, #tpu.memory_space<semaphore_mem>>
    %685 = tpu.memref_squeeze %684 : memref<1x!tpu.dma_semaphore, #tpu.memory_space<semaphore_mem>> -> memref<!tpu.dma_semaphore, #tpu.memory_space<semaphore_mem>>
    tpu.wait_dma2 semaphore(%685 : memref<!tpu.dma_semaphore, #tpu.memory_space<semaphore_mem>>) src(%682 : memref<1x128xf32, #tpu.memory_space<any>>) dst(%683 : memref<1x128xf32, #tpu.memory_space<vmem>>)
    %c1_i32_489 = arith.constant 1 : i32
    %c0_i32_490 = arith.constant 0 : i32
    %686 = tpu.memref_slice %arg2[%300, %c0_i32_490] : memref<1000x128xf32, #tpu.memory_space<any>> -> memref<1x128xf32, #tpu.memory_space<any>>
    %c37_i32_491 = arith.constant 37 : i32
    %c0_i32_492 = arith.constant 0 : i32
    %687 = tpu.memref_slice %arg9[%c37_i32_491, %c0_i32_492] : memref<64x128xf32, #tpu.memory_space<vmem>> -> memref<1x128xf32, #tpu.memory_space<vmem>>
    %688 = tpu.memref_slice %arg11[%c1_i32_489] : memref<2x!tpu.dma_semaphore, #tpu.memory_space<semaphore_mem>> -> memref<1x!tpu.dma_semaphore, #tpu.memory_space<semaphore_mem>>
    %689 = tpu.memref_squeeze %688 : memref<1x!tpu.dma_semaphore, #tpu.memory_space<semaphore_mem>> -> memref<!tpu.dma_semaphore, #tpu.memory_space<semaphore_mem>>
    tpu.wait_dma2 semaphore(%689 : memref<!tpu.dma_semaphore, #tpu.memory_space<semaphore_mem>>) src(%686 : memref<1x128xf32, #tpu.memory_space<any>>) dst(%687 : memref<1x128xf32, #tpu.memory_space<vmem>>)
    %c1_i32_493 = arith.constant 1 : i32
    %c0_i32_494 = arith.constant 0 : i32
    %690 = tpu.memref_slice %arg2[%308, %c0_i32_494] : memref<1000x128xf32, #tpu.memory_space<any>> -> memref<1x128xf32, #tpu.memory_space<any>>
    %c38_i32_495 = arith.constant 38 : i32
    %c0_i32_496 = arith.constant 0 : i32
    %691 = tpu.memref_slice %arg9[%c38_i32_495, %c0_i32_496] : memref<64x128xf32, #tpu.memory_space<vmem>> -> memref<1x128xf32, #tpu.memory_space<vmem>>
    %692 = tpu.memref_slice %arg11[%c1_i32_493] : memref<2x!tpu.dma_semaphore, #tpu.memory_space<semaphore_mem>> -> memref<1x!tpu.dma_semaphore, #tpu.memory_space<semaphore_mem>>
    %693 = tpu.memref_squeeze %692 : memref<1x!tpu.dma_semaphore, #tpu.memory_space<semaphore_mem>> -> memref<!tpu.dma_semaphore, #tpu.memory_space<semaphore_mem>>
    tpu.wait_dma2 semaphore(%693 : memref<!tpu.dma_semaphore, #tpu.memory_space<semaphore_mem>>) src(%690 : memref<1x128xf32, #tpu.memory_space<any>>) dst(%691 : memref<1x128xf32, #tpu.memory_space<vmem>>)
    %c1_i32_497 = arith.constant 1 : i32
    %c0_i32_498 = arith.constant 0 : i32
    %694 = tpu.memref_slice %arg2[%316, %c0_i32_498] : memref<1000x128xf32, #tpu.memory_space<any>> -> memref<1x128xf32, #tpu.memory_space<any>>
    %c39_i32_499 = arith.constant 39 : i32
    %c0_i32_500 = arith.constant 0 : i32
    %695 = tpu.memref_slice %arg9[%c39_i32_499, %c0_i32_500] : memref<64x128xf32, #tpu.memory_space<vmem>> -> memref<1x128xf32, #tpu.memory_space<vmem>>
    %696 = tpu.memref_slice %arg11[%c1_i32_497] : memref<2x!tpu.dma_semaphore, #tpu.memory_space<semaphore_mem>> -> memref<1x!tpu.dma_semaphore, #tpu.memory_space<semaphore_mem>>
    %697 = tpu.memref_squeeze %696 : memref<1x!tpu.dma_semaphore, #tpu.memory_space<semaphore_mem>> -> memref<!tpu.dma_semaphore, #tpu.memory_space<semaphore_mem>>
    tpu.wait_dma2 semaphore(%697 : memref<!tpu.dma_semaphore, #tpu.memory_space<semaphore_mem>>) src(%694 : memref<1x128xf32, #tpu.memory_space<any>>) dst(%695 : memref<1x128xf32, #tpu.memory_space<vmem>>)
    %c1_i32_501 = arith.constant 1 : i32
    %c0_i32_502 = arith.constant 0 : i32
    %698 = tpu.memref_slice %arg2[%324, %c0_i32_502] : memref<1000x128xf32, #tpu.memory_space<any>> -> memref<1x128xf32, #tpu.memory_space<any>>
    %c40_i32_503 = arith.constant 40 : i32
    %c0_i32_504 = arith.constant 0 : i32
    %699 = tpu.memref_slice %arg9[%c40_i32_503, %c0_i32_504] : memref<64x128xf32, #tpu.memory_space<vmem>> -> memref<1x128xf32, #tpu.memory_space<vmem>>
    %700 = tpu.memref_slice %arg11[%c1_i32_501] : memref<2x!tpu.dma_semaphore, #tpu.memory_space<semaphore_mem>> -> memref<1x!tpu.dma_semaphore, #tpu.memory_space<semaphore_mem>>
    %701 = tpu.memref_squeeze %700 : memref<1x!tpu.dma_semaphore, #tpu.memory_space<semaphore_mem>> -> memref<!tpu.dma_semaphore, #tpu.memory_space<semaphore_mem>>
    tpu.wait_dma2 semaphore(%701 : memref<!tpu.dma_semaphore, #tpu.memory_space<semaphore_mem>>) src(%698 : memref<1x128xf32, #tpu.memory_space<any>>) dst(%699 : memref<1x128xf32, #tpu.memory_space<vmem>>)
    %c1_i32_505 = arith.constant 1 : i32
    %c0_i32_506 = arith.constant 0 : i32
    %702 = tpu.memref_slice %arg2[%332, %c0_i32_506] : memref<1000x128xf32, #tpu.memory_space<any>> -> memref<1x128xf32, #tpu.memory_space<any>>
    %c41_i32_507 = arith.constant 41 : i32
    %c0_i32_508 = arith.constant 0 : i32
    %703 = tpu.memref_slice %arg9[%c41_i32_507, %c0_i32_508] : memref<64x128xf32, #tpu.memory_space<vmem>> -> memref<1x128xf32, #tpu.memory_space<vmem>>
    %704 = tpu.memref_slice %arg11[%c1_i32_505] : memref<2x!tpu.dma_semaphore, #tpu.memory_space<semaphore_mem>> -> memref<1x!tpu.dma_semaphore, #tpu.memory_space<semaphore_mem>>
    %705 = tpu.memref_squeeze %704 : memref<1x!tpu.dma_semaphore, #tpu.memory_space<semaphore_mem>> -> memref<!tpu.dma_semaphore, #tpu.memory_space<semaphore_mem>>
    tpu.wait_dma2 semaphore(%705 : memref<!tpu.dma_semaphore, #tpu.memory_space<semaphore_mem>>) src(%702 : memref<1x128xf32, #tpu.memory_space<any>>) dst(%703 : memref<1x128xf32, #tpu.memory_space<vmem>>)
    %c1_i32_509 = arith.constant 1 : i32
    %c0_i32_510 = arith.constant 0 : i32
    %706 = tpu.memref_slice %arg2[%340, %c0_i32_510] : memref<1000x128xf32, #tpu.memory_space<any>> -> memref<1x128xf32, #tpu.memory_space<any>>
    %c42_i32_511 = arith.constant 42 : i32
    %c0_i32_512 = arith.constant 0 : i32
    %707 = tpu.memref_slice %arg9[%c42_i32_511, %c0_i32_512] : memref<64x128xf32, #tpu.memory_space<vmem>> -> memref<1x128xf32, #tpu.memory_space<vmem>>
    %708 = tpu.memref_slice %arg11[%c1_i32_509] : memref<2x!tpu.dma_semaphore, #tpu.memory_space<semaphore_mem>> -> memref<1x!tpu.dma_semaphore, #tpu.memory_space<semaphore_mem>>
    %709 = tpu.memref_squeeze %708 : memref<1x!tpu.dma_semaphore, #tpu.memory_space<semaphore_mem>> -> memref<!tpu.dma_semaphore, #tpu.memory_space<semaphore_mem>>
    tpu.wait_dma2 semaphore(%709 : memref<!tpu.dma_semaphore, #tpu.memory_space<semaphore_mem>>) src(%706 : memref<1x128xf32, #tpu.memory_space<any>>) dst(%707 : memref<1x128xf32, #tpu.memory_space<vmem>>)
    %c1_i32_513 = arith.constant 1 : i32
    %c0_i32_514 = arith.constant 0 : i32
    %710 = tpu.memref_slice %arg2[%348, %c0_i32_514] : memref<1000x128xf32, #tpu.memory_space<any>> -> memref<1x128xf32, #tpu.memory_space<any>>
    %c43_i32_515 = arith.constant 43 : i32
    %c0_i32_516 = arith.constant 0 : i32
    %711 = tpu.memref_slice %arg9[%c43_i32_515, %c0_i32_516] : memref<64x128xf32, #tpu.memory_space<vmem>> -> memref<1x128xf32, #tpu.memory_space<vmem>>
    %712 = tpu.memref_slice %arg11[%c1_i32_513] : memref<2x!tpu.dma_semaphore, #tpu.memory_space<semaphore_mem>> -> memref<1x!tpu.dma_semaphore, #tpu.memory_space<semaphore_mem>>
    %713 = tpu.memref_squeeze %712 : memref<1x!tpu.dma_semaphore, #tpu.memory_space<semaphore_mem>> -> memref<!tpu.dma_semaphore, #tpu.memory_space<semaphore_mem>>
    tpu.wait_dma2 semaphore(%713 : memref<!tpu.dma_semaphore, #tpu.memory_space<semaphore_mem>>) src(%710 : memref<1x128xf32, #tpu.memory_space<any>>) dst(%711 : memref<1x128xf32, #tpu.memory_space<vmem>>)
    %c1_i32_517 = arith.constant 1 : i32
    %c0_i32_518 = arith.constant 0 : i32
    %714 = tpu.memref_slice %arg2[%356, %c0_i32_518] : memref<1000x128xf32, #tpu.memory_space<any>> -> memref<1x128xf32, #tpu.memory_space<any>>
    %c44_i32_519 = arith.constant 44 : i32
    %c0_i32_520 = arith.constant 0 : i32
    %715 = tpu.memref_slice %arg9[%c44_i32_519, %c0_i32_520] : memref<64x128xf32, #tpu.memory_space<vmem>> -> memref<1x128xf32, #tpu.memory_space<vmem>>
    %716 = tpu.memref_slice %arg11[%c1_i32_517] : memref<2x!tpu.dma_semaphore, #tpu.memory_space<semaphore_mem>> -> memref<1x!tpu.dma_semaphore, #tpu.memory_space<semaphore_mem>>
    %717 = tpu.memref_squeeze %716 : memref<1x!tpu.dma_semaphore, #tpu.memory_space<semaphore_mem>> -> memref<!tpu.dma_semaphore, #tpu.memory_space<semaphore_mem>>
    tpu.wait_dma2 semaphore(%717 : memref<!tpu.dma_semaphore, #tpu.memory_space<semaphore_mem>>) src(%714 : memref<1x128xf32, #tpu.memory_space<any>>) dst(%715 : memref<1x128xf32, #tpu.memory_space<vmem>>)
    %c1_i32_521 = arith.constant 1 : i32
    %c0_i32_522 = arith.constant 0 : i32
    %718 = tpu.memref_slice %arg2[%364, %c0_i32_522] : memref<1000x128xf32, #tpu.memory_space<any>> -> memref<1x128xf32, #tpu.memory_space<any>>
    %c45_i32_523 = arith.constant 45 : i32
    %c0_i32_524 = arith.constant 0 : i32
    %719 = tpu.memref_slice %arg9[%c45_i32_523, %c0_i32_524] : memref<64x128xf32, #tpu.memory_space<vmem>> -> memref<1x128xf32, #tpu.memory_space<vmem>>
    %720 = tpu.memref_slice %arg11[%c1_i32_521] : memref<2x!tpu.dma_semaphore, #tpu.memory_space<semaphore_mem>> -> memref<1x!tpu.dma_semaphore, #tpu.memory_space<semaphore_mem>>
    %721 = tpu.memref_squeeze %720 : memref<1x!tpu.dma_semaphore, #tpu.memory_space<semaphore_mem>> -> memref<!tpu.dma_semaphore, #tpu.memory_space<semaphore_mem>>
    tpu.wait_dma2 semaphore(%721 : memref<!tpu.dma_semaphore, #tpu.memory_space<semaphore_mem>>) src(%718 : memref<1x128xf32, #tpu.memory_space<any>>) dst(%719 : memref<1x128xf32, #tpu.memory_space<vmem>>)
    %c1_i32_525 = arith.constant 1 : i32
    %c0_i32_526 = arith.constant 0 : i32
    %722 = tpu.memref_slice %arg2[%372, %c0_i32_526] : memref<1000x128xf32, #tpu.memory_space<any>> -> memref<1x128xf32, #tpu.memory_space<any>>
    %c46_i32_527 = arith.constant 46 : i32
    %c0_i32_528 = arith.constant 0 : i32
    %723 = tpu.memref_slice %arg9[%c46_i32_527, %c0_i32_528] : memref<64x128xf32, #tpu.memory_space<vmem>> -> memref<1x128xf32, #tpu.memory_space<vmem>>
    %724 = tpu.memref_slice %arg11[%c1_i32_525] : memref<2x!tpu.dma_semaphore, #tpu.memory_space<semaphore_mem>> -> memref<1x!tpu.dma_semaphore, #tpu.memory_space<semaphore_mem>>
    %725 = tpu.memref_squeeze %724 : memref<1x!tpu.dma_semaphore, #tpu.memory_space<semaphore_mem>> -> memref<!tpu.dma_semaphore, #tpu.memory_space<semaphore_mem>>
    tpu.wait_dma2 semaphore(%725 : memref<!tpu.dma_semaphore, #tpu.memory_space<semaphore_mem>>) src(%722 : memref<1x128xf32, #tpu.memory_space<any>>) dst(%723 : memref<1x128xf32, #tpu.memory_space<vmem>>)
    %c1_i32_529 = arith.constant 1 : i32
    %c0_i32_530 = arith.constant 0 : i32
    %726 = tpu.memref_slice %arg2[%380, %c0_i32_530] : memref<1000x128xf32, #tpu.memory_space<any>> -> memref<1x128xf32, #tpu.memory_space<any>>
    %c47_i32_531 = arith.constant 47 : i32
    %c0_i32_532 = arith.constant 0 : i32
    %727 = tpu.memref_slice %arg9[%c47_i32_531, %c0_i32_532] : memref<64x128xf32, #tpu.memory_space<vmem>> -> memref<1x128xf32, #tpu.memory_space<vmem>>
    %728 = tpu.memref_slice %arg11[%c1_i32_529] : memref<2x!tpu.dma_semaphore, #tpu.memory_space<semaphore_mem>> -> memref<1x!tpu.dma_semaphore, #tpu.memory_space<semaphore_mem>>
    %729 = tpu.memref_squeeze %728 : memref<1x!tpu.dma_semaphore, #tpu.memory_space<semaphore_mem>> -> memref<!tpu.dma_semaphore, #tpu.memory_space<semaphore_mem>>
    tpu.wait_dma2 semaphore(%729 : memref<!tpu.dma_semaphore, #tpu.memory_space<semaphore_mem>>) src(%726 : memref<1x128xf32, #tpu.memory_space<any>>) dst(%727 : memref<1x128xf32, #tpu.memory_space<vmem>>)
    %c1_i32_533 = arith.constant 1 : i32
    %c0_i32_534 = arith.constant 0 : i32
    %730 = tpu.memref_slice %arg2[%388, %c0_i32_534] : memref<1000x128xf32, #tpu.memory_space<any>> -> memref<1x128xf32, #tpu.memory_space<any>>
    %c48_i32_535 = arith.constant 48 : i32
    %c0_i32_536 = arith.constant 0 : i32
    %731 = tpu.memref_slice %arg9[%c48_i32_535, %c0_i32_536] : memref<64x128xf32, #tpu.memory_space<vmem>> -> memref<1x128xf32, #tpu.memory_space<vmem>>
    %732 = tpu.memref_slice %arg11[%c1_i32_533] : memref<2x!tpu.dma_semaphore, #tpu.memory_space<semaphore_mem>> -> memref<1x!tpu.dma_semaphore, #tpu.memory_space<semaphore_mem>>
    %733 = tpu.memref_squeeze %732 : memref<1x!tpu.dma_semaphore, #tpu.memory_space<semaphore_mem>> -> memref<!tpu.dma_semaphore, #tpu.memory_space<semaphore_mem>>
    tpu.wait_dma2 semaphore(%733 : memref<!tpu.dma_semaphore, #tpu.memory_space<semaphore_mem>>) src(%730 : memref<1x128xf32, #tpu.memory_space<any>>) dst(%731 : memref<1x128xf32, #tpu.memory_space<vmem>>)
    %c1_i32_537 = arith.constant 1 : i32
    %c0_i32_538 = arith.constant 0 : i32
    %734 = tpu.memref_slice %arg2[%396, %c0_i32_538] : memref<1000x128xf32, #tpu.memory_space<any>> -> memref<1x128xf32, #tpu.memory_space<any>>
    %c49_i32_539 = arith.constant 49 : i32
    %c0_i32_540 = arith.constant 0 : i32
    %735 = tpu.memref_slice %arg9[%c49_i32_539, %c0_i32_540] : memref<64x128xf32, #tpu.memory_space<vmem>> -> memref<1x128xf32, #tpu.memory_space<vmem>>
    %736 = tpu.memref_slice %arg11[%c1_i32_537] : memref<2x!tpu.dma_semaphore, #tpu.memory_space<semaphore_mem>> -> memref<1x!tpu.dma_semaphore, #tpu.memory_space<semaphore_mem>>
    %737 = tpu.memref_squeeze %736 : memref<1x!tpu.dma_semaphore, #tpu.memory_space<semaphore_mem>> -> memref<!tpu.dma_semaphore, #tpu.memory_space<semaphore_mem>>
    tpu.wait_dma2 semaphore(%737 : memref<!tpu.dma_semaphore, #tpu.memory_space<semaphore_mem>>) src(%734 : memref<1x128xf32, #tpu.memory_space<any>>) dst(%735 : memref<1x128xf32, #tpu.memory_space<vmem>>)
    %c1_i32_541 = arith.constant 1 : i32
    %c0_i32_542 = arith.constant 0 : i32
    %738 = tpu.memref_slice %arg2[%404, %c0_i32_542] : memref<1000x128xf32, #tpu.memory_space<any>> -> memref<1x128xf32, #tpu.memory_space<any>>
    %c50_i32_543 = arith.constant 50 : i32
    %c0_i32_544 = arith.constant 0 : i32
    %739 = tpu.memref_slice %arg9[%c50_i32_543, %c0_i32_544] : memref<64x128xf32, #tpu.memory_space<vmem>> -> memref<1x128xf32, #tpu.memory_space<vmem>>
    %740 = tpu.memref_slice %arg11[%c1_i32_541] : memref<2x!tpu.dma_semaphore, #tpu.memory_space<semaphore_mem>> -> memref<1x!tpu.dma_semaphore, #tpu.memory_space<semaphore_mem>>
    %741 = tpu.memref_squeeze %740 : memref<1x!tpu.dma_semaphore, #tpu.memory_space<semaphore_mem>> -> memref<!tpu.dma_semaphore, #tpu.memory_space<semaphore_mem>>
    tpu.wait_dma2 semaphore(%741 : memref<!tpu.dma_semaphore, #tpu.memory_space<semaphore_mem>>) src(%738 : memref<1x128xf32, #tpu.memory_space<any>>) dst(%739 : memref<1x128xf32, #tpu.memory_space<vmem>>)
    %c1_i32_545 = arith.constant 1 : i32
    %c0_i32_546 = arith.constant 0 : i32
    %742 = tpu.memref_slice %arg2[%412, %c0_i32_546] : memref<1000x128xf32, #tpu.memory_space<any>> -> memref<1x128xf32, #tpu.memory_space<any>>
    %c51_i32_547 = arith.constant 51 : i32
    %c0_i32_548 = arith.constant 0 : i32
    %743 = tpu.memref_slice %arg9[%c51_i32_547, %c0_i32_548] : memref<64x128xf32, #tpu.memory_space<vmem>> -> memref<1x128xf32, #tpu.memory_space<vmem>>
    %744 = tpu.memref_slice %arg11[%c1_i32_545] : memref<2x!tpu.dma_semaphore, #tpu.memory_space<semaphore_mem>> -> memref<1x!tpu.dma_semaphore, #tpu.memory_space<semaphore_mem>>
    %745 = tpu.memref_squeeze %744 : memref<1x!tpu.dma_semaphore, #tpu.memory_space<semaphore_mem>> -> memref<!tpu.dma_semaphore, #tpu.memory_space<semaphore_mem>>
    tpu.wait_dma2 semaphore(%745 : memref<!tpu.dma_semaphore, #tpu.memory_space<semaphore_mem>>) src(%742 : memref<1x128xf32, #tpu.memory_space<any>>) dst(%743 : memref<1x128xf32, #tpu.memory_space<vmem>>)
    %c1_i32_549 = arith.constant 1 : i32
    %c0_i32_550 = arith.constant 0 : i32
    %746 = tpu.memref_slice %arg2[%420, %c0_i32_550] : memref<1000x128xf32, #tpu.memory_space<any>> -> memref<1x128xf32, #tpu.memory_space<any>>
    %c52_i32_551 = arith.constant 52 : i32
    %c0_i32_552 = arith.constant 0 : i32
    %747 = tpu.memref_slice %arg9[%c52_i32_551, %c0_i32_552] : memref<64x128xf32, #tpu.memory_space<vmem>> -> memref<1x128xf32, #tpu.memory_space<vmem>>
    %748 = tpu.memref_slice %arg11[%c1_i32_549] : memref<2x!tpu.dma_semaphore, #tpu.memory_space<semaphore_mem>> -> memref<1x!tpu.dma_semaphore, #tpu.memory_space<semaphore_mem>>
    %749 = tpu.memref_squeeze %748 : memref<1x!tpu.dma_semaphore, #tpu.memory_space<semaphore_mem>> -> memref<!tpu.dma_semaphore, #tpu.memory_space<semaphore_mem>>
    tpu.wait_dma2 semaphore(%749 : memref<!tpu.dma_semaphore, #tpu.memory_space<semaphore_mem>>) src(%746 : memref<1x128xf32, #tpu.memory_space<any>>) dst(%747 : memref<1x128xf32, #tpu.memory_space<vmem>>)
    %c1_i32_553 = arith.constant 1 : i32
    %c0_i32_554 = arith.constant 0 : i32
    %750 = tpu.memref_slice %arg2[%428, %c0_i32_554] : memref<1000x128xf32, #tpu.memory_space<any>> -> memref<1x128xf32, #tpu.memory_space<any>>
    %c53_i32_555 = arith.constant 53 : i32
    %c0_i32_556 = arith.constant 0 : i32
    %751 = tpu.memref_slice %arg9[%c53_i32_555, %c0_i32_556] : memref<64x128xf32, #tpu.memory_space<vmem>> -> memref<1x128xf32, #tpu.memory_space<vmem>>
    %752 = tpu.memref_slice %arg11[%c1_i32_553] : memref<2x!tpu.dma_semaphore, #tpu.memory_space<semaphore_mem>> -> memref<1x!tpu.dma_semaphore, #tpu.memory_space<semaphore_mem>>
    %753 = tpu.memref_squeeze %752 : memref<1x!tpu.dma_semaphore, #tpu.memory_space<semaphore_mem>> -> memref<!tpu.dma_semaphore, #tpu.memory_space<semaphore_mem>>
    tpu.wait_dma2 semaphore(%753 : memref<!tpu.dma_semaphore, #tpu.memory_space<semaphore_mem>>) src(%750 : memref<1x128xf32, #tpu.memory_space<any>>) dst(%751 : memref<1x128xf32, #tpu.memory_space<vmem>>)
    %c1_i32_557 = arith.constant 1 : i32
    %c0_i32_558 = arith.constant 0 : i32
    %754 = tpu.memref_slice %arg2[%436, %c0_i32_558] : memref<1000x128xf32, #tpu.memory_space<any>> -> memref<1x128xf32, #tpu.memory_space<any>>
    %c54_i32_559 = arith.constant 54 : i32
    %c0_i32_560 = arith.constant 0 : i32
    %755 = tpu.memref_slice %arg9[%c54_i32_559, %c0_i32_560] : memref<64x128xf32, #tpu.memory_space<vmem>> -> memref<1x128xf32, #tpu.memory_space<vmem>>
    %756 = tpu.memref_slice %arg11[%c1_i32_557] : memref<2x!tpu.dma_semaphore, #tpu.memory_space<semaphore_mem>> -> memref<1x!tpu.dma_semaphore, #tpu.memory_space<semaphore_mem>>
    %757 = tpu.memref_squeeze %756 : memref<1x!tpu.dma_semaphore, #tpu.memory_space<semaphore_mem>> -> memref<!tpu.dma_semaphore, #tpu.memory_space<semaphore_mem>>
    tpu.wait_dma2 semaphore(%757 : memref<!tpu.dma_semaphore, #tpu.memory_space<semaphore_mem>>) src(%754 : memref<1x128xf32, #tpu.memory_space<any>>) dst(%755 : memref<1x128xf32, #tpu.memory_space<vmem>>)
    %c1_i32_561 = arith.constant 1 : i32
    %c0_i32_562 = arith.constant 0 : i32
    %758 = tpu.memref_slice %arg2[%444, %c0_i32_562] : memref<1000x128xf32, #tpu.memory_space<any>> -> memref<1x128xf32, #tpu.memory_space<any>>
    %c55_i32_563 = arith.constant 55 : i32
    %c0_i32_564 = arith.constant 0 : i32
    %759 = tpu.memref_slice %arg9[%c55_i32_563, %c0_i32_564] : memref<64x128xf32, #tpu.memory_space<vmem>> -> memref<1x128xf32, #tpu.memory_space<vmem>>
    %760 = tpu.memref_slice %arg11[%c1_i32_561] : memref<2x!tpu.dma_semaphore, #tpu.memory_space<semaphore_mem>> -> memref<1x!tpu.dma_semaphore, #tpu.memory_space<semaphore_mem>>
    %761 = tpu.memref_squeeze %760 : memref<1x!tpu.dma_semaphore, #tpu.memory_space<semaphore_mem>> -> memref<!tpu.dma_semaphore, #tpu.memory_space<semaphore_mem>>
    tpu.wait_dma2 semaphore(%761 : memref<!tpu.dma_semaphore, #tpu.memory_space<semaphore_mem>>) src(%758 : memref<1x128xf32, #tpu.memory_space<any>>) dst(%759 : memref<1x128xf32, #tpu.memory_space<vmem>>)
    %c1_i32_565 = arith.constant 1 : i32
    %c0_i32_566 = arith.constant 0 : i32
    %762 = tpu.memref_slice %arg2[%452, %c0_i32_566] : memref<1000x128xf32, #tpu.memory_space<any>> -> memref<1x128xf32, #tpu.memory_space<any>>
    %c56_i32_567 = arith.constant 56 : i32
    %c0_i32_568 = arith.constant 0 : i32
    %763 = tpu.memref_slice %arg9[%c56_i32_567, %c0_i32_568] : memref<64x128xf32, #tpu.memory_space<vmem>> -> memref<1x128xf32, #tpu.memory_space<vmem>>
    %764 = tpu.memref_slice %arg11[%c1_i32_565] : memref<2x!tpu.dma_semaphore, #tpu.memory_space<semaphore_mem>> -> memref<1x!tpu.dma_semaphore, #tpu.memory_space<semaphore_mem>>
    %765 = tpu.memref_squeeze %764 : memref<1x!tpu.dma_semaphore, #tpu.memory_space<semaphore_mem>> -> memref<!tpu.dma_semaphore, #tpu.memory_space<semaphore_mem>>
    tpu.wait_dma2 semaphore(%765 : memref<!tpu.dma_semaphore, #tpu.memory_space<semaphore_mem>>) src(%762 : memref<1x128xf32, #tpu.memory_space<any>>) dst(%763 : memref<1x128xf32, #tpu.memory_space<vmem>>)
    %c1_i32_569 = arith.constant 1 : i32
    %c0_i32_570 = arith.constant 0 : i32
    %766 = tpu.memref_slice %arg2[%460, %c0_i32_570] : memref<1000x128xf32, #tpu.memory_space<any>> -> memref<1x128xf32, #tpu.memory_space<any>>
    %c57_i32_571 = arith.constant 57 : i32
    %c0_i32_572 = arith.constant 0 : i32
    %767 = tpu.memref_slice %arg9[%c57_i32_571, %c0_i32_572] : memref<64x128xf32, #tpu.memory_space<vmem>> -> memref<1x128xf32, #tpu.memory_space<vmem>>
    %768 = tpu.memref_slice %arg11[%c1_i32_569] : memref<2x!tpu.dma_semaphore, #tpu.memory_space<semaphore_mem>> -> memref<1x!tpu.dma_semaphore, #tpu.memory_space<semaphore_mem>>
    %769 = tpu.memref_squeeze %768 : memref<1x!tpu.dma_semaphore, #tpu.memory_space<semaphore_mem>> -> memref<!tpu.dma_semaphore, #tpu.memory_space<semaphore_mem>>
    tpu.wait_dma2 semaphore(%769 : memref<!tpu.dma_semaphore, #tpu.memory_space<semaphore_mem>>) src(%766 : memref<1x128xf32, #tpu.memory_space<any>>) dst(%767 : memref<1x128xf32, #tpu.memory_space<vmem>>)
    %c1_i32_573 = arith.constant 1 : i32
    %c0_i32_574 = arith.constant 0 : i32
    %770 = tpu.memref_slice %arg2[%468, %c0_i32_574] : memref<1000x128xf32, #tpu.memory_space<any>> -> memref<1x128xf32, #tpu.memory_space<any>>
    %c58_i32_575 = arith.constant 58 : i32
    %c0_i32_576 = arith.constant 0 : i32
    %771 = tpu.memref_slice %arg9[%c58_i32_575, %c0_i32_576] : memref<64x128xf32, #tpu.memory_space<vmem>> -> memref<1x128xf32, #tpu.memory_space<vmem>>
    %772 = tpu.memref_slice %arg11[%c1_i32_573] : memref<2x!tpu.dma_semaphore, #tpu.memory_space<semaphore_mem>> -> memref<1x!tpu.dma_semaphore, #tpu.memory_space<semaphore_mem>>
    %773 = tpu.memref_squeeze %772 : memref<1x!tpu.dma_semaphore, #tpu.memory_space<semaphore_mem>> -> memref<!tpu.dma_semaphore, #tpu.memory_space<semaphore_mem>>
    tpu.wait_dma2 semaphore(%773 : memref<!tpu.dma_semaphore, #tpu.memory_space<semaphore_mem>>) src(%770 : memref<1x128xf32, #tpu.memory_space<any>>) dst(%771 : memref<1x128xf32, #tpu.memory_space<vmem>>)
    %c1_i32_577 = arith.constant 1 : i32
    %c0_i32_578 = arith.constant 0 : i32
    %774 = tpu.memref_slice %arg2[%476, %c0_i32_578] : memref<1000x128xf32, #tpu.memory_space<any>> -> memref<1x128xf32, #tpu.memory_space<any>>
    %c59_i32_579 = arith.constant 59 : i32
    %c0_i32_580 = arith.constant 0 : i32
    %775 = tpu.memref_slice %arg9[%c59_i32_579, %c0_i32_580] : memref<64x128xf32, #tpu.memory_space<vmem>> -> memref<1x128xf32, #tpu.memory_space<vmem>>
    %776 = tpu.memref_slice %arg11[%c1_i32_577] : memref<2x!tpu.dma_semaphore, #tpu.memory_space<semaphore_mem>> -> memref<1x!tpu.dma_semaphore, #tpu.memory_space<semaphore_mem>>
    %777 = tpu.memref_squeeze %776 : memref<1x!tpu.dma_semaphore, #tpu.memory_space<semaphore_mem>> -> memref<!tpu.dma_semaphore, #tpu.memory_space<semaphore_mem>>
    tpu.wait_dma2 semaphore(%777 : memref<!tpu.dma_semaphore, #tpu.memory_space<semaphore_mem>>) src(%774 : memref<1x128xf32, #tpu.memory_space<any>>) dst(%775 : memref<1x128xf32, #tpu.memory_space<vmem>>)
    %c1_i32_581 = arith.constant 1 : i32
    %c0_i32_582 = arith.constant 0 : i32
    %778 = tpu.memref_slice %arg2[%484, %c0_i32_582] : memref<1000x128xf32, #tpu.memory_space<any>> -> memref<1x128xf32, #tpu.memory_space<any>>
    %c60_i32_583 = arith.constant 60 : i32
    %c0_i32_584 = arith.constant 0 : i32
    %779 = tpu.memref_slice %arg9[%c60_i32_583, %c0_i32_584] : memref<64x128xf32, #tpu.memory_space<vmem>> -> memref<1x128xf32, #tpu.memory_space<vmem>>
    %780 = tpu.memref_slice %arg11[%c1_i32_581] : memref<2x!tpu.dma_semaphore, #tpu.memory_space<semaphore_mem>> -> memref<1x!tpu.dma_semaphore, #tpu.memory_space<semaphore_mem>>
    %781 = tpu.memref_squeeze %780 : memref<1x!tpu.dma_semaphore, #tpu.memory_space<semaphore_mem>> -> memref<!tpu.dma_semaphore, #tpu.memory_space<semaphore_mem>>
    tpu.wait_dma2 semaphore(%781 : memref<!tpu.dma_semaphore, #tpu.memory_space<semaphore_mem>>) src(%778 : memref<1x128xf32, #tpu.memory_space<any>>) dst(%779 : memref<1x128xf32, #tpu.memory_space<vmem>>)
    %c1_i32_585 = arith.constant 1 : i32
    %c0_i32_586 = arith.constant 0 : i32
    %782 = tpu.memref_slice %arg2[%492, %c0_i32_586] : memref<1000x128xf32, #tpu.memory_space<any>> -> memref<1x128xf32, #tpu.memory_space<any>>
    %c61_i32_587 = arith.constant 61 : i32
    %c0_i32_588 = arith.constant 0 : i32
    %783 = tpu.memref_slice %arg9[%c61_i32_587, %c0_i32_588] : memref<64x128xf32, #tpu.memory_space<vmem>> -> memref<1x128xf32, #tpu.memory_space<vmem>>
    %784 = tpu.memref_slice %arg11[%c1_i32_585] : memref<2x!tpu.dma_semaphore, #tpu.memory_space<semaphore_mem>> -> memref<1x!tpu.dma_semaphore, #tpu.memory_space<semaphore_mem>>
    %785 = tpu.memref_squeeze %784 : memref<1x!tpu.dma_semaphore, #tpu.memory_space<semaphore_mem>> -> memref<!tpu.dma_semaphore, #tpu.memory_space<semaphore_mem>>
    tpu.wait_dma2 semaphore(%785 : memref<!tpu.dma_semaphore, #tpu.memory_space<semaphore_mem>>) src(%782 : memref<1x128xf32, #tpu.memory_space<any>>) dst(%783 : memref<1x128xf32, #tpu.memory_space<vmem>>)
    %c1_i32_589 = arith.constant 1 : i32
    %c0_i32_590 = arith.constant 0 : i32
    %786 = tpu.memref_slice %arg2[%500, %c0_i32_590] : memref<1000x128xf32, #tpu.memory_space<any>> -> memref<1x128xf32, #tpu.memory_space<any>>
    %c62_i32_591 = arith.constant 62 : i32
    %c0_i32_592 = arith.constant 0 : i32
    %787 = tpu.memref_slice %arg9[%c62_i32_591, %c0_i32_592] : memref<64x128xf32, #tpu.memory_space<vmem>> -> memref<1x128xf32, #tpu.memory_space<vmem>>
    %788 = tpu.memref_slice %arg11[%c1_i32_589] : memref<2x!tpu.dma_semaphore, #tpu.memory_space<semaphore_mem>> -> memref<1x!tpu.dma_semaphore, #tpu.memory_space<semaphore_mem>>
    %789 = tpu.memref_squeeze %788 : memref<1x!tpu.dma_semaphore, #tpu.memory_space<semaphore_mem>> -> memref<!tpu.dma_semaphore, #tpu.memory_space<semaphore_mem>>
    tpu.wait_dma2 semaphore(%789 : memref<!tpu.dma_semaphore, #tpu.memory_space<semaphore_mem>>) src(%786 : memref<1x128xf32, #tpu.memory_space<any>>) dst(%787 : memref<1x128xf32, #tpu.memory_space<vmem>>)
    %c1_i32_593 = arith.constant 1 : i32
    %c0_i32_594 = arith.constant 0 : i32
    %790 = tpu.memref_slice %arg2[%508, %c0_i32_594] : memref<1000x128xf32, #tpu.memory_space<any>> -> memref<1x128xf32, #tpu.memory_space<any>>
    %c63_i32_595 = arith.constant 63 : i32
    %c0_i32_596 = arith.constant 0 : i32
    %791 = tpu.memref_slice %arg9[%c63_i32_595, %c0_i32_596] : memref<64x128xf32, #tpu.memory_space<vmem>> -> memref<1x128xf32, #tpu.memory_space<vmem>>
    %792 = tpu.memref_slice %arg11[%c1_i32_593] : memref<2x!tpu.dma_semaphore, #tpu.memory_space<semaphore_mem>> -> memref<1x!tpu.dma_semaphore, #tpu.memory_space<semaphore_mem>>
    %793 = tpu.memref_squeeze %792 : memref<1x!tpu.dma_semaphore, #tpu.memory_space<semaphore_mem>> -> memref<!tpu.dma_semaphore, #tpu.memory_space<semaphore_mem>>
    tpu.wait_dma2 semaphore(%793 : memref<!tpu.dma_semaphore, #tpu.memory_space<semaphore_mem>>) src(%790 : memref<1x128xf32, #tpu.memory_space<any>>) dst(%791 : memref<1x128xf32, #tpu.memory_space<vmem>>)
    %c32 = arith.constant 32 : index
    %c0_597 = arith.constant 0 : index
    %794 = vector.load %arg9[%c32, %c0_597] : memref<64x128xf32, #tpu.memory_space<vmem>>, vector<32x128xf32>
    %795 = arith.truncf %794 : vector<32x128xf32> to vector<32x128xbf16>
    %c0_598 = arith.constant 0 : index
    %c0_599 = arith.constant 0 : index
    %796 = vector.load %arg3[%c0_598, %c0_599] : memref<128x512xbf16, #tpu.memory_space<vmem>>, vector<128x512xbf16>
    %cst_600 = arith.constant dense<0.000000e+00> : vector<32x512xf32>
    %797 = tpu.matmul %795, %796, %cst_600 {dimension_numbers = #tpu.dot_dimension_numbers<[1], [0], [0], [1], [0, 0, 1, 1], [], []>} : vector<32x128xbf16>, vector<128x512xbf16>, vector<32x512xf32> -> vector<32x512xf32>
    %c0_601 = arith.constant 0 : index
    %c0_602 = arith.constant 0 : index
    %798 = vector.load %arg5[%c0_601, %c0_602] : memref<1x512xf32, #tpu.memory_space<vmem>>, vector<1x512xf32>
    %799 = vector.broadcast %798 : vector<1x512xf32> to vector<32x512xf32>
    %800 = arith.addf %797, %799 : vector<32x512xf32>
    %801 = vector.extract_strided_slice %800 {offsets = [0, 0], sizes = [8, 512], strides = [1, 1]} : vector<32x512xf32> to vector<8x512xf32>
    %c1_603 = arith.constant 1 : index
    %c0_604 = arith.constant 0 : index
    %c0_605 = arith.constant 0 : index
    %c0_606 = arith.constant 0 : index
    %802 = vector.load %arg10[%c1_603, %c0_604, %c0_605, %c0_606] : memref<2x4x8x512xf32, #tpu.memory_space<vmem>>, vector<1x1x8x512xf32>
    %803 = vector.shape_cast %802 : vector<1x1x8x512xf32> to vector<8x512xf32>
    %804 = vector.shape_cast %801 : vector<8x512xf32> to vector<1x1x8x512xf32>
    tpu.vector_store %arg10[%c1_603, %c0_604, %c0_605, %c0_606], %804 {strides = array<i32>} : memref<2x4x8x512xf32, #tpu.memory_space<vmem>>, vector<1x1x8x512xf32>,
    %805 = vector.extract_strided_slice %800 {offsets = [8, 0], sizes = [8, 512], strides = [1, 1]} : vector<32x512xf32> to vector<8x512xf32>
    %c1_607 = arith.constant 1 : index
    %c1_608 = arith.constant 1 : index
    %c0_609 = arith.constant 0 : index
    %c0_610 = arith.constant 0 : index
    %806 = vector.load %arg10[%c1_607, %c1_608, %c0_609, %c0_610] : memref<2x4x8x512xf32, #tpu.memory_space<vmem>>, vector<1x1x8x512xf32>
    %807 = vector.shape_cast %806 : vector<1x1x8x512xf32> to vector<8x512xf32>
    %808 = vector.shape_cast %805 : vector<8x512xf32> to vector<1x1x8x512xf32>
    tpu.vector_store %arg10[%c1_607, %c1_608, %c0_609, %c0_610], %808 {strides = array<i32>} : memref<2x4x8x512xf32, #tpu.memory_space<vmem>>, vector<1x1x8x512xf32>,
    %809 = vector.extract_strided_slice %800 {offsets = [16, 0], sizes = [8, 512], strides = [1, 1]} : vector<32x512xf32> to vector<8x512xf32>
    %c1_611 = arith.constant 1 : index
    %c2_612 = arith.constant 2 : index
    %c0_613 = arith.constant 0 : index
    %c0_614 = arith.constant 0 : index
    %810 = vector.load %arg10[%c1_611, %c2_612, %c0_613, %c0_614] : memref<2x4x8x512xf32, #tpu.memory_space<vmem>>, vector<1x1x8x512xf32>
    %811 = vector.shape_cast %810 : vector<1x1x8x512xf32> to vector<8x512xf32>
    %812 = vector.shape_cast %809 : vector<8x512xf32> to vector<1x1x8x512xf32>
    tpu.vector_store %arg10[%c1_611, %c2_612, %c0_613, %c0_614], %812 {strides = array<i32>} : memref<2x4x8x512xf32, #tpu.memory_space<vmem>>, vector<1x1x8x512xf32>,
    %813 = vector.extract_strided_slice %800 {offsets = [24, 0], sizes = [8, 512], strides = [1, 1]} : vector<32x512xf32> to vector<8x512xf32>
    %c1_615 = arith.constant 1 : index
    %c3_616 = arith.constant 3 : index
    %c0_617 = arith.constant 0 : index
    %c0_618 = arith.constant 0 : index
    %814 = vector.load %arg10[%c1_615, %c3_616, %c0_617, %c0_618] : memref<2x4x8x512xf32, #tpu.memory_space<vmem>>, vector<1x1x8x512xf32>
    %815 = vector.shape_cast %814 : vector<1x1x8x512xf32> to vector<8x512xf32>
    %816 = vector.shape_cast %813 : vector<8x512xf32> to vector<1x1x8x512xf32>
    tpu.vector_store %arg10[%c1_615, %c3_616, %c0_617, %c0_618], %816 {strides = array<i32>} : memref<2x4x8x512xf32, #tpu.memory_space<vmem>>, vector<1x1x8x512xf32>,
    %c0_619 = arith.constant 0 : index
    %c0_620 = arith.constant 0 : index
    %c0_621 = arith.constant 0 : index
    %c0_622 = arith.constant 0 : index
    %817 = vector.load %arg10[%c0_619, %c0_620, %c0_621, %c0_622] : memref<2x4x8x512xf32, #tpu.memory_space<vmem>>, vector<1x1x8x512xf32>
    %818 = vector.shape_cast %817 : vector<1x1x8x512xf32> to vector<8x512xf32>
    %819 = arith.truncf %664 : vector<8x128xf32> to vector<8x128xbf16>
    %c0_623 = arith.constant 0 : index
    %c0_624 = arith.constant 0 : index
    %820 = vector.load %arg4[%c0_623, %c0_624] : memref<128x512xbf16, #tpu.memory_space<vmem>>, vector<128x512xbf16>
    %cst_625 = arith.constant dense<0.000000e+00> : vector<8x512xf32>
    %821 = tpu.matmul %819, %820, %cst_625 {dimension_numbers = #tpu.dot_dimension_numbers<[1], [0], [0], [1], [0, 0, 1, 1], [], []>} : vector<8x128xbf16>, vector<128x512xbf16>, vector<8x512xf32> -> vector<8x512xf32>
    %822 = arith.addf %818, %821 : vector<8x512xf32>
    %823 = vector.extract_strided_slice %822 {offsets = [0, 0], sizes = [8, 384], strides = [1, 1]} : vector<8x512xf32> to vector<8x384xf32>
    %824 = arith.negf %823 : vector<8x384xf32>
    %825 = math.exp %824 : vector<8x384xf32>
    %cst_626 = arith.constant 1.000000e+00 : f32
    %826 = vector.broadcast %cst_626 : f32 to vector<8x384xf32>
    %827 = arith.addf %826, %825 : vector<8x384xf32>
    %828 = arith.divf %826, %827 : vector<8x384xf32>
    %829 = vector.extract_strided_slice %828 {offsets = [0, 0], sizes = [8, 128], strides = [1, 1]} : vector<8x384xf32> to vector<8x128xf32>
    %830 = vector.extract_strided_slice %828 {offsets = [0, 128], sizes = [8, 128], strides = [1, 1]} : vector<8x384xf32> to vector<8x128xf32>
    %831 = vector.extract_strided_slice %828 {offsets = [0, 256], sizes = [8, 128], strides = [1, 1]} : vector<8x384xf32> to vector<8x128xf32>
    %832 = vector.extract_strided_slice %822 {offsets = [0, 384], sizes = [8, 128], strides = [1, 1]} : vector<8x512xf32> to vector<8x128xf32>
    %833 = math.tanh %832 : vector<8x128xf32>
    %834 = arith.mulf %830, %665 : vector<8x128xf32>
    %835 = arith.mulf %829, %833 : vector<8x128xf32>
    %836 = arith.addf %834, %835 : vector<8x128xf32>
    %837 = math.tanh %836 : vector<8x128xf32>
    %838 = arith.mulf %831, %837 : vector<8x128xf32>
    %c0_627 = arith.constant 0 : index
    %c1_628 = arith.constant 1 : index
    %c0_629 = arith.constant 0 : index
    %c0_630 = arith.constant 0 : index
    %839 = vector.load %arg10[%c0_627, %c1_628, %c0_629, %c0_630] : memref<2x4x8x512xf32, #tpu.memory_space<vmem>>, vector<1x1x8x512xf32>
    %840 = vector.shape_cast %839 : vector<1x1x8x512xf32> to vector<8x512xf32>
    %841 = arith.truncf %838 : vector<8x128xf32> to vector<8x128xbf16>
    %c0_631 = arith.constant 0 : index
    %c0_632 = arith.constant 0 : index
    %842 = vector.load %arg4[%c0_631, %c0_632] : memref<128x512xbf16, #tpu.memory_space<vmem>>, vector<128x512xbf16>
    %cst_633 = arith.constant dense<0.000000e+00> : vector<8x512xf32>
    %843 = tpu.matmul %841, %842, %cst_633 {dimension_numbers = #tpu.dot_dimension_numbers<[1], [0], [0], [1], [0, 0, 1, 1], [], []>} : vector<8x128xbf16>, vector<128x512xbf16>, vector<8x512xf32> -> vector<8x512xf32>
    %844 = arith.addf %840, %843 : vector<8x512xf32>
    %845 = vector.extract_strided_slice %844 {offsets = [0, 0], sizes = [8, 384], strides = [1, 1]} : vector<8x512xf32> to vector<8x384xf32>
    %846 = arith.negf %845 : vector<8x384xf32>
    %847 = math.exp %846 : vector<8x384xf32>
    %cst_634 = arith.constant 1.000000e+00 : f32
    %848 = vector.broadcast %cst_634 : f32 to vector<8x384xf32>
    %849 = arith.addf %848, %847 : vector<8x384xf32>
    %850 = arith.divf %848, %849 : vector<8x384xf32>
    %851 = vector.extract_strided_slice %850 {offsets = [0, 0], sizes = [8, 128], strides = [1, 1]} : vector<8x384xf32> to vector<8x128xf32>
    %852 = vector.extract_strided_slice %850 {offsets = [0, 128], sizes = [8, 128], strides = [1, 1]} : vector<8x384xf32> to vector<8x128xf32>
    %853 = vector.extract_strided_slice %850 {offsets = [0, 256], sizes = [8, 128], strides = [1, 1]} : vector<8x384xf32> to vector<8x128xf32>
    %854 = vector.extract_strided_slice %844 {offsets = [0, 384], sizes = [8, 128], strides = [1, 1]} : vector<8x512xf32> to vector<8x128xf32>
    %855 = math.tanh %854 : vector<8x128xf32>
    %856 = arith.mulf %852, %836 : vector<8x128xf32>
    %857 = arith.mulf %851, %855 : vector<8x128xf32>
    %858 = arith.addf %856, %857 : vector<8x128xf32>
    %859 = math.tanh %858 : vector<8x128xf32>
    %860 = arith.mulf %853, %859 : vector<8x128xf32>
    %c0_635 = arith.constant 0 : index
    %c2_636 = arith.constant 2 : index
    %c0_637 = arith.constant 0 : index
    %c0_638 = arith.constant 0 : index
    %861 = vector.load %arg10[%c0_635, %c2_636, %c0_637, %c0_638] : memref<2x4x8x512xf32, #tpu.memory_space<vmem>>, vector<1x1x8x512xf32>
    %862 = vector.shape_cast %861 : vector<1x1x8x512xf32> to vector<8x512xf32>
    %863 = arith.truncf %860 : vector<8x128xf32> to vector<8x128xbf16>
    %c0_639 = arith.constant 0 : index
    %c0_640 = arith.constant 0 : index
    %864 = vector.load %arg4[%c0_639, %c0_640] : memref<128x512xbf16, #tpu.memory_space<vmem>>, vector<128x512xbf16>
    %cst_641 = arith.constant dense<0.000000e+00> : vector<8x512xf32>
    %865 = tpu.matmul %863, %864, %cst_641 {dimension_numbers = #tpu.dot_dimension_numbers<[1], [0], [0], [1], [0, 0, 1, 1], [], []>} : vector<8x128xbf16>, vector<128x512xbf16>, vector<8x512xf32> -> vector<8x512xf32>
    %866 = arith.addf %862, %865 : vector<8x512xf32>
    %867 = vector.extract_strided_slice %866 {offsets = [0, 0], sizes = [8, 384], strides = [1, 1]} : vector<8x512xf32> to vector<8x384xf32>
    %868 = arith.negf %867 : vector<8x384xf32>
    %869 = math.exp %868 : vector<8x384xf32>
    %cst_642 = arith.constant 1.000000e+00 : f32
    %870 = vector.broadcast %cst_642 : f32 to vector<8x384xf32>
    %871 = arith.addf %870, %869 : vector<8x384xf32>
    %872 = arith.divf %870, %871 : vector<8x384xf32>
    %873 = vector.extract_strided_slice %872 {offsets = [0, 0], sizes = [8, 128], strides = [1, 1]} : vector<8x384xf32> to vector<8x128xf32>
    %874 = vector.extract_strided_slice %872 {offsets = [0, 128], sizes = [8, 128], strides = [1, 1]} : vector<8x384xf32> to vector<8x128xf32>
    %875 = vector.extract_strided_slice %872 {offsets = [0, 256], sizes = [8, 128], strides = [1, 1]} : vector<8x384xf32> to vector<8x128xf32>
    %876 = vector.extract_strided_slice %866 {offsets = [0, 384], sizes = [8, 128], strides = [1, 1]} : vector<8x512xf32> to vector<8x128xf32>
    %877 = math.tanh %876 : vector<8x128xf32>
    %878 = arith.mulf %874, %858 : vector<8x128xf32>
    %879 = arith.mulf %873, %877 : vector<8x128xf32>
    %880 = arith.addf %878, %879 : vector<8x128xf32>
    %881 = math.tanh %880 : vector<8x128xf32>
    %882 = arith.mulf %875, %881 : vector<8x128xf32>
    %c0_643 = arith.constant 0 : index
    %c3_644 = arith.constant 3 : index
    %c0_645 = arith.constant 0 : index
    %c0_646 = arith.constant 0 : index
    %883 = vector.load %arg10[%c0_643, %c3_644, %c0_645, %c0_646] : memref<2x4x8x512xf32, #tpu.memory_space<vmem>>, vector<1x1x8x512xf32>
    %884 = vector.shape_cast %883 : vector<1x1x8x512xf32> to vector<8x512xf32>
    %885 = arith.truncf %882 : vector<8x128xf32> to vector<8x128xbf16>
    %c0_647 = arith.constant 0 : index
    %c0_648 = arith.constant 0 : index
    %886 = vector.load %arg4[%c0_647, %c0_648] : memref<128x512xbf16, #tpu.memory_space<vmem>>, vector<128x512xbf16>
    %cst_649 = arith.constant dense<0.000000e+00> : vector<8x512xf32>
    %887 = tpu.matmul %885, %886, %cst_649 {dimension_numbers = #tpu.dot_dimension_numbers<[1], [0], [0], [1], [0, 0, 1, 1], [], []>} : vector<8x128xbf16>, vector<128x512xbf16>, vector<8x512xf32> -> vector<8x512xf32>
    %888 = arith.addf %884, %887 : vector<8x512xf32>
    %889 = vector.extract_strided_slice %888 {offsets = [0, 0], sizes = [8, 384], strides = [1, 1]} : vector<8x512xf32> to vector<8x384xf32>
    %890 = arith.negf %889 : vector<8x384xf32>
    %891 = math.exp %890 : vector<8x384xf32>
    %cst_650 = arith.constant 1.000000e+00 : f32
    %892 = vector.broadcast %cst_650 : f32 to vector<8x384xf32>
    %893 = arith.addf %892, %891 : vector<8x384xf32>
    %894 = arith.divf %892, %893 : vector<8x384xf32>
    %895 = vector.extract_strided_slice %894 {offsets = [0, 0], sizes = [8, 128], strides = [1, 1]} : vector<8x384xf32> to vector<8x128xf32>
    %896 = vector.extract_strided_slice %894 {offsets = [0, 128], sizes = [8, 128], strides = [1, 1]} : vector<8x384xf32> to vector<8x128xf32>
    %897 = vector.extract_strided_slice %894 {offsets = [0, 256], sizes = [8, 128], strides = [1, 1]} : vector<8x384xf32> to vector<8x128xf32>
    %898 = vector.extract_strided_slice %888 {offsets = [0, 384], sizes = [8, 128], strides = [1, 1]} : vector<8x512xf32> to vector<8x128xf32>
    %899 = math.tanh %898 : vector<8x128xf32>
    %900 = arith.mulf %896, %880 : vector<8x128xf32>
    %901 = arith.mulf %895, %899 : vector<8x128xf32>
    %902 = arith.addf %900, %901 : vector<8x128xf32>
    %903 = math.tanh %902 : vector<8x128xf32>
    %904 = arith.mulf %897, %903 : vector<8x128xf32>
    %c1_651 = arith.constant 1 : index
    %c0_652 = arith.constant 0 : index
    %c0_653 = arith.constant 0 : index
    %c0_654 = arith.constant 0 : index
    %905 = vector.load %arg10[%c1_651, %c0_652, %c0_653, %c0_654] : memref<2x4x8x512xf32, #tpu.memory_space<vmem>>, vector<1x1x8x512xf32>
    %906 = vector.shape_cast %905 : vector<1x1x8x512xf32> to vector<8x512xf32>
    %907 = arith.truncf %904 : vector<8x128xf32> to vector<8x128xbf16>
    %c0_655 = arith.constant 0 : index
    %c0_656 = arith.constant 0 : index
    %908 = vector.load %arg4[%c0_655, %c0_656] : memref<128x512xbf16, #tpu.memory_space<vmem>>, vector<128x512xbf16>
    %cst_657 = arith.constant dense<0.000000e+00> : vector<8x512xf32>
    %909 = tpu.matmul %907, %908, %cst_657 {dimension_numbers = #tpu.dot_dimension_numbers<[1], [0], [0], [1], [0, 0, 1, 1], [], []>} : vector<8x128xbf16>, vector<128x512xbf16>, vector<8x512xf32> -> vector<8x512xf32>
    %910 = arith.addf %906, %909 : vector<8x512xf32>
    %911 = vector.extract_strided_slice %910 {offsets = [0, 0], sizes = [8, 384], strides = [1, 1]} : vector<8x512xf32> to vector<8x384xf32>
    %912 = arith.negf %911 : vector<8x384xf32>
    %913 = math.exp %912 : vector<8x384xf32>
    %cst_658 = arith.constant 1.000000e+00 : f32
    %914 = vector.broadcast %cst_658 : f32 to vector<8x384xf32>
    %915 = arith.addf %914, %913 : vector<8x384xf32>
    %916 = arith.divf %914, %915 : vector<8x384xf32>
    %917 = vector.extract_strided_slice %916 {offsets = [0, 0], sizes = [8, 128], strides = [1, 1]} : vector<8x384xf32> to vector<8x128xf32>
    %918 = vector.extract_strided_slice %916 {offsets = [0, 128], sizes = [8, 128], strides = [1, 1]} : vector<8x384xf32> to vector<8x128xf32>
    %919 = vector.extract_strided_slice %916 {offsets = [0, 256], sizes = [8, 128], strides = [1, 1]} : vector<8x384xf32> to vector<8x128xf32>
    %920 = vector.extract_strided_slice %910 {offsets = [0, 384], sizes = [8, 128], strides = [1, 1]} : vector<8x512xf32> to vector<8x128xf32>
    %921 = math.tanh %920 : vector<8x128xf32>
    %922 = arith.mulf %918, %902 : vector<8x128xf32>
    %923 = arith.mulf %917, %921 : vector<8x128xf32>
    %924 = arith.addf %922, %923 : vector<8x128xf32>
    %925 = math.tanh %924 : vector<8x128xf32>
    %926 = arith.mulf %919, %925 : vector<8x128xf32>
    %c1_659 = arith.constant 1 : index
    %c1_660 = arith.constant 1 : index
    %c0_661 = arith.constant 0 : index
    %c0_662 = arith.constant 0 : index
    %927 = vector.load %arg10[%c1_659, %c1_660, %c0_661, %c0_662] : memref<2x4x8x512xf32, #tpu.memory_space<vmem>>, vector<1x1x8x512xf32>
    %928 = vector.shape_cast %927 : vector<1x1x8x512xf32> to vector<8x512xf32>
    %929 = arith.truncf %926 : vector<8x128xf32> to vector<8x128xbf16>
    %c0_663 = arith.constant 0 : index
    %c0_664 = arith.constant 0 : index
    %930 = vector.load %arg4[%c0_663, %c0_664] : memref<128x512xbf16, #tpu.memory_space<vmem>>, vector<128x512xbf16>
    %cst_665 = arith.constant dense<0.000000e+00> : vector<8x512xf32>
    %931 = tpu.matmul %929, %930, %cst_665 {dimension_numbers = #tpu.dot_dimension_numbers<[1], [0], [0], [1], [0, 0, 1, 1], [], []>} : vector<8x128xbf16>, vector<128x512xbf16>, vector<8x512xf32> -> vector<8x512xf32>
    %932 = arith.addf %928, %931 : vector<8x512xf32>
    %933 = vector.extract_strided_slice %932 {offsets = [0, 0], sizes = [8, 384], strides = [1, 1]} : vector<8x512xf32> to vector<8x384xf32>
    %934 = arith.negf %933 : vector<8x384xf32>
    %935 = math.exp %934 : vector<8x384xf32>
    %cst_666 = arith.constant 1.000000e+00 : f32
    %936 = vector.broadcast %cst_666 : f32 to vector<8x384xf32>
    %937 = arith.addf %936, %935 : vector<8x384xf32>
    %938 = arith.divf %936, %937 : vector<8x384xf32>
    %939 = vector.extract_strided_slice %938 {offsets = [0, 0], sizes = [8, 128], strides = [1, 1]} : vector<8x384xf32> to vector<8x128xf32>
    %940 = vector.extract_strided_slice %938 {offsets = [0, 128], sizes = [8, 128], strides = [1, 1]} : vector<8x384xf32> to vector<8x128xf32>
    %941 = vector.extract_strided_slice %938 {offsets = [0, 256], sizes = [8, 128], strides = [1, 1]} : vector<8x384xf32> to vector<8x128xf32>
    %942 = vector.extract_strided_slice %932 {offsets = [0, 384], sizes = [8, 128], strides = [1, 1]} : vector<8x512xf32> to vector<8x128xf32>
    %943 = math.tanh %942 : vector<8x128xf32>
    %944 = arith.mulf %940, %924 : vector<8x128xf32>
    %945 = arith.mulf %939, %943 : vector<8x128xf32>
    %946 = arith.addf %944, %945 : vector<8x128xf32>
    %947 = math.tanh %946 : vector<8x128xf32>
    %948 = arith.mulf %941, %947 : vector<8x128xf32>
    %c1_667 = arith.constant 1 : index
    %c2_668 = arith.constant 2 : index
    %c0_669 = arith.constant 0 : index
    %c0_670 = arith.constant 0 : index
    %949 = vector.load %arg10[%c1_667, %c2_668, %c0_669, %c0_670] : memref<2x4x8x512xf32, #tpu.memory_space<vmem>>, vector<1x1x8x512xf32>
    %950 = vector.shape_cast %949 : vector<1x1x8x512xf32> to vector<8x512xf32>
    %951 = arith.truncf %948 : vector<8x128xf32> to vector<8x128xbf16>
    %c0_671 = arith.constant 0 : index
    %c0_672 = arith.constant 0 : index
    %952 = vector.load %arg4[%c0_671, %c0_672] : memref<128x512xbf16, #tpu.memory_space<vmem>>, vector<128x512xbf16>
    %cst_673 = arith.constant dense<0.000000e+00> : vector<8x512xf32>
    %953 = tpu.matmul %951, %952, %cst_673 {dimension_numbers = #tpu.dot_dimension_numbers<[1], [0], [0], [1], [0, 0, 1, 1], [], []>} : vector<8x128xbf16>, vector<128x512xbf16>, vector<8x512xf32> -> vector<8x512xf32>
    %954 = arith.addf %950, %953 : vector<8x512xf32>
    %955 = vector.extract_strided_slice %954 {offsets = [0, 0], sizes = [8, 384], strides = [1, 1]} : vector<8x512xf32> to vector<8x384xf32>
    %956 = arith.negf %955 : vector<8x384xf32>
    %957 = math.exp %956 : vector<8x384xf32>
    %cst_674 = arith.constant 1.000000e+00 : f32
    %958 = vector.broadcast %cst_674 : f32 to vector<8x384xf32>
    %959 = arith.addf %958, %957 : vector<8x384xf32>
    %960 = arith.divf %958, %959 : vector<8x384xf32>
    %961 = vector.extract_strided_slice %960 {offsets = [0, 0], sizes = [8, 128], strides = [1, 1]} : vector<8x384xf32> to vector<8x128xf32>
    %962 = vector.extract_strided_slice %960 {offsets = [0, 128], sizes = [8, 128], strides = [1, 1]} : vector<8x384xf32> to vector<8x128xf32>
    %963 = vector.extract_strided_slice %960 {offsets = [0, 256], sizes = [8, 128], strides = [1, 1]} : vector<8x384xf32> to vector<8x128xf32>
    %964 = vector.extract_strided_slice %954 {offsets = [0, 384], sizes = [8, 128], strides = [1, 1]} : vector<8x512xf32> to vector<8x128xf32>
    %965 = math.tanh %964 : vector<8x128xf32>
    %966 = arith.mulf %962, %946 : vector<8x128xf32>
    %967 = arith.mulf %961, %965 : vector<8x128xf32>
    %968 = arith.addf %966, %967 : vector<8x128xf32>
    %969 = math.tanh %968 : vector<8x128xf32>
    %970 = arith.mulf %963, %969 : vector<8x128xf32>
    %c1_675 = arith.constant 1 : index
    %c3_676 = arith.constant 3 : index
    %c0_677 = arith.constant 0 : index
    %c0_678 = arith.constant 0 : index
    %971 = vector.load %arg10[%c1_675, %c3_676, %c0_677, %c0_678] : memref<2x4x8x512xf32, #tpu.memory_space<vmem>>, vector<1x1x8x512xf32>
    %972 = vector.shape_cast %971 : vector<1x1x8x512xf32> to vector<8x512xf32>
    %973 = arith.truncf %970 : vector<8x128xf32> to vector<8x128xbf16>
    %c0_679 = arith.constant 0 : index
    %c0_680 = arith.constant 0 : index
    %974 = vector.load %arg4[%c0_679, %c0_680] : memref<128x512xbf16, #tpu.memory_space<vmem>>, vector<128x512xbf16>
    %cst_681 = arith.constant dense<0.000000e+00> : vector<8x512xf32>
    %975 = tpu.matmul %973, %974, %cst_681 {dimension_numbers = #tpu.dot_dimension_numbers<[1], [0], [0], [1], [0, 0, 1, 1], [], []>} : vector<8x128xbf16>, vector<128x512xbf16>, vector<8x512xf32> -> vector<8x512xf32>
    %976 = arith.addf %972, %975 : vector<8x512xf32>
    %977 = vector.extract_strided_slice %976 {offsets = [0, 0], sizes = [8, 384], strides = [1, 1]} : vector<8x512xf32> to vector<8x384xf32>
    %978 = arith.negf %977 : vector<8x384xf32>
    %979 = math.exp %978 : vector<8x384xf32>
    %cst_682 = arith.constant 1.000000e+00 : f32
    %980 = vector.broadcast %cst_682 : f32 to vector<8x384xf32>
    %981 = arith.addf %980, %979 : vector<8x384xf32>
    %982 = arith.divf %980, %981 : vector<8x384xf32>
    %983 = vector.extract_strided_slice %982 {offsets = [0, 0], sizes = [8, 128], strides = [1, 1]} : vector<8x384xf32> to vector<8x128xf32>
    %984 = vector.extract_strided_slice %982 {offsets = [0, 128], sizes = [8, 128], strides = [1, 1]} : vector<8x384xf32> to vector<8x128xf32>
    %985 = vector.extract_strided_slice %982 {offsets = [0, 256], sizes = [8, 128], strides = [1, 1]} : vector<8x384xf32> to vector<8x128xf32>
    %986 = vector.extract_strided_slice %976 {offsets = [0, 384], sizes = [8, 128], strides = [1, 1]} : vector<8x512xf32> to vector<8x128xf32>
    %987 = math.tanh %986 : vector<8x128xf32>
    %988 = arith.mulf %984, %968 : vector<8x128xf32>
    %989 = arith.mulf %983, %987 : vector<8x128xf32>
    %990 = arith.addf %988, %989 : vector<8x128xf32>
    %991 = math.tanh %990 : vector<8x128xf32>
    %992 = arith.mulf %985, %991 : vector<8x128xf32>
    %993 = arith.truncf %992 : vector<8x128xf32> to vector<8x128xbf16>
    %c0_683 = arith.constant 0 : index
    %c0_684 = arith.constant 0 : index
    %994 = vector.load %arg6[%c0_683, %c0_684] : memref<128x128xbf16, #tpu.memory_space<vmem>>, vector<128x128xbf16>
    %cst_685 = arith.constant dense<0.000000e+00> : vector<8x128xf32>
    %995 = tpu.matmul %993, %994, %cst_685 {dimension_numbers = #tpu.dot_dimension_numbers<[1], [0], [0], [1], [0, 0, 1, 1], [], []>} : vector<8x128xbf16>, vector<128x128xbf16>, vector<8x128xf32> -> vector<8x128xf32>
    %c0_686 = arith.constant 0 : index
    %c0_687 = arith.constant 0 : index
    %996 = vector.load %arg7[%c0_686, %c0_687] : memref<1x128xf32, #tpu.memory_space<vmem>>, vector<1x128xf32>
    %997 = vector.broadcast %996 : vector<1x128xf32> to vector<8x128xf32>
    %998 = arith.addf %995, %997 : vector<8x128xf32>
    %cst_688 = arith.constant dense<0xFF800000> : vector<8xf32>
    %999 = vector.multi_reduction <maximumf>, %998, %cst_688 [1] : vector<8x128xf32> to vector<8xf32>
    %1000 = vector.shape_cast %999 : vector<8xf32> to vector<8x1xf32>
    %1001 = vector.broadcast %1000 : vector<8x1xf32> to vector<8x128xf32>
    %1002 = arith.subf %998, %1001 : vector<8x128xf32>
    %1003 = math.exp %1002 : vector<8x128xf32>
    %cst_689 = arith.constant dense<0.000000e+00> : vector<8xf32>
    %1004 = vector.multi_reduction <add>, %1003, %cst_689 [1] : vector<8x128xf32> to vector<8xf32>
    %1005 = vector.shape_cast %1004 : vector<8xf32> to vector<8x1xf32>
    %1006 = math.log %1005 : vector<8x1xf32>
    %1007 = vector.broadcast %1006 : vector<8x1xf32> to vector<8x128xf32>
    %1008 = arith.subf %1002, %1007 : vector<8x128xf32>
    %c0_690 = arith.constant 0 : index
    %c0_691 = arith.constant 0 : index
    %1009 = vector.load %arg8[%c0_690, %c0_691] : memref<8x128xf32, #tpu.memory_space<vmem>>, vector<8x128xf32>
    tpu.vector_store %arg8[%c0_690, %c0_691], %1008 {strides = array<i32>} : memref<8x128xf32, #tpu.memory_space<vmem>>, vector<8x128xf32>,
    return
  }
  func.func @transform_1(%arg0: i32, %arg1: memref<64xi32, #tpu.memory_space<smem>>) -> (i32, i32) {
    %c0_i32 = arith.constant 0 : i32
    %c0_i32_0 = arith.constant 0 : i32
    %c0_i32_1 = arith.constant 0 : i32
    return %c0_i32, %c0_i32_0 : i32, i32
  }
  func.func @transform_2(%arg0: i32, %arg1: memref<64xi32, #tpu.memory_space<smem>>) -> (i32, i32) {
    %c0_i32 = arith.constant 0 : i32
    %c0_i32_0 = arith.constant 0 : i32
    %c0_i32_1 = arith.constant 0 : i32
    return %c0_i32, %c0_i32_0 : i32, i32
  }
  func.func @transform_3(%arg0: i32, %arg1: memref<64xi32, #tpu.memory_space<smem>>) -> (i32, i32) {
    %c0_i32 = arith.constant 0 : i32
    %c0_i32_0 = arith.constant 0 : i32
    %c0_i32_1 = arith.constant 0 : i32
    return %c0_i32, %c0_i32_0 : i32, i32
  }
  func.func @transform_4(%arg0: i32, %arg1: memref<64xi32, #tpu.memory_space<smem>>) -> (i32, i32) {
    %c0_i32 = arith.constant 0 : i32
    %c0_i32_0 = arith.constant 0 : i32
    %c0_i32_1 = arith.constant 0 : i32
    return %c0_i32, %c0_i32_0 : i32, i32
  }
  func.func @transform_5(%arg0: i32, %arg1: memref<64xi32, #tpu.memory_space<smem>>) -> (i32, i32) {
    %c0_i32 = arith.constant 0 : i32
    %c0_i32_0 = arith.constant 0 : i32
    %c0_i32_1 = arith.constant 0 : i32
    return %c0_i32, %c0_i32_0 : i32, i32
  }
  func.func @transform_6(%arg0: i32, %arg1: memref<64xi32, #tpu.memory_space<smem>>) -> (i32, i32) {
    %c0_i32 = arith.constant 0 : i32
    %c0_i32_0 = arith.constant 0 : i32
    return %arg0, %c0_i32 : i32, i32
  }
}

</mosaic_0001>

<bundles_post_ra>
// kernel: tpu_custom_call.1
= control target key start
LH: loop header
LB: loop body
LE: loop exit
PB: predicated region body
PF: predicated region fallthrough
CT: control target
= control target key end

     0   :  { %s7336_s0 = inlined_call_operand.hbm [shape: s32[64], index: 0, kind: input, shape index: {}]   ;;  %s7337_s1 = inlined_call_operand.hbm [shape: f32[1000,128], index: 1, kind: input, shape index: {}]   ;;  %s7338_s2 = inlined_call_operand.hbm [shape: bf16[128,512], index: 2, kind: input, shape index: {}]   ;;  %s7339_s3 = inlined_call_operand.hbm [shape: bf16[128,512], index: 3, kind: input, shape index: {}]   ;;  %s7340_s4 = inlined_call_operand.vmem [shape: f32[1,512], index: 4, kind: input, shape index: {}]   ;;  %s7341_s5 = inlined_call_operand.hbm [shape: bf16[128,128], index: 5, kind: input, shape index: {}]   ;;  %s7342_s6 = inlined_call_operand.vmem [shape: f32[1,128], index: 6, kind: input, shape index: {}]   ;;  %s7343_s7 = inlined_call_operand.hbm [shape: f32[8,128], index: 7, kind: output, shape index: {}]  }
   0x1   :  { %s3983_s26 = scalar_lea.hbm %s7336_s0, 16 }
   0x2   :  { %p3984_p0 = scmp.ne.s32.totalorder %s7336_s0, %s3983_s26  ;;  %p3987_p1 = scmp.lt.u32.totalorder %s3983_s26, %s7336_s0 }
   0x4   :  { %p3989_p2 = pnand %p3987_p1, %p3984_p0 }
   0x6   :  { %3992 = shalt.err (!%p3989_p2)  }
   0x7   :  { %s5629_s8 = smov [#allocation6]  }
   0x8   :  { %13 = dma.hbm_to_smem %s7336_s0, 16, %s5629_s8, [#allocation5] }
   0x9   :  { %5617 = dma.done.wait [#allocation5], 16 }
   0xa   :  { %5618 = vsyncadd [#allocation5], 4294967280 }
   0xb   :  { %15 = sfence }
   0xc   :  { %16 = vsyncpa [#allocation8], 0 }
   0xd   :  { %17 = vsyncpa [#allocation11], 0 }
   0xe   :  { %18 = vsyncpa [#allocation9], 0  ;;  %s5630_s11 = smov [#allocation10]   ;;  %s5631_s13 = smov [#allocation7]  }
   0xf   :  { %s36_s12 = sshll.u32 %s5630_s11, 4  ;;  %s24_s14 = sshll.u32 %s5631_s13, 4  ;;  %s37_s12 = int_to_ptr.vmem [resolvable:$true] %s36_s12  ;;  %s5757_s14 = int_to_ptr.vmem [resolvable:$true] %s24_s14 }
  0x10   :  { %s3993_s17 = scalar_lea.hbm %s7339_s3, 4096 }
  0x11   :  { %p3994_p3 = scmp.ne.s32.totalorder %s7339_s3, %s3993_s17  ;;  %p3997_p4 = scmp.lt.u32.totalorder %s3993_s17, %s7339_s3 }
  0x13   :  { %p3999_p5 = pnand %p3997_p4, %p3994_p3 }
  0x15   :  { %4002 = shalt.err (!%p3999_p5)
}
  0x16   :  { %s4003_s21 = scalar_lea.vmem %s37_s12, 4096  ;;  %p4008_p7 = scmp.lt.s32.totalorder %s37_s12, %s37_s12 }
  0x17   :  { %p4004_p6 = scmp.ne.s32.totalorder %s37_s12, %s4003_s21  ;;  %p4009_p8 = scmp.lt.s32.totalorder %s4003_s21, %s4003_s21 }
  0x19   :  { %p4010_p9 = por %p4009_p8, %p4008_p7 }
  0x1b   :  { %p4011_p10 = pnand %p4010_p9, %p4004_p6 }
  0x1d   :  { %4014 = shalt.err (!%p4011_p10)
}
  0x1e   :  { %s5632_s22 = smov 256   ;;  %s5633_s23 = smov 16  }
  0x1f   :  { %42 = dma.hbm_to_vmem [thread:$0]  %s7339_s3, 4096, %s37_s12, [#allocation11], %s5632_s22, %s5632_s22, %s5633_s23  }
  0x20   :  { %s4015_s28 = scalar_lea.hbm %s7338_s2, 4096 }
  0x21   :  { %p4016_p11 = scmp.ne.s32.totalorder %s7338_s2, %s4015_s28  ;;  %p4019_p12 = scmp.lt.u32.totalorder %s4015_s28, %s7338_s2 }
  0x23   :  { %p4021_p13 = pnand %p4019_p12, %p4016_p11 }
  0x25   :  { %4024 = shalt.err (!%p4021_p13)
}
  0x26   :  { %s4025_s10 = scalar_lea.vmem %s5757_s14, 4096  ;;  %p4030_p1 = scmp.lt.s32.totalorder %s5757_s14, %s5757_s14 }
  0x27   :  { %p4026_p0 = scmp.ne.s32.totalorder %s5757_s14, %s4025_s10  ;;  %p4031_p2 = scmp.lt.s32.totalorder %s4025_s10, %s4025_s10 }
  0x29   :  { %p4032_p3 = por %p4031_p2, %p4030_p1 }
  0x2b   :  { %p4033_p4 = pnand %p4032_p3, %p4026_p0 }
  0x2d   :  { %4036 = shalt.err (!%p4033_p4)
}
  0x2e   :  { %30 = dma.hbm_to_vmem [thread:$0]  %s7338_s2, 4096, %s5757_s14, [#allocation8], %s5632_s22, %s5632_s22, %s5633_s23  }
  0x2f   :  { %s5634_s12 = smov [#allocation12]   ;;  %s4037_s17 = scalar_lea.hbm %s7341_s5, 1024 }
  0x30   :  { %s50_s13 = sshll.u32 %s5634_s12, 4  ;;  %p4038_p5 = scmp.ne.s32.totalorder %s7341_s5, %s4037_s17  ;;  %s51_s13 = int_to_ptr.vmem [resolvable:$true] %s50_s13 }
  0x31   :  { %p4041_p6 = scmp.lt.u32.totalorder %s4037_s17, %s7341_s5 }
  0x33   :  { %p4043_p7 = pnand %p4041_p6, %p4038_p5 }
  0x35   :  { %4046 = shalt.err (!%p4043_p7)
}
  0x36   :  { %s4047_s21 = scalar_lea.vmem %s51_s13, 1024  ;;  %p4052_p9 = scmp.lt.s32.totalorder %s51_s13, %s51_s13 }
  0x37   :  { %p4048_p8 = scmp.ne.s32.totalorder %s51_s13, %s4047_s21  ;;  %p4053_p10 = scmp.lt.s32.totalorder %s4047_s21, %s4047_s21 }
  0x39   :  { %p4054_p11 = por %p4053_p10, %p4052_p9 }
  0x3b   :  { %p4055_p12 = pnand %p4054_p11, %p4048_p8 }
  0x3d   :  { %4058 = shalt.err (!%p4055_p12)
}
  0x3e   :  { %s5635_s2 = smov 64   ;;  %s5636_s14 = smov 4  }
  0x3f   :  { %56 = dma.hbm_to_vmem [thread:$0]  %s7341_s5, 1024, %s51_s13, [#allocation11], %s5635_s2, %s5635_s2, %s5636_s14  }
  0x40   :  { %5619 = dma.done.wait [#allocation8], 4096  }
  0x41   :  { %5620 = vsyncadd [#allocation8], 4294963200 }
  0x42   :  { %5621 = dma.done.wait [#allocation11], 5120  }
  0x43   :  { %5622 = vsyncadd [#allocation11], 4294962176  ;;  %s70_s24 = sld [smem:[#allocation6]]  ;;  %s5637_s25 = smov [#allocation2]  }
  0x44   :  { %s80_s26 = sshll.u32 %s5637_s25, 4  ;;  %s5802_s27 = sld [smem:[#allocation6 + $0x1]]  ;;  %s5800_s26 = int_to_ptr.vmem [resolvable:$true] %s80_s26 }
  0x45   :  { %s5638_s28 = smov [#allocation2 + $0x1]   ;;  %s5804_s30 = sld [smem:[#allocation6 + $0x2]] }
  0x46   :  { %s96_s29 = sshll.u32 %s5638_s28, 4  ;;  %s5639_s8 = smov [#allocation2 + $0x2]   ;;  %s5806_s29 = int_to_ptr.vmem [resolvable:$true] %s96_s29 }
  0x47   :  { %s112_s5 = sshll.u32 %s5639_s8, 4  ;;  %s5808_s9 = sld [smem:[#allocation6 + $0x3]]  ;;  %s5810_s5 = int_to_ptr.vmem [resolvable:$true] %s112_s5 }
  0x48   :  { %s5640_s3 = smov [#allocation2 + $0x3]   ;;  %s5821_s0 = scalar_lea.hbm %s7337_s1, 16000 }
  0x49   :  { %s3304_s10 = sshll.u32 %s70_s24, 4  ;;  %s5812_s11 = sshll.u32 %s5640_s3, 4  ;;  %s129_s11 = int_to_ptr.vmem [resolvable:$true] %s5812_s11 }
  0x4a   :  { %s72_s15 = scalar_lea.hbm %s7337_s1, %s3304_s10  ;;  %s3306_s16 = sshll.u32 %s5802_s27, 4 }
  0x4b   :  { %s4059_s17 = scalar_lea.hbm %s72_s15, 16  ;;  %p4062_p0 = scmp.lt.u32.totalorder %s72_s15, %s7337_s1 }
  0x4c   :  { %p4060_p13 = scmp.ne.s32.totalorder %s72_s15, %s4059_s17  ;;  %p4063_p1 = scmp.lt.u32.totalorder %s5821_s0, %s4059_s17 }
  0x4d   :  { %p4065_p3 = scmp.lt.u32.totalorder %s4059_s17, %s72_s15 }
  0x4e   :  { %p4064_p2 = por %p4063_p1, %p4062_p0 }
  0x50   :  { %p4066_p4 = por %p4065_p3, %p4064_p2 }
  0x52   :  { %p4067_p5 = pnand %p4066_p4, %p4060_p13 }
  0x54   :  { %4070 = shalt.err (!%p4067_p5)  }
  0x55   :  { %s4071_s2 = scalar_lea.vmem %s5800_s26, 16  ;;  %s5830_s14 = scalar_lea.vmem %s5800_s26, 1024 }
  0x56   :  { %p4072_p6 = scmp.ne.s32.totalorder %s5800_s26, %s4071_s2  ;;  %p4076_p7 = scmp.lt.s32.totalorder %s5800_s26, %s5800_s26 }
  0x57   :  { %p4077_p8 = scmp.lt.s32.totalorder %s5830_s14, %s4071_s2 }
  0x59   :  { %p4078_p9 = por %p4077_p8, %p4076_p7 }
  0x5b   :  { %p4079_p10 = pnand %p4078_p9, %p4072_p6 }
  0x5d   :  { %4082 = shalt.err (!%p4079_p10)  }
  0x5e   :  { %83 = dma.hbm_to_vmem [thread:$0]  %s72_s15, 16, %s5800_s26, [#allocation4] }
  0x5f   :  { %s87_s24 = scalar_lea.hbm %s7337_s1, %s3306_s16  ;;  %s3308_s25 = sshll.u32 %s5804_s30, 4 }
  0x60   :  { %s4083_s27 = scalar_lea.hbm %s87_s24, 16  ;;  %p4086_p12 = scmp.lt.u32.totalorder %s87_s24, %s7337_s1 }
  0x61   :  { %p4084_p11 = scmp.ne.s32.totalorder %s87_s24, %s4083_s27  ;;  %p4087_p13 = scmp.lt.u32.totalorder %s5821_s0, %s4083_s27 }
  0x62   :  { %p4089_p1 = scmp.lt.u32.totalorder %s4083_s27, %s87_s24 }
  0x63   :  { %p4088_p0 = por %p4087_p13, %p4086_p12 }
  0x65   :  { %p4090_p2 = por %p4089_p1, %p4088_p0 }
  0x67   :  { %p4091_p3 = pnand %p4090_p2, %p4084_p11 }
  0x69   :  { %4094 = shalt.err (!%p4091_p3)  }
  0x6a   :  { %s4095_s10 = scalar_lea.vmem %s5806_s29, 16  ;;  %p4100_p5 = scmp.lt.s32.totalorder %s5806_s29, %s5800_s26 }
  0x6b   :  { %p4096_p4 = scmp.ne.s32.totalorder %s5806_s29, %s4095_s10  ;;  %p4101_p6 = scmp.lt.s32.totalorder %s5830_s14, %s4095_s10 }
  0x6d   :  { %p4102_p7 = por %p4101_p6, %p4100_p5 }
  0x6f   :  { %p4103_p8 = pnand %p4102_p7, %p4096_p4 }
  0x71   :  { %4106 = shalt.err (!%p4103_p8)  }
  0x72   :  { %99 = dma.hbm_to_vmem [thread:$0]  %s87_s24, 16, %s5806_s29, [#allocation4] }
  0x73   :  { %s103_s12 = scalar_lea.hbm %s7337_s1, %s3308_s25  ;;  %s3310_s13 = sshll.u32 %s5808_s9, 4 }
  0x74   :  { %s4107_s15 = scalar_lea.hbm %s103_s12, 16  ;;  %p4110_p10 = scmp.lt.u32.totalorder %s103_s12, %s7337_s1 }
  0x75   :  { %p4108_p9 = scmp.ne.s32.totalorder %s103_s12, %s4107_s15  ;;  %p4111_p11 = scmp.lt.u32.totalorder %s5821_s0, %s4107_s15 }
  0x76   :  { %p4113_p13 = scmp.lt.u32.totalorder %s4107_s15, %s103_s12 }
  0x77   :  { %p4112_p12 = por %p4111_p11, %p4110_p10 }
  0x79   :  { %p4114_p0 = por %p4113_p13, %p4112_p12 }
  0x7b   :  { %p4115_p1 = pnand %p4114_p0, %p4108_p9 }
  0x7d   :  { %4118 = shalt.err (!%p4115_p1)  }
  0x7e   :  { %s4119_s29 = scalar_lea.vmem %s5810_s5, 16  ;;  %p4124_p3 = scmp.lt.s32.totalorder %s5810_s5, %s5800_s26 }
  0x7f   :  { %p4120_p2 = scmp.ne.s32.totalorder %s5810_s5, %s4119_s29  ;;  %p4125_p4 = scmp.lt.s32.totalorder %s5830_s14, %s4119_s29 }
  0x81   :  { %p4126_p5 = por %p4125_p4, %p4124_p3 }
  0x83   :  { %p4127_p6 = pnand %p4126_p5, %p4120_p2 }
  0x85   :  { %4130 = shalt.err (!%p4127_p6)  }
  0x86   :  { %115 = dma.hbm_to_vmem [thread:$0]  %s103_s12, 16, %s5810_s5, [#allocation4] }
  0x87   :  { %s119_s19 = scalar_lea.hbm %s7337_s1, %s3310_s13 }
  0x88   :  { %s4131_s20 = scalar_lea.hbm %s119_s19, 16  ;;  %p4134_p8 = scmp.lt.u32.totalorder %s119_s19, %s7337_s1 }
  0x89   :  { %p4132_p7 = scmp.ne.s32.totalorder %s119_s19, %s4131_s20  ;;  %p4135_p9 = scmp.lt.u32.totalorder %s5821_s0, %s4131_s20 }
  0x8a   :  { %p4137_p11 = scmp.lt.u32.totalorder %s4131_s20, %s119_s19 }
  0x8b   :  { %p4136_p10 = por %p4135_p9, %p4134_p8 }
  0x8d   :  { %p4138_p12 = por %p4137_p11, %p4136_p10 }
  0x8f   :  { %p4139_p13 = pnand %p4138_p12, %p4132_p7 }
  0x91   :  { %4142 = shalt.err (!%p4139_p13)  }
  0x92   :  { %s4143_s22 = scalar_lea.vmem %s129_s11, 16  ;;  %p4148_p1 = scmp.lt.s32.totalorder %s129_s11, %s5800_s26 }
  0x93   :  { %p4144_p0 = scmp.ne.s32.totalorder %s129_s11, %s4143_s22  ;;  %p4149_p2 = scmp.lt.s32.totalorder %s5830_s14, %s4143_s22 }
  0x95   :  { %p4150_p3 = por %p4149_p2, %p4148_p1 }
  0x97   :  { %p4151_p4 = pnand %p4150_p3, %p4144_p0 }
  0x99   :  { %4154 = shalt.err (!%p4151_p4)  }
  0x9a   :  { %131 = dma.hbm_to_vmem [thread:$0]  %s119_s19, 16, %s129_s11, [#allocation4] }
  0x9b   :  { %s3311_s5 = sld [smem:[#allocation6 + $0x4]]  ;;  %s5641_s23 = smov [#allocation2 + $0x4]  }
  0x9c   :  { %s144_s24 = sshll.u32 %s5641_s23, 4  ;;  %s5874_s25 = sld [smem:[#allocation6 + $0x5]]  ;;  %s145_s24 = int_to_ptr.vmem [resolvable:$true] %s144_s24 }
  0x9d   :  { %s5642_s27 = smov [#allocation2 + $0x5]   ;;  %s5876_s8 = sld [smem:[#allocation6 + $0x6]] }
  0x9e   :  { %s160_s28 = sshll.u32 %s5642_s27, 4  ;;  %s5643_s10 = smov [#allocation2 + $0x6]   ;;  %s5878_s28 = int_to_ptr.vmem [resolvable:$true] %s160_s28 }
  0x9f   :  { %s176_s30 = sshll.u32 %s5643_s10, 4  ;;  %s5880_s3 = sld [smem:[#allocation6 + $0x7]]  ;;  %s5882_s30 = int_to_ptr.vmem [resolvable:$true] %s176_s30 }
  0xa1   :  { %s3312_s12 = sshll.u32 %s3311_s5, 4 }
  0xa2   :  { %s135_s15 = scalar_lea.hbm %s7337_s1, %s3312_s12  ;;  %s3314_s16 = sshll.u32 %s5874_s25, 4 }
  0xa3   :  { %s4155_s17 = scalar_lea.hbm %s135_s15, 16  ;;  %p4158_p6 = scmp.lt.u32.totalorder %s135_s15, %s7337_s1 }
  0xa4   :  { %p4156_p5 = scmp.ne.s32.totalorder %s135_s15, %s4155_s17  ;;  %p4159_p7 = scmp.lt.u32.totalorder %s5821_s0, %s4155_s17 }
  0xa5   :  { %p4161_p9 = scmp.lt.u32.totalorder %s4155_s17, %s135_s15 }
  0xa6   :  { %p4160_p8 = por %p4159_p7, %p4158_p6 }
  0xa8   :  { %p4162_p10 = por %p4161_p9, %p4160_p8 }
  0xaa   :  { %p4163_p11 = pnand %p4162_p10, %p4156_p5 }
  0xac   :  { %4166 = shalt.err (!%p4163_p11)  }
  0xad   :  { %s4167_s18 = scalar_lea.vmem %s145_s24, 16  ;;  %p4172_p13 = scmp.lt.s32.totalorder %s145_s24, %s5800_s26 }
  0xae   :  { %p4168_p12 = scmp.ne.s32.totalorder %s145_s24, %s4167_s18  ;;  %p4173_p0 = scmp.lt.s32.totalorder %s5830_s14, %s4167_s18 }
  0xb0   :  { %p4174_p1 = por %p4173_p0, %p4172_p13 }
  0xb2   :  { %p4175_p2 = pnand %p4174_p1, %p4168_p12 }
  0xb4   :  { %4178 = shalt.err (!%p4175_p2)  }
  0xb5   :  { %147 = dma.hbm_to_vmem [thread:$0]  %s135_s15, 16, %s145_s24, [#allocation4] }
  0xb6   :  { %s151_s21 = scalar_lea.hbm %s7337_s1, %s3314_s16  ;;  %s3316_s2 = sshll.u32 %s5876_s8, 4 }
  0xb7   :  { %s4179_s22 = scalar_lea.hbm %s151_s21, 16  ;;  %p4182_p4 = scmp.lt.u32.totalorder %s151_s21, %s7337_s1 }
  0xb8   :  { %p4180_p3 = scmp.ne.s32.totalorder %s151_s21, %s4179_s22  ;;  %p4183_p5 = scmp.lt.u32.totalorder %s5821_s0, %s4179_s22 }
  0xb9   :  { %p4185_p7 = scmp.lt.u32.totalorder %s4179_s22, %s151_s21 }
  0xba   :  { %p4184_p6 = por %p4183_p5, %p4182_p4 }
  0xbc   :  { %p4186_p8 = por %p4185_p7, %p4184_p6 }
  0xbe   :  { %p4187_p9 = pnand %p4186_p8, %p4180_p3 }
  0xc0   :  { %4190 = shalt.err (!%p4187_p9)  }
  0xc1   :  { %s4191_s24 = scalar_lea.vmem %s5878_s28, 16  ;;  %p4196_p11 = scmp.lt.s32.totalorder %s5878_s28, %s5800_s26 }
  0xc2   :  { %p4192_p10 = scmp.ne.s32.totalorder %s5878_s28, %s4191_s24  ;;  %p4197_p12 = scmp.lt.s32.totalorder %s5830_s14, %s4191_s24 }
  0xc4   :  { %p4198_p13 = por %p4197_p12, %p4196_p11 }
  0xc6   :  { %p4199_p0 = pnand %p4198_p13, %p4192_p10 }
  0xc8   :  { %4202 = shalt.err (!%p4199_p0)  }
  0xc9   :  { %163 = dma.hbm_to_vmem [thread:$0]  %s151_s21, 16, %s5878_s28, [#allocation4] }
  0xca   :  { %s167_s8 = scalar_lea.hbm %s7337_s1, %s3316_s2  ;;  %s3318_s10 = sshll.u32 %s5880_s3, 4 }
  0xcb   :  { %s4203_s12 = scalar_lea.hbm %s167_s8, 16  ;;  %p4206_p2 = scmp.lt.u32.totalorder %s167_s8, %s7337_s1 }
  0xcc   :  { %p4204_p1 = scmp.ne.s32.totalorder %s167_s8, %s4203_s12  ;;  %p4207_p3 = scmp.lt.u32.totalorder %s5821_s0, %s4203_s12 }
  0xcd   :  { %p4209_p5 = scmp.lt.u32.totalorder %s4203_s12, %s167_s8 }
  0xce   :  { %p4208_p4 = por %p4207_p3, %p4206_p2 }
  0xd0   :  { %p4210_p6 = por %p4209_p5, %p4208_p4 }
  0xd2   :  { %p4211_p7 = pnand %p4210_p6, %p4204_p1 }
  0xd4   :  { %4214 = shalt.err (!%p4211_p7)  }
  0xd5   :  { %s4215_s28 = scalar_lea.vmem %s5882_s30, 16  ;;  %p4220_p9 = scmp.lt.s32.totalorder %s5882_s30, %s5800_s26 }
  0xd6   :  { %p4216_p8 = scmp.ne.s32.totalorder %s5882_s30, %s4215_s28  ;;  %p4221_p10 = scmp.lt.s32.totalorder %s5830_s14, %s4215_s28 }
  0xd8   :  { %p4222_p11 = por %p4221_p10, %p4220_p9 }
  0xda   :  { %p4223_p12 = pnand %p4222_p11, %p4216_p8 }
  0xdc   :  { %4226 = shalt.err (!%p4223_p12)  }
  0xdd   :  { %179 = dma.hbm_to_vmem [thread:$0]  %s167_s8, 16, %s5882_s30, [#allocation4] }
  0xde   :  { %s183_s16 = scalar_lea.hbm %s7337_s1, %s3318_s10  ;;  %s5644_s17 = smov [#allocation2 + $0x7]  }
  0xdf   :  { %s192_s29 = sshll.u32 %s5644_s17, 4  ;;  %s5925_s9 = sld [smem:[#allocation6 + $0x8]]  ;;  %s193_s29 = int_to_ptr.vmem [resolvable:$true] %s192_s29 }
  0xe0   :  { %s4227_s18 = scalar_lea.hbm %s183_s16, 16  ;;  %p4230_p0 = scmp.lt.u32.totalorder %s183_s16, %s7337_s1 }
  0xe1   :  { %p4228_p13 = scmp.ne.s32.totalorder %s183_s16, %s4227_s18  ;;  %p4231_p1 = scmp.lt.u32.totalorder %s5821_s0, %s4227_s18 }
  0xe2   :  { %p4233_p3 = scmp.lt.u32.totalorder %s4227_s18, %s183_s16 }
  0xe3   :  { %p4232_p2 = por %p4231_p1, %p4230_p0 }
  0xe5   :  { %p4234_p4 = por %p4233_p3, %p4232_p2 }
  0xe7   :  { %p4235_p5 = pnand %p4234_p4, %p4228_p13 }
  0xe9   :  { %4238 = shalt.err (!%p4235_p5)  }
  0xea   :  { %s4239_s30 = scalar_lea.vmem %s193_s29, 16  ;;  %p4244_p7 = scmp.lt.s32.totalorder %s193_s29, %s5800_s26 }
  0xeb   :  { %p4240_p6 = scmp.ne.s32.totalorder %s193_s29, %s4239_s30  ;;  %p4245_p8 = scmp.lt.s32.totalorder %s5830_s14, %s4239_s30 }
  0xed   :  { %p4246_p9 = por %p4245_p8, %p4244_p7 }
  0xef   :  { %p4247_p10 = pnand %p4246_p9, %p4240_p6 }
  0xf1   :  { %4250 = shalt.err (!%p4247_p10)  }
  0xf2   :  { %195 = dma.hbm_to_vmem [thread:$0]  %s183_s16, 16, %s193_s29, [#allocation4] }
  0xf3   :  { %s5645_s21 = smov [#allocation2 + $0x8]   ;;  %s5933_s22 = sld [smem:[#allocation6 + $0x9]] }
  0xf4   :  { %s208_s2 = sshll.u32 %s5645_s21, 4  ;;  %s5646_s5 = smov [#allocation2 + $0x9]   ;;  %s209_s2 = int_to_ptr.vmem [resolvable:$true] %s208_s2 }
  0xf5   :  { %s224_s23 = sshll.u32 %s5646_s5, 4  ;;  %s5935_s24 = sld [smem:[#allocation6 + $0xa]]  ;;  %s5938_s23 = int_to_ptr.vmem [resolvable:$true] %s224_s23 }
  0xf6   :  { %s3320_s25 = sshll.u32 %s5925_s9, 4 }
  0xf7   :  { %s199_s10 = scalar_lea.hbm %s7337_s1, %s3320_s25 }
  0xf8   :  { %s4251_s12 = scalar_lea.hbm %s199_s10, 16  ;;  %p4254_p12 = scmp.lt.u32.totalorder %s199_s10, %s7337_s1 }
  0xf9   :  { %p4252_p11 = scmp.ne.s32.totalorder %s199_s10, %s4251_s12  ;;  %p4255_p13 = scmp.lt.u32.totalorder %s5821_s0, %s4251_s12 }
  0xfa   :  { %p4257_p1 = scmp.lt.u32.totalorder %s4251_s12, %s199_s10 }
  0xfb   :  { %p4256_p0 = por %p4255_p13, %p4254_p12 }
  0xfd   :  { %p4258_p2 = por %p4257_p1, %p4256_p0 }
  0xff   :  { %p4259_p3 = pnand %p4258_p2, %p4252_p11 }
 0x101   :  { %4262 = shalt.err (!%p4259_p3)  }
 0x102   :  { %s4263_s28 = scalar_lea.vmem %s209_s2, 16  ;;  %p4268_p5 = scmp.lt.s32.totalorder %s209_s2, %s5800_s26 }
 0x103   :  { %p4264_p4 = scmp.ne.s32.totalorder %s209_s2, %s4263_s28  ;;  %p4269_p6 = scmp.lt.s32.totalorder %s5830_s14, %s4263_s28 }
 0x105   :  { %p4270_p7 = por %p4269_p6, %p4268_p5 }
 0x107   :  { %p4271_p8 = pnand %p4270_p7, %p4264_p4 }
 0x109   :  { %4274 = shalt.err (!%p4271_p8)  }
 0x10a   :  { %211 = dma.hbm_to_vmem [thread:$0]  %s199_s10, 16, %s209_s2, [#allocation4] }
 0x10b   :  { %s3322_s3 = sshll.u32 %s5933_s22, 4  ;;  %s5647_s15 = smov [#allocation2 + $0xa]  }
 0x10c   :  { %s240_s16 = sshll.u32 %s5647_s15, 4  ;;  %s215_s9 = scalar_lea.hbm %s7337_s1, %s3322_s3  ;;  %s5953_s16 = int_to_ptr.vmem [resolvable:$true] %s240_s16 }
 0x10d   :  { %s4275_s18 = scalar_lea.hbm %s215_s9, 16  ;;  %p4278_p10 = scmp.lt.u32.totalorder %s215_s9, %s7337_s1 }
 0x10e   :  { %p4276_p9 = scmp.ne.s32.totalorder %s215_s9, %s4275_s18  ;;  %p4279_p11 = scmp.lt.u32.totalorder %s5821_s0, %s4275_s18 }
 0x10f   :  { %p4281_p13 = scmp.lt.u32.totalorder %s4275_s18, %s215_s9 }
 0x110   :  { %p4280_p12 = por %p4279_p11, %p4278_p10 }
 0x112   :  { %p4282_p0 = por %p4281_p13, %p4280_p12 }
 0x114   :  { %p4283_p1 = pnand %p4282_p0, %p4276_p9 }
 0x116   :  { %4286 = shalt.err (!%p4283_p1)  }
 0x117   :  { %s4287_s30 = scalar_lea.vmem %s5938_s23, 16  ;;  %p4292_p3 = scmp.lt.s32.totalorder %s5938_s23, %s5800_s26 }
 0x118   :  { %p4288_p2 = scmp.ne.s32.totalorder %s5938_s23, %s4287_s30  ;;  %p4293_p4 = scmp.lt.s32.totalorder %s5830_s14, %s4287_s30 }
 0x11a   :  { %p4294_p5 = por %p4293_p4, %p4292_p3 }
 0x11c   :  { %p4295_p6 = pnand %p4294_p5, %p4288_p2 }
 0x11e   :  { %4298 = shalt.err (!%p4295_p6)  }
 0x11f   :  { %227 = dma.hbm_to_vmem [thread:$0]  %s215_s9, 16, %s5938_s23, [#allocation4] }
 0x120   :  { %s3324_s21 = sshll.u32 %s5935_s24, 4  ;;  %s5966_s2 = sld [smem:[#allocation6 + $0xb]] }
 0x121   :  { %s231_s25 = scalar_lea.hbm %s7337_s1, %s3324_s21 }
 0x122   :  { %s4299_s27 = scalar_lea.hbm %s231_s25, 16  ;;  %p4302_p8 = scmp.lt.u32.totalorder %s231_s25, %s7337_s1 }
 0x123   :  { %p4300_p7 = scmp.ne.s32.totalorder %s231_s25, %s4299_s27  ;;  %p4303_p9 = scmp.lt.u32.totalorder %s5821_s0, %s4299_s27 }
 0x124   :  { %p4305_p11 = scmp.lt.u32.totalorder %s4299_s27, %s231_s25 }
 0x125   :  { %p4304_p10 = por %p4303_p9, %p4302_p8 }
 0x127   :  { %p4306_p12 = por %p4305_p11, %p4304_p10 }
 0x129   :  { %p4307_p13 = pnand %p4306_p12, %p4300_p7 }
 0x12b   :  { %4310 = shalt.err (!%p4307_p13)  }
 0x12c   :  { %s4311_s23 = scalar_lea.vmem %s5953_s16, 16  ;;  %p4316_p1 = scmp.lt.s32.totalorder %s5953_s16, %s5800_s26 }
 0x12d   :  { %p4312_p0 = scmp.ne.s32.totalorder %s5953_s16, %s4311_s23  ;;  %p4317_p2 = scmp.lt.s32.totalorder %s5830_s14, %s4311_s23 }
 0x12f   :  { %p4318_p3 = por %p4317_p2, %p4316_p1 }
 0x131   :  { %p4319_p4 = pnand %p4318_p3, %p4312_p0 }
 0x133   :  { %4322 = shalt.err (!%p4319_p4)  }
 0x134   :  { %243 = dma.hbm_to_vmem [thread:$0]  %s231_s25, 16, %s5953_s16, [#allocation4] }
 0x135   :  { %s5648_s24 = smov [#allocation2 + $0xb]   ;;  %s5981_s11 = sld [smem:[#allocation6 + $0xc]] }
 0x136   :  { %s256_s12 = sshll.u32 %s5648_s24, 4  ;;  %s5649_s13 = smov [#allocation2 + $0xc]   ;;  %s257_s12 = int_to_ptr.vmem [resolvable:$true] %s256_s12 }
 0x137   :  { %s272_s28 = sshll.u32 %s5649_s13, 4  ;;  %s5983_s3 = sld [smem:[#allocation6 + $0xd]]  ;;  %s5986_s28 = int_to_ptr.vmem [resolvable:$true] %s272_s28 }
 0x138   :  { %s3326_s15 = sshll.u32 %s5966_s2, 4 }
 0x139   :  { %s247_s9 = scalar_lea.hbm %s7337_s1, %s3326_s15 }
 0x13a   :  { %s4323_s18 = scalar_lea.hbm %s247_s9, 16  ;;  %p4326_p6 = scmp.lt.u32.totalorder %s247_s9, %s7337_s1 }
 0x13b   :  { %p4324_p5 = scmp.ne.s32.totalorder %s247_s9, %s4323_s18  ;;  %p4327_p7 = scmp.lt.u32.totalorder %s5821_s0, %s4323_s18 }
 0x13c   :  { %p4329_p9 = scmp.lt.u32.totalorder %s4323_s18, %s247_s9 }
 0x13d   :  { %p4328_p8 = por %p4327_p7, %p4326_p6 }
 0x13f   :  { %p4330_p10 = por %p4329_p9, %p4328_p8 }
 0x141   :  { %p4331_p11 = pnand %p4330_p10, %p4324_p5 }
 0x143   :  { %4334 = shalt.err (!%p4331_p11)  }
 0x144   :  { %s4335_s20 = scalar_lea.vmem %s257_s12, 16  ;;  %p4340_p13 = scmp.lt.s32.totalorder %s257_s12, %s5800_s26 }
 0x145   :  { %p4336_p12 = scmp.ne.s32.totalorder %s257_s12, %s4335_s20  ;;  %p4341_p0 = scmp.lt.s32.totalorder %s5830_s14, %s4335_s20 }
 0x147   :  { %p4342_p1 = por %p4341_p0, %p4340_p13 }
 0x149   :  { %p4343_p2 = pnand %p4342_p1, %p4336_p12 }
 0x14b   :  { %4346 = shalt.err (!%p4343_p2)  }
 0x14c   :  { %259 = dma.hbm_to_vmem [thread:$0]  %s247_s9, 16, %s257_s12, [#allocation4] }
 0x14d   :  { %s3328_s30 = sshll.u32 %s5981_s11, 4  ;;  %s5650_s21 = smov [#allocation2 + $0xd]  }
 0x14e   :  { %s288_s2 = sshll.u32 %s5650_s21, 4  ;;  %s263_s25 = scalar_lea.hbm %s7337_s1, %s3328_s30  ;;  %s6001_s2 = int_to_ptr.vmem [resolvable:$true] %s288_s2 }
 0x14f   :  { %s4347_s27 = scalar_lea.hbm %s263_s25, 16  ;;  %p4350_p4 = scmp.lt.u32.totalorder %s263_s25, %s7337_s1 }
 0x150   :  { %p4348_p3 = scmp.ne.s32.totalorder %s263_s25, %s4347_s27  ;;  %p4351_p5 = scmp.lt.u32.totalorder %s5821_s0, %s4347_s27 }
 0x151   :  { %p4353_p7 = scmp.lt.u32.totalorder %s4347_s27, %s263_s25 }
 0x152   :  { %p4352_p6 = por %p4351_p5, %p4350_p4 }
 0x154   :  { %p4354_p8 = por %p4353_p7, %p4352_p6 }
 0x156   :  { %p4355_p9 = pnand %p4354_p8, %p4348_p3 }
 0x158   :  { %4358 = shalt.err (!%p4355_p9)  }
 0x159   :  { %s4359_s23 = scalar_lea.vmem %s5986_s28, 16  ;;  %p4364_p11 = scmp.lt.s32.totalorder %s5986_s28, %s5800_s26 }
 0x15a   :  { %p4360_p10 = scmp.ne.s32.totalorder %s5986_s28, %s4359_s23  ;;  %p4365_p12 = scmp.lt.s32.totalorder %s5830_s14, %s4359_s23 }
 0x15c   :  { %p4366_p13 = por %p4365_p12, %p4364_p11 }
 0x15e   :  { %p4367_p0 = pnand %p4366_p13, %p4360_p10 }
 0x160   :  { %4370 = shalt.err (!%p4367_p0)  }
 0x161   :  { %275 = dma.hbm_to_vmem [thread:$0]  %s263_s25, 16, %s5986_s28, [#allocation4] }
 0x162   :  { %s3330_s24 = sshll.u32 %s5983_s3, 4  ;;  %s6014_s12 = sld [smem:[#allocation6 + $0xe]] }
 0x163   :  { %s279_s15 = scalar_lea.hbm %s7337_s1, %s3330_s24 }
 0x164   :  { %s4371_s17 = scalar_lea.hbm %s279_s15, 16  ;;  %p4374_p2 = scmp.lt.u32.totalorder %s279_s15, %s7337_s1 }
 0x165   :  { %p4372_p1 = scmp.ne.s32.totalorder %s279_s15, %s4371_s17  ;;  %p4375_p3 = scmp.lt.u32.totalorder %s5821_s0, %s4371_s17 }
 0x166   :  { %p4377_p5 = scmp.lt.u32.totalorder %s4371_s17, %s279_s15 }
 0x167   :  { %p4376_p4 = por %p4375_p3, %p4374_p2 }
 0x169   :  { %p4378_p6 = por %p4377_p5, %p4376_p4 }
 0x16b   :  { %p4379_p7 = pnand %p4378_p6, %p4372_p1 }
 0x16d   :  { %4382 = shalt.err (!%p4379_p7)  }
 0x16e   :  { %s4383_s28 = scalar_lea.vmem %s6001_s2, 16  ;;  %p4388_p9 = scmp.lt.s32.totalorder %s6001_s2, %s5800_s26 }
 0x16f   :  { %p4384_p8 = scmp.ne.s32.totalorder %s6001_s2, %s4383_s28  ;;  %p4389_p10 = scmp.lt.s32.totalorder %s5830_s14, %s4383_s28 }
 0x171   :  { %p4390_p11 = por %p4389_p10, %p4388_p9 }
 0x173   :  { %p4391_p12 = pnand %p4390_p11, %p4384_p8 }
 0x175   :  { %4394 = shalt.err (!%p4391_p12)  }
 0x176   :  { %291 = dma.hbm_to_vmem [thread:$0]  %s279_s15, 16, %s6001_s2, [#allocation4] }
 0x177   :  { %s5651_s3 = smov [#allocation2 + $0xe]   ;;  %s6029_s19 = sld [smem:[#allocation6 + $0xf]] }
 0x178   :  { %s304_s18 = sshll.u32 %s5651_s3, 4  ;;  %s5652_s16 = smov [#allocation2 + $0xf]   ;;  %s305_s18 = int_to_ptr.vmem [resolvable:$true] %s304_s18 }
 0x179   :  { %s320_s20 = sshll.u32 %s5652_s16, 4  ;;  %s6031_s30 = sld [smem:[#allocation6 + $0x10]]  ;;  %s6034_s20 = int_to_ptr.vmem [resolvable:$true] %s320_s20 }
 0x17a   :  { %s3332_s21 = sshll.u32 %s6014_s12, 4 }
 0x17b   :  { %s295_s25 = scalar_lea.hbm %s7337_s1, %s3332_s21 }
 0x17c   :  { %s4395_s27 = scalar_lea.hbm %s295_s25, 16  ;;  %p4398_p0 = scmp.lt.u32.totalorder %s295_s25, %s7337_s1 }
 0x17d   :  { %p4396_p13 = scmp.ne.s32.totalorder %s295_s25, %s4395_s27  ;;  %p4399_p1 = scmp.lt.u32.totalorder %s5821_s0, %s4395_s27 }
 0x17e   :  { %p4401_p3 = scmp.lt.u32.totalorder %s4395_s27, %s295_s25 }
 0x17f   :  { %p4400_p2 = por %p4399_p1, %p4398_p0 }
 0x181   :  { %p4402_p4 = por %p4401_p3, %p4400_p2 }
 0x183   :  { %p4403_p5 = pnand %p4402_p4, %p4396_p13 }
 0x185   :  { %4406 = shalt.err (!%p4403_p5)  }
 0x186   :  { %s4407_s10 = scalar_lea.vmem %s305_s18, 16  ;;  %p4412_p7 = scmp.lt.s32.totalorder %s305_s18, %s5800_s26 }
 0x187   :  { %p4408_p6 = scmp.ne.s32.totalorder %s305_s18, %s4407_s10  ;;  %p4413_p8 = scmp.lt.s32.totalorder %s5830_s14, %s4407_s10 }
 0x189   :  { %p4414_p9 = por %p4413_p8, %p4412_p7 }
 0x18b   :  { %p4415_p10 = pnand %p4414_p9, %p4408_p6 }
 0x18d   :  { %4418 = shalt.err (!%p4415_p10)  }
 0x18e   :  { %307 = dma.hbm_to_vmem [thread:$0]  %s295_s25, 16, %s305_s18, [#allocation4] }
 0x18f   :  { %s3334_s23 = sshll.u32 %s6029_s19, 4  ;;  %s5653_s24 = smov [#allocation2 + $0x10]  }
 0x190   :  { %s336_s12 = sshll.u32 %s5653_s24, 4  ;;  %s311_s15 = scalar_lea.hbm %s7337_s1, %s3334_s23  ;;  %s6049_s12 = int_to_ptr.vmem [resolvable:$true] %s336_s12 }
 0x191   :  { %s4419_s17 = scalar_lea.hbm %s311_s15, 16  ;;  %p4422_p12 = scmp.lt.u32.totalorder %s311_s15, %s7337_s1 }
 0x192   :  { %p4420_p11 = scmp.ne.s32.totalorder %s311_s15, %s4419_s17  ;;  %p4423_p13 = scmp.lt.u32.totalorder %s5821_s0, %s4419_s17 }
 0x193   :  { %p4425_p1 = scmp.lt.u32.totalorder %s4419_s17, %s311_s15 }
 0x194   :  { %p4424_p0 = por %p4423_p13, %p4422_p12 }
 0x196   :  { %p4426_p2 = por %p4425_p1, %p4424_p0 }
 0x198   :  { %p4427_p3 = pnand %p4426_p2, %p4420_p11 }
 0x19a   :  { %4430 = shalt.err (!%p4427_p3)  }
 0x19b   :  { %s4431_s28 = scalar_lea.vmem %s6034_s20, 16  ;;  %p4436_p5 = scmp.lt.s32.totalorder %s6034_s20, %s5800_s26 }
 0x19c   :  { %p4432_p4 = scmp.ne.s32.totalorder %s6034_s20, %s4431_s28  ;;  %p4437_p6 = scmp.lt.s32.totalorder %s5830_s14, %s4431_s28 }
 0x19e   :  { %p4438_p7 = por %p4437_p6, %p4436_p5 }
 0x1a0   :  { %p4439_p8 = pnand %p4438_p7, %p4432_p4 }
 0x1a2   :  { %4442 = shalt.err (!%p4439_p8)  }
 0x1a3   :  { %323 = dma.hbm_to_vmem [thread:$0]  %s311_s15, 16, %s6034_s20, [#allocation4] }
 0x1a4   :  { %s3336_s3 = sshll.u32 %s6031_s30, 4  ;;  %s6062_s18 = sld [smem:[#allocation6 + $0x11]] }
 0x1a5   :  { %s327_s21 = scalar_lea.hbm %s7337_s1, %s3336_s3 }
 0x1a6   :  { %s4443_s22 = scalar_lea.hbm %s327_s21, 16  ;;  %p4446_p10 = scmp.lt.u32.totalorder %s327_s21, %s7337_s1 }
 0x1a7   :  { %p4444_p9 = scmp.ne.s32.totalorder %s327_s21, %s4443_s22  ;;  %p4447_p11 = scmp.lt.u32.totalorder %s5821_s0, %s4443_s22 }
 0x1a8   :  { %p4449_p13 = scmp.lt.u32.totalorder %s4443_s22, %s327_s21 }
 0x1a9   :  { %p4448_p12 = por %p4447_p11, %p4446_p10 }
 0x1ab   :  { %p4450_p0 = por %p4449_p13, %p4448_p12 }
 0x1ad   :  { %p4451_p1 = pnand %p4450_p0, %p4444_p9 }
 0x1af   :  { %4454 = shalt.err (!%p4451_p1)  }
 0x1b0   :  { %s4455_s20 = scalar_lea.vmem %s6049_s12, 16  ;;  %p4460_p3 = scmp.lt.s32.totalorder %s6049_s12, %s5800_s26 }
 0x1b1   :  { %p4456_p2 = scmp.ne.s32.totalorder %s6049_s12, %s4455_s20  ;;  %p4461_p4 = scmp.lt.s32.totalorder %s5830_s14, %s4455_s20 }
 0x1b3   :  { %p4462_p5 = por %p4461_p4, %p4460_p3 }
 0x1b5   :  { %p4463_p6 = pnand %p4462_p5, %p4456_p2 }
 0x1b7   :  { %4466 = shalt.err (!%p4463_p6)  }
 0x1b8   :  { %339 = dma.hbm_to_vmem [thread:$0]  %s327_s21, 16, %s6049_s12, [#allocation4] }
 0x1b9   :  { %s5654_s30 = smov [#allocation2 + $0x11]   ;;  %s6077_s8 = sld [smem:[#allocation6 + $0x12]] }
 0x1ba   :  { %s352_s27 = sshll.u32 %s5654_s30, 4  ;;  %s5655_s2 = smov [#allocation2 + $0x12]   ;;  %s353_s27 = int_to_ptr.vmem [resolvable:$true] %s352_s27 }
 0x1bb   :  { %s368_s10 = sshll.u32 %s5655_s2, 4  ;;  %s6079_s23 = sld [smem:[#allocation6 + $0x13]]  ;;  %s6082_s10 = int_to_ptr.vmem [resolvable:$true] %s368_s10 }
 0x1bc   :  { %s3338_s24 = sshll.u32 %s6062_s18, 4 }
 0x1bd   :  { %s343_s15 = scalar_lea.hbm %s7337_s1, %s3338_s24 }
 0x1be   :  { %s4467_s17 = scalar_lea.hbm %s343_s15, 16  ;;  %p4470_p8 = scmp.lt.u32.totalorder %s343_s15, %s7337_s1 }
 0x1bf   :  { %p4468_p7 = scmp.ne.s32.totalorder %s343_s15, %s4467_s17  ;;  %p4471_p9 = scmp.lt.u32.totalorder %s5821_s0, %s4467_s17 }
 0x1c0   :  { %p4473_p11 = scmp.lt.u32.totalorder %s4467_s17, %s343_s15 }
 0x1c1   :  { %p4472_p10 = por %p4471_p9, %p4470_p8 }
 0x1c3   :  { %p4474_p12 = por %p4473_p11, %p4472_p10 }
 0x1c5   :  { %p4475_p13 = pnand %p4474_p12, %p4468_p7 }
 0x1c7   :  { %4478 = shalt.err (!%p4475_p13)  }
 0x1c8   :  { %s4479_s9 = scalar_lea.vmem %s353_s27, 16  ;;  %p4484_p1 = scmp.lt.s32.totalorder %s353_s27, %s5800_s26 }
 0x1c9   :  { %p4480_p0 = scmp.ne.s32.totalorder %s353_s27, %s4479_s9  ;;  %p4485_p2 = scmp.lt.s32.totalorder %s5830_s14, %s4479_s9 }
 0x1cb   :  { %p4486_p3 = por %p4485_p2, %p4484_p1 }
 0x1cd   :  { %p4487_p4 = pnand %p4486_p3, %p4480_p0 }
 0x1cf   :  { %4490 = shalt.err (!%p4487_p4)  }
 0x1d0   :  { %355 = dma.hbm_to_vmem [thread:$0]  %s343_s15, 16, %s353_s27, [#allocation4] }
 0x1d1   :  { %s3340_s28 = sshll.u32 %s6077_s8, 4  ;;  %s5656_s3 = smov [#allocation2 + $0x13]  }
 0x1d2   :  { %s384_s18 = sshll.u32 %s5656_s3, 4  ;;  %s359_s21 = scalar_lea.hbm %s7337_s1, %s3340_s28  ;;  %s6097_s18 = int_to_ptr.vmem [resolvable:$true] %s384_s18 }
 0x1d3   :  { %s4491_s22 = scalar_lea.hbm %s359_s21, 16  ;;  %p4494_p6 = scmp.lt.u32.totalorder %s359_s21, %s7337_s1 }
 0x1d4   :  { %p4492_p5 = scmp.ne.s32.totalorder %s359_s21, %s4491_s22  ;;  %p4495_p7 = scmp.lt.u32.totalorder %s5821_s0, %s4491_s22 }
 0x1d5   :  { %p4497_p9 = scmp.lt.u32.totalorder %s4491_s22, %s359_s21 }
 0x1d6   :  { %p4496_p8 = por %p4495_p7, %p4494_p6 }
 0x1d8   :  { %p4498_p10 = por %p4497_p9, %p4496_p8 }
 0x1da   :  { %p4499_p11 = pnand %p4498_p10, %p4492_p5 }
 0x1dc   :  { %4502 = shalt.err (!%p4499_p11)  }
 0x1dd   :  { %s4503_s20 = scalar_lea.vmem %s6082_s10, 16  ;;  %p4508_p13 = scmp.lt.s32.totalorder %s6082_s10, %s5800_s26 }
 0x1de   :  { %p4504_p12 = scmp.ne.s32.totalorder %s6082_s10, %s4503_s20  ;;  %p4509_p0 = scmp.lt.s32.totalorder %s5830_s14, %s4503_s20 }
 0x1e0   :  { %p4510_p1 = por %p4509_p0, %p4508_p13 }
 0x1e2   :  { %p4511_p2 = pnand %p4510_p1, %p4504_p12 }
 0x1e4   :  { %4514 = shalt.err (!%p4511_p2)  }
 0x1e5   :  { %371 = dma.hbm_to_vmem [thread:$0]  %s359_s21, 16, %s6082_s10, [#allocation4] }
 0x1e6   :  { %s3342_s30 = sshll.u32 %s6079_s23, 4  ;;  %s6110_s27 = sld [smem:[#allocation6 + $0x14]] }
 0x1e7   :  { %s375_s24 = scalar_lea.hbm %s7337_s1, %s3342_s30 }
 0x1e8   :  { %s4515_s11 = scalar_lea.hbm %s375_s24, 16  ;;  %p4518_p4 = scmp.lt.u32.totalorder %s375_s24, %s7337_s1 }
 0x1e9   :  { %p4516_p3 = scmp.ne.s32.totalorder %s375_s24, %s4515_s11  ;;  %p4519_p5 = scmp.lt.u32.totalorder %s5821_s0, %s4515_s11 }
 0x1ea   :  { %p4521_p7 = scmp.lt.u32.totalorder %s4515_s11, %s375_s24 }
 0x1eb   :  { %p4520_p6 = por %p4519_p5, %p4518_p4 }
 0x1ed   :  { %p4522_p8 = por %p4521_p7, %p4520_p6 }
 0x1ef   :  { %p4523_p9 = pnand %p4522_p8, %p4516_p3 }
 0x1f1   :  { %4526 = shalt.err (!%p4523_p9)  }
 0x1f2   :  { %s4527_s10 = scalar_lea.vmem %s6097_s18, 16  ;;  %p4532_p11 = scmp.lt.s32.totalorder %s6097_s18, %s5800_s26 }
 0x1f3   :  { %p4528_p10 = scmp.ne.s32.totalorder %s6097_s18, %s4527_s10  ;;  %p4533_p12 = scmp.lt.s32.totalorder %s5830_s14, %s4527_s10 }
 0x1f5   :  { %p4534_p13 = por %p4533_p12, %p4532_p11 }
 0x1f7   :  { %p4535_p0 = pnand %p4534_p13, %p4528_p10 }
 0x1f9   :  { %4538 = shalt.err (!%p4535_p0)  }
 0x1fa   :  { %387 = dma.hbm_to_vmem [thread:$0]  %s375_s24, 16, %s6097_s18, [#allocation4] }
 0x1fb   :  { %s5657_s23 = smov [#allocation2 + $0x14]   ;;  %s6125_s29 = sld [smem:[#allocation6 + $0x15]] }
 0x1fc   :  { %s400_s17 = sshll.u32 %s5657_s23, 4  ;;  %s5658_s12 = smov [#allocation2 + $0x15]   ;;  %s401_s17 = int_to_ptr.vmem [resolvable:$true] %s400_s17 }
 0x1fd   :  { %s416_s9 = sshll.u32 %s5658_s12, 4  ;;  %s6127_s28 = sld [smem:[#allocation6 + $0x16]]  ;;  %s6130_s9 = int_to_ptr.vmem [resolvable:$true] %s416_s9 }
 0x1fe   :  { %s3344_s3 = sshll.u32 %s6110_s27, 4 }
 0x1ff   :  { %s391_s21 = scalar_lea.hbm %s7337_s1, %s3344_s3 }
 0x200   :  { %s4539_s22 = scalar_lea.hbm %s391_s21, 16  ;;  %p4542_p2 = scmp.lt.u32.totalorder %s391_s21, %s7337_s1 }
 0x201   :  { %p4540_p1 = scmp.ne.s32.totalorder %s391_s21, %s4539_s22  ;;  %p4543_p3 = scmp.lt.u32.totalorder %s5821_s0, %s4539_s22 }
 0x202   :  { %p4545_p5 = scmp.lt.u32.totalorder %s4539_s22, %s391_s21 }
 0x203   :  { %p4544_p4 = por %p4543_p3, %p4542_p2 }
 0x205   :  { %p4546_p6 = por %p4545_p5, %p4544_p4 }
 0x207   :  { %p4547_p7 = pnand %p4546_p6, %p4540_p1 }
 0x209   :  { %4550 = shalt.err (!%p4547_p7)  }
 0x20a   :  { %s4551_s25 = scalar_lea.vmem %s401_s17, 16  ;;  %p4556_p9 = scmp.lt.s32.totalorder %s401_s17, %s5800_s26 }
 0x20b   :  { %p4552_p8 = scmp.ne.s32.totalorder %s401_s17, %s4551_s25  ;;  %p4557_p10 = scmp.lt.s32.totalorder %s5830_s14, %s4551_s25 }
 0x20d   :  { %p4558_p11 = por %p4557_p10, %p4556_p9 }
 0x20f   :  { %p4559_p12 = pnand %p4558_p11, %p4552_p8 }
 0x211   :  { %4562 = shalt.err (!%p4559_p12)  }
 0x212   :  { %403 = dma.hbm_to_vmem [thread:$0]  %s391_s21, 16, %s401_s17, [#allocation4] }
 0x213   :  { %s3346_s20 = sshll.u32 %s6125_s29, 4  ;;  %s5659_s30 = smov [#allocation2 + $0x16]  }
 0x214   :  { %s432_s27 = sshll.u32 %s5659_s30, 4  ;;  %s407_s24 = scalar_lea.hbm %s7337_s1, %s3346_s20  ;;  %s6145_s27 = int_to_ptr.vmem [resolvable:$true] %s432_s27 }
 0x215   :  { %s4563_s11 = scalar_lea.hbm %s407_s24, 16  ;;  %p4566_p0 = scmp.lt.u32.totalorder %s407_s24, %s7337_s1 }
 0x216   :  { %p4564_p13 = scmp.ne.s32.totalorder %s407_s24, %s4563_s11  ;;  %p4567_p1 = scmp.lt.u32.totalorder %s5821_s0, %s4563_s11 }
 0x217   :  { %p4569_p3 = scmp.lt.u32.totalorder %s4563_s11, %s407_s24 }
 0x218   :  { %p4568_p2 = por %p4567_p1, %p4566_p0 }
 0x21a   :  { %p4570_p4 = por %p4569_p3, %p4568_p2 }
 0x21c   :  { %p4571_p5 = pnand %p4570_p4, %p4564_p13 }
 0x21e   :  { %4574 = shalt.err (!%p4571_p5)  }
 0x21f   :  { %s4575_s10 = scalar_lea.vmem %s6130_s9, 16  ;;  %p4580_p7 = scmp.lt.s32.totalorder %s6130_s9, %s5800_s26 }
 0x220   :  { %p4576_p6 = scmp.ne.s32.totalorder %s6130_s9, %s4575_s10  ;;  %p4581_p8 = scmp.lt.s32.totalorder %s5830_s14, %s4575_s10 }
 0x222   :  { %p4582_p9 = por %p4581_p8, %p4580_p7 }
 0x224   :  { %p4583_p10 = pnand %p4582_p9, %p4576_p6 }
 0x226   :  { %4586 = shalt.err (!%p4583_p10)  }
 0x227   :  { %419 = dma.hbm_to_vmem [thread:$0]  %s407_s24, 16, %s6130_s9, [#allocation4] }
 0x228   :  { %s3348_s23 = sshll.u32 %s6127_s28, 4  ;;  %s6158_s17 = sld [smem:[#allocation6 + $0x17]] }
 0x229   :  { %s423_s3 = scalar_lea.hbm %s7337_s1, %s3348_s23 }
 0x22a   :  { %s4587_s19 = scalar_lea.hbm %s423_s3, 16  ;;  %p4590_p12 = scmp.lt.u32.totalorder %s423_s3, %s7337_s1 }
 0x22b   :  { %p4588_p11 = scmp.ne.s32.totalorder %s423_s3, %s4587_s19  ;;  %p4591_p13 = scmp.lt.u32.totalorder %s5821_s0, %s4587_s19 }
 0x22c   :  { %p4593_p1 = scmp.lt.u32.totalorder %s4587_s19, %s423_s3 }
 0x22d   :  { %p4592_p0 = por %p4591_p13, %p4590_p12 }
 0x22f   :  { %p4594_p2 = por %p4593_p1, %p4592_p0 }
 0x231   :  { %p4595_p3 = pnand %p4594_p2, %p4588_p11 }
 0x233   :  { %4598 = shalt.err (!%p4595_p3)  }
 0x234   :  { %s4599_s9 = scalar_lea.vmem %s6145_s27, 16  ;;  %p4604_p5 = scmp.lt.s32.totalorder %s6145_s27, %s5800_s26 }
 0x235   :  { %p4600_p4 = scmp.ne.s32.totalorder %s6145_s27, %s4599_s9  ;;  %p4605_p6 = scmp.lt.s32.totalorder %s5830_s14, %s4599_s9 }
 0x237   :  { %p4606_p7 = por %p4605_p6, %p4604_p5 }
 0x239   :  { %p4607_p8 = pnand %p4606_p7, %p4600_p4 }
 0x23b   :  { %4610 = shalt.err (!%p4607_p8)  }
 0x23c   :  { %435 = dma.hbm_to_vmem [thread:$0]  %s423_s3, 16, %s6145_s27, [#allocation4] }
 0x23d   :  { %s5660_s28 = smov [#allocation2 + $0x17]   ;;  %s6173_s5 = sld [smem:[#allocation6 + $0x18]] }
 0x23e   :  { %s448_s22 = sshll.u32 %s5660_s28, 4  ;;  %s5661_s18 = smov [#allocation2 + $0x18]   ;;  %s449_s22 = int_to_ptr.vmem [resolvable:$true] %s448_s22 }
 0x23f   :  { %s464_s25 = sshll.u32 %s5661_s18, 4  ;;  %s6175_s20 = sld [smem:[#allocation6 + $0x19]]  ;;  %s6178_s25 = int_to_ptr.vmem [resolvable:$true] %s464_s25 }
 0x240   :  { %s3350_s30 = sshll.u32 %s6158_s17, 4 }
 0x241   :  { %s439_s24 = scalar_lea.hbm %s7337_s1, %s3350_s30 }
 0x242   :  { %s4611_s11 = scalar_lea.hbm %s439_s24, 16  ;;  %p4614_p10 = scmp.lt.u32.totalorder %s439_s24, %s7337_s1 }
 0x243   :  { %p4612_p9 = scmp.ne.s32.totalorder %s439_s24, %s4611_s11  ;;  %p4615_p11 = scmp.lt.u32.totalorder %s5821_s0, %s4611_s11 }
 0x244   :  { %p4617_p13 = scmp.lt.u32.totalorder %s4611_s11, %s439_s24 }
 0x245   :  { %p4616_p12 = por %p4615_p11, %p4614_p10 }
 0x247   :  { %p4618_p0 = por %p4617_p13, %p4616_p12 }
 0x249   :  { %p4619_p1 = pnand %p4618_p0, %p4612_p9 }
 0x24b   :  { %4622 = shalt.err (!%p4619_p1)  }
 0x24c   :  { %s4623_s15 = scalar_lea.vmem %s449_s22, 16  ;;  %p4628_p3 = scmp.lt.s32.totalorder %s449_s22, %s5800_s26 }
 0x24d   :  { %p4624_p2 = scmp.ne.s32.totalorder %s449_s22, %s4623_s15  ;;  %p4629_p4 = scmp.lt.s32.totalorder %s5830_s14, %s4623_s15 }
 0x24f   :  { %p4630_p5 = por %p4629_p4, %p4628_p3 }
 0x251   :  { %p4631_p6 = pnand %p4630_p5, %p4624_p2 }
 0x253   :  { %4634 = shalt.err (!%p4631_p6)  }
 0x254   :  { %451 = dma.hbm_to_vmem [thread:$0]  %s439_s24, 16, %s449_s22, [#allocation4] }
 0x255   :  { %s3352_s10 = sshll.u32 %s6173_s5, 4  ;;  %s5662_s23 = smov [#allocation2 + $0x19]  }
 0x256   :  { %s480_s17 = sshll.u32 %s5662_s23, 4  ;;  %s455_s3 = scalar_lea.hbm %s7337_s1, %s3352_s10  ;;  %s6193_s17 = int_to_ptr.vmem [resolvable:$true] %s480_s17 }
 0x257   :  { %s4635_s19 = scalar_lea.hbm %s455_s3, 16  ;;  %p4638_p8 = scmp.lt.u32.totalorder %s455_s3, %s7337_s1 }
 0x258   :  { %p4636_p7 = scmp.ne.s32.totalorder %s455_s3, %s4635_s19  ;;  %p4639_p9 = scmp.lt.u32.totalorder %s5821_s0, %s4635_s19 }
 0x259   :  { %p4641_p11 = scmp.lt.u32.totalorder %s4635_s19, %s455_s3 }
 0x25a   :  { %p4640_p10 = por %p4639_p9, %p4638_p8 }
 0x25c   :  { %p4642_p12 = por %p4641_p11, %p4640_p10 }
 0x25e   :  { %p4643_p13 = pnand %p4642_p12, %p4636_p7 }
 0x260   :  { %4646 = shalt.err (!%p4643_p13)  }
 0x261   :  { %s4647_s9 = scalar_lea.vmem %s6178_s25, 16  ;;  %p4652_p1 = scmp.lt.s32.totalorder %s6178_s25, %s5800_s26 }
 0x262   :  { %p4648_p0 = scmp.ne.s32.totalorder %s6178_s25, %s4647_s9  ;;  %p4653_p2 = scmp.lt.s32.totalorder %s5830_s14, %s4647_s9 }
 0x264   :  { %p4654_p3 = por %p4653_p2, %p4652_p1 }
 0x266   :  { %p4655_p4 = pnand %p4654_p3, %p4648_p0 }
 0x268   :  { %4658 = shalt.err (!%p4655_p4)  }
 0x269   :  { %467 = dma.hbm_to_vmem [thread:$0]  %s455_s3, 16, %s6178_s25, [#allocation4] }
 0x26a   :  { %s3354_s28 = sshll.u32 %s6175_s20, 4  ;;  %s6206_s22 = sld [smem:[#allocation6 + $0x1a]] }
 0x26b   :  { %s471_s30 = scalar_lea.hbm %s7337_s1, %s3354_s28 }
 0x26c   :  { %s4659_s8 = scalar_lea.hbm %s471_s30, 16  ;;  %p4662_p6 = scmp.lt.u32.totalorder %s471_s30, %s7337_s1 }
 0x26d   :  { %p4660_p5 = scmp.ne.s32.totalorder %s471_s30, %s4659_s8  ;;  %p4663_p7 = scmp.lt.u32.totalorder %s5821_s0, %s4659_s8 }
 0x26e   :  { %p4665_p9 = scmp.lt.u32.totalorder %s4659_s8, %s471_s30 }
 0x26f   :  { %p4664_p8 = por %p4663_p7, %p4662_p6 }
 0x271   :  { %p4666_p10 = por %p4665_p9, %p4664_p8 }
 0x273   :  { %p4667_p11 = pnand %p4666_p10, %p4660_p5 }
 0x275   :  { %4670 = shalt.err (!%p4667_p11)  }
 0x276   :  { %s4671_s25 = scalar_lea.vmem %s6193_s17, 16  ;;  %p4676_p13 = scmp.lt.s32.totalorder %s6193_s17, %s5800_s26 }
 0x277   :  { %p4672_p12 = scmp.ne.s32.totalorder %s6193_s17, %s4671_s25  ;;  %p4677_p0 = scmp.lt.s32.totalorder %s5830_s14, %s4671_s25 }
 0x279   :  { %p4678_p1 = por %p4677_p0, %p4676_p13 }
 0x27b   :  { %p4679_p2 = pnand %p4678_p1, %p4672_p12 }
 0x27d   :  { %4682 = shalt.err (!%p4679_p2)  }
 0x27e   :  { %483 = dma.hbm_to_vmem [thread:$0]  %s471_s30, 16, %s6193_s17, [#allocation4] }
 0x27f   :  { %s5663_s20 = smov [#allocation2 + $0x1a]   ;;  %s6221_s13 = sld [smem:[#allocation6 + $0x1b]] }
 0x280   :  { %s496_s11 = sshll.u32 %s5663_s20, 4  ;;  %s5664_s27 = smov [#allocation2 + $0x1b]   ;;  %s497_s11 = int_to_ptr.vmem [resolvable:$true] %s496_s11 }
 0x281   :  { %s512_s15 = sshll.u32 %s5664_s27, 4  ;;  %s6223_s10 = sld [smem:[#allocation6 + $0x1c]]  ;;  %s6226_s15 = int_to_ptr.vmem [resolvable:$true] %s512_s15 }
 0x282   :  { %s3356_s23 = sshll.u32 %s6206_s22, 4 }
 0x283   :  { %s487_s3 = scalar_lea.hbm %s7337_s1, %s3356_s23 }
 0x284   :  { %s4683_s19 = scalar_lea.hbm %s487_s3, 16  ;;  %p4686_p4 = scmp.lt.u32.totalorder %s487_s3, %s7337_s1 }
 0x285   :  { %p4684_p3 = scmp.ne.s32.totalorder %s487_s3, %s4683_s19  ;;  %p4687_p5 = scmp.lt.u32.totalorder %s5821_s0, %s4683_s19 }
 0x286   :  { %p4689_p7 = scmp.lt.u32.totalorder %s4683_s19, %s487_s3 }
 0x287   :  { %p4688_p6 = por %p4687_p5, %p4686_p4 }
 0x289   :  { %p4690_p8 = por %p4689_p7, %p4688_p6 }
 0x28b   :  { %p4691_p9 = pnand %p4690_p8, %p4684_p3 }
 0x28d   :  { %4694 = shalt.err (!%p4691_p9)  }
 0x28e   :  { %s4695_s21 = scalar_lea.vmem %s497_s11, 16  ;;  %p4700_p11 = scmp.lt.s32.totalorder %s497_s11, %s5800_s26 }
 0x28f   :  { %p4696_p10 = scmp.ne.s32.totalorder %s497_s11, %s4695_s21  ;;  %p4701_p12 = scmp.lt.s32.totalorder %s5830_s14, %s4695_s21 }
 0x291   :  { %p4702_p13 = por %p4701_p12, %p4700_p11 }
 0x293   :  { %p4703_p0 = pnand %p4702_p13, %p4696_p10 }
 0x295   :  { %4706 = shalt.err (!%p4703_p0)  }
 0x296   :  { %499 = dma.hbm_to_vmem [thread:$0]  %s487_s3, 16, %s497_s11, [#allocation4] }
 0x297   :  { %s3358_s9 = sshll.u32 %s6221_s13, 4  ;;  %s5665_s28 = smov [#allocation2 + $0x1c]  }
 0x298   :  { %s528_s22 = sshll.u32 %s5665_s28, 4  ;;  %s503_s30 = scalar_lea.hbm %s7337_s1, %s3358_s9  ;;  %s6241_s22 = int_to_ptr.vmem [resolvable:$true] %s528_s22 }
 0x299   :  { %s4707_s8 = scalar_lea.hbm %s503_s30, 16  ;;  %p4710_p2 = scmp.lt.u32.totalorder %s503_s30, %s7337_s1 }
 0x29a   :  { %p4708_p1 = scmp.ne.s32.totalorder %s503_s30, %s4707_s8  ;;  %p4711_p3 = scmp.lt.u32.totalorder %s5821_s0, %s4707_s8 }
 0x29b   :  { %p4713_p5 = scmp.lt.u32.totalorder %s4707_s8, %s503_s30 }
 0x29c   :  { %p4712_p4 = por %p4711_p3, %p4710_p2 }
 0x29e   :  { %p4714_p6 = por %p4713_p5, %p4712_p4 }
 0x2a0   :  { %p4715_p7 = pnand %p4714_p6, %p4708_p1 }
 0x2a2   :  { %4718 = shalt.err (!%p4715_p7)  }
 0x2a3   :  { %s4719_s25 = scalar_lea.vmem %s6226_s15, 16  ;;  %p4724_p9 = scmp.lt.s32.totalorder %s6226_s15, %s5800_s26 }
 0x2a4   :  { %p4720_p8 = scmp.ne.s32.totalorder %s6226_s15, %s4719_s25  ;;  %p4725_p10 = scmp.lt.s32.totalorder %s5830_s14, %s4719_s25 }
 0x2a6   :  { %p4726_p11 = por %p4725_p10, %p4724_p9 }
 0x2a8   :  { %p4727_p12 = pnand %p4726_p11, %p4720_p8 }
 0x2aa   :  { %4730 = shalt.err (!%p4727_p12)  }
 0x2ab   :  { %515 = dma.hbm_to_vmem [thread:$0]  %s503_s30, 16, %s6226_s15, [#allocation4] }
 0x2ac   :  { %s3360_s20 = sshll.u32 %s6223_s10, 4  ;;  %s6254_s11 = sld [smem:[#allocation6 + $0x1d]] }
 0x2ad   :  { %s519_s23 = scalar_lea.hbm %s7337_s1, %s3360_s20 }
 0x2ae   :  { %s4731_s29 = scalar_lea.hbm %s519_s23, 16  ;;  %p4734_p0 = scmp.lt.u32.totalorder %s519_s23, %s7337_s1 }
 0x2af   :  { %p4732_p13 = scmp.ne.s32.totalorder %s519_s23, %s4731_s29  ;;  %p4735_p1 = scmp.lt.u32.totalorder %s5821_s0, %s4731_s29 }
 0x2b0   :  { %p4737_p3 = scmp.lt.u32.totalorder %s4731_s29, %s519_s23 }
 0x2b1   :  { %p4736_p2 = por %p4735_p1, %p4734_p0 }
 0x2b3   :  { %p4738_p4 = por %p4737_p3, %p4736_p2 }
 0x2b5   :  { %p4739_p5 = pnand %p4738_p4, %p4732_p13 }
 0x2b7   :  { %4742 = shalt.err (!%p4739_p5)  }
 0x2b8   :  { %s4743_s15 = scalar_lea.vmem %s6241_s22, 16  ;;  %p4748_p7 = scmp.lt.s32.totalorder %s6241_s22, %s5800_s26 }
 0x2b9   :  { %p4744_p6 = scmp.ne.s32.totalorder %s6241_s22, %s4743_s15  ;;  %p4749_p8 = scmp.lt.s32.totalorder %s5830_s14, %s4743_s15 }
 0x2bb   :  { %p4750_p9 = por %p4749_p8, %p4748_p7 }
 0x2bd   :  { %p4751_p10 = pnand %p4750_p9, %p4744_p6 }
 0x2bf   :  { %4754 = shalt.err (!%p4751_p10)  }
 0x2c0   :  { %531 = dma.hbm_to_vmem [thread:$0]  %s519_s23, 16, %s6241_s22, [#allocation4] }
 0x2c1   :  { %s5666_s10 = smov [#allocation2 + $0x1d]   ;;  %s6269_s16 = sld [smem:[#allocation6 + $0x1e]] }
 0x2c2   :  { %s544_s19 = sshll.u32 %s5666_s10, 4  ;;  %s5667_s17 = smov [#allocation2 + $0x1e]   ;;  %s545_s19 = int_to_ptr.vmem [resolvable:$true] %s544_s19 }
 0x2c3   :  { %s560_s21 = sshll.u32 %s5667_s17, 4  ;;  %s6271_s9 = sld [smem:[#allocation6 + $0x1f]]  ;;  %s6274_s21 = int_to_ptr.vmem [resolvable:$true] %s560_s21 }
 0x2c4   :  { %s3362_s28 = sshll.u32 %s6254_s11, 4 }
 0x2c5   :  { %s535_s30 = scalar_lea.hbm %s7337_s1, %s3362_s28 }
 0x2c6   :  { %s4755_s8 = scalar_lea.hbm %s535_s30, 16  ;;  %p4758_p12 = scmp.lt.u32.totalorder %s535_s30, %s7337_s1 }
 0x2c7   :  { %p4756_p11 = scmp.ne.s32.totalorder %s535_s30, %s4755_s8  ;;  %p4759_p13 = scmp.lt.u32.totalorder %s5821_s0, %s4755_s8 }
 0x2c8   :  { %p4761_p1 = scmp.lt.u32.totalorder %s4755_s8, %s535_s30 }
 0x2c9   :  { %p4760_p0 = por %p4759_p13, %p4758_p12 }
 0x2cb   :  { %p4762_p2 = por %p4761_p1, %p4760_p0 }
 0x2cd   :  { %p4763_p3 = pnand %p4762_p2, %p4756_p11 }
 0x2cf   :  { %4766 = shalt.err (!%p4763_p3)  }
 0x2d0   :  { %s4767_s24 = scalar_lea.vmem %s545_s19, 16  ;;  %p4772_p5 = scmp.lt.s32.totalorder %s545_s19, %s5800_s26 }
 0x2d1   :  { %p4768_p4 = scmp.ne.s32.totalorder %s545_s19, %s4767_s24  ;;  %p4773_p6 = scmp.lt.s32.totalorder %s5830_s14, %s4767_s24 }
 0x2d3   :  { %p4774_p7 = por %p4773_p6, %p4772_p5 }
 0x2d5   :  { %p4775_p8 = pnand %p4774_p7, %p4768_p4 }
 0x2d7   :  { %4778 = shalt.err (!%p4775_p8)  }
 0x2d8   :  { %547 = dma.hbm_to_vmem [thread:$0]  %s535_s30, 16, %s545_s19, [#allocation4] }
 0x2d9   :  { %s3364_s25 = sshll.u32 %s6269_s16, 4  ;;  %s5668_s20 = smov [#allocation2 + $0x1f]  }
 0x2da   :  { %s576_s11 = sshll.u32 %s5668_s20, 4  ;;  %s551_s23 = scalar_lea.hbm %s7337_s1, %s3364_s25  ;;  %s6289_s11 = int_to_ptr.vmem [resolvable:$true] %s576_s11 }
 0x2db   :  { %s4779_s29 = scalar_lea.hbm %s551_s23, 16  ;;  %p4782_p10 = scmp.lt.u32.totalorder %s551_s23, %s7337_s1 }
 0x2dc   :  { %p4780_p9 = scmp.ne.s32.totalorder %s551_s23, %s4779_s29  ;;  %p4783_p11 = scmp.lt.u32.totalorder %s5821_s0, %s4779_s29 }
 0x2dd   :  { %p4785_p13 = scmp.lt.u32.totalorder %s4779_s29, %s551_s23 }
 0x2de   :  { %p4784_p12 = por %p4783_p11, %p4782_p10 }
 0x2e0   :  { %p4786_p0 = por %p4785_p13, %p4784_p12 }
 0x2e2   :  { %p4787_p1 = pnand %p4786_p0, %p4780_p9 }
 0x2e4   :  { %4790 = shalt.err (!%p4787_p1)  }
 0x2e5   :  { %s4791_s15 = scalar_lea.vmem %s6274_s21, 16  ;;  %p4796_p3 = scmp.lt.s32.totalorder %s6274_s21, %s5800_s26 }
 0x2e6   :  { %p4792_p2 = scmp.ne.s32.totalorder %s6274_s21, %s4791_s15  ;;  %p4797_p4 = scmp.lt.s32.totalorder %s5830_s14, %s4791_s15 }
 0x2e8   :  { %p4798_p5 = por %p4797_p4, %p4796_p3 }
 0x2ea   :  { %p4799_p6 = pnand %p4798_p5, %p4792_p2 }
 0x2ec   :  { %4802 = shalt.err (!%p4799_p6)  }
 0x2ed   :  { %563 = dma.hbm_to_vmem [thread:$0]  %s551_s23, 16, %s6274_s21, [#allocation4] }
 0x2ee   :  { %s3366_s10 = sshll.u32 %s6271_s9, 4  ;;  %s6302_s19 = sld [smem:[#allocation6 + $0x20]] }
 0x2ef   :  { %s567_s28 = scalar_lea.hbm %s7337_s1, %s3366_s10 }
 0x2f0   :  { %s4803_s5 = scalar_lea.hbm %s567_s28, 16  ;;  %p4806_p8 = scmp.lt.u32.totalorder %s567_s28, %s7337_s1 }
 0x2f1   :  { %p4804_p7 = scmp.ne.s32.totalorder %s567_s28, %s4803_s5  ;;  %p4807_p9 = scmp.lt.u32.totalorder %s5821_s0, %s4803_s5 }
 0x2f2   :  { %p4809_p11 = scmp.lt.u32.totalorder %s4803_s5, %s567_s28 }
 0x2f3   :  { %p4808_p10 = por %p4807_p9, %p4806_p8 }
 0x2f5   :  { %p4810_p12 = por %p4809_p11, %p4808_p10 }
 0x2f7   :  { %p4811_p13 = pnand %p4810_p12, %p4804_p7 }
 0x2f9   :  { %4814 = shalt.err (!%p4811_p13)  }
 0x2fa   :  { %s4815_s21 = scalar_lea.vmem %s6289_s11, 16  ;;  %p4820_p1 = scmp.lt.s32.totalorder %s6289_s11, %s5800_s26 }
 0x2fb   :  { %p4816_p0 = scmp.ne.s32.totalorder %s6289_s11, %s4815_s21  ;;  %p4821_p2 = scmp.lt.s32.totalorder %s5830_s14, %s4815_s21 }
 0x2fd   :  { %p4822_p3 = por %p4821_p2, %p4820_p1 }
 0x2ff   :  { %p4823_p4 = pnand %p4822_p3, %p4816_p0 }
 0x301   :  { %4826 = shalt.err (!%p4823_p4)  }
 0x302   :  { %579 = dma.hbm_to_vmem [thread:$0]  %s567_s28, 16, %s6289_s11, [#allocation4] }
 0x303   :  { %s5669_s9 = smov [#allocation2 + $0x20]   ;;  %s6317_s2 = sld [smem:[#allocation6 + $0x21]] }
 0x304   :  { %s593_s8 = sshll.u32 %s5669_s9, 4  ;;  %s5670_s22 = smov [#allocation2 + $0x21]   ;;  %s594_s8 = int_to_ptr.vmem [resolvable:$true] %s593_s8 }
 0x305   :  { %s609_s24 = sshll.u32 %s5670_s22, 4  ;;  %s6319_s25 = sld [smem:[#allocation6 + $0x22]]  ;;  %s6322_s24 = int_to_ptr.vmem [resolvable:$true] %s609_s24 }
 0x306   :  { %s3368_s20 = sshll.u32 %s6302_s19, 4 }
 0x307   :  { %s583_s23 = scalar_lea.hbm %s7337_s1, %s3368_s20 }
 0x308   :  { %s4827_s29 = scalar_lea.hbm %s583_s23, 16  ;;  %p4830_p6 = scmp.lt.u32.totalorder %s583_s23, %s7337_s1 }
 0x309   :  { %p4828_p5 = scmp.ne.s32.totalorder %s583_s23, %s4827_s29  ;;  %p4831_p7 = scmp.lt.u32.totalorder %s5821_s0, %s4827_s29 }
 0x30a   :  { %p4833_p9 = scmp.lt.u32.totalorder %s4827_s29, %s583_s23 }
 0x30b   :  { %p4832_p8 = por %p4831_p7, %p4830_p6 }
 0x30d   :  { %p4834_p10 = por %p4833_p9, %p4832_p8 }
 0x30f   :  { %p4835_p11 = pnand %p4834_p10, %p4828_p5 }
 0x311   :  { %4838 = shalt.err (!%p4835_p11)  }
 0x312   :  { %s4839_s3 = scalar_lea.vmem %s594_s8, 16  ;;  %p4844_p13 = scmp.lt.s32.totalorder %s594_s8, %s5800_s26 }
 0x313   :  { %p4840_p12 = scmp.ne.s32.totalorder %s594_s8, %s4839_s3  ;;  %p4845_p0 = scmp.lt.s32.totalorder %s5830_s14, %s4839_s3 }
 0x315   :  { %p4846_p1 = por %p4845_p0, %p4844_p13 }
 0x317   :  { %p4847_p2 = pnand %p4846_p1, %p4840_p12 }
 0x319   :  { %4850 = shalt.err (!%p4847_p2)  }
 0x31a   :  { %596 = dma.hbm_to_vmem [thread:$0]  %s583_s23, 16, %s594_s8, [#allocation4 + $0x1] }
 0x31b   :  { %s3370_s15 = sshll.u32 %s6317_s2, 4  ;;  %s5671_s10 = smov [#allocation2 + $0x22]  }
 0x31c   :  { %s625_s19 = sshll.u32 %s5671_s10, 4  ;;  %s600_s28 = scalar_lea.hbm %s7337_s1, %s3370_s15  ;;  %s6337_s19 = int_to_ptr.vmem [resolvable:$true] %s625_s19 }
 0x31d   :  { %s4851_s5 = scalar_lea.hbm %s600_s28, 16  ;;  %p4854_p4 = scmp.lt.u32.totalorder %s600_s28, %s7337_s1 }
 0x31e   :  { %p4852_p3 = scmp.ne.s32.totalorder %s600_s28, %s4851_s5  ;;  %p4855_p5 = scmp.lt.u32.totalorder %s5821_s0, %s4851_s5 }
 0x31f   :  { %p4857_p7 = scmp.lt.u32.totalorder %s4851_s5, %s600_s28 }
 0x320   :  { %p4856_p6 = por %p4855_p5, %p4854_p4 }
 0x322   :  { %p4858_p8 = por %p4857_p7, %p4856_p6 }
 0x324   :  { %p4859_p9 = pnand %p4858_p8, %p4852_p3 }
 0x326   :  { %4862 = shalt.err (!%p4859_p9)  }
 0x327   :  { %s4863_s21 = scalar_lea.vmem %s6322_s24, 16  ;;  %p4868_p11 = scmp.lt.s32.totalorder %s6322_s24, %s5800_s26 }
 0x328   :  { %p4864_p10 = scmp.ne.s32.totalorder %s6322_s24, %s4863_s21  ;;  %p4869_p12 = scmp.lt.s32.totalorder %s5830_s14, %s4863_s21 }
 0x32a   :  { %p4870_p13 = por %p4869_p12, %p4868_p11 }
 0x32c   :  { %p4871_p0 = pnand %p4870_p13, %p4864_p10 }
 0x32e   :  { %4874 = shalt.err (!%p4871_p0)  }
 0x32f   :  { %612 = dma.hbm_to_vmem [thread:$0]  %s600_s28, 16, %s6322_s24, [#allocation4 + $0x1] }
 0x330   :  { %s3372_s9 = sshll.u32 %s6319_s25, 4  ;;  %s6350_s8 = sld [smem:[#allocation6 + $0x23]] }
 0x331   :  { %s616_s20 = scalar_lea.hbm %s7337_s1, %s3372_s9 }
 0x332   :  { %s4875_s13 = scalar_lea.hbm %s616_s20, 16  ;;  %p4878_p2 = scmp.lt.u32.totalorder %s616_s20, %s7337_s1 }
 0x333   :  { %p4876_p1 = scmp.ne.s32.totalorder %s616_s20, %s4875_s13  ;;  %p4879_p3 = scmp.lt.u32.totalorder %s5821_s0, %s4875_s13 }
 0x334   :  { %p4881_p5 = scmp.lt.u32.totalorder %s4875_s13, %s616_s20 }
 0x335   :  { %p4880_p4 = por %p4879_p3, %p4878_p2 }
 0x337   :  { %p4882_p6 = por %p4881_p5, %p4880_p4 }
 0x339   :  { %p4883_p7 = pnand %p4882_p6, %p4876_p1 }
 0x33b   :  { %4886 = shalt.err (!%p4883_p7)  }
 0x33c   :  { %s4887_s24 = scalar_lea.vmem %s6337_s19, 16  ;;  %p4892_p9 = scmp.lt.s32.totalorder %s6337_s19, %s5800_s26 }
 0x33d   :  { %p4888_p8 = scmp.ne.s32.totalorder %s6337_s19, %s4887_s24  ;;  %p4893_p10 = scmp.lt.s32.totalorder %s5830_s14, %s4887_s24 }
 0x33f   :  { %p4894_p11 = por %p4893_p10, %p4892_p9 }
 0x341   :  { %p4895_p12 = pnand %p4894_p11, %p4888_p8 }
 0x343   :  { %4898 = shalt.err (!%p4895_p12)  }
 0x344   :  { %628 = dma.hbm_to_vmem [thread:$0]  %s616_s20, 16, %s6337_s19, [#allocation4 + $0x1] }
 0x345   :  { %s5672_s25 = smov [#allocation2 + $0x23]   ;;  %s6365_s12 = sld [smem:[#allocation6 + $0x24]] }
 0x346   :  { %s641_s29 = sshll.u32 %s5672_s25, 4  ;;  %s5673_s11 = smov [#allocation2 + $0x24]   ;;  %s642_s29 = int_to_ptr.vmem [resolvable:$true] %s641_s29 }
 0x347   :  { %s657_s3 = sshll.u32 %s5673_s11, 4  ;;  %s6367_s15 = sld [smem:[#allocation6 + $0x25]]  ;;  %s6370_s3 = int_to_ptr.vmem [resolvable:$true] %s657_s3 }
 0x348   :  { %s3374_s10 = sshll.u32 %s6350_s8, 4 }
 0x349   :  { %s632_s28 = scalar_lea.hbm %s7337_s1, %s3374_s10 }
 0x34a   :  { %s4899_s5 = scalar_lea.hbm %s632_s28, 16  ;;  %p4902_p0 = scmp.lt.u32.totalorder %s632_s28, %s7337_s1 }
 0x34b   :  { %p4900_p13 = scmp.ne.s32.totalorder %s632_s28, %s4899_s5  ;;  %p4903_p1 = scmp.lt.u32.totalorder %s5821_s0, %s4899_s5 }
 0x34c   :  { %p4905_p3 = scmp.lt.u32.totalorder %s4899_s5, %s632_s28 }
 0x34d   :  { %p4904_p2 = por %p4903_p1, %p4902_p0 }
 0x34f   :  { %p4906_p4 = por %p4905_p3, %p4904_p2 }
 0x351   :  { %p4907_p5 = pnand %p4906_p4, %p4900_p13 }
 0x353   :  { %4910 = shalt.err (!%p4907_p5)  }
 0x354   :  { %s4911_s30 = scalar_lea.vmem %s642_s29, 16  ;;  %p4916_p7 = scmp.lt.s32.totalorder %s642_s29, %s5800_s26 }
 0x355   :  { %p4912_p6 = scmp.ne.s32.totalorder %s642_s29, %s4911_s30  ;;  %p4917_p8 = scmp.lt.s32.totalorder %s5830_s14, %s4911_s30 }
 0x357   :  { %p4918_p9 = por %p4917_p8, %p4916_p7 }
 0x359   :  { %p4919_p10 = pnand %p4918_p9, %p4912_p6 }
 0x35b   :  { %4922 = shalt.err (!%p4919_p10)  }
 0x35c   :  { %644 = dma.hbm_to_vmem [thread:$0]  %s632_s28, 16, %s642_s29, [#allocation4 + $0x1] }
 0x35d   :  { %s3376_s21 = sshll.u32 %s6365_s12, 4  ;;  %s5674_s9 = smov [#allocation2 + $0x25]  }
 0x35e   :  { %s673_s8 = sshll.u32 %s5674_s9, 4  ;;  %s648_s20 = scalar_lea.hbm %s7337_s1, %s3376_s21  ;;  %s6385_s8 = int_to_ptr.vmem [resolvable:$true] %s673_s8 }
 0x35f   :  { %s4923_s13 = scalar_lea.hbm %s648_s20, 16  ;;  %p4926_p12 = scmp.lt.u32.totalorder %s648_s20, %s7337_s1 }
 0x360   :  { %p4924_p11 = scmp.ne.s32.totalorder %s648_s20, %s4923_s13  ;;  %p4927_p13 = scmp.lt.u32.totalorder %s5821_s0, %s4923_s13 }
 0x361   :  { %p4929_p1 = scmp.lt.u32.totalorder %s4923_s13, %s648_s20 }
 0x362   :  { %p4928_p0 = por %p4927_p13, %p4926_p12 }
 0x364   :  { %p4930_p2 = por %p4929_p1, %p4928_p0 }
 0x366   :  { %p4931_p3 = pnand %p4930_p2, %p4924_p11 }
 0x368   :  { %4934 = shalt.err (!%p4931_p3)  }
 0x369   :  { %s4935_s24 = scalar_lea.vmem %s6370_s3, 16  ;;  %p4940_p5 = scmp.lt.s32.totalorder %s6370_s3, %s5800_s26 }
 0x36a   :  { %p4936_p4 = scmp.ne.s32.totalorder %s6370_s3, %s4935_s24  ;;  %p4941_p6 = scmp.lt.s32.totalorder %s5830_s14, %s4935_s24 }
 0x36c   :  { %p4942_p7 = por %p4941_p6, %p4940_p5 }
 0x36e   :  { %p4943_p8 = pnand %p4942_p7, %p4936_p4 }
 0x370   :  { %4946 = shalt.err (!%p4943_p8)  }
 0x371   :  { %660 = dma.hbm_to_vmem [thread:$0]  %s648_s20, 16, %s6370_s3, [#allocation4 + $0x1] }
 0x372   :  { %s3378_s25 = sshll.u32 %s6367_s15, 4  ;;  %s6398_s29 = sld [smem:[#allocation6 + $0x26]] }
 0x373   :  { %s664_s10 = scalar_lea.hbm %s7337_s1, %s3378_s25 }
 0x374   :  { %s4947_s16 = scalar_lea.hbm %s664_s10, 16  ;;  %p4950_p10 = scmp.lt.u32.totalorder %s664_s10, %s7337_s1 }
 0x375   :  { %p4948_p9 = scmp.ne.s32.totalorder %s664_s10, %s4947_s16  ;;  %p4951_p11 = scmp.lt.u32.totalorder %s5821_s0, %s4947_s16 }
 0x376   :  { %p4953_p13 = scmp.lt.u32.totalorder %s4947_s16, %s664_s10 }
 0x377   :  { %p4952_p12 = por %p4951_p11, %p4950_p10 }
 0x379   :  { %p4954_p0 = por %p4953_p13, %p4952_p12 }
 0x37b   :  { %p4955_p1 = pnand %p4954_p0, %p4948_p9 }
 0x37d   :  { %4958 = shalt.err (!%p4955_p1)  }
 0x37e   :  { %s4959_s3 = scalar_lea.vmem %s6385_s8, 16  ;;  %p4964_p3 = scmp.lt.s32.totalorder %s6385_s8, %s5800_s26 }
 0x37f   :  { %p4960_p2 = scmp.ne.s32.totalorder %s6385_s8, %s4959_s3  ;;  %p4965_p4 = scmp.lt.s32.totalorder %s5830_s14, %s4959_s3 }
 0x381   :  { %p4966_p5 = por %p4965_p4, %p4964_p3 }
 0x383   :  { %p4967_p6 = pnand %p4966_p5, %p4960_p2 }
 0x385   :  { %4970 = shalt.err (!%p4967_p6)  }
 0x386   :  { %676 = dma.hbm_to_vmem [thread:$0]  %s664_s10, 16, %s6385_s8, [#allocation4 + $0x1] }
 0x387   :  { %s5675_s15 = smov [#allocation2 + $0x26]   ;;  %s6413_s18 = sld [smem:[#allocation6 + $0x27]] }
 0x388   :  { %s689_s5 = sshll.u32 %s5675_s15, 4  ;;  %s5676_s19 = smov [#allocation2 + $0x27]   ;;  %s690_s5 = int_to_ptr.vmem [resolvable:$true] %s689_s5 }
 0x389   :  { %s705_s30 = sshll.u32 %s5676_s19, 4  ;;  %s6415_s21 = sld [smem:[#allocation6 + $0x28]]  ;;  %s6418_s30 = int_to_ptr.vmem [resolvable:$true] %s705_s30 }
 0x38a   :  { %s3380_s9 = sshll.u32 %s6398_s29, 4 }
 0x38b   :  { %s680_s20 = scalar_lea.hbm %s7337_s1, %s3380_s9 }
 0x38c   :  { %s4971_s13 = scalar_lea.hbm %s680_s20, 16  ;;  %p4974_p8 = scmp.lt.u32.totalorder %s680_s20, %s7337_s1 }
 0x38d   :  { %p4972_p7 = scmp.ne.s32.totalorder %s680_s20, %s4971_s13  ;;  %p4975_p9 = scmp.lt.u32.totalorder %s5821_s0, %s4971_s13 }
 0x38e   :  { %p4977_p11 = scmp.lt.u32.totalorder %s4971_s13, %s680_s20 }
 0x38f   :  { %p4976_p10 = por %p4975_p9, %p4974_p8 }
 0x391   :  { %p4978_p12 = por %p4977_p11, %p4976_p10 }
 0x393   :  { %p4979_p13 = pnand %p4978_p12, %p4972_p7 }
 0x395   :  { %4982 = shalt.err (!%p4979_p13)  }
 0x396   :  { %s4983_s23 = scalar_lea.vmem %s690_s5, 16  ;;  %p4988_p1 = scmp.lt.s32.totalorder %s690_s5, %s5800_s26 }
 0x397   :  { %p4984_p0 = scmp.ne.s32.totalorder %s690_s5, %s4983_s23  ;;  %p4989_p2 = scmp.lt.s32.totalorder %s5830_s14, %s4983_s23 }
 0x399   :  { %p4990_p3 = por %p4989_p2, %p4988_p1 }
 0x39b   :  { %p4991_p4 = pnand %p4990_p3, %p4984_p0 }
 0x39d   :  { %4994 = shalt.err (!%p4991_p4)  }
 0x39e   :  { %692 = dma.hbm_to_vmem [thread:$0]  %s680_s20, 16, %s690_s5, [#allocation4 + $0x1] }
 0x39f   :  { %s3382_s24 = sshll.u32 %s6413_s18, 4  ;;  %s5677_s25 = smov [#allocation2 + $0x28]  }
 0x3a0   :  { %s721_s29 = sshll.u32 %s5677_s25, 4  ;;  %s696_s10 = scalar_lea.hbm %s7337_s1, %s3382_s24  ;;  %s6433_s29 = int_to_ptr.vmem [resolvable:$true] %s721_s29 }
 0x3a1   :  { %s4995_s16 = scalar_lea.hbm %s696_s10, 16  ;;  %p4998_p6 = scmp.lt.u32.totalorder %s696_s10, %s7337_s1 }
 0x3a2   :  { %p4996_p5 = scmp.ne.s32.totalorder %s696_s10, %s4995_s16  ;;  %p4999_p7 = scmp.lt.u32.totalorder %s5821_s0, %s4995_s16 }
 0x3a3   :  { %p5001_p9 = scmp.lt.u32.totalorder %s4995_s16, %s696_s10 }
 0x3a4   :  { %p5000_p8 = por %p4999_p7, %p4998_p6 }
 0x3a6   :  { %p5002_p10 = por %p5001_p9, %p5000_p8 }
 0x3a8   :  { %p5003_p11 = pnand %p5002_p10, %p4996_p5 }
 0x3aa   :  { %5006 = shalt.err (!%p5003_p11)  }
 0x3ab   :  { %s5007_s3 = scalar_lea.vmem %s6418_s30, 16  ;;  %p5012_p13 = scmp.lt.s32.totalorder %s6418_s30, %s5800_s26 }
 0x3ac   :  { %p5008_p12 = scmp.ne.s32.totalorder %s6418_s30, %s5007_s3  ;;  %p5013_p0 = scmp.lt.s32.totalorder %s5830_s14, %s5007_s3 }
 0x3ae   :  { %p5014_p1 = por %p5013_p0, %p5012_p13 }
 0x3b0   :  { %p5015_p2 = pnand %p5014_p1, %p5008_p12 }
 0x3b2   :  { %5018 = shalt.err (!%p5015_p2)  }
 0x3b3   :  { %708 = dma.hbm_to_vmem [thread:$0]  %s696_s10, 16, %s6418_s30, [#allocation4 + $0x1] }
 0x3b4   :  { %s3384_s15 = sshll.u32 %s6415_s21, 4  ;;  %s6446_s5 = sld [smem:[#allocation6 + $0x29]] }
 0x3b5   :  { %s712_s9 = scalar_lea.hbm %s7337_s1, %s3384_s15 }
 0x3b6   :  { %s5019_s2 = scalar_lea.hbm %s712_s9, 16  ;;  %p5022_p4 = scmp.lt.u32.totalorder %s712_s9, %s7337_s1 }
 0x3b7   :  { %p5020_p3 = scmp.ne.s32.totalorder %s712_s9, %s5019_s2  ;;  %p5023_p5 = scmp.lt.u32.totalorder %s5821_s0, %s5019_s2 }
 0x3b8   :  { %p5025_p7 = scmp.lt.u32.totalorder %s5019_s2, %s712_s9 }
 0x3b9   :  { %p5024_p6 = por %p5023_p5, %p5022_p4 }
 0x3bb   :  { %p5026_p8 = por %p5025_p7, %p5024_p6 }
 0x3bd   :  { %p5027_p9 = pnand %p5026_p8, %p5020_p3 }
 0x3bf   :  { %5030 = shalt.err (!%p5027_p9)  }
 0x3c0   :  { %s5031_s30 = scalar_lea.vmem %s6433_s29, 16  ;;  %p5036_p11 = scmp.lt.s32.totalorder %s6433_s29, %s5800_s26 }
 0x3c1   :  { %p5032_p10 = scmp.ne.s32.totalorder %s6433_s29, %s5031_s30  ;;  %p5037_p12 = scmp.lt.s32.totalorder %s5830_s14, %s5031_s30 }
 0x3c3   :  { %p5038_p13 = por %p5037_p12, %p5036_p11 }
 0x3c5   :  { %p5039_p0 = pnand %p5038_p13, %p5032_p10 }
 0x3c7   :  { %5042 = shalt.err (!%p5039_p0)  }
 0x3c8   :  { %724 = dma.hbm_to_vmem [thread:$0]  %s712_s9, 16, %s6433_s29, [#allocation4 + $0x1] }
 0x3c9   :  { %s5678_s21 = smov [#allocation2 + $0x29]   ;;  %s6461_s27 = sld [smem:[#allocation6 + $0x2a]] }
 0x3ca   :  { %s737_s13 = sshll.u32 %s5678_s21, 4  ;;  %s5679_s8 = smov [#allocation2 + $0x2a]   ;;  %s738_s13 = int_to_ptr.vmem [resolvable:$true] %s737_s13 }
 0x3cb   :  { %s753_s23 = sshll.u32 %s5679_s8, 4  ;;  %s6463_s24 = sld [smem:[#allocation6 + $0x2b]]  ;;  %s6466_s23 = int_to_ptr.vmem [resolvable:$true] %s753_s23 }
 0x3cc   :  { %s3386_s25 = sshll.u32 %s6446_s5, 4 }
 0x3cd   :  { %s728_s10 = scalar_lea.hbm %s7337_s1, %s3386_s25 }
 0x3ce   :  { %s5043_s16 = scalar_lea.hbm %s728_s10, 16  ;;  %p5046_p2 = scmp.lt.u32.totalorder %s728_s10, %s7337_s1 }
 0x3cf   :  { %p5044_p1 = scmp.ne.s32.totalorder %s728_s10, %s5043_s16  ;;  %p5047_p3 = scmp.lt.u32.totalorder %s5821_s0, %s5043_s16 }
 0x3d0   :  { %p5049_p5 = scmp.lt.u32.totalorder %s5043_s16, %s728_s10 }
 0x3d1   :  { %p5048_p4 = por %p5047_p3, %p5046_p2 }
 0x3d3   :  { %p5050_p6 = por %p5049_p5, %p5048_p4 }
 0x3d5   :  { %p5051_p7 = pnand %p5050_p6, %p5044_p1 }
 0x3d7   :  { %5054 = shalt.err (!%p5051_p7)  }
 0x3d8   :  { %s5055_s28 = scalar_lea.vmem %s738_s13, 16  ;;  %p5060_p9 = scmp.lt.s32.totalorder %s738_s13, %s5800_s26 }
 0x3d9   :  { %p5056_p8 = scmp.ne.s32.totalorder %s738_s13, %s5055_s28  ;;  %p5061_p10 = scmp.lt.s32.totalorder %s5830_s14, %s5055_s28 }
 0x3db   :  { %p5062_p11 = por %p5061_p10, %p5060_p9 }
 0x3dd   :  { %p5063_p12 = pnand %p5062_p11, %p5056_p8 }
 0x3df   :  { %5066 = shalt.err (!%p5063_p12)  }
 0x3e0   :  { %740 = dma.hbm_to_vmem [thread:$0]  %s728_s10, 16, %s738_s13, [#allocation4 + $0x1] }
 0x3e1   :  { %s3388_s3 = sshll.u32 %s6461_s27, 4  ;;  %s5680_s15 = smov [#allocation2 + $0x2b]  }
 0x3e2   :  { %s769_s5 = sshll.u32 %s5680_s15, 4  ;;  %s744_s9 = scalar_lea.hbm %s7337_s1, %s3388_s3  ;;  %s6481_s5 = int_to_ptr.vmem [resolvable:$true] %s769_s5 }
 0x3e3   :  { %s5067_s2 = scalar_lea.hbm %s744_s9, 16  ;;  %p5070_p0 = scmp.lt.u32.totalorder %s744_s9, %s7337_s1 }
 0x3e4   :  { %p5068_p13 = scmp.ne.s32.totalorder %s744_s9, %s5067_s2  ;;  %p5071_p1 = scmp.lt.u32.totalorder %s5821_s0, %s5067_s2 }
 0x3e5   :  { %p5073_p3 = scmp.lt.u32.totalorder %s5067_s2, %s744_s9 }
 0x3e6   :  { %p5072_p2 = por %p5071_p1, %p5070_p0 }
 0x3e8   :  { %p5074_p4 = por %p5073_p3, %p5072_p2 }
 0x3ea   :  { %p5075_p5 = pnand %p5074_p4, %p5068_p13 }
 0x3ec   :  { %5078 = shalt.err (!%p5075_p5)  }
 0x3ed   :  { %s5079_s30 = scalar_lea.vmem %s6466_s23, 16  ;;  %p5084_p7 = scmp.lt.s32.totalorder %s6466_s23, %s5800_s26 }
 0x3ee   :  { %p5080_p6 = scmp.ne.s32.totalorder %s6466_s23, %s5079_s30  ;;  %p5085_p8 = scmp.lt.s32.totalorder %s5830_s14, %s5079_s30 }
 0x3f0   :  { %p5086_p9 = por %p5085_p8, %p5084_p7 }
 0x3f2   :  { %p5087_p10 = pnand %p5086_p9, %p5080_p6 }
 0x3f4   :  { %5090 = shalt.err (!%p5087_p10)  }
 0x3f5   :  { %756 = dma.hbm_to_vmem [thread:$0]  %s744_s9, 16, %s6466_s23, [#allocation4 + $0x1] }
 0x3f6   :  { %s3390_s21 = sshll.u32 %s6463_s24, 4  ;;  %s6494_s13 = sld [smem:[#allocation6 + $0x2c]] }
 0x3f7   :  { %s760_s25 = scalar_lea.hbm %s7337_s1, %s3390_s21 }
 0x3f8   :  { %s5091_s12 = scalar_lea.hbm %s760_s25, 16  ;;  %p5094_p12 = scmp.lt.u32.totalorder %s760_s25, %s7337_s1 }
 0x3f9   :  { %p5092_p11 = scmp.ne.s32.totalorder %s760_s25, %s5091_s12  ;;  %p5095_p13 = scmp.lt.u32.totalorder %s5821_s0, %s5091_s12 }
 0x3fa   :  { %p5097_p1 = scmp.lt.u32.totalorder %s5091_s12, %s760_s25 }
 0x3fb   :  { %p5096_p0 = por %p5095_p13, %p5094_p12 }
 0x3fd   :  { %p5098_p2 = por %p5097_p1, %p5096_p0 }
 0x3ff   :  { %p5099_p3 = pnand %p5098_p2, %p5092_p11 }
 0x401   :  { %5102 = shalt.err (!%p5099_p3)  }
 0x402   :  { %s5103_s23 = scalar_lea.vmem %s6481_s5, 16  ;;  %p5108_p5 = scmp.lt.s32.totalorder %s6481_s5, %s5800_s26 }
 0x403   :  { %p5104_p4 = scmp.ne.s32.totalorder %s6481_s5, %s5103_s23  ;;  %p5109_p6 = scmp.lt.s32.totalorder %s5830_s14, %s5103_s23 }
 0x405   :  { %p5110_p7 = por %p5109_p6, %p5108_p5 }
 0x407   :  { %p5111_p8 = pnand %p5110_p7, %p5104_p4 }
 0x409   :  { %5114 = shalt.err (!%p5111_p8)  }
 0x40a   :  { %772 = dma.hbm_to_vmem [thread:$0]  %s760_s25, 16, %s6481_s5, [#allocation4 + $0x1] }
 0x40b   :  { %s5681_s24 = smov [#allocation2 + $0x2c]   ;;  %s6509_s17 = sld [smem:[#allocation6 + $0x2d]] }
 0x40c   :  { %s785_s16 = sshll.u32 %s5681_s24, 4  ;;  %s5682_s29 = smov [#allocation2 + $0x2d]   ;;  %s786_s16 = int_to_ptr.vmem [resolvable:$true] %s785_s16 }
 0x40d   :  { %s801_s28 = sshll.u32 %s5682_s29, 4  ;;  %s6511_s3 = sld [smem:[#allocation6 + $0x2e]]  ;;  %s6514_s28 = int_to_ptr.vmem [resolvable:$true] %s801_s28 }
 0x40e   :  { %s3392_s15 = sshll.u32 %s6494_s13, 4 }
 0x40f   :  { %s776_s9 = scalar_lea.hbm %s7337_s1, %s3392_s15 }
 0x410   :  { %s5115_s2 = scalar_lea.hbm %s776_s9, 16  ;;  %p5118_p10 = scmp.lt.u32.totalorder %s776_s9, %s7337_s1 }
 0x411   :  { %p5116_p9 = scmp.ne.s32.totalorder %s776_s9, %s5115_s2  ;;  %p5119_p11 = scmp.lt.u32.totalorder %s5821_s0, %s5115_s2 }
 0x412   :  { %p5121_p13 = scmp.lt.u32.totalorder %s5115_s2, %s776_s9 }
 0x413   :  { %p5120_p12 = por %p5119_p11, %p5118_p10 }
 0x415   :  { %p5122_p0 = por %p5121_p13, %p5120_p12 }
 0x417   :  { %p5123_p1 = pnand %p5122_p0, %p5116_p9 }
 0x419   :  { %5126 = shalt.err (!%p5123_p1)  }
 0x41a   :  { %s5127_s20 = scalar_lea.vmem %s786_s16, 16  ;;  %p5132_p3 = scmp.lt.s32.totalorder %s786_s16, %s5800_s26 }
 0x41b   :  { %p5128_p2 = scmp.ne.s32.totalorder %s786_s16, %s5127_s20  ;;  %p5133_p4 = scmp.lt.s32.totalorder %s5830_s14, %s5127_s20 }
 0x41d   :  { %p5134_p5 = por %p5133_p4, %p5132_p3 }
 0x41f   :  { %p5135_p6 = pnand %p5134_p5, %p5128_p2 }
 0x421   :  { %5138 = shalt.err (!%p5135_p6)  }
 0x422   :  { %788 = dma.hbm_to_vmem [thread:$0]  %s776_s9, 16, %s786_s16, [#allocation4 + $0x1] }
 0x423   :  { %s3394_s30 = sshll.u32 %s6509_s17, 4  ;;  %s5683_s21 = smov [#allocation2 + $0x2e]  }
 0x424   :  { %s817_s13 = sshll.u32 %s5683_s21, 4  ;;  %s792_s25 = scalar_lea.hbm %s7337_s1, %s3394_s30  ;;  %s6529_s13 = int_to_ptr.vmem [resolvable:$true] %s817_s13 }
 0x425   :  { %s5139_s12 = scalar_lea.hbm %s792_s25, 16  ;;  %p5142_p8 = scmp.lt.u32.totalorder %s792_s25, %s7337_s1 }
 0x426   :  { %p5140_p7 = scmp.ne.s32.totalorder %s792_s25, %s5139_s12  ;;  %p5143_p9 = scmp.lt.u32.totalorder %s5821_s0, %s5139_s12 }
 0x427   :  { %p5145_p11 = scmp.lt.u32.totalorder %s5139_s12, %s792_s25 }
 0x428   :  { %p5144_p10 = por %p5143_p9, %p5142_p8 }
 0x42a   :  { %p5146_p12 = por %p5145_p11, %p5144_p10 }
 0x42c   :  { %p5147_p13 = pnand %p5146_p12, %p5140_p7 }
 0x42e   :  { %5150 = shalt.err (!%p5147_p13)  }
 0x42f   :  { %s5151_s23 = scalar_lea.vmem %s6514_s28, 16  ;;  %p5156_p1 = scmp.lt.s32.totalorder %s6514_s28, %s5800_s26 }
 0x430   :  { %p5152_p0 = scmp.ne.s32.totalorder %s6514_s28, %s5151_s23  ;;  %p5157_p2 = scmp.lt.s32.totalorder %s5830_s14, %s5151_s23 }
 0x432   :  { %p5158_p3 = por %p5157_p2, %p5156_p1 }
 0x434   :  { %p5159_p4 = pnand %p5158_p3, %p5152_p0 }
 0x436   :  { %5162 = shalt.err (!%p5159_p4)  }
 0x437   :  { %804 = dma.hbm_to_vmem [thread:$0]  %s792_s25, 16, %s6514_s28, [#allocation4 + $0x1] }
 0x438   :  { %s3396_s24 = sshll.u32 %s6511_s3, 4  ;;  %s6542_s16 = sld [smem:[#allocation6 + $0x2f]] }
 0x439   :  { %s808_s15 = scalar_lea.hbm %s7337_s1, %s3396_s24 }
 0x43a   :  { %s5163_s18 = scalar_lea.hbm %s808_s15, 16  ;;  %p5166_p6 = scmp.lt.u32.totalorder %s808_s15, %s7337_s1 }
 0x43b   :  { %p5164_p5 = scmp.ne.s32.totalorder %s808_s15, %s5163_s18  ;;  %p5167_p7 = scmp.lt.u32.totalorder %s5821_s0, %s5163_s18 }
 0x43c   :  { %p5169_p9 = scmp.lt.u32.totalorder %s5163_s18, %s808_s15 }
 0x43d   :  { %p5168_p8 = por %p5167_p7, %p5166_p6 }
 0x43f   :  { %p5170_p10 = por %p5169_p9, %p5168_p8 }
 0x441   :  { %p5171_p11 = pnand %p5170_p10, %p5164_p5 }
 0x443   :  { %5174 = shalt.err (!%p5171_p11)  }
 0x444   :  { %s5175_s28 = scalar_lea.vmem %s6529_s13, 16  ;;  %p5180_p13 = scmp.lt.s32.totalorder %s6529_s13, %s5800_s26 }
 0x445   :  { %p5176_p12 = scmp.ne.s32.totalorder %s6529_s13, %s5175_s28  ;;  %p5181_p0 = scmp.lt.s32.totalorder %s5830_s14, %s5175_s28 }
 0x447   :  { %p5182_p1 = por %p5181_p0, %p5180_p13 }
 0x449   :  { %p5183_p2 = pnand %p5182_p1, %p5176_p12 }
 0x44b   :  { %5186 = shalt.err (!%p5183_p2)  }
 0x44c   :  { %820 = dma.hbm_to_vmem [thread:$0]  %s808_s15, 16, %s6529_s13, [#allocation4 + $0x1] }
 0x44d   :  { %s5684_s3 = smov [#allocation2 + $0x2f]   ;;  %s6557_s22 = sld [smem:[#allocation6 + $0x30]] }
 0x44e   :  { %s833_s2 = sshll.u32 %s5684_s3, 4  ;;  %s5685_s5 = smov [#allocation2 + $0x30]   ;;  %s834_s2 = int_to_ptr.vmem [resolvable:$true] %s833_s2 }
 0x44f   :  { %s849_s20 = sshll.u32 %s5685_s5, 4  ;;  %s6559_s30 = sld [smem:[#allocation6 + $0x31]]  ;;  %s6562_s20 = int_to_ptr.vmem [resolvable:$true] %s849_s20 }
 0x450   :  { %s3398_s21 = sshll.u32 %s6542_s16, 4 }
 0x451   :  { %s824_s25 = scalar_lea.hbm %s7337_s1, %s3398_s21 }
 0x452   :  { %s5187_s12 = scalar_lea.hbm %s824_s25, 16  ;;  %p5190_p4 = scmp.lt.u32.totalorder %s824_s25, %s7337_s1 }
 0x453   :  { %p5188_p3 = scmp.ne.s32.totalorder %s824_s25, %s5187_s12  ;;  %p5191_p5 = scmp.lt.u32.totalorder %s5821_s0, %s5187_s12 }
 0x454   :  { %p5193_p7 = scmp.lt.u32.totalorder %s5187_s12, %s824_s25 }
 0x455   :  { %p5192_p6 = por %p5191_p5, %p5190_p4 }
 0x457   :  { %p5194_p8 = por %p5193_p7, %p5192_p6 }
 0x459   :  { %p5195_p9 = pnand %p5194_p8, %p5188_p3 }
 0x45b   :  { %5198 = shalt.err (!%p5195_p9)  }
 0x45c   :  { %s5199_s10 = scalar_lea.vmem %s834_s2, 16  ;;  %p5204_p11 = scmp.lt.s32.totalorder %s834_s2, %s5800_s26 }
 0x45d   :  { %p5200_p10 = scmp.ne.s32.totalorder %s834_s2, %s5199_s10  ;;  %p5205_p12 = scmp.lt.s32.totalorder %s5830_s14, %s5199_s10 }
 0x45f   :  { %p5206_p13 = por %p5205_p12, %p5204_p11 }
 0x461   :  { %p5207_p0 = pnand %p5206_p13, %p5200_p10 }
 0x463   :  { %5210 = shalt.err (!%p5207_p0)  }
 0x464   :  { %836 = dma.hbm_to_vmem [thread:$0]  %s824_s25, 16, %s834_s2, [#allocation4 + $0x1] }
 0x465   :  { %s3400_s23 = sshll.u32 %s6557_s22, 4  ;;  %s5686_s24 = smov [#allocation2 + $0x31]  }
 0x466   :  { %s865_s16 = sshll.u32 %s5686_s24, 4  ;;  %s840_s15 = scalar_lea.hbm %s7337_s1, %s3400_s23  ;;  %s6577_s16 = int_to_ptr.vmem [resolvable:$true] %s865_s16 }
 0x467   :  { %s5211_s18 = scalar_lea.hbm %s840_s15, 16  ;;  %p5214_p2 = scmp.lt.u32.totalorder %s840_s15, %s7337_s1 }
 0x468   :  { %p5212_p1 = scmp.ne.s32.totalorder %s840_s15, %s5211_s18  ;;  %p5215_p3 = scmp.lt.u32.totalorder %s5821_s0, %s5211_s18 }
 0x469   :  { %p5217_p5 = scmp.lt.u32.totalorder %s5211_s18, %s840_s15 }
 0x46a   :  { %p5216_p4 = por %p5215_p3, %p5214_p2 }
 0x46c   :  { %p5218_p6 = por %p5217_p5, %p5216_p4 }
 0x46e   :  { %p5219_p7 = pnand %p5218_p6, %p5212_p1 }
 0x470   :  { %5222 = shalt.err (!%p5219_p7)  }
 0x471   :  { %s5223_s28 = scalar_lea.vmem %s6562_s20, 16  ;;  %p5228_p9 = scmp.lt.s32.totalorder %s6562_s20, %s5800_s26 }
 0x472   :  { %p5224_p8 = scmp.ne.s32.totalorder %s6562_s20, %s5223_s28  ;;  %p5229_p10 = scmp.lt.s32.totalorder %s5830_s14, %s5223_s28 }
 0x474   :  { %p5230_p11 = por %p5229_p10, %p5228_p9 }
 0x476   :  { %p5231_p12 = pnand %p5230_p11, %p5224_p8 }
 0x478   :  { %5234 = shalt.err (!%p5231_p12)  }
 0x479   :  { %852 = dma.hbm_to_vmem [thread:$0]  %s840_s15, 16, %s6562_s20, [#allocation4 + $0x1] }
 0x47a   :  { %s3402_s3 = sshll.u32 %s6559_s30, 4  ;;  %s6590_s2 = sld [smem:[#allocation6 + $0x32]] }
 0x47b   :  { %s856_s21 = scalar_lea.hbm %s7337_s1, %s3402_s3 }
 0x47c   :  { %s5235_s27 = scalar_lea.hbm %s856_s21, 16  ;;  %p5238_p0 = scmp.lt.u32.totalorder %s856_s21, %s7337_s1 }
 0x47d   :  { %p5236_p13 = scmp.ne.s32.totalorder %s856_s21, %s5235_s27  ;;  %p5239_p1 = scmp.lt.u32.totalorder %s5821_s0, %s5235_s27 }
 0x47e   :  { %p5241_p3 = scmp.lt.u32.totalorder %s5235_s27, %s856_s21 }
 0x47f   :  { %p5240_p2 = por %p5239_p1, %p5238_p0 }
 0x481   :  { %p5242_p4 = por %p5241_p3, %p5240_p2 }
 0x483   :  { %p5243_p5 = pnand %p5242_p4, %p5236_p13 }
 0x485   :  { %5246 = shalt.err (!%p5243_p5)  }
 0x486   :  { %s5247_s20 = scalar_lea.vmem %s6577_s16, 16  ;;  %p5252_p7 = scmp.lt.s32.totalorder %s6577_s16, %s5800_s26 }
 0x487   :  { %p5248_p6 = scmp.ne.s32.totalorder %s6577_s16, %s5247_s20  ;;  %p5253_p8 = scmp.lt.s32.totalorder %s5830_s14, %s5247_s20 }
 0x489   :  { %p5254_p9 = por %p5253_p8, %p5252_p7 }
 0x48b   :  { %p5255_p10 = pnand %p5254_p9, %p5248_p6 }
 0x48d   :  { %5258 = shalt.err (!%p5255_p10)  }
 0x48e   :  { %868 = dma.hbm_to_vmem [thread:$0]  %s856_s21, 16, %s6577_s16, [#allocation4 + $0x1] }
 0x48f   :  { %s5687_s30 = smov [#allocation2 + $0x32]   ;;  %s6605_s11 = sld [smem:[#allocation6 + $0x33]] }
 0x490   :  { %s881_s12 = sshll.u32 %s5687_s30, 4  ;;  %s5688_s13 = smov [#allocation2 + $0x33]   ;;  %s882_s12 = int_to_ptr.vmem [resolvable:$true] %s881_s12 }
 0x491   :  { %s897_s10 = sshll.u32 %s5688_s13, 4  ;;  %s6607_s23 = sld [smem:[#allocation6 + $0x34]]  ;;  %s6610_s10 = int_to_ptr.vmem [resolvable:$true] %s897_s10 }
 0x492   :  { %s3404_s24 = sshll.u32 %s6590_s2, 4 }
 0x493   :  { %s872_s15 = scalar_lea.hbm %s7337_s1, %s3404_s24 }
 0x494   :  { %s5259_s18 = scalar_lea.hbm %s872_s15, 16  ;;  %p5262_p12 = scmp.lt.u32.totalorder %s872_s15, %s7337_s1 }
 0x495   :  { %p5260_p11 = scmp.ne.s32.totalorder %s872_s15, %s5259_s18  ;;  %p5263_p13 = scmp.lt.u32.totalorder %s5821_s0, %s5259_s18 }
 0x496   :  { %p5265_p1 = scmp.lt.u32.totalorder %s5259_s18, %s872_s15 }
 0x497   :  { %p5264_p0 = por %p5263_p13, %p5262_p12 }
 0x499   :  { %p5266_p2 = por %p5265_p1, %p5264_p0 }
 0x49b   :  { %p5267_p3 = pnand %p5266_p2, %p5260_p11 }
 0x49d   :  { %5270 = shalt.err (!%p5267_p3)  }
 0x49e   :  { %s5271_s9 = scalar_lea.vmem %s882_s12, 16  ;;  %p5276_p5 = scmp.lt.s32.totalorder %s882_s12, %s5800_s26 }
 0x49f   :  { %p5272_p4 = scmp.ne.s32.totalorder %s882_s12, %s5271_s9  ;;  %p5277_p6 = scmp.lt.s32.totalorder %s5830_s14, %s5271_s9 }
 0x4a1   :  { %p5278_p7 = por %p5277_p6, %p5276_p5 }
 0x4a3   :  { %p5279_p8 = pnand %p5278_p7, %p5272_p4 }
 0x4a5   :  { %5282 = shalt.err (!%p5279_p8)  }
 0x4a6   :  { %884 = dma.hbm_to_vmem [thread:$0]  %s872_s15, 16, %s882_s12, [#allocation4 + $0x1] }
 0x4a7   :  { %s3406_s28 = sshll.u32 %s6605_s11, 4  ;;  %s5689_s3 = smov [#allocation2 + $0x34]  }
 0x4a8   :  { %s913_s2 = sshll.u32 %s5689_s3, 4  ;;  %s888_s21 = scalar_lea.hbm %s7337_s1, %s3406_s28  ;;  %s6625_s2 = int_to_ptr.vmem [resolvable:$true] %s913_s2 }
 0x4a9   :  { %s5283_s27 = scalar_lea.hbm %s888_s21, 16  ;;  %p5286_p10 = scmp.lt.u32.totalorder %s888_s21, %s7337_s1 }
 0x4aa   :  { %p5284_p9 = scmp.ne.s32.totalorder %s888_s21, %s5283_s27  ;;  %p5287_p11 = scmp.lt.u32.totalorder %s5821_s0, %s5283_s27 }
 0x4ab   :  { %p5289_p13 = scmp.lt.u32.totalorder %s5283_s27, %s888_s21 }
 0x4ac   :  { %p5288_p12 = por %p5287_p11, %p5286_p10 }
 0x4ae   :  { %p5290_p0 = por %p5289_p13, %p5288_p12 }
 0x4b0   :  { %p5291_p1 = pnand %p5290_p0, %p5284_p9 }
 0x4b2   :  { %5294 = shalt.err (!%p5291_p1)  }
 0x4b3   :  { %s5295_s20 = scalar_lea.vmem %s6610_s10, 16  ;;  %p5300_p3 = scmp.lt.s32.totalorder %s6610_s10, %s5800_s26 }
 0x4b4   :  { %p5296_p2 = scmp.ne.s32.totalorder %s6610_s10, %s5295_s20  ;;  %p5301_p4 = scmp.lt.s32.totalorder %s5830_s14, %s5295_s20 }
 0x4b6   :  { %p5302_p5 = por %p5301_p4, %p5300_p3 }
 0x4b8   :  { %p5303_p6 = pnand %p5302_p5, %p5296_p2 }
 0x4ba   :  { %5306 = shalt.err (!%p5303_p6)  }
 0x4bb   :  { %900 = dma.hbm_to_vmem [thread:$0]  %s888_s21, 16, %s6610_s10, [#allocation4 + $0x1] }
 0x4bc   :  { %s3408_s30 = sshll.u32 %s6607_s23, 4  ;;  %s6638_s12 = sld [smem:[#allocation6 + $0x35]] }
 0x4bd   :  { %s904_s24 = scalar_lea.hbm %s7337_s1, %s3408_s30 }
 0x4be   :  { %s5307_s17 = scalar_lea.hbm %s904_s24, 16  ;;  %p5310_p8 = scmp.lt.u32.totalorder %s904_s24, %s7337_s1 }
 0x4bf   :  { %p5308_p7 = scmp.ne.s32.totalorder %s904_s24, %s5307_s17  ;;  %p5311_p9 = scmp.lt.u32.totalorder %s5821_s0, %s5307_s17 }
 0x4c0   :  { %p5313_p11 = scmp.lt.u32.totalorder %s5307_s17, %s904_s24 }
 0x4c1   :  { %p5312_p10 = por %p5311_p9, %p5310_p8 }
 0x4c3   :  { %p5314_p12 = por %p5313_p11, %p5312_p10 }
 0x4c5   :  { %p5315_p13 = pnand %p5314_p12, %p5308_p7 }
 0x4c7   :  { %5318 = shalt.err (!%p5315_p13)  }
 0x4c8   :  { %s5319_s10 = scalar_lea.vmem %s6625_s2, 16  ;;  %p5324_p1 = scmp.lt.s32.totalorder %s6625_s2, %s5800_s26 }
 0x4c9   :  { %p5320_p0 = scmp.ne.s32.totalorder %s6625_s2, %s5319_s10  ;;  %p5325_p2 = scmp.lt.s32.totalorder %s5830_s14, %s5319_s10 }
 0x4cb   :  { %p5326_p3 = por %p5325_p2, %p5324_p1 }
 0x4cd   :  { %p5327_p4 = pnand %p5326_p3, %p5320_p0 }
 0x4cf   :  { %5330 = shalt.err (!%p5327_p4)  }
 0x4d0   :  { %916 = dma.hbm_to_vmem [thread:$0]  %s904_s24, 16, %s6625_s2, [#allocation4 + $0x1] }
 0x4d1   :  { %s5690_s23 = smov [#allocation2 + $0x35]   ;;  %s6653_s19 = sld [smem:[#allocation6 + $0x36]] }
 0x4d2   :  { %s929_s18 = sshll.u32 %s5690_s23, 4  ;;  %s5691_s16 = smov [#allocation2 + $0x36]   ;;  %s930_s18 = int_to_ptr.vmem [resolvable:$true] %s929_s18 }
 0x4d3   :  { %s945_s9 = sshll.u32 %s5691_s16, 4  ;;  %s6655_s28 = sld [smem:[#allocation6 + $0x37]]  ;;  %s6658_s9 = int_to_ptr.vmem [resolvable:$true] %s945_s9 }
 0x4d4   :  { %s3410_s3 = sshll.u32 %s6638_s12, 4 }
 0x4d5   :  { %s920_s21 = scalar_lea.hbm %s7337_s1, %s3410_s3 }
 0x4d6   :  { %s5331_s27 = scalar_lea.hbm %s920_s21, 16  ;;  %p5334_p6 = scmp.lt.u32.totalorder %s920_s21, %s7337_s1 }
 0x4d7   :  { %p5332_p5 = scmp.ne.s32.totalorder %s920_s21, %s5331_s27  ;;  %p5335_p7 = scmp.lt.u32.totalorder %s5821_s0, %s5331_s27 }
 0x4d8   :  { %p5337_p9 = scmp.lt.u32.totalorder %s5331_s27, %s920_s21 }
 0x4d9   :  { %p5336_p8 = por %p5335_p7, %p5334_p6 }
 0x4db   :  { %p5338_p10 = por %p5337_p9, %p5336_p8 }
 0x4dd   :  { %p5339_p11 = pnand %p5338_p10, %p5332_p5 }
 0x4df   :  { %5342 = shalt.err (!%p5339_p11)  }
 0x4e0   :  { %s5343_s25 = scalar_lea.vmem %s930_s18, 16  ;;  %p5348_p13 = scmp.lt.s32.totalorder %s930_s18, %s5800_s26 }
 0x4e1   :  { %p5344_p12 = scmp.ne.s32.totalorder %s930_s18, %s5343_s25  ;;  %p5349_p0 = scmp.lt.s32.totalorder %s5830_s14, %s5343_s25 }
 0x4e3   :  { %p5350_p1 = por %p5349_p0, %p5348_p13 }
 0x4e5   :  { %p5351_p2 = pnand %p5350_p1, %p5344_p12 }
 0x4e7   :  { %5354 = shalt.err (!%p5351_p2)  }
 0x4e8   :  { %932 = dma.hbm_to_vmem [thread:$0]  %s920_s21, 16, %s930_s18, [#allocation4 + $0x1] }
 0x4e9   :  { %s3412_s20 = sshll.u32 %s6653_s19, 4  ;;  %s5692_s30 = smov [#allocation2 + $0x37]  }
 0x4ea   :  { %s961_s12 = sshll.u32 %s5692_s30, 4  ;;  %s936_s24 = scalar_lea.hbm %s7337_s1, %s3412_s20  ;;  %s6673_s12 = int_to_ptr.vmem [resolvable:$true] %s961_s12 }
 0x4eb   :  { %s5355_s17 = scalar_lea.hbm %s936_s24, 16  ;;  %p5358_p4 = scmp.lt.u32.totalorder %s936_s24, %s7337_s1 }
 0x4ec   :  { %p5356_p3 = scmp.ne.s32.totalorder %s936_s24, %s5355_s17  ;;  %p5359_p5 = scmp.lt.u32.totalorder %s5821_s0, %s5355_s17 }
 0x4ed   :  { %p5361_p7 = scmp.lt.u32.totalorder %s5355_s17, %s936_s24 }
 0x4ee   :  { %p5360_p6 = por %p5359_p5, %p5358_p4 }
 0x4f0   :  { %p5362_p8 = por %p5361_p7, %p5360_p6 }
 0x4f2   :  { %p5363_p9 = pnand %p5362_p8, %p5356_p3 }
 0x4f4   :  { %5366 = shalt.err (!%p5363_p9)  }
 0x4f5   :  { %s5367_s10 = scalar_lea.vmem %s6658_s9, 16  ;;  %p5372_p11 = scmp.lt.s32.totalorder %s6658_s9, %s5800_s26 }
 0x4f6   :  { %p5368_p10 = scmp.ne.s32.totalorder %s6658_s9, %s5367_s10  ;;  %p5373_p12 = scmp.lt.s32.totalorder %s5830_s14, %s5367_s10 }
 0x4f8   :  { %p5374_p13 = por %p5373_p12, %p5372_p11 }
 0x4fa   :  { %p5375_p0 = pnand %p5374_p13, %p5368_p10 }
 0x4fc   :  { %5378 = shalt.err (!%p5375_p0)  }
 0x4fd   :  { %948 = dma.hbm_to_vmem [thread:$0]  %s936_s24, 16, %s6658_s9, [#allocation4 + $0x1] }
 0x4fe   :  { %s3414_s23 = sshll.u32 %s6655_s28, 4  ;;  %s6686_s18 = sld [smem:[#allocation6 + $0x38]] }
 0x4ff   :  { %s952_s3 = scalar_lea.hbm %s7337_s1, %s3414_s23 }
 0x500   :  { %s5379_s22 = scalar_lea.hbm %s952_s3, 16  ;;  %p5382_p2 = scmp.lt.u32.totalorder %s952_s3, %s7337_s1 }
 0x501   :  { %p5380_p1 = scmp.ne.s32.totalorder %s952_s3, %s5379_s22  ;;  %p5383_p3 = scmp.lt.u32.totalorder %s5821_s0, %s5379_s22 }
 0x502   :  { %p5385_p5 = scmp.lt.u32.totalorder %s5379_s22, %s952_s3 }
 0x503   :  { %p5384_p4 = por %p5383_p3, %p5382_p2 }
 0x505   :  { %p5386_p6 = por %p5385_p5, %p5384_p4 }
 0x507   :  { %p5387_p7 = pnand %p5386_p6, %p5380_p1 }
 0x509   :  { %5390 = shalt.err (!%p5387_p7)  }
 0x50a   :  { %s5391_s9 = scalar_lea.vmem %s6673_s12, 16  ;;  %p5396_p9 = scmp.lt.s32.totalorder %s6673_s12, %s5800_s26 }
 0x50b   :  { %p5392_p8 = scmp.ne.s32.totalorder %s6673_s12, %s5391_s9  ;;  %p5397_p10 = scmp.lt.s32.totalorder %s5830_s14, %s5391_s9 }
 0x50d   :  { %p5398_p11 = por %p5397_p10, %p5396_p9 }
 0x50f   :  { %p5399_p12 = pnand %p5398_p11, %p5392_p8 }
 0x511   :  { %5402 = shalt.err (!%p5399_p12)  }
 0x512   :  { %964 = dma.hbm_to_vmem [thread:$0]  %s952_s3, 16, %s6673_s12, [#allocation4 + $0x1] }
 0x513   :  { %s5693_s28 = smov [#allocation2 + $0x38]   ;;  %s6701_s8 = sld [smem:[#allocation6 + $0x39]] }
 0x514   :  { %s977_s27 = sshll.u32 %s5693_s28, 4  ;;  %s5694_s2 = smov [#allocation2 + $0x39]   ;;  %s978_s27 = int_to_ptr.vmem [resolvable:$true] %s977_s27 }
 0x515   :  { %s993_s25 = sshll.u32 %s5694_s2, 4  ;;  %s6703_s20 = sld [smem:[#allocation6 + $0x3a]]  ;;  %s6706_s25 = int_to_ptr.vmem [resolvable:$true] %s993_s25 }
 0x516   :  { %s3416_s30 = sshll.u32 %s6686_s18, 4 }
 0x517   :  { %s968_s24 = scalar_lea.hbm %s7337_s1, %s3416_s30 }
 0x518   :  { %s5403_s17 = scalar_lea.hbm %s968_s24, 16  ;;  %p5406_p0 = scmp.lt.u32.totalorder %s968_s24, %s7337_s1 }
 0x519   :  { %p5404_p13 = scmp.ne.s32.totalorder %s968_s24, %s5403_s17  ;;  %p5407_p1 = scmp.lt.u32.totalorder %s5821_s0, %s5403_s17 }
 0x51a   :  { %p5409_p3 = scmp.lt.u32.totalorder %s5403_s17, %s968_s24 }
 0x51b   :  { %p5408_p2 = por %p5407_p1, %p5406_p0 }
 0x51d   :  { %p5410_p4 = por %p5409_p3, %p5408_p2 }
 0x51f   :  { %p5411_p5 = pnand %p5410_p4, %p5404_p13 }
 0x521   :  { %5414 = shalt.err (!%p5411_p5)  }
 0x522   :  { %s5415_s15 = scalar_lea.vmem %s978_s27, 16  ;;  %p5420_p7 = scmp.lt.s32.totalorder %s978_s27, %s5800_s26 }
 0x523   :  { %p5416_p6 = scmp.ne.s32.totalorder %s978_s27, %s5415_s15  ;;  %p5421_p8 = scmp.lt.s32.totalorder %s5830_s14, %s5415_s15 }
 0x525   :  { %p5422_p9 = por %p5421_p8, %p5420_p7 }
 0x527   :  { %p5423_p10 = pnand %p5422_p9, %p5416_p6 }
 0x529   :  { %5426 = shalt.err (!%p5423_p10)  }
 0x52a   :  { %980 = dma.hbm_to_vmem [thread:$0]  %s968_s24, 16, %s978_s27, [#allocation4 + $0x1] }
 0x52b   :  { %s3418_s10 = sshll.u32 %s6701_s8, 4  ;;  %s5695_s23 = smov [#allocation2 + $0x3a]  }
 0x52c   :  { %s1009_s18 = sshll.u32 %s5695_s23, 4  ;;  %s984_s3 = scalar_lea.hbm %s7337_s1, %s3418_s10  ;;  %s6721_s18 = int_to_ptr.vmem [resolvable:$true] %s1009_s18 }
 0x52d   :  { %s5427_s22 = scalar_lea.hbm %s984_s3, 16  ;;  %p5430_p12 = scmp.lt.u32.totalorder %s984_s3, %s7337_s1 }
 0x52e   :  { %p5428_p11 = scmp.ne.s32.totalorder %s984_s3, %s5427_s22  ;;  %p5431_p13 = scmp.lt.u32.totalorder %s5821_s0, %s5427_s22 }
 0x52f   :  { %p5433_p1 = scmp.lt.u32.totalorder %s5427_s22, %s984_s3 }
 0x530   :  { %p5432_p0 = por %p5431_p13, %p5430_p12 }
 0x532   :  { %p5434_p2 = por %p5433_p1, %p5432_p0 }
 0x534   :  { %p5435_p3 = pnand %p5434_p2, %p5428_p11 }
 0x536   :  { %5438 = shalt.err (!%p5435_p3)  }
 0x537   :  { %s5439_s9 = scalar_lea.vmem %s6706_s25, 16  ;;  %p5444_p5 = scmp.lt.s32.totalorder %s6706_s25, %s5800_s26 }
 0x538   :  { %p5440_p4 = scmp.ne.s32.totalorder %s6706_s25, %s5439_s9  ;;  %p5445_p6 = scmp.lt.s32.totalorder %s5830_s14, %s5439_s9 }
 0x53a   :  { %p5446_p7 = por %p5445_p6, %p5444_p5 }
 0x53c   :  { %p5447_p8 = pnand %p5446_p7, %p5440_p4 }
 0x53e   :  { %5450 = shalt.err (!%p5447_p8)  }
 0x53f   :  { %996 = dma.hbm_to_vmem [thread:$0]  %s984_s3, 16, %s6706_s25, [#allocation4 + $0x1] }
 0x540   :  { %s3420_s28 = sshll.u32 %s6703_s20, 4  ;;  %s6734_s27 = sld [smem:[#allocation6 + $0x3b]] }
 0x541   :  { %s1000_s30 = scalar_lea.hbm %s7337_s1, %s3420_s28 }
 0x542   :  { %s5451_s11 = scalar_lea.hbm %s1000_s30, 16  ;;  %p5454_p10 = scmp.lt.u32.totalorder %s1000_s30, %s7337_s1 }
 0x543   :  { %p5452_p9 = scmp.ne.s32.totalorder %s1000_s30, %s5451_s11  ;;  %p5455_p11 = scmp.lt.u32.totalorder %s5821_s0, %s5451_s11 }
 0x544   :  { %p5457_p13 = scmp.lt.u32.totalorder %s5451_s11, %s1000_s30 }
 0x545   :  { %p5456_p12 = por %p5455_p11, %p5454_p10 }
 0x547   :  { %p5458_p0 = por %p5457_p13, %p5456_p12 }
 0x549   :  { %p5459_p1 = pnand %p5458_p0, %p5452_p9 }
 0x54b   :  { %5462 = shalt.err (!%p5459_p1)  }
 0x54c   :  { %s5463_s25 = scalar_lea.vmem %s6721_s18, 16  ;;  %p5468_p3 = scmp.lt.s32.totalorder %s6721_s18, %s5800_s26 }
 0x54d   :  { %p5464_p2 = scmp.ne.s32.totalorder %s6721_s18, %s5463_s25  ;;  %p5469_p4 = scmp.lt.s32.totalorder %s5830_s14, %s5463_s25 }
 0x54f   :  { %p5470_p5 = por %p5469_p4, %p5468_p3 }
 0x551   :  { %p5471_p6 = pnand %p5470_p5, %p5464_p2 }
 0x553   :  { %5474 = shalt.err (!%p5471_p6)  }
 0x554   :  { %1012 = dma.hbm_to_vmem [thread:$0]  %s1000_s30, 16, %s6721_s18, [#allocation4 + $0x1] }
 0x555   :  { %s5696_s20 = smov [#allocation2 + $0x3b]   ;;  %s6749_s29 = sld [smem:[#allocation6 + $0x3c]] }
 0x556   :  { %s1025_s17 = sshll.u32 %s5696_s20, 4  ;;  %s5697_s12 = smov [#allocation2 + $0x3c]   ;;  %s1026_s17 = int_to_ptr.vmem [resolvable:$true] %s1025_s17 }
 0x557   :  { %s1041_s15 = sshll.u32 %s5697_s12, 4  ;;  %s6751_s10 = sld [smem:[#allocation6 + $0x3d]]  ;;  %s6754_s15 = int_to_ptr.vmem [resolvable:$true] %s1041_s15 }
 0x558   :  { %s3422_s23 = sshll.u32 %s6734_s27, 4 }
 0x559   :  { %s1016_s3 = scalar_lea.hbm %s7337_s1, %s3422_s23 }
 0x55a   :  { %s5475_s22 = scalar_lea.hbm %s1016_s3, 16  ;;  %p5478_p8 = scmp.lt.u32.totalorder %s1016_s3, %s7337_s1 }
 0x55b   :  { %p5476_p7 = scmp.ne.s32.totalorder %s1016_s3, %s5475_s22  ;;  %p5479_p9 = scmp.lt.u32.totalorder %s5821_s0, %s5475_s22 }
 0x55c   :  { %p5481_p11 = scmp.lt.u32.totalorder %s5475_s22, %s1016_s3 }
 0x55d   :  { %p5480_p10 = por %p5479_p9, %p5478_p8 }
 0x55f   :  { %p5482_p12 = por %p5481_p11, %p5480_p10 }
 0x561   :  { %p5483_p13 = pnand %p5482_p12, %p5476_p7 }
 0x563   :  { %5486 = shalt.err (!%p5483_p13)  }
 0x564   :  { %s5487_s21 = scalar_lea.vmem %s1026_s17, 16  ;;  %p5492_p1 = scmp.lt.s32.totalorder %s1026_s17, %s5800_s26 }
 0x565   :  { %p5488_p0 = scmp.ne.s32.totalorder %s1026_s17, %s5487_s21  ;;  %p5493_p2 = scmp.lt.s32.totalorder %s5830_s14, %s5487_s21 }
 0x567   :  { %p5494_p3 = por %p5493_p2, %p5492_p1 }
 0x569   :  { %p5495_p4 = pnand %p5494_p3, %p5488_p0 }
 0x56b   :  { %5498 = shalt.err (!%p5495_p4)  }
 0x56c   :  { %1028 = dma.hbm_to_vmem [thread:$0]  %s1016_s3, 16, %s1026_s17, [#allocation4 + $0x1] }
 0x56d   :  { %s3424_s9 = sshll.u32 %s6749_s29, 4  ;;  %s5698_s28 = smov [#allocation2 + $0x3d]  }
 0x56e   :  { %s1057_s27 = sshll.u32 %s5698_s28, 4  ;;  %s1032_s30 = scalar_lea.hbm %s7337_s1, %s3424_s9  ;;  %s6769_s27 = int_to_ptr.vmem [resolvable:$true] %s1057_s27 }
 0x56f   :  { %s5499_s11 = scalar_lea.hbm %s1032_s30, 16  ;;  %p5502_p6 = scmp.lt.u32.totalorder %s1032_s30, %s7337_s1 }
 0x570   :  { %p5500_p5 = scmp.ne.s32.totalorder %s1032_s30, %s5499_s11  ;;  %p5503_p7 = scmp.lt.u32.totalorder %s5821_s0, %s5499_s11 }
 0x571   :  { %p5505_p9 = scmp.lt.u32.totalorder %s5499_s11, %s1032_s30 }
 0x572   :  { %p5504_p8 = por %p5503_p7, %p5502_p6 }
 0x574   :  { %p5506_p10 = por %p5505_p9, %p5504_p8 }
 0x576   :  { %p5507_p11 = pnand %p5506_p10, %p5500_p5 }
 0x578   :  { %5510 = shalt.err (!%p5507_p11)  }
 0x579   :  { %s5511_s25 = scalar_lea.vmem %s6754_s15, 16  ;;  %p5516_p13 = scmp.lt.s32.totalorder %s6754_s15, %s5800_s26 }
 0x57a   :  { %p5512_p12 = scmp.ne.s32.totalorder %s6754_s15, %s5511_s25  ;;  %p5517_p0 = scmp.lt.s32.totalorder %s5830_s14, %s5511_s25 }
 0x57c   :  { %p5518_p1 = por %p5517_p0, %p5516_p13 }
 0x57e   :  { %p5519_p2 = pnand %p5518_p1, %p5512_p12 }
 0x580   :  { %5522 = shalt.err (!%p5519_p2)  }
 0x581   :  { %1044 = dma.hbm_to_vmem [thread:$0]  %s1032_s30, 16, %s6754_s15, [#allocation4 + $0x1] }
 0x582   :  { %s3426_s20 = sshll.u32 %s6751_s10, 4  ;;  %s3427_s17 = sld [smem:[#allocation6 + $0x3e]] }
 0x583   :  { %s1048_s23 = scalar_lea.hbm %s7337_s1, %s3426_s20 }
 0x584   :  { %s5523_s19 = scalar_lea.hbm %s1048_s23, 16  ;;  %p5526_p4 = scmp.lt.u32.totalorder %s1048_s23, %s7337_s1 }
 0x585   :  { %p5524_p3 = scmp.ne.s32.totalorder %s1048_s23, %s5523_s19  ;;  %p5527_p5 = scmp.lt.u32.totalorder %s5821_s0, %s5523_s19 }
 0x586   :  { %p5529_p7 = scmp.lt.u32.totalorder %s5523_s19, %s1048_s23 }
 0x587   :  { %p5528_p6 = por %p5527_p5, %p5526_p4 }
 0x589   :  { %p5530_p8 = por %p5529_p7, %p5528_p6 }
 0x58b   :  { %p5531_p9 = pnand %p5530_p8, %p5524_p3 }
 0x58d   :  { %5534 = shalt.err (!%p5531_p9)  }
 0x58e   :  { %s5535_s15 = scalar_lea.vmem %s6769_s27, 16  ;;  %p5540_p11 = scmp.lt.s32.totalorder %s6769_s27, %s5800_s26 }
 0x58f   :  { %p5536_p10 = scmp.ne.s32.totalorder %s6769_s27, %s5535_s15  ;;  %p5541_p12 = scmp.lt.s32.totalorder %s5830_s14, %s5535_s15 }
 0x591   :  { %p5542_p13 = por %p5541_p12, %p5540_p11 }
 0x593   :  { %p5543_p0 = pnand %p5542_p13, %p5536_p10 }
 0x595   :  { %5546 = shalt.err (!%p5543_p0)  }
 0x596   :  { %1060 = dma.hbm_to_vmem [thread:$0]  %s1048_s23, 16, %s6769_s27, [#allocation4 + $0x1] }
 0x597   :  { %s5699_s10 = smov [#allocation2 + $0x3e]   ;;  %s3429_s5 = sld [smem:[#allocation6 + $0x3f]] }
 0x598   :  { %s1073_s22 = sshll.u32 %s5699_s10, 4  ;;  %s5700_s18 = smov [#allocation2 + $0x3f]   ;;  %s1074_s22 = int_to_ptr.vmem [resolvable:$true] %s1073_s22 }
 0x599   :  { %s1089_s21 = sshll.u32 %s5700_s18, 4  ;;  %s3428_s9 = sshll.u32 %s3427_s17, 4  ;;  %s6798_s21 = int_to_ptr.vmem [resolvable:$true] %s1089_s21 }
 0x59a   :  { %s1064_s2 = scalar_lea.hbm %s7337_s1, %s3428_s9 }
 0x59b   :  { %s5547_s30 = scalar_lea.hbm %s1064_s2, 16  ;;  %p5550_p2 = scmp.lt.u32.totalorder %s1064_s2, %s7337_s1 }
 0x59c   :  { %p5548_p1 = scmp.ne.s32.totalorder %s1064_s2, %s5547_s30  ;;  %p5551_p3 = scmp.lt.u32.totalorder %s5821_s0, %s5547_s30 }
 0x59d   :  { %p5553_p5 = scmp.lt.u32.totalorder %s5547_s30, %s1064_s2 }
 0x59e   :  { %p5552_p4 = por %p5551_p3, %p5550_p2 }
 0x5a0   :  { %p5554_p6 = por %p5553_p5, %p5552_p4 }
 0x5a2   :  { %p5555_p7 = pnand %p5554_p6, %p5548_p1 }
 0x5a4   :  { %5558 = shalt.err (!%p5555_p7)  }
 0x5a5   :  { %s5559_s27 = scalar_lea.vmem %s1074_s22, 16  ;;  %p5564_p9 = scmp.lt.s32.totalorder %s1074_s22, %s5800_s26 }
 0x5a6   :  { %p5560_p8 = scmp.ne.s32.totalorder %s1074_s22, %s5559_s27  ;;  %p5565_p10 = scmp.lt.s32.totalorder %s5830_s14, %s5559_s27 }
 0x5a8   :  { %p5566_p11 = por %p5565_p10, %p5564_p9 }
 0x5aa   :  { %p5567_p12 = pnand %p5566_p11, %p5560_p8 }
 0x5ac   :  { %5570 = shalt.err (!%p5567_p12)  }
 0x5ad   :  { %1076 = dma.hbm_to_vmem [thread:$0]  %s1064_s2, 16, %s1074_s22, [#allocation4 + $0x1] }
 0x5ae   :  { %s3430_s24 = sshll.u32 %s3429_s5, 4 }
 0x5af   :  { %s1080_s17 = scalar_lea.hbm %s7337_s1, %s3430_s24 }
 0x5b0   :  { %s5571_s29 = scalar_lea.hbm %s1080_s17, 16  ;;  %p5574_p0 = scmp.lt.u32.totalorder %s1080_s17, %s7337_s1 }
 0x5b1   :  { %p5572_p13 = scmp.ne.s32.totalorder %s1080_s17, %s5571_s29  ;;  %p5575_p1 = scmp.lt.u32.totalorder %s5821_s0, %s5571_s29 }
 0x5b2   :  { %p5577_p3 = scmp.lt.u32.totalorder %s5571_s29, %s1080_s17 }
 0x5b3   :  { %p5576_p2 = por %p5575_p1, %p5574_p0 }
 0x5b5   :  { %p5578_p4 = por %p5577_p3, %p5576_p2 }
 0x5b7   :  { %p5579_p5 = pnand %p5578_p4, %p5572_p13 }
 0x5b9   :  { %5582 = shalt.err (!%p5579_p5)  }
 0x5ba   :  { %s5583_s19 = scalar_lea.vmem %s6798_s21, 16  ;;  %p5588_p7 = scmp.lt.s32.totalorder %s6798_s21, %s5800_s26 }
 0x5bb   :  { %p5584_p6 = scmp.ne.s32.totalorder %s6798_s21, %s5583_s19  ;;  %p5589_p8 = scmp.lt.s32.totalorder %s5830_s14, %s5583_s19 }
 0x5bd   :  { %p5590_p9 = por %p5589_p8, %p5588_p7 }
 0x5bf   :  { %p5591_p10 = pnand %p5590_p9, %p5584_p6 }
 0x5c1   :  { %5594 = shalt.err (!%p5591_p10)  }
 0x5c2   :  { %1092 = dma.hbm_to_vmem [thread:$0]  %s1080_s17, 16, %s6798_s21, [#allocation4 + $0x1] }
 0x5c3   :  { %5623 = dma.done.wait [#allocation4], 512 }
 0x5c4   :  { %5624 = vsyncadd [#allocation4], 4294966784  ;;  %v7344_v0 = vmov 0   ;;  %v3667_v1 = vld [vmem:[#allocation7 + $0x4] ss:$16 sps:$4 sm:$0xff]   ;;  %v1159_v34 = vld [vmem:[#allocation2 + $0x8] sm:$0xff]  ;;  %v1198_v39 = vlaneseq }
 0x5c5   :  { %1410 = vmatprep.mubr.bf16.mxu0 %v7344_v0  ;;  %1463 = vmatprep.mubr.bf16.mxu1 %v7344_v0  ;;  %v3669_v2 = vld [vmem:[#allocation7 + $0xc] ss:$16 sps:$4 sm:$0xff]   ;;  %v3671_v3 = vld [vmem:[#allocation7] ss:$16 sps:$4 sm:$0xff]   ;;  %v3672_v4 = vld [vmem:[#allocation7 + $0x8] ss:$16 sps:$4 sm:$0xff]  }
 0x5c6   :  { %1378 = vmatprep.subr.bf16.mxu0 %v3667_v1  ;;  %1431 = vmatprep.subr.bf16.mxu1 %v3669_v2  ;;  %v3673_v5 = vld [vmem:[#allocation7 + $0x24] ss:$16 sps:$4 sm:$0xff]   ;;  %v3675_v6 = vld [vmem:[#allocation7 + $0x2c] ss:$16 sps:$4 sm:$0xff]   ;;  %v3677_v7 = vld [vmem:[#allocation7 + $0x20] ss:$16 sps:$4 sm:$0xff]  }
 0x5c7   :  { %1379 = vmatpush1.bf16.msra.mxu0 %v3671_v3  ;;  %1432 = vmatpush1.bf16.msra.mxu1 %v3672_v4  ;;  %v3678_v8 = vld [vmem:[#allocation7 + $0x28] ss:$16 sps:$4 sm:$0xff]   ;;  %v3679_v9 = vld [vmem:[#allocation7 + $0x44] ss:$16 sps:$4 sm:$0xff]   ;;  %v3681_v10 = vld [vmem:[#allocation7 + $0x4c] ss:$16 sps:$4 sm:$0xff]  }
 0x5c8   :  { %1380 = vmatprep.subr.bf16.mxu0 %v3673_v5  ;;  %1433 = vmatprep.subr.bf16.mxu1 %v3675_v6  ;;  %v3683_v11 = vld [vmem:[#allocation7 + $0x40] ss:$16 sps:$4 sm:$0xff]   ;;  %v3684_v12 = vld [vmem:[#allocation7 + $0x48] ss:$16 sps:$4 sm:$0xff]   ;;  %v3685_v13 = vld [vmem:[#allocation7 + $0x64] ss:$16 sps:$4 sm:$0xff]  }
 0x5c9   :  { %v3687_v14 = vld [vmem:[#allocation7 + $0x6c] ss:$16 sps:$4 sm:$0xff]   ;;  %v3689_v15 = vld [vmem:[#allocation7 + $0x60] ss:$16 sps:$4 sm:$0xff]   ;;  %v3690_v16 = vld [vmem:[#allocation7 + $0x68] ss:$16 sps:$4 sm:$0xff]  }
 0x5ca   :  { %v3691_v17 = vld [vmem:[#allocation7 + $0x84] ss:$16 sps:$4 sm:$0xff]   ;;  %v3693_v18 = vld [vmem:[#allocation7 + $0x8c] ss:$16 sps:$4 sm:$0xff]   ;;  %v3695_v19 = vld [vmem:[#allocation7 + $0x80] ss:$16 sps:$4 sm:$0xff]  }
 0x5cb   :  { %1381 = vmatpush1.bf16.msra.mxu0 %v3677_v7  ;;  %1434 = vmatpush1.bf16.msra.mxu1 %v3678_v8  ;;  %v3696_v20 = vld [vmem:[#allocation7 + $0x88] ss:$16 sps:$4 sm:$0xff]   ;;  %v3697_v21 = vld [vmem:[#allocation7 + $0xa4] ss:$16 sps:$4 sm:$0xff]   ;;  %v3699_v22 = vld [vmem:[#allocation7 + $0xac] ss:$16 sps:$4 sm:$0xff]  }
 0x5cc   :  { %1382 = vmatprep.subr.bf16.mxu0 %v3679_v9  ;;  %1435 = vmatprep.subr.bf16.mxu1 %v3681_v10  ;;  %v3701_v23 = vld [vmem:[#allocation7 + $0xa0] ss:$16 sps:$4 sm:$0xff]   ;;  %v3702_v24 = vld [vmem:[#allocation7 + $0xa8] ss:$16 sps:$4 sm:$0xff]   ;;  %v3703_v25 = vld [vmem:[#allocation7 + $0xc4] ss:$16 sps:$4 sm:$0xff]  }
 0x5cd   :  { %v3705_v26 = vld [vmem:[#allocation7 + $0xcc] ss:$16 sps:$4 sm:$0xff]   ;;  %v3707_v27 = vld [vmem:[#allocation7 + $0xc0] ss:$16 sps:$4 sm:$0xff]   ;;  %v3708_v28 = vld [vmem:[#allocation7 + $0xc8] ss:$16 sps:$4 sm:$0xff]  }
 0x5ce   :  { %v3709_v29 = vld [vmem:[#allocation7 + $0xe4] ss:$16 sps:$4 sm:$0xff]   ;;  %v3711_v30 = vld [vmem:[#allocation7 + $0xec] ss:$16 sps:$4 sm:$0xff]   ;;  %v3713_v31 = vld [vmem:[#allocation7 + $0xe0] ss:$16 sps:$4 sm:$0xff]  }
 0x5cf   :  { %1383 = vmatpush1.bf16.msra.mxu0 %v3683_v11  ;;  %1436 = vmatpush1.bf16.msra.mxu1 %v3684_v12  ;;  %v3714_v32 = vld [vmem:[#allocation7 + $0xe8] ss:$16 sps:$4 sm:$0xff]   ;;  %v1158_v33 = vld [vmem:[#allocation2] sm:$0xff]  ;;  %v1160_v36 = vld [vmem:[#allocation2 + $0x10] sm:$0xff]  ;;  %v6823_v40 = vshrl.u32 %v1198_v39, 7 }
 0x5d0   :  { %1384 = vmatprep.subr.bf16.mxu0 %v3685_v13  ;;  %1437 = vmatprep.subr.bf16.mxu1 %v3687_v14  ;;  %v1162_v35 = vpack.c.bf16 %v1159_v34, %v1158_v33  ;;  %v1161_v37 = vld [vmem:[#allocation2 + $0x18] sm:$0xff] }
 0x5d1   :  { %v1163_v38 = vpack.c.bf16 %v1161_v37, %v1160_v36  ;;  %v1200_v41 = vsub.s32 0, %v6823_v40  ;;  %v1208_v42 = vsub.s32 2, %v6823_v40  ;;  %v1196_v43 = vld [vmem:[%s7340_s4] sm:$0xf]  ;;  %v1204_v44 = vsub.s32 1, %v6823_v40 }
 0x5d2   :  { %v1212_v45 = vsub.s32 3, %v6823_v40 }
 0x5d3   :  { %1385 = vmatpush1.bf16.msra.mxu0 %v3689_v15  ;;  %1438 = vmatpush1.bf16.msra.mxu1 %v3690_v16  ;;  %v1201_v46 = vrot.slane %v1196_v43, %v1200_v41  ;;  %v1209_v47 = vrot.slane %v1196_v43, %v1208_v42  ;;  %v1205_v48 = vrot.slane %v1196_v43, %v1204_v44 }
 0x5d4   :  { %1386 = vmatprep.subr.bf16.mxu0 %v3691_v17  ;;  %1439 = vmatprep.subr.bf16.mxu1 %v3693_v18  ;;  %v1213_v49 = vrot.slane %v1196_v43, %v1212_v45 }
 0x5d7   :  { %1387 = vmatpush1.bf16.msra.mxu0 %v3695_v19  ;;  %1440 = vmatpush1.bf16.msra.mxu1 %v3696_v20 }
 0x5d8   :  { %1388 = vmatprep.subr.bf16.mxu0 %v3697_v21  ;;  %1441 = vmatprep.subr.bf16.mxu1 %v3699_v22 }
 0x5db   :  { %1389 = vmatpush1.bf16.msra.mxu0 %v3701_v23  ;;  %1442 = vmatpush1.bf16.msra.mxu1 %v3702_v24 }
 0x5dc   :  { %1390 = vmatprep.subr.bf16.mxu0 %v3703_v25  ;;  %1443 = vmatprep.subr.bf16.mxu1 %v3705_v26 }
 0x5df   :  { %1391 = vmatpush1.bf16.msra.mxu0 %v3707_v27  ;;  %1444 = vmatpush1.bf16.msra.mxu1 %v3708_v28 }
 0x5e0   :  { %1392 = vmatprep.subr.bf16.mxu0 %v3709_v29  ;;  %1445 = vmatprep.subr.bf16.mxu1 %v3711_v30 }
 0x5e3   :  { %1393 = vmatpush1.bf16.msra.mxu0 %v3713_v31  ;;  %1446 = vmatpush1.bf16.msra.mxu1 %v3714_v32 }
 0x5e6   :  { %1411 = vmatmul.mubr.bf16.vlgmr.msra.gmra.mrb[0].mxu0 %v1162_v35  ;;  %1464 = vmatmul.mubr.bf16.vlgmr.msra.gmra.mrb[0].mxu1 %v1162_v35 }
 0x5e7   :  { %1420 = vmatprep.mubr.bf16.mxu0 %v7344_v0  ;;  %1473 = vmatprep.mubr.bf16.mxu1 %v7344_v0 }
 0x5ee   :  { %1421 = vmatmul.mubr.bf16.gmra.mrb[4].mxu0 %v1163_v38  ;;  %1474 = vmatmul.mubr.bf16.gmra.mrb[4].mxu1 %v1163_v38 }
 0x6b9   :  { %v1412_v50 = vpop.f32.mrb[0].mxu0  ;;  %v1465_v51 = vpop.f32.mrb[0].mxu1 }
 0x6ba   :  { %v6840_v52 = vadd.f32 %v1412_v50, %v1201_v46  ;;  %v6842_v53 = vadd.f32 %v1465_v51, %v1209_v47  ;;  %v1414_v54 = vpop.f32.mrb[1].mxu0  ;;  %v1467_v55 = vpop.f32.mrb[1].mxu1 }
 0x6bb   :  { %v6844_v56 = vadd.f32 %v1414_v54, %v1205_v48  ;;  %v6846_v57 = vadd.f32 %v1467_v55, %v1213_v49  ;;  %v1416_v58 = vpop.f32.mrb[2].mxu0  ;;  %v1469_v59 = vpop.f32.mrb[2].mxu1 }
 0x6bc   :  { %v6848_v60 = vadd.f32 %v1416_v58, %v1201_v46  ;;  %v6850_v61 = vadd.f32 %v1469_v59, %v1209_v47  ;;  %v1418_v62 = vpop.f32.mrb[3].mxu0  ;;  %v1471_v63 = vpop.f32.mrb[3].mxu1 }
 0x6bd   :  { %v6852_v1 = vadd.f32 %v1418_v62, %v1205_v48  ;;  %v6854_v2 = vadd.f32 %v1471_v63, %v1213_v49 }
 0x6c1   :  { %v1422_v3 = vpop.f32.mrb[4].mxu0  ;;  %v1475_v4 = vpop.f32.mrb[4].mxu1 }
 0x6c2   :  { %v6856_v5 = vadd.f32 %v1422_v3, %v1201_v46  ;;  %v6858_v6 = vadd.f32 %v1475_v4, %v1209_v47  ;;  %v1424_v7 = vpop.f32.mrb[5].mxu0  ;;  %v1477_v8 = vpop.f32.mrb[5].mxu1 }
 0x6c3   :  { %v6860_v9 = vadd.f32 %v1424_v7, %v1205_v48  ;;  %v6862_v10 = vadd.f32 %v1477_v8, %v1213_v49  ;;  %v1426_v11 = vpop.f32.mrb[6].mxu0  ;;  %v1479_v12 = vpop.f32.mrb[6].mxu1 }
 0x6c4   :  { %v6864_v13 = vadd.f32 %v1426_v11, %v1201_v46  ;;  %v6866_v14 = vadd.f32 %v1479_v12, %v1209_v47  ;;  %v1428_v15 = vpop.f32.mrb[7].mxu0  ;;  %v1481_v16 = vpop.f32.mrb[7].mxu1 }
 0x6c5   :  { %v6868_v17 = vadd.f32 %v1428_v15, %v1205_v48  ;;  %v6870_v18 = vadd.f32 %v1481_v16, %v1213_v49 }
 0x6c6   :  { %5625 = dma.done.wait [#allocation4 + $0x1], 512 }
 0x6c7   :  { %5626 = vsyncadd [#allocation4 + $0x1], 4294966784  ;;  %1819 = vmatprep.mubr.bf16.mxu0 %v7344_v0  ;;  %1872 = vmatprep.mubr.bf16.mxu1 %v7344_v0  ;;  %v3715_v19 = vld [vmem:[#allocation7 + $0x4] ss:$16 sps:$4 sm:$0xff]   ;;  %v3717_v20 = vld [vmem:[#allocation7] ss:$16 sps:$4 sm:$0xff]  }
 0x6c8   :  { %1787 = vmatprep.subr.bf16.mxu0 %v3715_v19  ;;  %v3718_v21 = vld [vmem:[#allocation7 + $0x24] ss:$16 sps:$4 sm:$0xff]   ;;  %v3720_v22 = vld [vmem:[#allocation7 + $0x20] ss:$16 sps:$4 sm:$0xff]   ;;  %v3726_v24 = vld [vmem:[#allocation7 + $0xc] ss:$16 sps:$4 sm:$0xff]  }
 0x6c9   :  { %1788 = vmatpush1.bf16.msra.mxu0 %v3717_v20  ;;  %v3721_v23 = vld [vmem:[#allocation7 + $0x44] ss:$16 sps:$4 sm:$0xff]   ;;  %v3729_v25 = vld [vmem:[#allocation7 + $0x8] ss:$16 sps:$4 sm:$0xff]   ;;  %v3723_v26 = vld [vmem:[#allocation7 + $0x40] ss:$16 sps:$4 sm:$0xff]   ;;  %1840 = vmatprep.subr.bf16.mxu1 %v3726_v24 }
 0x6ca   :  { %1789 = vmatprep.subr.bf16.mxu0 %v3718_v21  ;;  %v3724_v27 = vld [vmem:[#allocation7 + $0x64] ss:$16 sps:$4 sm:$0xff]   ;;  %1841 = vmatpush1.bf16.msra.mxu1 %v3729_v25  ;;  %v3732_v28 = vld [vmem:[#allocation7 + $0x2c] ss:$16 sps:$4 sm:$0xff]   ;;  %v3735_v29 = vld [vmem:[#allocation7 + $0x28] ss:$16 sps:$4 sm:$0xff]  }
 0x6cb   :  { %1842 = vmatprep.subr.bf16.mxu1 %v3732_v28  ;;  %v3728_v30 = vld [vmem:[#allocation7 + $0x60] ss:$16 sps:$4 sm:$0xff]   ;;  %v3730_v31 = vld [vmem:[#allocation7 + $0x84] ss:$16 sps:$4 sm:$0xff]   ;;  %v3738_v32 = vld [vmem:[#allocation7 + $0x4c] ss:$16 sps:$4 sm:$0xff]  }
 0x6cc   :  { %v3741_v33 = vld [vmem:[#allocation7 + $0x48] ss:$16 sps:$4 sm:$0xff]   ;;  %v3744_v34 = vld [vmem:[#allocation7 + $0x6c] ss:$16 sps:$4 sm:$0xff]   ;;  %v3734_v35 = vld [vmem:[#allocation7 + $0x80] ss:$16 sps:$4 sm:$0xff]  }
 0x6cd   :  { %1790 = vmatpush1.bf16.msra.mxu0 %v3720_v22  ;;  %v3736_v36 = vld [vmem:[#allocation7 + $0xa4] ss:$16 sps:$4 sm:$0xff]   ;;  %v3747_v37 = vld [vmem:[#allocation7 + $0x68] ss:$16 sps:$4 sm:$0xff]   ;;  %v3750_v38 = vld [vmem:[#allocation7 + $0x8c] ss:$16 sps:$4 sm:$0xff]  }
 0x6ce   :  { %1791 = vmatprep.subr.bf16.mxu0 %v3721_v23  ;;  %1843 = vmatpush1.bf16.msra.mxu1 %v3735_v29  ;;  %v3740_v39 = vld [vmem:[#allocation7 + $0xa0] ss:$16 sps:$4 sm:$0xff]   ;;  %v3742_v43 = vld [vmem:[#allocation7 + $0xc4] ss:$16 sps:$4 sm:$0xff]   ;;  %v3753_v46 = vld [vmem:[#allocation7 + $0x88] ss:$16 sps:$4 sm:$0xff]  }
 0x6cf   :  { %1844 = vmatprep.subr.bf16.mxu1 %v3738_v32  ;;  %v3754_v47 = vld [vmem:[#allocation7 + $0xac] ss:$16 sps:$4 sm:$0xff]   ;;  %v3746_v48 = vld [vmem:[#allocation7 + $0xc0] ss:$16 sps:$4 sm:$0xff]   ;;  %v3748_v49 = vld [vmem:[#allocation7 + $0xe4] ss:$16 sps:$4 sm:$0xff]  }
 0x6d0   :  { %v3758_v50 = vld [vmem:[#allocation7 + $0xa8] ss:$16 sps:$4 sm:$0xff]   ;;  %v3752_v51 = vld [vmem:[#allocation7 + $0xe0] ss:$16 sps:$4 sm:$0xff]   ;;  %v3760_v54 = vld [vmem:[#allocation7 + $0xcc] ss:$16 sps:$4 sm:$0xff]  }
 0x6d1   :  { %1792 = vmatpush1.bf16.msra.mxu0 %v3723_v26  ;;  %v1567_v55 = vld [vmem:[#allocation2 + $0x20] sm:$0xff]  ;;  %v1568_v58 = vld [vmem:[#allocation2 + $0x28] sm:$0xff]  ;;  %v1569_v15 = vld [vmem:[#allocation2 + $0x30] sm:$0xff]  ;;  %vm5703_vm0 = vmmov 0   ;;  %s5704_s3 = smov [#allocation13]  }
 0x6d2   :  { %1793 = vmatprep.subr.bf16.mxu0 %v3724_v27  ;;  %1845 = vmatpush1.bf16.msra.mxu1 %v3741_v33  ;;  %v6874_v59 = vld [vmem:[#allocation10 + $0x4] ss:$16 sps:$4 sm:$0xff]   ;;  %v3764_v62 = vld [vmem:[#allocation7 + $0xc8] ss:$16 sps:$4 sm:$0xff]   ;;  %v3766_v63 = vld [vmem:[#allocation7 + $0xec] ss:$16 sps:$4 sm:$0xff]   ;;  %v1571_v3 = vpack.c.bf16 %v1568_v58, %v1567_v55 }
 0x6d3   :  { %1846 = vmatprep.subr.bf16.mxu1 %v3744_v34  ;;  %v6876_v4 = vld [vmem:[#allocation10] ss:$16 sps:$4 sm:$0xff]   ;;  %v6878_v7 = vld [vmem:[#allocation10 + $0x24] ss:$16 sps:$4 sm:$0xff]   ;;  %v3770_v8 = vld [vmem:[#allocation7 + $0xe8] ss:$16 sps:$4 sm:$0xff]  }
 0x6d4   :  { %v6881_v11 = vld [vmem:[#allocation10 + $0xc] ss:$16 sps:$4 sm:$0xff]   ;;  %v6883_v12 = vld [vmem:[#allocation10 + $0x20] ss:$16 sps:$4 sm:$0xff]   ;;  %v6888_v19 = vld [vmem:[#allocation10 + $0x44] ss:$16 sps:$4 sm:$0xff]  }
 0x6d5   :  { %1794 = vmatpush1.bf16.msra.mxu0 %v3728_v30  ;;  %v1570_v16 = vld [vmem:[#allocation2 + $0x38] sm:$0xff]  ;;  %v6896_v23 = vld [vmem:[#allocation10 + $0x40] ss:$16 sps:$4 sm:$0xff]   ;;  %v6898_v24 = vld [vmem:[#allocation10 + $0x64] ss:$16 sps:$4 sm:$0xff]   ;;  %s3153_s15 = sshll.u32 %s5704_s3, 4  ;;  %s3154_s15 = int_to_ptr.vmem [resolvable:$true] %s3153_s15 }
 0x6d6   :  { %1795 = vmatprep.subr.bf16.mxu0 %v3730_v31  ;;  %1847 = vmatpush1.bf16.msra.mxu1 %v3747_v37  ;;  %v6890_v20 = vld [vmem:[#allocation10 + $0x8] ss:$16 sps:$4 sm:$0xff]   ;;  %v6893_v21 = vld [vmem:[#allocation10 + $0x2c] ss:$16 sps:$4 sm:$0xff]   ;;  %v1572_v22 = vpack.c.bf16 %v1570_v16, %v1569_v15  ;;  %v6908_v27 = vld [vmem:[#allocation10 + $0x60] ss:$16 sps:$4 sm:$0xff]   ;;  %p5600_p12 = scmp.lt.s32.totalorder %s3154_s15, %s3154_s15 }
 0x6d7   :  { %1848 = vmatprep.subr.bf16.mxu1 %v3750_v38  ;;  %v6902_v25 = vld [vmem:[#allocation10 + $0x28] ss:$16 sps:$4 sm:$0xff]   ;;  %v6905_v26 = vld [vmem:[#allocation10 + $0x4c] ss:$16 sps:$4 sm:$0xff]   ;;  %v6911_v28 = vld [vmem:[#allocation10 + $0x84] ss:$16 sps:$4 sm:$0xff]  }
 0x6d8   :  { %v6913_v29 = vld [vmem:[#allocation10 + $0x48] ss:$16 sps:$4 sm:$0xff]   ;;  %v6918_v30 = vld [vmem:[#allocation10 + $0x6c] ss:$16 sps:$4 sm:$0xff]   ;;  %v6920_v31 = vld [vmem:[#allocation10 + $0x80] ss:$16 sps:$4 sm:$0xff]  }
 0x6d9   :  { %1796 = vmatpush1.bf16.msra.mxu0 %v3734_v35  ;;  %v6923_v32 = vld [vmem:[#allocation10 + $0xa4] ss:$16 sps:$4 sm:$0xff]   ;;  %v6925_v33 = vld [vmem:[#allocation10 + $0x68] ss:$16 sps:$4 sm:$0xff]   ;;  %v6931_v34 = vld [vmem:[#allocation10 + $0x8c] ss:$16 sps:$4 sm:$0xff]  }
 0x6da   :  { %1797 = vmatprep.subr.bf16.mxu0 %v3736_v36  ;;  %1849 = vmatpush1.bf16.msra.mxu1 %v3753_v46  ;;  %v6935_v35 = vld [vmem:[#allocation10 + $0xa0] ss:$16 sps:$4 sm:$0xff]   ;;  %v6938_v36 = vld [vmem:[#allocation10 + $0xc4] ss:$16 sps:$4 sm:$0xff]   ;;  %v6941_v37 = vld [vmem:[#allocation10 + $0x88] ss:$16 sps:$4 sm:$0xff]  }
 0x6db   :  { %1850 = vmatprep.subr.bf16.mxu1 %v3754_v47  ;;  %v6944_v38 = vld [vmem:[#allocation10 + $0xac] ss:$16 sps:$4 sm:$0xff]   ;;  %v6953_v46 = vld [vmem:[#allocation10 + $0xa8] ss:$16 sps:$4 sm:$0xff]  }
 0x6dc   :  { %v6956_v47 = vld [vmem:[#allocation10 + $0xcc] ss:$16 sps:$4 sm:$0xff]  }
 0x6dd   :  { %1798 = vmatpush1.bf16.msra.mxu0 %v3740_v39  ;;  %v6947_v39 = vld [vmem:[#allocation10 + $0xc0] ss:$16 sps:$4 sm:$0xff]  }
 0x6de   :  { %1799 = vmatprep.subr.bf16.mxu0 %v3742_v43  ;;  %1851 = vmatpush1.bf16.msra.mxu1 %v3758_v50  ;;  %v6950_v43 = vld [vmem:[#allocation10 + $0xe4] ss:$16 sps:$4 sm:$0xff]   ;;  %v6966_v50 = vld [vmem:[#allocation10 + $0xec] ss:$16 sps:$4 sm:$0xff]  }
 0x6df   :  { %1852 = vmatprep.subr.bf16.mxu1 %v3760_v54  ;;  %v1605_v54 = vld [vmem:[%s7340_s4] sm:$0xf] }
 0x6e0   :  { %v7017_v55 = vrot.slane %v1605_v54, %v1200_v41  ;;  %v7035_v41 = vrot.slane %v1605_v54, %v1208_v42 }
 0x6e1   :  { %1800 = vmatpush1.bf16.msra.mxu0 %v3746_v48  ;;  %v6959_v48 = vld [vmem:[#allocation10 + $0xe0] ss:$16 sps:$4 sm:$0xff]  }
 0x6e2   :  { %1801 = vmatprep.subr.bf16.mxu0 %v3748_v49  ;;  %1853 = vmatpush1.bf16.msra.mxu1 %v3764_v62  ;;  %v6963_v49 = vld [vmem:[#allocation10 + $0xc8] ss:$16 sps:$4 sm:$0xff]   ;;  %7350 = vst [vmem:[#allocation150_spill] sm:$0xff] %v7017_v55  ;;  %7356 = vst [vmem:[#allocation156_spill] sm:$0xff] %v7035_v41 }
 0x6e3   :  { %1854 = vmatprep.subr.bf16.mxu1 %v3766_v63  ;;  %v7025_v63 = vrot.slane %v1605_v54, %v1204_v44 }
 0x6e5   :  { %1802 = vmatpush1.bf16.msra.mxu0 %v3752_v51  ;;  %v6970_v51 = vld [vmem:[#allocation10 + $0xe8] ss:$16 sps:$4 sm:$0xff]   ;;  %7353 = vst [vmem:[#allocation153_spill] sm:$0xff] %v7025_v63 }
 0x6e6   :  { %2109 = vmatprep.subr.bf16.mxu0 %v6874_v59  ;;  %1855 = vmatpush1.bf16.msra.mxu1 %v3770_v8 }
 0x6e7   :  { %2150 = vmatprep.subr.bf16.mxu1 %v6881_v11 }
 0x6e8   :  { %1820 = vmatmul.mubr.bf16.vlgmr.msra.gmra.mrb[8].mxu0 %v1571_v3 }
 0x6e9   :  { %2110 = vmatpush1.bf16.msra.mxu0 %v6876_v4  ;;  %1829 = vmatprep.mubr.bf16.mxu0 %v7344_v0 }
 0x6ea   :  { %2111 = vmatprep.subr.bf16.mxu0 %v6878_v7  ;;  %1873 = vmatmul.mubr.bf16.vlgmr.msra.gmra.mrb[8].mxu1 %v1571_v3 }
 0x6eb   :  { %2151 = vmatpush1.bf16.msra.mxu1 %v6890_v20  ;;  %1882 = vmatprep.mubr.bf16.mxu1 %v7344_v0 }
 0x6ec   :  { %2152 = vmatprep.subr.bf16.mxu1 %v6893_v21 }
 0x6ed   :  { %2112 = vmatpush1.bf16.msra.mxu0 %v6883_v12 }
 0x6ee   :  { %2113 = vmatprep.subr.bf16.mxu0 %v6888_v19 }
 0x6ef   :  { %2153 = vmatpush1.bf16.msra.mxu1 %v6902_v25 }
 0x6f0   :  { %1830 = vmatmul.mubr.bf16.gmra.mrb[12].mxu0 %v1572_v22  ;;  %2154 = vmatprep.subr.bf16.mxu1 %v6905_v26 }
 0x6f1   :  { %2114 = vmatpush1.bf16.msra.mxu0 %v6896_v23  ;;  %2141 = vmatprep.mubr.bf16.mxu0 %v7344_v0 }
 0x6f2   :  { %2115 = vmatprep.subr.bf16.mxu0 %v6898_v24  ;;  %1883 = vmatmul.mubr.bf16.gmra.mrb[12].mxu1 %v1572_v22 }
 0x6f3   :  { %2155 = vmatpush1.bf16.msra.mxu1 %v6913_v29  ;;  %2182 = vmatprep.mubr.bf16.mxu1 %v7344_v0 }
 0x6f4   :  { %2156 = vmatprep.subr.bf16.mxu1 %v6918_v30 }
 0x6f5   :  { %2116 = vmatpush1.bf16.msra.mxu0 %v6908_v27 }
 0x6f6   :  { %2117 = vmatprep.subr.bf16.mxu0 %v6911_v28 }
 0x6f7   :  { %2157 = vmatpush1.bf16.msra.mxu1 %v6925_v33 }
 0x6f8   :  { %2158 = vmatprep.subr.bf16.mxu1 %v6931_v34 }
 0x6f9   :  { %2118 = vmatpush1.bf16.msra.mxu0 %v6920_v31 }
 0x6fa   :  { %2119 = vmatprep.subr.bf16.mxu0 %v6923_v32 }
 0x6fb   :  { %2159 = vmatpush1.bf16.msra.mxu1 %v6941_v37 }
 0x6fc   :  { %2160 = vmatprep.subr.bf16.mxu1 %v6944_v38 }
 0x6fd   :  { %2120 = vmatpush1.bf16.msra.mxu0 %v6935_v35 }
 0x6fe   :  { %2121 = vmatprep.subr.bf16.mxu0 %v6938_v36 }
 0x6ff   :  { %2161 = vmatpush1.bf16.msra.mxu1 %v6953_v46 }
 0x700   :  { %2162 = vmatprep.subr.bf16.mxu1 %v6956_v47 }
 0x701   :  { %2122 = vmatpush1.bf16.msra.mxu0 %v6947_v39 }
 0x702   :  { %2123 = vmatprep.subr.bf16.mxu0 %v6950_v43 }
 0x703   :  { %2163 = vmatpush1.bf16.msra.mxu1 %v6963_v49 }
 0x704   :  { %2164 = vmatprep.subr.bf16.mxu1 %v6966_v50 }
 0x705   :  { %2124 = vmatpush1.bf16.msra.mxu0 %v6959_v48 }
 0x706   :  { %2224 = vmatprep.subr.bf16.mxu0 %v6874_v59 }
 0x707   :  { %2165 = vmatpush1.bf16.msra.mxu1 %v6970_v51 }
 0x708   :  { %2142 = vmatmul.mubr.bf16.vlgmr.msra.gmra.mrb[16].mxu0 %v7344_v0  ;;  %2265 = vmatprep.subr.bf16.mxu1 %v6881_v11 }
 0x709   :  { %2225 = vmatpush1.bf16.msra.mxu0 %v6876_v4  ;;  %2256 = vmatprep.mubr.bf16.mxu0 %v7344_v0 }
 0x70a   :  { %2226 = vmatprep.subr.bf16.mxu0 %v6878_v7  ;;  %2183 = vmatmul.mubr.bf16.vlgmr.msra.gmra.mrb[16].mxu1 %v7344_v0 }
 0x70b   :  { %2266 = vmatpush1.bf16.msra.mxu1 %v6890_v20  ;;  %2297 = vmatprep.mubr.bf16.mxu1 %v7344_v0  ;;  %v7041_v0 = vrot.slane %v1605_v54, %v1212_v45 }
 0x70c   :  { %2267 = vmatprep.subr.bf16.mxu1 %v6893_v21 }
 0x70d   :  { %2227 = vmatpush1.bf16.msra.mxu0 %v6883_v12  ;;  %7358 = vst [vmem:[#allocation158_spill] sm:$0xff] %v7041_v0 }
 0x70e   :  { %2228 = vmatprep.subr.bf16.mxu0 %v6888_v19 }
 0x70f   :  { %2268 = vmatpush1.bf16.msra.mxu1 %v6902_v25 }
 0x710   :  { %2269 = vmatprep.subr.bf16.mxu1 %v6905_v26 }
 0x711   :  { %2229 = vmatpush1.bf16.msra.mxu0 %v6896_v23 }
 0x712   :  { %2230 = vmatprep.subr.bf16.mxu0 %v6898_v24 }
 0x713   :  { %2270 = vmatpush1.bf16.msra.mxu1 %v6913_v29 }
 0x714   :  { %2271 = vmatprep.subr.bf16.mxu1 %v6918_v30 }
 0x715   :  { %2231 = vmatpush1.bf16.msra.mxu0 %v6908_v27 }
 0x716   :  { %2232 = vmatprep.subr.bf16.mxu0 %v6911_v28 }
 0x717   :  { %2272 = vmatpush1.bf16.msra.mxu1 %v6925_v33 }
 0x718   :  { %2273 = vmatprep.subr.bf16.mxu1 %v6931_v34 }
 0x719   :  { %2233 = vmatpush1.bf16.msra.mxu0 %v6920_v31 }
 0x71a   :  { %2234 = vmatprep.subr.bf16.mxu0 %v6923_v32 }
 0x71b   :  { %2274 = vmatpush1.bf16.msra.mxu1 %v6941_v37 }
 0x71c   :  { %2275 = vmatprep.subr.bf16.mxu1 %v6944_v38 }
 0x71d   :  { %2235 = vmatpush1.bf16.msra.mxu0 %v6935_v35 }
 0x71e   :  { %2236 = vmatprep.subr.bf16.mxu0 %v6938_v36 }
 0x71f   :  { %2276 = vmatpush1.bf16.msra.mxu1 %v6953_v46 }
 0x720   :  { %2277 = vmatprep.subr.bf16.mxu1 %v6956_v47 }
 0x721   :  { %2237 = vmatpush1.bf16.msra.mxu0 %v6947_v39 }
 0x722   :  { %2238 = vmatprep.subr.bf16.mxu0 %v6950_v43 }
 0x723   :  { %2278 = vmatpush1.bf16.msra.mxu1 %v6963_v49 }
 0x724   :  { %2279 = vmatprep.subr.bf16.mxu1 %v6966_v50 }
 0x725   :  { %2239 = vmatpush1.bf16.msra.mxu0 %v6959_v48 }
 0x726   :  { %2339 = vmatprep.subr.bf16.mxu0 %v6874_v59 }
 0x727   :  { %2280 = vmatpush1.bf16.msra.mxu1 %v6970_v51 }
 0x728   :  { %2380 = vmatprep.subr.bf16.mxu1 %v6881_v11 }
 0x7bb   :  { %v7019_v58 = vpop.f32.mrb[8].mxu0 }
 0x7bc   :  { %7351 = vst [vmem:[#allocation151_spill] sm:$0xff] %v7019_v58  ;;  %v7021_v62 = vpop.f32.mrb[9].mxu0 }
 0x7bd   :  { %7352 = vst [vmem:[#allocation152_spill] sm:$0xff] %v7021_v62  ;;  %v1825_v3 = vpop.f32.mrb[10].mxu0  ;;  %v7037_v22 = vpop.f32.mrb[8].mxu1 }
 0x7be   :  { %v7028_v8 = vadd.f32 %v1825_v3, %v7017_v55  ;;  %v1827_v15 = vpop.f32.mrb[11].mxu0  ;;  %7357 = vst [vmem:[#allocation157_spill] sm:$0xff] %v7037_v22  ;;  %v7043_v44 = vpop.f32.mrb[9].mxu1 }
 0x7bf   :  { %v7031_v16 = vadd.f32 %v1827_v15, %v7025_v63  ;;  %7359 = vst [vmem:[#allocation159_spill] sm:$0xff] %v7043_v44  ;;  %v1878_v62 = vpop.f32.mrb[10].mxu1 }
 0x7c0   :  { %7354 = vst [vmem:[#allocation154_spill] sm:$0xff] %v7028_v8  ;;  %v7046_v3 = vadd.f32 %v1878_v62, %v7035_v41  ;;  %v1880_v8 = vpop.f32.mrb[11].mxu1 }
 0x7c1   :  { %7355 = vst [vmem:[#allocation155_spill] sm:$0xff] %v7031_v16  ;;  %v7049_v15 = vadd.f32 %v1880_v8, %v7041_v0 }
 0x7c2   :  { %7360 = vst [vmem:[#allocation160_spill] sm:$0xff] %v7046_v3 }
 0x7c3   :  { %v1831_v58 = vpop.f32.mrb[12].mxu0  ;;  %7361 = vst [vmem:[#allocation161_spill] sm:$0xff] %v7049_v15 }
 0x7c4   :  { %v7052_v42 = vadd.f32 %v1831_v58, %v7017_v55  ;;  %v1833_v16 = vpop.f32.mrb[13].mxu0 }
 0x7c5   :  { %v7055_v22 = vadd.f32 %v1833_v16, %v7025_v63  ;;  %v1835_v40 = vpop.f32.mrb[14].mxu0  ;;  %v1884_v3 = vpop.f32.mrb[12].mxu1 }
 0x7c6   :  { %7362 = vst [vmem:[#allocation162_spill] sm:$0xff] %v7052_v42  ;;  %v7058_v45 = vadd.f32 %v1835_v40, %v7017_v55  ;;  %v1837_v54 = vpop.f32.mrb[15].mxu0  ;;  %v7064_v44 = vadd.f32 %v1884_v3, %v7035_v41  ;;  %v1886_v8 = vpop.f32.mrb[13].mxu1 }
 0x7c7   :  { %7363 = vst [vmem:[#allocation163_spill] sm:$0xff] %v7055_v22  ;;  %v7061_v62 = vadd.f32 %v1837_v54, %v7025_v63  ;;  %v7067_v58 = vadd.f32 %v1886_v8, %v7041_v0  ;;  %v1888_v42 = vpop.f32.mrb[14].mxu1 }
 0x7c8   :  { %7364 = vst [vmem:[#allocation164_spill] sm:$0xff] %v7058_v45  ;;  %7366 = vst [vmem:[#allocation166_spill] sm:$0xff] %v7064_v44  ;;  %v7070_v16 = vadd.f32 %v1888_v42, %v7035_v41  ;;  %v1890_v22 = vpop.f32.mrb[15].mxu1 }
 0x7c9   :  { %7365 = vst [vmem:[#allocation165_spill] sm:$0xff] %v7061_v62  ;;  %7367 = vst [vmem:[#allocation167_spill] sm:$0xff] %v7067_v58  ;;  %v7073_v40 = vadd.f32 %v1890_v22, %v7041_v0 }
 0x7ca   :  { %7368 = vst [vmem:[#allocation168_spill] sm:$0xff] %v7070_v16 }
 0x7cb   :  { %7369 = vst [vmem:[#allocation169_spill] sm:$0xff] %v7073_v40 }
 0x7db   :  { %v2143_v45 = vpop.f32.mrb[16].mxu0 }
 0x7dc   :  { %v2191_v54 = vadd.f32 %v2143_v45, %v6840_v52  ;;  %v2145_v62 = vpop.f32.mrb[17].mxu0 }
 0x7dd   :  { %v2192_v15 = vadd.f32 %v2145_v62, %v6844_v56  ;;  %v2147_v3 = vpop.f32.mrb[18].mxu0  ;;  %v2184_v8 = vpop.f32.mrb[16].mxu1 }
 0x7de   :  { %v3527_v44 = vmul.f32 -1.442695, %v2191_v54  ;;  %v2148_v63 = vpop.f32.mrb[19].mxu0  ;;  %v2186_v58 = vpop.f32.mrb[17].mxu1  ;;  %v2193_v42 = vadd.f32 %v2184_v8, %v6842_v53 }
 0x7df   :  { %v3528_v55 = vmul.f32 -1.442695, %v2192_v15  ;;  %v2188_v16 = vpop.f32.mrb[18].mxu1  ;;  %v2194_v40 = vadd.f32 %v2186_v58, %v6846_v57 }
 0x7e0   :  { %3819 = vpow2.f32 %v3527_v44  ;;  %v2189_v41 = vpop.f32.mrb[19].mxu1  ;;  %v3529_v22 = vmul.f32 -1.442695, %v2193_v42 }
 0x7e1   :  { %3821 = vpow2.f32 %v3528_v55 }
 0x7e2   :  { %3823 = vpow2.f32 %v3529_v22 }
 0x7e3   :  { %3825 = vtanh.f32 %v2194_v40  ;;  %v7370_v40 = vmov 0  }
 0x7ea   :  { %v3820_v0 = vpop.eup %3819 }
 0x7eb   :  { %v3822_v52 = vpop.eup %3821  ;;  %v2204_v45 = vadd.f32 1.0, %v3820_v0 }
 0x7ec   :  { %v2205_v56 = vadd.f32 1.0, %v3822_v52  ;;  %v3824_v63 = vpop.eup %3823 }
 0x7ed   :  { %3827 = vrcp.f32 %v2204_v45  ;;  %v3826_v44 = vpop.eup %3825  ;;  %v2206_v55 = vadd.f32 1.0, %v3824_v63 }
 0x7ee   :  { %3829 = vrcp.f32 %v2205_v56 }
 0x7ef   :  { %3831 = vrcp.f32 %v2206_v55 }
 0x7f7   :  { %v3828_v15 = vpop.eup %3827 }
 0x7f8   :  { %v3830_v62 = vpop.eup %3829  ;;  %v2215_v54 = vmul.f32 %v3828_v15, %v3826_v44 }
 0x7f9   :  { %v2214_v53 = vmul.f32 0.0, %v3830_v62  ;;  %v3832_v57 = vpop.eup %3831 }
 0x7fb   :  { %v7079_v41 = vadd.f32 %v2215_v54, %v2214_v53 }
 0x7fd   :  { %3833 = vtanh.f32 %v7079_v41 }
 0x807   :  { %v3834_v58 = vpop.eup %3833 }
 0x808   :  { %v2218_v16 = vmul.f32 %v3834_v58, %v3832_v57 }
 0x80a   :  { %v2223_v0 = vpack.c.bf16 %v2218_v16, %v2218_v16 }
 0x80c   :  { %2257 = vmatmul.mubr.bf16.vlgmr.msra.gmra.mrb[20].mxu0 %v2223_v0  ;;  %2298 = vmatmul.mubr.bf16.vlgmr.msra.gmra.mrb[20].mxu1 %v2223_v0 }
 0x80d   :  { %2340 = vmatpush1.bf16.msra.mxu0 %v6876_v4  ;;  %2381 = vmatpush1.bf16.msra.mxu1 %v6890_v20 }
 0x80e   :  { %2341 = vmatprep.subr.bf16.mxu0 %v6878_v7  ;;  %2382 = vmatprep.subr.bf16.mxu1 %v6893_v21 }
 0x80f   :  { %2371 = vmatprep.mubr.bf16.mxu0 %v7370_v40  ;;  %2412 = vmatprep.mubr.bf16.mxu1 %v7370_v40 }
 0x811   :  { %2342 = vmatpush1.bf16.msra.mxu0 %v6883_v12  ;;  %2383 = vmatpush1.bf16.msra.mxu1 %v6902_v25 }
 0x812   :  { %2343 = vmatprep.subr.bf16.mxu0 %v6888_v19  ;;  %2384 = vmatprep.subr.bf16.mxu1 %v6905_v26 }
 0x815   :  { %2344 = vmatpush1.bf16.msra.mxu0 %v6896_v23  ;;  %2385 = vmatpush1.bf16.msra.mxu1 %v6913_v29 }
 0x816   :  { %2345 = vmatprep.subr.bf16.mxu0 %v6898_v24  ;;  %2386 = vmatprep.subr.bf16.mxu1 %v6918_v30 }
 0x819   :  { %2346 = vmatpush1.bf16.msra.mxu0 %v6908_v27  ;;  %2387 = vmatpush1.bf16.msra.mxu1 %v6925_v33 }
 0x81a   :  { %2347 = vmatprep.subr.bf16.mxu0 %v6911_v28  ;;  %2388 = vmatprep.subr.bf16.mxu1 %v6931_v34 }
 0x81d   :  { %2348 = vmatpush1.bf16.msra.mxu0 %v6920_v31  ;;  %2389 = vmatpush1.bf16.msra.mxu1 %v6941_v37 }
 0x81e   :  { %2349 = vmatprep.subr.bf16.mxu0 %v6923_v32  ;;  %2390 = vmatprep.subr.bf16.mxu1 %v6944_v38 }
 0x821   :  { %2350 = vmatpush1.bf16.msra.mxu0 %v6935_v35  ;;  %2391 = vmatpush1.bf16.msra.mxu1 %v6953_v46 }
 0x822   :  { %2351 = vmatprep.subr.bf16.mxu0 %v6938_v36  ;;  %2392 = vmatprep.subr.bf16.mxu1 %v6956_v47 }
 0x825   :  { %2352 = vmatpush1.bf16.msra.mxu0 %v6947_v39  ;;  %2393 = vmatpush1.bf16.msra.mxu1 %v6963_v49 }
 0x826   :  { %2353 = vmatprep.subr.bf16.mxu0 %v6950_v43  ;;  %2394 = vmatprep.subr.bf16.mxu1 %v6966_v50 }
 0x829   :  { %2354 = vmatpush1.bf16.msra.mxu0 %v6959_v48  ;;  %2395 = vmatpush1.bf16.msra.mxu1 %v6970_v51 }
 0x82a   :  { %2454 = vmatprep.subr.bf16.mxu0 %v6874_v59  ;;  %2495 = vmatprep.subr.bf16.mxu1 %v6881_v11 }
 0x8df   :  { %v2258_v3 = vpop.f32.mrb[20].mxu0  ;;  %v2299_v8 = vpop.f32.mrb[20].mxu1 }
 0x8e0   :  { %v2306_v42 = vadd.f32 %v2258_v3, %v6848_v60  ;;  %v2260_v22 = vpop.f32.mrb[21].mxu0  ;;  %v2301_v52 = vpop.f32.mrb[21].mxu1  ;;  %v2308_v54 = vadd.f32 %v2299_v8, %v6850_v61 }
 0x8e1   :  { %v2307_v45 = vadd.f32 %v2260_v22, %v6852_v1  ;;  %v2262_v56 = vpop.f32.mrb[22].mxu0  ;;  %v2303_v63 = vpop.f32.mrb[22].mxu1  ;;  %v2309_v53 = vadd.f32 %v2301_v52, %v6854_v2 }
 0x8e2   :  { %v3530_v44 = vmul.f32 -1.442695, %v2306_v42  ;;  %v2263_v15 = vpop.f32.mrb[23].mxu0  ;;  %v2304_v55 = vpop.f32.mrb[23].mxu1  ;;  %v3532_v57 = vmul.f32 -1.442695, %v2308_v54 }
 0x8e3   :  { %v3531_v62 = vmul.f32 -1.442695, %v2307_v45 }
 0x8e4   :  { %3835 = vpow2.f32 %v3530_v44 }
 0x8e5   :  { %3837 = vpow2.f32 %v3531_v62 }
 0x8e6   :  { %3839 = vtanh.f32 %v2309_v53 }
 0x8e7   :  { %3841 = vpow2.f32 %v3532_v57 }
 0x8ee   :  { %v3836_v58 = vpop.eup %3835 }
 0x8ef   :  { %v2319_v16 = vadd.f32 1.0, %v3836_v58  ;;  %v3838_v60 = vpop.eup %3837 }
 0x8f0   :  { %v2320_v1 = vadd.f32 1.0, %v3838_v60  ;;  %v3840_v0 = vpop.eup %3839 }
 0x8f1   :  { %3843 = vrcp.f32 %v2319_v16  ;;  %v3842_v3 = vpop.eup %3841 }
 0x8f2   :  { %3845 = vrcp.f32 %v2320_v1  ;;  %v2321_v56 = vadd.f32 1.0, %v3842_v3 }
 0x8f4   :  { %3847 = vrcp.f32 %v2321_v56 }
 0x8fb   :  { %v3844_v42 = vpop.eup %3843 }
 0x8fc   :  { %v2330_v22 = vmul.f32 %v3844_v42, %v3840_v0  ;;  %v3846_v45 = vpop.eup %3845 }
 0x8fd   :  { %v2329_v63 = vmul.f32 %v3846_v45, %v7079_v41 }
 0x8fe   :  { %v3848_v2 = vpop.eup %3847 }
 0x8ff   :  { %v7121_v61 = vadd.f32 %v2330_v22, %v2329_v63 }
 0x901   :  { %3849 = vtanh.f32 %v7121_v61 }
 0x90b   :  { %v3850_v8 = vpop.eup %3849 }
 0x90c   :  { %v2333_v52 = vmul.f32 %v3850_v8, %v3848_v2 }
 0x90e   :  { %v2338_v44 = vpack.c.bf16 %v2333_v52, %v2333_v52 }
 0x910   :  { %2372 = vmatmul.mubr.bf16.vlgmr.msra.gmra.mrb[24].mxu0 %v2338_v44  ;;  %2413 = vmatmul.mubr.bf16.vlgmr.msra.gmra.mrb[24].mxu1 %v2338_v44 }
 0x911   :  { %2455 = vmatpush1.bf16.msra.mxu0 %v6876_v4  ;;  %2496 = vmatpush1.bf16.msra.mxu1 %v6890_v20 }
 0x912   :  { %2456 = vmatprep.subr.bf16.mxu0 %v6878_v7  ;;  %2497 = vmatprep.subr.bf16.mxu1 %v6893_v21 }
 0x913   :  { %2486 = vmatprep.mubr.bf16.mxu0 %v7370_v40  ;;  %2527 = vmatprep.mubr.bf16.mxu1 %v7370_v40 }
 0x915   :  { %2457 = vmatpush1.bf16.msra.mxu0 %v6883_v12  ;;  %2498 = vmatpush1.bf16.msra.mxu1 %v6902_v25 }
 0x916   :  { %2458 = vmatprep.subr.bf16.mxu0 %v6888_v19  ;;  %2499 = vmatprep.subr.bf16.mxu1 %v6905_v26 }
 0x919   :  { %2459 = vmatpush1.bf16.msra.mxu0 %v6896_v23  ;;  %2500 = vmatpush1.bf16.msra.mxu1 %v6913_v29 }
 0x91a   :  { %2460 = vmatprep.subr.bf16.mxu0 %v6898_v24  ;;  %2501 = vmatprep.subr.bf16.mxu1 %v6918_v30 }
 0x91d   :  { %2461 = vmatpush1.bf16.msra.mxu0 %v6908_v27  ;;  %2502 = vmatpush1.bf16.msra.mxu1 %v6925_v33 }
 0x91e   :  { %2462 = vmatprep.subr.bf16.mxu0 %v6911_v28  ;;  %2503 = vmatprep.subr.bf16.mxu1 %v6931_v34 }
 0x921   :  { %2463 = vmatpush1.bf16.msra.mxu0 %v6920_v31  ;;  %2504 = vmatpush1.bf16.msra.mxu1 %v6941_v37 }
 0x922   :  { %2464 = vmatprep.subr.bf16.mxu0 %v6923_v32  ;;  %2505 = vmatprep.subr.bf16.mxu1 %v6944_v38 }
 0x925   :  { %2465 = vmatpush1.bf16.msra.mxu0 %v6935_v35  ;;  %2506 = vmatpush1.bf16.msra.mxu1 %v6953_v46 }
 0x926   :  { %2466 = vmatprep.subr.bf16.mxu0 %v6938_v36  ;;  %2507 = vmatprep.subr.bf16.mxu1 %v6956_v47 }
 0x929   :  { %2467 = vmatpush1.bf16.msra.mxu0 %v6947_v39  ;;  %2508 = vmatpush1.bf16.msra.mxu1 %v6963_v49 }
 0x92a   :  { %2468 = vmatprep.subr.bf16.mxu0 %v6950_v43  ;;  %2509 = vmatprep.subr.bf16.mxu1 %v6966_v50 }
 0x92d   :  { %2469 = vmatpush1.bf16.msra.mxu0 %v6959_v48  ;;  %2510 = vmatpush1.bf16.msra.mxu1 %v6970_v51 }
 0x92e   :  { %2569 = vmatprep.subr.bf16.mxu0 %v6874_v59  ;;  %2610 = vmatprep.subr.bf16.mxu1 %v6881_v11 }
 0x9e3   :  { %v2373_v41 = vpop.f32.mrb[24].mxu0  ;;  %v2414_v15 = vpop.f32.mrb[24].mxu1 }
 0x9e4   :  { %v2421_v55 = vadd.f32 %v2373_v41, %v6856_v5  ;;  %v2375_v62 = vpop.f32.mrb[25].mxu0  ;;  %v2416_v54 = vpop.f32.mrb[25].mxu1  ;;  %v2423_v3 = vadd.f32 %v2414_v15, %v6858_v6 }
 0x9e5   :  { %v2422_v53 = vadd.f32 %v2375_v62, %v6860_v9  ;;  %v2377_v57 = vpop.f32.mrb[26].mxu0  ;;  %v2418_v58 = vpop.f32.mrb[26].mxu1  ;;  %v2424_v42 = vadd.f32 %v2416_v54, %v6862_v10 }
 0x9e6   :  { %v3533_v16 = vmul.f32 -1.442695, %v2421_v55  ;;  %v2378_v60 = vpop.f32.mrb[27].mxu0  ;;  %v2419_v1 = vpop.f32.mrb[27].mxu1  ;;  %v3535_v22 = vmul.f32 -1.442695, %v2423_v3 }
 0x9e7   :  { %v3534_v0 = vmul.f32 -1.442695, %v2422_v53 }
 0x9e8   :  { %3851 = vpow2.f32 %v3533_v16 }
 0x9e9   :  { %3853 = vpow2.f32 %v3534_v0 }
 0x9ea   :  { %3855 = vtanh.f32 %v2424_v42 }
 0x9eb   :  { %3857 = vpow2.f32 %v3535_v22 }
 0x9f2   :  { %v3852_v45 = vpop.eup %3851 }
 0x9f3   :  { %v2434_v56 = vadd.f32 1.0, %v3852_v45  ;;  %v3854_v5 = vpop.eup %3853 }
 0x9f4   :  { %v2435_v9 = vadd.f32 1.0, %v3854_v5  ;;  %v3856_v63 = vpop.eup %3855 }
 0x9f5   :  { %3859 = vrcp.f32 %v2434_v56  ;;  %v3858_v2 = vpop.eup %3857 }
 0x9f6   :  { %3861 = vrcp.f32 %v2435_v9  ;;  %v2436_v41 = vadd.f32 1.0, %v3858_v2 }
 0x9f8   :  { %3863 = vrcp.f32 %v2436_v41 }
 0x9ff   :  { %v3860_v8 = vpop.eup %3859 }
 0xa00   :  { %v2445_v52 = vmul.f32 %v3860_v8, %v3856_v63  ;;  %v3862_v44 = vpop.eup %3861 }
 0xa01   :  { %v2444_v55 = vmul.f32 %v3862_v44, %v7121_v61 }
 0xa02   :  { %v3864_v10 = vpop.eup %3863 }
 0xa03   :  { %v7163_v6 = vadd.f32 %v2445_v52, %v2444_v55 }
 0xa05   :  { %3865 = vtanh.f32 %v7163_v6 }
 0xa0f   :  { %v3866_v15 = vpop.eup %3865 }
 0xa10   :  { %v2448_v62 = vmul.f32 %v3866_v15, %v3864_v10 }
 0xa12   :  { %v2453_v54 = vpack.c.bf16 %v2448_v62, %v2448_v62 }
 0xa14   :  { %2487 = vmatmul.mubr.bf16.vlgmr.msra.gmra.mrb[28].mxu0 %v2453_v54  ;;  %2528 = vmatmul.mubr.bf16.vlgmr.msra.gmra.mrb[28].mxu1 %v2453_v54 }
 0xa15   :  { %2570 = vmatpush1.bf16.msra.mxu0 %v6876_v4  ;;  %2611 = vmatpush1.bf16.msra.mxu1 %v6890_v20 }
 0xa16   :  { %2571 = vmatprep.subr.bf16.mxu0 %v6878_v7  ;;  %2612 = vmatprep.subr.bf16.mxu1 %v6893_v21 }
 0xa17   :  { %2601 = vmatprep.mubr.bf16.mxu0 %v7370_v40  ;;  %2642 = vmatprep.mubr.bf16.mxu1 %v7370_v40 }
 0xa19   :  { %2572 = vmatpush1.bf16.msra.mxu0 %v6883_v12  ;;  %2613 = vmatpush1.bf16.msra.mxu1 %v6902_v25 }
 0xa1a   :  { %2573 = vmatprep.subr.bf16.mxu0 %v6888_v19  ;;  %2614 = vmatprep.subr.bf16.mxu1 %v6905_v26 }
 0xa1d   :  { %2574 = vmatpush1.bf16.msra.mxu0 %v6896_v23  ;;  %2615 = vmatpush1.bf16.msra.mxu1 %v6913_v29 }
 0xa1e   :  { %2575 = vmatprep.subr.bf16.mxu0 %v6898_v24  ;;  %2616 = vmatprep.subr.bf16.mxu1 %v6918_v30 }
 0xa21   :  { %2576 = vmatpush1.bf16.msra.mxu0 %v6908_v27  ;;  %2617 = vmatpush1.bf16.msra.mxu1 %v6925_v33 }
 0xa22   :  { %2577 = vmatprep.subr.bf16.mxu0 %v6911_v28  ;;  %2618 = vmatprep.subr.bf16.mxu1 %v6931_v34 }
 0xa25   :  { %2578 = vmatpush1.bf16.msra.mxu0 %v6920_v31  ;;  %2619 = vmatpush1.bf16.msra.mxu1 %v6941_v37 }
 0xa26   :  { %2579 = vmatprep.subr.bf16.mxu0 %v6923_v32  ;;  %2620 = vmatprep.subr.bf16.mxu1 %v6944_v38 }
 0xa29   :  { %2580 = vmatpush1.bf16.msra.mxu0 %v6935_v35  ;;  %2621 = vmatpush1.bf16.msra.mxu1 %v6953_v46 }
 0xa2a   :  { %2581 = vmatprep.subr.bf16.mxu0 %v6938_v36  ;;  %2622 = vmatprep.subr.bf16.mxu1 %v6956_v47 }
 0xa2d   :  { %2582 = vmatpush1.bf16.msra.mxu0 %v6947_v39  ;;  %2623 = vmatpush1.bf16.msra.mxu1 %v6963_v49 }
 0xa2e   :  { %2583 = vmatprep.subr.bf16.mxu0 %v6950_v43  ;;  %2624 = vmatprep.subr.bf16.mxu1 %v6966_v50 }
 0xa31   :  { %2584 = vmatpush1.bf16.msra.mxu0 %v6959_v48  ;;  %2625 = vmatpush1.bf16.msra.mxu1 %v6970_v51 }
 0xa32   :  { %2684 = vmatprep.subr.bf16.mxu0 %v6874_v59  ;;  %2725 = vmatprep.subr.bf16.mxu1 %v6881_v11 }
 0xae7   :  { %v2488_v61 = vpop.f32.mrb[28].mxu0  ;;  %v2529_v53 = vpop.f32.mrb[28].mxu1 }
 0xae8   :  { %v2536_v57 = vadd.f32 %v2488_v61, %v6864_v13  ;;  %v2490_v58 = vpop.f32.mrb[29].mxu0  ;;  %v2531_v16 = vpop.f32.mrb[29].mxu1  ;;  %v2538_v56 = vadd.f32 %v2529_v53, %v6866_v14 }
 0xae9   :  { %v2537_v60 = vadd.f32 %v2490_v58, %v6868_v17  ;;  %v2492_v1 = vpop.f32.mrb[30].mxu0  ;;  %v2533_v0 = vpop.f32.mrb[30].mxu1  ;;  %v2539_v5 = vadd.f32 %v2531_v16, %v6870_v18  ;;  %v7376_v58 = vld [vmem:[#allocation152_spill] sm:$0xff] }
 0xaea   :  { %v3536_v3 = vmul.f32 -1.442695, %v2536_v57  ;;  %v2493_v42 = vpop.f32.mrb[31].mxu0  ;;  %v2534_v22 = vpop.f32.mrb[31].mxu1  ;;  %v3538_v9 = vmul.f32 -1.442695, %v2538_v56 }
 0xaeb   :  { %v3537_v45 = vmul.f32 -1.442695, %v2537_v60  ;;  %v7375_v57 = vld [vmem:[#allocation153_spill] sm:$0xff]  ;;  %v7377_v60 = vld [vmem:[#allocation158_spill] sm:$0xff]  ;;  %v7378_v1 = vld [vmem:[#allocation159_spill] sm:$0xff] }
 0xaec   :  { %3867 = vpow2.f32 %v3536_v3  ;;  %v1824_v16 = vadd.f32 %v7376_v58, %v7375_v57  ;;  %v1877_v0 = vadd.f32 %v7378_v1, %v7377_v60  ;;  %v7254_v58 = vld [vmem:[#allocation10] ss:$16 sps:$4 sm:$0xff]   ;;  %v7268_v60 = vld [vmem:[#allocation10 + $0x44] ss:$16 sps:$4 sm:$0xff]  }
 0xaed   :  { %3869 = vpow2.f32 %v3537_v45 }
 0xaee   :  { %3871 = vtanh.f32 %v2539_v5 }
 0xaef   :  { %3873 = vpow2.f32 %v3538_v9 }
 0xaf6   :  { %v3868_v63 = vpop.eup %3867 }
 0xaf7   :  { %v2549_v2 = vadd.f32 1.0, %v3868_v63  ;;  %v3870_v13 = vpop.eup %3869 }
 0xaf8   :  { %v2550_v17 = vadd.f32 1.0, %v3870_v13  ;;  %v3872_v8 = vpop.eup %3871 }
 0xaf9   :  { %3875 = vrcp.f32 %v2549_v2  ;;  %v3874_v52 = vpop.eup %3873 }
 0xafa   :  { %3877 = vrcp.f32 %v2550_v17  ;;  %v2551_v10 = vadd.f32 1.0, %v3874_v52 }
 0xafc   :  { %3879 = vrcp.f32 %v2551_v10 }
 0xb03   :  { %v3876_v44 = vpop.eup %3875 }
 0xb04   :  { %v2560_v41 = vmul.f32 %v3876_v44, %v3872_v8  ;;  %v3878_v55 = vpop.eup %3877 }
 0xb05   :  { %v2559_v15 = vmul.f32 %v3878_v55, %v7163_v6  ;;  %v7374_v6 = vld [vmem:[#allocation157_spill] sm:$0xff] }
 0xb06   :  { %v3880_v18 = vpop.eup %3879 }
 0xb07   :  { %v7205_v14 = vadd.f32 %v2560_v41, %v2559_v15 }
 0xb09   :  { %3881 = vtanh.f32 %v7205_v14 }
 0xb13   :  { %v3882_v62 = vpop.eup %3881 }
 0xb14   :  { %v2563_v54 = vmul.f32 %v3882_v62, %v3880_v18 }
 0xb16   :  { %v2568_v61 = vpack.c.bf16 %v2563_v54, %v2563_v54 }
 0xb18   :  { %2602 = vmatmul.mubr.bf16.vlgmr.msra.gmra.mrb[32].mxu0 %v2568_v61  ;;  %2643 = vmatmul.mubr.bf16.vlgmr.msra.gmra.mrb[32].mxu1 %v2568_v61 }
 0xb19   :  { %2685 = vmatpush1.bf16.msra.mxu0 %v6876_v4  ;;  %2726 = vmatpush1.bf16.msra.mxu1 %v6890_v20  ;;  %v7371_v4 = vld [vmem:[#allocation150_spill] sm:$0xff] }
 0xb1a   :  { %2686 = vmatprep.subr.bf16.mxu0 %v6878_v7  ;;  %2727 = vmatprep.subr.bf16.mxu1 %v6893_v21  ;;  %v7372_v7 = vld [vmem:[#allocation151_spill] sm:$0xff] }
 0xb1b   :  { %2716 = vmatprep.mubr.bf16.mxu0 %v7370_v40  ;;  %2757 = vmatprep.mubr.bf16.mxu1 %v7370_v40 }
 0xb1d   :  { %2687 = vmatpush1.bf16.msra.mxu0 %v6883_v12  ;;  %2728 = vmatpush1.bf16.msra.mxu1 %v6902_v25  ;;  %v1822_v12 = vadd.f32 %v7372_v7, %v7371_v4 }
 0xb1e   :  { %2688 = vmatprep.subr.bf16.mxu0 %v6888_v19  ;;  %2729 = vmatprep.subr.bf16.mxu1 %v6905_v26  ;;  %v7373_v19 = vld [vmem:[#allocation156_spill] sm:$0xff] }
 0xb1f   :  { %v1875_v53 = vadd.f32 %v7374_v6, %v7373_v19 }
 0xb21   :  { %2689 = vmatpush1.bf16.msra.mxu0 %v6896_v23  ;;  %2730 = vmatpush1.bf16.msra.mxu1 %v6913_v29 }
 0xb22   :  { %2690 = vmatprep.subr.bf16.mxu0 %v6898_v24  ;;  %2731 = vmatprep.subr.bf16.mxu1 %v6918_v30 }
 0xb25   :  { %2691 = vmatpush1.bf16.msra.mxu0 %v6908_v27  ;;  %2732 = vmatpush1.bf16.msra.mxu1 %v6925_v33 }
 0xb26   :  { %2692 = vmatprep.subr.bf16.mxu0 %v6911_v28  ;;  %2733 = vmatprep.subr.bf16.mxu1 %v6931_v34 }
 0xb29   :  { %2693 = vmatpush1.bf16.msra.mxu0 %v6920_v31  ;;  %2734 = vmatpush1.bf16.msra.mxu1 %v6941_v37 }
 0xb2a   :  { %2694 = vmatprep.subr.bf16.mxu0 %v6923_v32  ;;  %2735 = vmatprep.subr.bf16.mxu1 %v6944_v38 }
 0xb2d   :  { %2695 = vmatpush1.bf16.msra.mxu0 %v6935_v35  ;;  %2736 = vmatpush1.bf16.msra.mxu1 %v6953_v46 }
 0xb2e   :  { %2696 = vmatprep.subr.bf16.mxu0 %v6938_v36  ;;  %2737 = vmatprep.subr.bf16.mxu1 %v6956_v47 }
 0xb31   :  { %2697 = vmatpush1.bf16.msra.mxu0 %v6947_v39  ;;  %2738 = vmatpush1.bf16.msra.mxu1 %v6963_v49 }
 0xb32   :  { %2698 = vmatprep.subr.bf16.mxu0 %v6950_v43  ;;  %2739 = vmatprep.subr.bf16.mxu1 %v6966_v50 }
 0xb35   :  { %2699 = vmatpush1.bf16.msra.mxu0 %v6959_v48  ;;  %2740 = vmatpush1.bf16.msra.mxu1 %v6970_v51 }
 0xb36   :  { %2799 = vmatprep.subr.bf16.mxu0 %v6874_v59  ;;  %2840 = vmatprep.subr.bf16.mxu1 %v6881_v11 }
 0xbeb   :  { %v2603_v3 = vpop.f32.mrb[32].mxu0  ;;  %v2644_v42 = vpop.f32.mrb[32].mxu1 }
 0xbec   :  { %v2651_v22 = vadd.f32 %v2603_v3, %v1822_v12  ;;  %v2653_v45 = vadd.f32 %v2644_v42, %v1875_v53  ;;  %v2605_v56 = vpop.f32.mrb[33].mxu0  ;;  %v2646_v59 = vpop.f32.mrb[33].mxu1 }
 0xbed   :  { %v2652_v5 = vadd.f32 %v2605_v56, %v1824_v16  ;;  %v2654_v11 = vadd.f32 %v2646_v59, %v1877_v0  ;;  %v2607_v9 = vpop.f32.mrb[34].mxu0  ;;  %v2648_v63 = vpop.f32.mrb[34].mxu1  ;;  %v7258_v16 = vld [vmem:[#allocation10 + $0x24] ss:$16 sps:$4 sm:$0xff]  }
 0xbee   :  { %v3539_v2 = vmul.f32 -1.442695, %v2651_v22  ;;  %v2608_v13 = vpop.f32.mrb[35].mxu0  ;;  %v2649_v17 = vpop.f32.mrb[35].mxu1  ;;  %v3541_v52 = vmul.f32 -1.442695, %v2653_v45 }
 0xbef   :  { %v3540_v8 = vmul.f32 -1.442695, %v2652_v5  ;;  %v3957_v63 = vld [vmem:[#allocation10 + $0x8] ss:$16 sps:$4 sm:$0xff]   ;;  %v3960_v17 = vld [vmem:[#allocation10 + $0x4c] ss:$16 sps:$4 sm:$0xff]  }
 0xbf0   :  { %3883 = vpow2.f32 %v3539_v2  ;;  %v3958_v2 = vld [vmem:[#allocation10 + $0x2c] ss:$16 sps:$4 sm:$0xff]   ;;  %v3959_v13 = vld [vmem:[#allocation10 + $0x28] ss:$16 sps:$4 sm:$0xff]  }
 0xbf1   :  { %3885 = vpow2.f32 %v3540_v8  ;;  %v3961_v8 = vld [vmem:[#allocation10 + $0x40] ss:$16 sps:$4 sm:$0xff]  }
 0xbf2   :  { %3887 = vtanh.f32 %v2654_v11 }
 0xbf3   :  { %3889 = vpow2.f32 %v3541_v52  ;;  %v3962_v52 = vld [vmem:[#allocation10 + $0x48] ss:$16 sps:$4 sm:$0xff]  }
 0xbfa   :  { %v3884_v44 = vpop.eup %3883 }
 0xbfb   :  { %v2664_v41 = vadd.f32 1.0, %v3884_v44  ;;  %v3886_v55 = vpop.eup %3885  ;;  %v3963_v44 = vld [vmem:[#allocation10 + $0x64] ss:$16 sps:$4 sm:$0xff]  }
 0xbfc   :  { %v2665_v10 = vadd.f32 1.0, %v3886_v55  ;;  %v3888_v15 = vpop.eup %3887  ;;  %v3965_v55 = vld [vmem:[#allocation10 + $0x60] ss:$16 sps:$4 sm:$0xff]  }
 0xbfd   :  { %3891 = vrcp.f32 %v2664_v41  ;;  %v3890_v18 = vpop.eup %3889  ;;  %v3964_v41 = vld [vmem:[#allocation10 + $0x6c] ss:$16 sps:$4 sm:$0xff]  }
 0xbfe   :  { %3893 = vrcp.f32 %v2665_v10  ;;  %v2666_v4 = vadd.f32 1.0, %v3890_v18  ;;  %v3966_v10 = vld [vmem:[#allocation10 + $0x68] ss:$16 sps:$4 sm:$0xff]   ;;  %v3969_v18 = vld [vmem:[#allocation10 + $0x80] ss:$16 sps:$4 sm:$0xff]  }
 0xc00   :  { %3895 = vrcp.f32 %v2666_v4  ;;  %v3973_v4 = vld [vmem:[#allocation10 + $0xa0] ss:$16 sps:$4 sm:$0xff]  }
 0xc07   :  { %v3892_v62 = vpop.eup %3891 }
 0xc08   :  { %v2675_v54 = vmul.f32 %v3892_v62, %v3888_v15  ;;  %v3894_v61 = vpop.eup %3893  ;;  %v3968_v15 = vld [vmem:[#allocation10 + $0x8c] ss:$16 sps:$4 sm:$0xff]   ;;  %v3970_v62 = vld [vmem:[#allocation10 + $0x88] ss:$16 sps:$4 sm:$0xff]  }
 0xc09   :  { %v2674_v7 = vmul.f32 %v3894_v61, %v7205_v14  ;;  %v7264_v14 = vld [vmem:[#allocation10 + $0x20] ss:$16 sps:$4 sm:$0xff]   ;;  %v3972_v61 = vld [vmem:[#allocation10 + $0xac] ss:$16 sps:$4 sm:$0xff]  }
 0xc0a   :  { %v3896_v19 = vpop.eup %3895 }
 0xc0b   :  { %v7251_v12 = vadd.f32 %v2675_v54, %v2674_v7  ;;  %v3971_v54 = vld [vmem:[#allocation10 + $0xa4] ss:$16 sps:$4 sm:$0xff]   ;;  %v3974_v7 = vld [vmem:[#allocation10 + $0xa8] ss:$16 sps:$4 sm:$0xff]  }
 0xc0d   :  { %3897 = vtanh.f32 %v7251_v12 }
 0xc17   :  { %v3898_v6 = vpop.eup %3897 }
 0xc18   :  { %v2678_v53 = vmul.f32 %v3898_v6, %v3896_v19  ;;  %v3976_v19 = vld [vmem:[#allocation10 + $0xcc] ss:$16 sps:$4 sm:$0xff]   ;;  %v3977_v6 = vld [vmem:[#allocation10 + $0xc0] ss:$16 sps:$4 sm:$0xff]  }
 0xc1a   :  { %v2683_v57 = vpack.c.bf16 %v2678_v53, %v2678_v53  ;;  %v3978_v53 = vld [vmem:[#allocation10 + $0xc8] ss:$16 sps:$4 sm:$0xff]  }
 0xc1c   :  { %2717 = vmatmul.mubr.bf16.vlgmr.msra.gmra.mrb[36].mxu0 %v2683_v57  ;;  %2758 = vmatmul.mubr.bf16.vlgmr.msra.gmra.mrb[36].mxu1 %v2683_v57  ;;  %v3979_v57 = vld [vmem:[#allocation10 + $0xe4] ss:$16 sps:$4 sm:$0xff]  }
 0xc1d   :  { %2800 = vmatpush1.bf16.msra.mxu0 %v7254_v58  ;;  %2841 = vmatpush1.bf16.msra.mxu1 %v6890_v20  ;;  %v3955_v20 = vld [vmem:[#allocation10 + $0x4] ss:$16 sps:$4 sm:$0xff]  }
 0xc1e   :  { %2801 = vmatprep.subr.bf16.mxu0 %v7258_v16  ;;  %2842 = vmatprep.subr.bf16.mxu1 %v6893_v21  ;;  %v3956_v21 = vld [vmem:[#allocation10 + $0xc] ss:$16 sps:$4 sm:$0xff]  }
 0xc1f   :  { %2831 = vmatprep.mubr.bf16.mxu0 %v7370_v40  ;;  %2872 = vmatprep.mubr.bf16.mxu1 %v7370_v40 }
 0xc21   :  { %2802 = vmatpush1.bf16.msra.mxu0 %v7264_v14  ;;  %2843 = vmatpush1.bf16.msra.mxu1 %v6902_v25  ;;  %v7379_v25 = vld [vmem:[#allocation154_spill] sm:$0xff] }
 0xc22   :  { %2803 = vmatprep.subr.bf16.mxu0 %v7268_v60  ;;  %2844 = vmatprep.subr.bf16.mxu1 %v6905_v26 }
 0xc25   :  { %2804 = vmatpush1.bf16.msra.mxu0 %v6896_v23  ;;  %2845 = vmatpush1.bf16.msra.mxu1 %v6913_v29 }
 0xc26   :  { %2805 = vmatprep.subr.bf16.mxu0 %v6898_v24  ;;  %2846 = vmatprep.subr.bf16.mxu1 %v6918_v30 }
 0xc29   :  { %2806 = vmatpush1.bf16.msra.mxu0 %v6908_v27  ;;  %2847 = vmatpush1.bf16.msra.mxu1 %v6925_v33  ;;  %v7380_v27 = vld [vmem:[#allocation160_spill] sm:$0xff]  ;;  %v7382_v33 = vld [vmem:[#allocation161_spill] sm:$0xff] }
 0xc2a   :  { %2807 = vmatprep.subr.bf16.mxu0 %v6911_v28  ;;  %2848 = vmatprep.subr.bf16.mxu1 %v6931_v34 }
 0xc2d   :  { %2808 = vmatpush1.bf16.msra.mxu0 %v6920_v31  ;;  %2849 = vmatpush1.bf16.msra.mxu1 %v6941_v37  ;;  %v7381_v31 = vld [vmem:[#allocation155_spill] sm:$0xff] }
 0xc2e   :  { %2809 = vmatprep.subr.bf16.mxu0 %v6923_v32  ;;  %2850 = vmatprep.subr.bf16.mxu1 %v6944_v38 }
 0xc31   :  { %2810 = vmatpush1.bf16.msra.mxu0 %v6935_v35  ;;  %2851 = vmatpush1.bf16.msra.mxu1 %v6953_v46 }
 0xc32   :  { %2811 = vmatprep.subr.bf16.mxu0 %v6938_v36  ;;  %2852 = vmatprep.subr.bf16.mxu1 %v6956_v47 }
 0xc35   :  { %2812 = vmatpush1.bf16.msra.mxu0 %v6947_v39  ;;  %2853 = vmatpush1.bf16.msra.mxu1 %v6963_v49 }
 0xc36   :  { %2813 = vmatprep.subr.bf16.mxu0 %v6950_v43  ;;  %2854 = vmatprep.subr.bf16.mxu1 %v6966_v50 }
 0xc39   :  { %2814 = vmatpush1.bf16.msra.mxu0 %v6959_v48  ;;  %2855 = vmatpush1.bf16.msra.mxu1 %v6970_v51 }
 0xc3a   :  { %2914 = vmatprep.subr.bf16.mxu0 %v3955_v20  ;;  %2955 = vmatprep.subr.bf16.mxu1 %v3956_v21  ;;  %v7383_v21 = vld [vmem:[#allocation162_spill] sm:$0xff] }
 0xcef   :  { %v2718_v23 = vpop.f32.mrb[36].mxu0  ;;  %v2759_v24 = vpop.f32.mrb[36].mxu1 }
 0xcf0   :  { %v2766_v26 = vadd.f32 %v2718_v23, %v7379_v25  ;;  %v2768_v28 = vadd.f32 %v2759_v24, %v7380_v27  ;;  %v2720_v29 = vpop.f32.mrb[37].mxu0  ;;  %v2761_v30 = vpop.f32.mrb[37].mxu1  ;;  %v7384_v24 = vld [vmem:[#allocation166_spill] sm:$0xff] }
 0xcf1   :  { %v2767_v32 = vadd.f32 %v2720_v29, %v7381_v31  ;;  %v2769_v34 = vadd.f32 %v2761_v30, %v7382_v33  ;;  %v2722_v35 = vpop.f32.mrb[38].mxu0  ;;  %v2763_v36 = vpop.f32.mrb[38].mxu1  ;;  %v7386_v30 = vld [vmem:[#allocation167_spill] sm:$0xff] }
 0xcf2   :  { %v3542_v37 = vmul.f32 -1.442695, %v2766_v26  ;;  %v2723_v38 = vpop.f32.mrb[39].mxu0  ;;  %v2764_v39 = vpop.f32.mrb[39].mxu1  ;;  %v3544_v46 = vmul.f32 -1.442695, %v2768_v28 }
 0xcf3   :  { %v3543_v43 = vmul.f32 -1.442695, %v2767_v32  ;;  %v7385_v28 = vld [vmem:[#allocation163_spill] sm:$0xff] }
 0xcf4   :  { %3899 = vpow2.f32 %v3542_v37 }
 0xcf5   :  { %3901 = vpow2.f32 %v3543_v43 }
 0xcf6   :  { %3903 = vtanh.f32 %v2769_v34 }
 0xcf7   :  { %3905 = vpow2.f32 %v3544_v46 }
 0xcfe   :  { %v3900_v47 = vpop.eup %3899 }
 0xcff   :  { %v2779_v48 = vadd.f32 1.0, %v3900_v47  ;;  %v3902_v49 = vpop.eup %3901 }
 0xd00   :  { %v2780_v50 = vadd.f32 1.0, %v3902_v49  ;;  %v3904_v51 = vpop.eup %3903 }
 0xd01   :  { %3907 = vrcp.f32 %v2779_v48  ;;  %v3906_v1 = vpop.eup %3905 }
 0xd02   :  { %3909 = vrcp.f32 %v2780_v50  ;;  %v2781_v22 = vadd.f32 1.0, %v3906_v1 }
 0xd04   :  { %3911 = vrcp.f32 %v2781_v22 }
 0xd0b   :  { %v3908_v0 = vpop.eup %3907 }
 0xd0c   :  { %v2790_v3 = vmul.f32 %v3908_v0, %v3904_v51  ;;  %v3910_v42 = vpop.eup %3909 }
 0xd0d   :  { %v2789_v45 = vmul.f32 %v3910_v42, %v7251_v12  ;;  %v3975_v12 = vld [vmem:[#allocation10 + $0xc4] ss:$16 sps:$4 sm:$0xff]  }
 0xd0e   :  { %v3912_v59 = vpop.eup %3911 }
 0xd0f   :  { %v7299_v56 = vadd.f32 %v2790_v3, %v2789_v45 }
 0xd11   :  { %3913 = vtanh.f32 %v7299_v56 }
 0xd1b   :  { %v3914_v5 = vpop.eup %3913 }
 0xd1c   :  { %v2793_v11 = vmul.f32 %v3914_v5, %v3912_v59 }
 0xd1e   :  { %v2798_v9 = vpack.c.bf16 %v2793_v11, %v2793_v11  ;;  %v3811_v11 = vld [vmem:[#allocation12] sm:$0xff]  }
 0xd20   :  { %2832 = vmatmul.mubr.bf16.vlgmr.msra.gmra.mrb[40].mxu0 %v2798_v9  ;;  %2873 = vmatmul.mubr.bf16.vlgmr.msra.gmra.mrb[40].mxu1 %v2798_v9  ;;  %v5702_v9 = vmov 0.0  }
 0xd21   :  { %2915 = vmatpush1.bf16.msra.mxu0 %v7254_v58  ;;  %2956 = vmatpush1.bf16.msra.mxu1 %v3957_v63  ;;  %v3980_v58 = vld [vmem:[#allocation10 + $0xec] ss:$16 sps:$4 sm:$0xff]  }
 0xd22   :  { %2916 = vmatprep.subr.bf16.mxu0 %v7258_v16  ;;  %2957 = vmatprep.subr.bf16.mxu1 %v3958_v2  ;;  %v3981_v16 = vld [vmem:[#allocation10 + $0xe0] ss:$16 sps:$4 sm:$0xff]   ;;  %v3812_v63 = vld [vmem:[#allocation12 + $0x8] sm:$0xff]   ;;  %v3814_v2 = vld [vmem:[#allocation12 + $0x18] sm:$0xff]  }
 0xd23   :  { %2946 = vmatprep.mubr.bf16.mxu0 %v7370_v40  ;;  %2987 = vmatprep.mubr.bf16.mxu1 %v7370_v40  ;;  %v3967_v40 = vld [vmem:[#allocation10 + $0x84] ss:$16 sps:$4 sm:$0xff]  }
 0xd25   :  { %2917 = vmatpush1.bf16.msra.mxu0 %v7264_v14  ;;  %2958 = vmatpush1.bf16.msra.mxu1 %v3959_v13  ;;  %v3982_v14 = vld [vmem:[#allocation10 + $0xe8] ss:$16 sps:$4 sm:$0xff]   ;;  %v3815_v13 = vld [vmem:[#allocation12 + $0x20] sm:$0xff]  }
 0xd26   :  { %2918 = vmatprep.subr.bf16.mxu0 %v7268_v60  ;;  %2959 = vmatprep.subr.bf16.mxu1 %v3960_v17  ;;  %v3816_v17 = vld [vmem:[#allocation12 + $0x28] sm:$0xff]  }
 0xd29   :  { %2919 = vmatpush1.bf16.msra.mxu0 %v3961_v8  ;;  %2960 = vmatpush1.bf16.msra.mxu1 %v3962_v52  ;;  %v3817_v8 = vld [vmem:[#allocation12 + $0x30] sm:$0xff]   ;;  %v3818_v52 = vld [vmem:[#allocation12 + $0x38] sm:$0xff]  }
 0xd2a   :  { %2920 = vmatprep.subr.bf16.mxu0 %v3963_v44  ;;  %2961 = vmatprep.subr.bf16.mxu1 %v3964_v41 }
 0xd2d   :  { %2921 = vmatpush1.bf16.msra.mxu0 %v3965_v55  ;;  %2962 = vmatpush1.bf16.msra.mxu1 %v3966_v10  ;;  %v7387_v55 = vld [vmem:[#allocation164_spill] sm:$0xff] }
 0xd2e   :  { %2922 = vmatprep.subr.bf16.mxu0 %v3967_v40  ;;  %2963 = vmatprep.subr.bf16.mxu1 %v3968_v15  ;;  %v7388_v40 = vld [vmem:[#allocation168_spill] sm:$0xff] }
 0xd31   :  { %2923 = vmatpush1.bf16.msra.mxu0 %v3969_v18  ;;  %2964 = vmatpush1.bf16.msra.mxu1 %v3970_v62 }
 0xd32   :  { %2924 = vmatprep.subr.bf16.mxu0 %v3971_v54  ;;  %2965 = vmatprep.subr.bf16.mxu1 %v3972_v61  ;;  %v7389_v54 = vld [vmem:[#allocation165_spill] sm:$0xff] }
 0xd35   :  { %2925 = vmatpush1.bf16.msra.mxu0 %v3973_v4  ;;  %2966 = vmatpush1.bf16.msra.mxu1 %v3974_v7  ;;  %v7390_v4 = vld [vmem:[#allocation169_spill] sm:$0xff] }
 0xd36   :  { %2926 = vmatprep.subr.bf16.mxu0 %v3975_v12  ;;  %2967 = vmatprep.subr.bf16.mxu1 %v3976_v19 }
 0xd39   :  { %2927 = vmatpush1.bf16.msra.mxu0 %v3977_v6  ;;  %2968 = vmatpush1.bf16.msra.mxu1 %v3978_v53 }
 0xd3a   :  { %2928 = vmatprep.subr.bf16.mxu0 %v3979_v57  ;;  %2969 = vmatprep.subr.bf16.mxu1 %v3980_v58 }
 0xd3d   :  { %2929 = vmatpush1.bf16.msra.mxu0 %v3981_v16  ;;  %2970 = vmatpush1.bf16.msra.mxu1 %v3982_v14 }
 0xd3e   :  { %3571 = vmatprep.subr.bf16.mxu0 %v5702_v9 }
 0xdf3   :  { %v2833_v60 = vpop.f32.mrb[40].mxu0  ;;  %v2874_v20 = vpop.f32.mrb[40].mxu1 }
 0xdf4   :  { %v2881_v23 = vadd.f32 %v2833_v60, %v7383_v21  ;;  %v2883_v25 = vadd.f32 %v2874_v20, %v7384_v24  ;;  %v2835_v26 = vpop.f32.mrb[41].mxu0  ;;  %v2876_v27 = vpop.f32.mrb[41].mxu1 }
 0xdf5   :  { %v2882_v29 = vadd.f32 %v2835_v26, %v7385_v28  ;;  %v2884_v31 = vadd.f32 %v2876_v27, %v7386_v30  ;;  %v2837_v32 = vpop.f32.mrb[42].mxu0  ;;  %v2878_v33 = vpop.f32.mrb[42].mxu1 }
 0xdf6   :  { %v3545_v34 = vmul.f32 -1.442695, %v2881_v23  ;;  %v2838_v35 = vpop.f32.mrb[43].mxu0  ;;  %v2879_v36 = vpop.f32.mrb[43].mxu1  ;;  %v3547_v38 = vmul.f32 -1.442695, %v2883_v25 }
 0xdf7   :  { %v3546_v37 = vmul.f32 -1.442695, %v2882_v29  ;;  %v3551_v35 = vld [vmem:[%s7342_s6] ss:$0 sm:$0xff]  ;;  %s5595_s6 = scalar_lea.vmem %s3154_s15, 128 }
 0xdf8   :  { %3915 = vpow2.f32 %v3545_v34  ;;  %p5596_p11 = scmp.ne.s32.totalorder %s3154_s15, %s5595_s6  ;;  %p5601_p13 = scmp.lt.s32.totalorder %s5595_s6, %s5595_s6 }
 0xdf9   :  { %3917 = vpow2.f32 %v3546_v37 }
 0xdfa   :  { %3919 = vtanh.f32 %v2884_v31  ;;  %p5602_p0 = por %p5601_p13, %p5600_p12 }
 0xdfb   :  { %3921 = vpow2.f32 %v3547_v38 }
 0xdfc   :  { %p5603_p1 = pnand %p5602_p0, %p5596_p11 }
 0xe02   :  { %v3916_v39 = vpop.eup %3915 }
 0xe03   :  { %v2894_v43 = vadd.f32 1.0, %v3916_v39  ;;  %v3918_v46 = vpop.eup %3917 }
 0xe04   :  { %v2895_v47 = vadd.f32 1.0, %v3918_v46  ;;  %v3920_v48 = vpop.eup %3919 }
 0xe05   :  { %3923 = vrcp.f32 %v2894_v43  ;;  %v3922_v49 = vpop.eup %3921 }
 0xe06   :  { %3925 = vrcp.f32 %v2895_v47  ;;  %v2896_v0 = vadd.f32 1.0, %v3922_v49 }
 0xe08   :  { %3927 = vrcp.f32 %v2896_v0 }
 0xe0f   :  { %v3924_v50 = vpop.eup %3923 }
 0xe10   :  { %v2905_v51 = vmul.f32 %v3924_v50, %v3920_v48  ;;  %v3926_v1 = vpop.eup %3925 }
 0xe11   :  { %v2904_v3 = vmul.f32 %v3926_v1, %v7299_v56  ;;  %v3813_v56 = vld [vmem:[#allocation12 + $0x10] sm:$0xff]  }
 0xe12   :  { %v3928_v22 = vpop.eup %3927 }
 0xe13   :  { %v7313_v42 = vadd.f32 %v2905_v51, %v2904_v3 }
 0xe15   :  { %3929 = vtanh.f32 %v7313_v42 }
 0xe1f   :  { %v3930_v45 = vpop.eup %3929 }
 0xe20   :  { %v2908_v59 = vmul.f32 %v3930_v45, %v3928_v22 }
 0xe22   :  { %v2913_v5 = vpack.c.bf16 %v2908_v59, %v2908_v59 }
 0xe24   :  { %2947 = vmatmul.mubr.bf16.vlgmr.msra.gmra.mrb[44].mxu0 %v2913_v5  ;;  %2988 = vmatmul.mubr.bf16.vlgmr.msra.gmra.mrb[44].mxu1 %v2913_v5 }
 0xe25   :  { %3572 = vmatpush3.bf16.msra.mxu0 %v3811_v11  ;;  %3587 = vmatprep.mubr.msk.bf16.mxu0 %vm5703_vm0, %v5702_v9 }
 0xe26   :  { %3573 = vmatprep.subr.bf16.mxu0 %v5702_v9 }
 0xe29   :  { %3574 = vmatpush3.bf16.msra.mxu0 %v3812_v63 }
 0xe2a   :  { %3575 = vmatprep.subr.bf16.mxu0 %v5702_v9 }
 0xe2d   :  { %3576 = vmatpush3.bf16.msra.mxu0 %v3813_v56 }
 0xe2e   :  { %3577 = vmatprep.subr.bf16.mxu0 %v5702_v9 }
 0xe31   :  { %3578 = vmatpush3.bf16.msra.mxu0 %v3814_v2 }
 0xe32   :  { %3579 = vmatprep.subr.bf16.mxu0 %v5702_v9 }
 0xe35   :  { %3580 = vmatpush3.bf16.msra.mxu0 %v3815_v13 }
 0xe36   :  { %3581 = vmatprep.subr.bf16.mxu0 %v5702_v9 }
 0xe39   :  { %3582 = vmatpush3.bf16.msra.mxu0 %v3816_v17 }
 0xe3a   :  { %3583 = vmatprep.subr.bf16.mxu0 %v5702_v9 }
 0xe3d   :  { %3584 = vmatpush3.bf16.msra.mxu0 %v3817_v8 }
 0xe3e   :  { %3585 = vmatprep.subr.bf16.mxu0 %v5702_v9 }
 0xe41   :  { %3586 = vmatpush3.bf16.msra.mxu0 %v3818_v52 }
 0xef7   :  { %v2948_v44 = vpop.f32.mrb[44].mxu0  ;;  %v2989_v41 = vpop.f32.mrb[44].mxu1 }
 0xef8   :  { %v2996_v10 = vadd.f32 %v2948_v44, %v7387_v55  ;;  %v2998_v15 = vadd.f32 %v2989_v41, %v7388_v40  ;;  %v2950_v18 = vpop.f32.mrb[45].mxu0  ;;  %v2991_v62 = vpop.f32.mrb[45].mxu1 }
 0xef9   :  { %v2997_v61 = vadd.f32 %v2950_v18, %v7389_v54  ;;  %v2999_v7 = vadd.f32 %v2991_v62, %v7390_v4  ;;  %v2952_v12 = vpop.f32.mrb[46].mxu0  ;;  %v2993_v19 = vpop.f32.mrb[46].mxu1 }
 0xefa   :  { %v3548_v6 = vmul.f32 -1.442695, %v2996_v10  ;;  %v2953_v53 = vpop.f32.mrb[47].mxu0  ;;  %v2994_v57 = vpop.f32.mrb[47].mxu1  ;;  %v3550_v16 = vmul.f32 -1.442695, %v2998_v15 }
 0xefb   :  { %v3549_v58 = vmul.f32 -1.442695, %v2997_v61 }
 0xefc   :  { %3931 = vpow2.f32 %v3548_v6 }
 0xefd   :  { %3933 = vpow2.f32 %v3549_v58 }
 0xefe   :  { %3935 = vtanh.f32 %v2999_v7 }
 0xeff   :  { %3937 = vpow2.f32 %v3550_v16 }
 0xf06   :  { %v3932_v14 = vpop.eup %3931 }
 0xf07   :  { %v3009_v60 = vadd.f32 1.0, %v3932_v14  ;;  %v3934_v20 = vpop.eup %3933 }
 0xf08   :  { %v3010_v21 = vadd.f32 1.0, %v3934_v20  ;;  %v3936_v23 = vpop.eup %3935 }
 0xf09   :  { %3939 = vrcp.f32 %v3009_v60  ;;  %v3938_v24 = vpop.eup %3937 }
 0xf0a   :  { %3941 = vrcp.f32 %v3010_v21  ;;  %v3011_v28 = vadd.f32 1.0, %v3938_v24 }
 0xf0c   :  { %3943 = vrcp.f32 %v3011_v28 }
 0xf13   :  { %v3940_v25 = vpop.eup %3939 }
 0xf14   :  { %v3020_v26 = vmul.f32 %v3940_v25, %v3936_v23  ;;  %v3942_v27 = vpop.eup %3941 }
 0xf15   :  { %v3019_v29 = vmul.f32 %v3942_v27, %v7313_v42 }
 0xf16   :  { %v3944_v31 = vpop.eup %3943 }
 0xf17   :  { %v3021_v30 = vadd.f32 %v3020_v26, %v3019_v29 }
 0xf19   :  { %3945 = vtanh.f32 %v3021_v30 }
 0xf23   :  { %v3946_v32 = vpop.eup %3945 }
 0xf24   :  { %v3023_v33 = vmul.f32 %v3946_v32, %v3944_v31 }
 0xf26   :  { %v3024_v34 = vpack.c.bf16 %v3023_v33, %v3023_v33 }
 0xf28   :  { %3588 = vmatmul.mubr.bf16.vlgmr.msra.gmra.mrb[48].mxu0 %v3024_v34 }
 0xffb   :  { %v3130_v36 = vpop.f32.mrb[48].mxu0 }
 0xffc   :  { %v3131_v37 = vadd.f32 %v3551_v35, %v3130_v36  ;;  %v3589_v38 = vpop.f32.mrb[49].mxu0 }
 0xffd   :  { %v3133_v39 = vpop.f32.mrb[50].mxu0 }
 0xffe   :  { %3136 = vmax.xlane.f32.xlu0 %v3131_v37  ;;  %v3590_v43 = vpop.f32.mrb[51].mxu0 }
0x108b   :  { %v3137_v46 = vpop.xlane.xlu0 %3136 }
0x108c   :  { %v3138_v47 = vsub.f32 %v3131_v37, %v3137_v46 }
0x108e   :  { %v3139_v48 = vmul.f32 1.442695, %v3138_v47 }
0x1090   :  { %3947 = vpow2.f32 %v3139_v48 }
0x109a   :  { %v3948_v49 = vpop.eup %3947 }
0x109b   :  { %3141 = vadd.xlane.f32.xlu0 %v3948_v49 }
0x1128   :  { %v3142_v50 = vpop.xlane.xlu0 %3141 }
0x1129   :  { %3949 = vlog2.f32 %v3142_v50 }
0x1133   :  { %v3950_v51 = vpop.eup %3949 }
0x1134   :  { %v3144_v1 = vmul.f32 0.6931472, %v3950_v51 }
0x1136   :  { %v3145_v0 = vsub.f32 %v3138_v47, %v3144_v1 }
0x1138   :  { %3146 = vst [vmem:[#allocation13] sm:$0xff] %v3145_v0 }
0x1139   :  { %5606 = shalt.err (!%p5603_p1)
}
0x113a   :  { %s5607_s5 = scalar_lea.hbm %s7343_s7, 128 }
0x113b   :  { %p5608_p2 = scmp.ne.s32.totalorder %s7343_s7, %s5607_s5  ;;  %p5611_p3 = scmp.lt.u32.totalorder %s5607_s5, %s7343_s7 }
0x113d   :  { %p5613_p4 = pnand %p5611_p3, %p5608_p2 }
0x113f   :  { %5616 = shalt.err (!%p5613_p4)
}
0x1140   :  { %3156 = dma.vmem_to_hbm [thread:$0]  %s3154_s15, 128, %s7343_s7, [#allocation9]  }
0x1141   :  { %5627 = dma.done.wait [#allocation9], 128  }
0x1142   :  { %5628 = vsyncadd [#allocation9], 4294967168 }
0x1143   :  { %3160 = vsyncpa [#allocation8], 1 }
0x1144   :  { %3161 = vsyncpa [#allocation11], 1 }
0x1145   :  { %3162 = vsyncpa [#allocation9], 1 }
0x1146   :  { %3163 = vsyncmov [#allocation4] }
0x1149   :  { %s3164_s30 = vpop.sfrf %3163 }
0x114a   :  { %p3560_p5 = scmp.ne.s32.totalorder %s3164_s30, 0 }
0x114c   :  { %3168 = shalt.err (%p3560_p5)  }
0x114d   :  { %3170 = vsyncmov [#allocation4 + $0x1] }
0x1150   :  { %s3171_s11 = vpop.sfrf %3170 }
0x1151   :  { %p3561_p6 = scmp.ne.s32.totalorder %s3171_s11, 0 }
0x1153   :  { %3175 = shalt.err (%p3561_p6)  }

</bundles_post_ra>
